<compile_context>
chip_gen: v7x
topology: tpu7x:2x2x1
jax: 0.10.0
libtpu: 0.0.40
codegen_flags: <defaults>
</compile_context>

<pallas_src>
import functools

import numpy as np
import jax
import jax.numpy as jnp
from jax.experimental import pallas as pl
from jax.experimental.pallas import tpu as pltpu

# ----------------------------- config ---------------------------------------
GROWTH = 8
BLOCK_CONFIG = (6, 12, 24, 16)
BN_SIZE = 4
NUM_INIT = 2 * GROWTH          # init features for configurable-growth densenet
BN_EPS = 1e-5
BOTTLENECK = BN_SIZE * GROWTH  # 32
BOT_PAD = 128                  # bottleneck channels padded to one lane register


def _rup(x, m):
    return ((x + m - 1) // m) * m


# ----------------------------- Pallas kernels -------------------------------
# Kernel 1 (stem): out = relu(bn(patches @ W))   -- BN/ReLU as matmul epilogue.
def _matmul_bnrelu_kernel(a_ref, w_ref, s_ref, t_ref, o_ref):
    y = jnp.dot(a_ref[...], w_ref[...], preferred_element_type=jnp.float32)
    o_ref[...] = jnp.maximum(y * s_ref[...] + t_ref[...], 0.0)


def matmul_bnrelu(a, w, s, t):
    M, K = a.shape
    _, N = w.shape
    return pl.pallas_call(
        _matmul_bnrelu_kernel,
        out_shape=jax.ShapeDtypeStruct((M, N), jnp.float32),
        grid=(1,),
        in_specs=[pl.BlockSpec((M, K), lambda i: (0, 0)),
                  pl.BlockSpec((K, N), lambda i: (0, 0)),
                  pl.BlockSpec((1, N), lambda i: (0, 0)),
                  pl.BlockSpec((1, N), lambda i: (0, 0))],
        out_specs=pl.BlockSpec((M, N), lambda i: (0, 0)),
        compiler_params=pltpu.CompilerParams(
            dimension_semantics=("arbitrary",)),
    )(a, w, s, t)


# Kernel 2: out = relu(bn(x)) @ W  -- BN/ReLU prologue fused into the matmul.
# Used for the three transition 1x1 convs and for the norm5+classifier tail.
def _bnrelu_matmul_kernel(x_ref, s_ref, t_ref, w_ref, o_ref):
    y = jnp.maximum(x_ref[...] * s_ref[...] + t_ref[...], 0.0)
    o_ref[...] = jnp.dot(y, w_ref[...], preferred_element_type=jnp.float32)


def bnrelu_matmul(x, s, t, w):
    M, K = x.shape
    _, N = w.shape
    return pl.pallas_call(
        _bnrelu_matmul_kernel,
        out_shape=jax.ShapeDtypeStruct((M, N), jnp.float32),
        grid=(1,),
        in_specs=[pl.BlockSpec((M, K), lambda i: (0, 0)),
                  pl.BlockSpec((1, K), lambda i: (0, 0)),
                  pl.BlockSpec((1, K), lambda i: (0, 0)),
                  pl.BlockSpec((K, N), lambda i: (0, 0))],
        out_specs=pl.BlockSpec((M, N), lambda i: (0, 0)),
        compiler_params=pltpu.CompilerParams(
            dimension_semantics=("arbitrary",)),
    )(x, s, t, w)


# Kernel 3: one entire DenseNet layer fused into a single pallas_call.
#   x_ref : (rows, Cp)   flattened (B,(H+2),(W+2)) x channel-padded feature map
#   m_ref : (rows, 1)    1.0 on interior rows, 0.0 on the spatial ring
#   w1    : (Cp, 128)    1x1 bottleneck weight (zero-padded)
#   w2    : (9, 128, Cp) 3x3 weight per tap; output cols placed at this layer's
#                        channel offset so x + conv2 implements the concat.
def _dense_layer_kernel(x_ref, m_ref, s1_ref, t1_ref, w1_ref,
                        s2_ref, t2_ref, w2_ref, o_ref, ypad_ref,
                        *, wp, padr, rows):
    x = x_ref[...]                                           # (rows, Cp)
    m = m_ref[...]                                           # (rows, 1)
    # BN1 + ReLU prologue (padded / future channels have scale = shift = 0)
    y1 = jnp.maximum(x * s1_ref[...] + t1_ref[...], 0.0)
    # 1x1 bottleneck conv on the MXU
    y2 = jnp.dot(y1, w1_ref[...], preferred_element_type=jnp.float32)
    # BN2 + ReLU; zeroing ring rows implements conv2's zero padding
    y3 = jnp.maximum(y2 * s2_ref[...] + t2_ref[...], 0.0) * m
    # 3x3 conv as 9 row-shifted 1x1 matmuls over the flattened padded map.
    ypad_ref[...] = jnp.zeros_like(ypad_ref)
    ypad_ref[pl.ds(padr, rows), :] = y3
    acc = jnp.zeros_like(x)
    for tap in range(9):
        di, dj = tap // 3, tap % 3
        off = (di - 1) * wp + (dj - 1)
        acc = acc + jnp.dot(ypad_ref[pl.ds(padr + off, rows), :],
                            w2_ref[tap], preferred_element_type=jnp.float32)
    # New growth channels live in their own (previously all-zero) columns of x,
    # so concat == add; mask keeps the spatial ring exactly zero.
    o_ref[...] = x + acc * m


def dense_layer_call(xf, lp, mask, *, wp, padr, rows, cp):
    kernel = functools.partial(_dense_layer_kernel, wp=wp, padr=padr, rows=rows)
    return pl.pallas_call(
        kernel,
        out_shape=jax.ShapeDtypeStruct((rows, cp), jnp.float32),
        grid=(1,),
        in_specs=[pl.BlockSpec((rows, cp), lambda i: (0, 0)),
                  pl.BlockSpec((rows, 1), lambda i: (0, 0)),
                  pl.BlockSpec((1, cp), lambda i: (0, 0)),
                  pl.BlockSpec((1, cp), lambda i: (0, 0)),
                  pl.BlockSpec((cp, BOT_PAD), lambda i: (0, 0)),
                  pl.BlockSpec((1, BOT_PAD), lambda i: (0, 0)),
                  pl.BlockSpec((1, BOT_PAD), lambda i: (0, 0)),
                  pl.BlockSpec((9, BOT_PAD, cp), lambda i: (0, 0, 0))],
        out_specs=pl.BlockSpec((rows, cp), lambda i: (0, 0)),
        scratch_shapes=[pltpu.VMEM((rows + 2 * padr, BOT_PAD), jnp.float32)],
        input_output_aliases={0: 0},   # grow the feature map in place
        compiler_params=pltpu.CompilerParams(
            dimension_semantics=("arbitrary",)),
    )(xf, mask, lp["s1"], lp["t1"], lp["w1"], lp["s2"], lp["t2"], lp["w2"])


# ----------------------------- XLA glue (tiny, once per stage) ---------------
def _im2col(x, kh, kw, stride, pad):
    """x: (B,H,W,C) -> ((B*oh*ow, kh*kw*C), (B,oh,ow)); patch order (kh,kw,C)."""
    x = jnp.pad(x, ((0, 0), (pad, pad), (pad, pad), (0, 0)))
    B, H, W, C = x.shape
    oh = (H - kh) // stride + 1
    ow = (W - kw) // stride + 1
    cols = []
    for i in range(kh):
        for j in range(kw):
            cols.append(x[:, i:i + stride * oh:stride,
                          j:j + stride * ow:stride, :])
    patches = jnp.concatenate(cols, axis=-1)
    return patches.reshape(B * oh * ow, kh * kw * C), (B, oh, ow)


def max_pool_3x3_s2_p1(x):
    # TODO(synk): pooling windows stay in plain JAX (reduce_window) -- tiny op.
    return jax.lax.reduce_window(
        x, -jnp.inf, jax.lax.max, (1, 3, 3, 1), (1, 2, 2, 1),
        ((0, 0), (1, 1), (1, 1), (0, 0)))


def avg_pool_2x2(x):
    s = jax.lax.reduce_window(
        x, 0.0, jax.lax.add, (1, 2, 2, 1), (1, 2, 2, 1), "VALID")
    return s / 4.0


def _interior_mask(B, H, W):
    """(B*(H+2)*(W+2), 1) f32 constant: 1 on interior rows, 0 on the ring."""
    m = np.zeros((B, H + 2, W + 2, 1), np.float32)
    m[:, 1:H + 1, 1:W + 1, :] = 1.0
    return jnp.asarray(m.reshape(B * (H + 2) * (W + 2), 1))


# ----------------------------- raw (PyTorch-layout) parameters ---------------
def _conv_w(key, kh, kw, cin, cout):
    fan_in = kh * kw * cin
    return jax.random.normal(key, (kh, kw, cin, cout), jnp.float32) * \
        (2.0 / fan_in) ** 0.5


def _bn_p(key, c):
    k1, k2, k3 = jax.random.split(key, 3)
    return dict(
        gamma=1.0 + 0.1 * jax.random.normal(k1, (c,), jnp.float32),
        beta=0.1 * jax.random.normal(k2, (c,), jnp.float32),
        mean=0.1 * jax.random.normal(k3, (c,), jnp.float32),
        var=jnp.ones((c,), jnp.float32),
    )


def init_params(key, n_channels, n_actions):
    keys = iter(jax.random.split(key, 2048))
    p = {}
    p["conv0"] = _conv_w(next(keys), 7, 7, n_channels, NUM_INIT)
    p["norm0"] = _bn_p(next(keys), NUM_INIT)
    p["blocks"], p["transitions"] = [], []
    feats = NUM_INIT
    for bi, n_layers in enumerate(BLOCK_CONFIG):
        layers = []
        for li in range(n_layers):
            cin = feats + li * GROWTH
            layers.append(dict(
                norm1=_bn_p(next(keys), cin),
                conv1=_conv_w(next(keys), 1, 1, cin, BOTTLENECK),
                norm2=_bn_p(next(keys), BOTTLENECK),
                conv2=_conv_w(next(keys), 3, 3, BOTTLENECK, GROWTH),
            ))
        p["blocks"].append(layers)
        feats += n_layers * GROWTH
        if bi != len(BLOCK_CONFIG) - 1:
            p["transitions"].append(dict(
                norm=_bn_p(next(keys), feats),
                conv=_conv_w(next(keys), 1, 1, feats, feats // 2),
            ))
            feats //= 2
    p["norm5"] = _bn_p(next(keys), feats)
    p["fc_w"] = 0.05 * jax.random.normal(next(keys), (feats, n_actions),
                                         jnp.float32)
    p["fc_b"] = jnp.zeros((n_actions,), jnp.float32)
    return p


# ----------------------------- one-time weight packing -----------------------
def _bn_scale_shift(bn):
    scale = bn["gamma"] / jnp.sqrt(bn["var"] + BN_EPS)
    shift = bn["beta"] - bn["mean"] * scale
    return scale, shift


def _place(x, shape):
    out = jnp.zeros(shape, jnp.float32)
    idx = tuple(slice(0, d) for d in x.shape)
    return out.at[idx].set(x.astype(jnp.float32))


def pack_params(raw, n_channels, n_actions):
    """Repack PyTorch-layout weights into padded kernel layout (done ONCE)."""
    packed = {}
    c0p = _rup(NUM_INIT, 128)
    w0 = raw["conv0"].reshape(7 * 7 * n_channels, NUM_INIT)
    s0, t0 = _bn_scale_shift(raw["norm0"])
    packed["w0"] = _place(w0, (_rup(7 * 7 * n_channels, 128), c0p))
    packed["s0"] = _place(s0[None, :], (1, c0p))
    packed["t0"] = _place(t0[None, :], (1, c0p))

    feats = NUM_INIT
    packed["blocks"], packed["transitions"] = [], []
    for bi, n_layers in enumerate(BLOCK_CONFIG):
        feats_end = feats + n_layers * GROWTH
        cp = _rup(feats_end, 128)
        layers = []
        for li in range(n_layers):
            lp = raw["blocks"][bi][li]
            cin = feats + li * GROWTH
            s1, t1 = _bn_scale_shift(lp["norm1"])
            s2, t2 = _bn_scale_shift(lp["norm2"])
            w1 = lp["conv1"].reshape(cin, BOTTLENECK)
            w2 = jnp.zeros((9, BOT_PAD, cp), jnp.float32)
            for tap in range(9):
                di, dj = tap // 3, tap % 3
                w2 = w2.at[tap, :BOTTLENECK, cin:cin + GROWTH].set(
                    lp["conv2"][di, dj])
            layers.append(dict(
                s1=_place(s1[None, :], (1, cp)),
                t1=_place(t1[None, :], (1, cp)),
                w1=_place(w1, (cp, BOT_PAD)),
                s2=_place(s2[None, :], (1, BOT_PAD)),
                t2=_place(t2[None, :], (1, BOT_PAD)),
                w2=w2))
        packed["blocks"].append(layers)
        feats = feats_end
        if bi != len(BLOCK_CONFIG) - 1:
            tp = raw["transitions"][bi]
            s, t = _bn_scale_shift(tp["norm"])
            w = tp["conv"].reshape(feats, feats // 2)
            packed["transitions"].append(dict(
                s=_place(s[None, :], (1, cp)),
                t=_place(t[None, :], (1, cp)),
                w=_place(w, (cp, _rup(feats // 2, 128)))))
            feats //= 2

    s5, t5 = _bn_scale_shift(raw["norm5"])
    cpf = _rup(feats, 128)
    packed["s5"] = _place(s5[None, :], (1, cpf))
    packed["t5"] = _place(t5[None, :], (1, cpf))
    packed["fc"] = _place(raw["fc_w"], (cpf, _rup(n_actions, 128)))
    packed["fc_b"] = raw["fc_b"].astype(jnp.float32)
    return packed


# ----------------------------- forward ---------------------------------------
def vision_dqn_dense_forward(packed, x_nchw):
    # Accept NCHW (PyTorch convention), compute in NHWC / channels-last 2D.
    x = jnp.transpose(x_nchw, (0, 2, 3, 1)).astype(jnp.float32)

    # Stem: one-time XLA im2col + fused conv0+BN+ReLU kernel.
    cols, (B, oh, ow) = _im2col(x, 7, 7, stride=2, pad=3)
    kp = packed["w0"].shape[0]
    if cols.shape[1] < kp:
        cols = jnp.pad(cols, ((0, 0), (0, kp - cols.shape[1])))
    y = matmul_bnrelu(cols, packed["w0"], packed["s0"], packed["t0"])
    x = y.reshape(B, oh, ow, y.shape[-1])
    x = max_pool_3x3_s2_p1(x)

    n_blocks = len(packed["blocks"])
    for bi in range(n_blocks):
        layers = packed["blocks"][bi]
        cp = layers[0]["w1"].shape[0]               # static, from packed shapes
        Bb, H, W, C = x.shape
        if C < cp:                                  # once per block boundary
            x = jnp.pad(x, ((0, 0), (0, 0), (0, 0), (0, cp - C)))
        # Persistent block layout: zero spatial ring + channel pad, flattened.
        xf = jnp.pad(x, ((0, 0), (1, 1), (1, 1), (0, 0))).reshape(-1, cp)
        rows = Bb * (H + 2) * (W + 2)
        mask = _interior_mask(Bb, H, W)
        padr = _rup(W + 3, 8)
        for lp in layers:
            xf = dense_layer_call(xf, lp, mask, wp=W + 2, padr=padr,
                                  rows=rows, cp=cp)
        if bi != n_blocks - 1:
            tp = packed["transitions"][bi]
            yt = bnrelu_matmul(xf, tp["s"], tp["t"], tp["w"])  # (rows, 128)
            yt = yt.reshape(Bb, H + 2, W + 2, -1)[:, 1:H + 1, 1:W + 1, :]
            x = avg_pool_2x2(yt)
        else:
            # norm5 + ReLU + classifier matmul fused; adaptive_avg_pool2d(1,1)
            # commutes with the linear layer, so pool the per-pixel logits.
            xi = xf.reshape(Bb, H + 2, W + 2, cp)[:, 1:H + 1, 1:W + 1, :]
            xi = xi.reshape(Bb * H * W, cp)
            z = bnrelu_matmul(xi, packed["s5"], packed["t5"], packed["fc"])
            z = z.reshape(Bb, H * W, -1).mean(axis=1)
            na = packed["fc_b"].shape[0]
            return z[:, :na] + packed["fc_b"]       # (B, n_actions)


# ----------------------------- demo -------------------------------------------
if __name__ == "__main__":
    B, C, H, W = 2, 4, 32, 32   # 32x32 is the smallest spatial size that
    n_actions = 8               # survives DenseNet-121's 5 downsamplings.
    key = jax.random.PRNGKey(0)
    kp, kx = jax.random.split(key)
    raw = init_params(kp, C, n_actions)
    params = pack_params(raw, C, n_actions)   # pad/repack weights exactly once
    x = jax.random.normal(kx, (B, C, H, W), jnp.float32)

    fwd = jax.jit(vision_dqn_dense_forward)
    out = jax.block_until_ready(fwd(params, x))
    assert out.shape == (B, n_actions), out.shape
    assert bool(jnp.all(jnp.isfinite(out)))
    print("KERNEL_OK")
</pallas_src>

<mosaic_0001>
module attributes {stable_mosaic.version = 11 : i64} {
  func.func @_matmul_bnrelu_kernel(%arg0: i32, %arg1: memref<512x256xf32, #tpu.memory_space<vmem>>, %arg2: memref<256x128xf32, #tpu.memory_space<vmem>>, %arg3: memref<1x128xf32, #tpu.memory_space<vmem>>, %arg4: memref<1x128xf32, #tpu.memory_space<vmem>>, %arg5: memref<512x128xf32, #tpu.memory_space<vmem>>) attributes {dimension_semantics = [#tpu.dimension_semantics<arbitrary>], iteration_bounds = array<i64: 1>, scalar_prefetch = 0 : i64, scratch_operands = 0 : i64, tpu.core_type = #tpu.core_type<tc>, window_params = [{pipeline_mode = #tpu.pipeline_mode<synchronous>, transform_indices = @transform_0, window_bounds = array<i64: 512, 256>}, {pipeline_mode = #tpu.pipeline_mode<synchronous>, transform_indices = @transform_1, window_bounds = array<i64: 256, 128>}, {pipeline_mode = #tpu.pipeline_mode<synchronous>, transform_indices = @transform_2, window_bounds = array<i64: 1, 128>}, {pipeline_mode = #tpu.pipeline_mode<synchronous>, transform_indices = @transform_3, window_bounds = array<i64: 1, 128>}, {pipeline_mode = #tpu.pipeline_mode<synchronous>, transform_indices = @transform_4, window_bounds = array<i64: 512, 128>}]} {
    %c0 = arith.constant 0 : index
    %c0_0 = arith.constant 0 : index
    %0 = vector.load %arg1[%c0, %c0_0] : memref<512x256xf32, #tpu.memory_space<vmem>>, vector<512x256xf32>
    %c0_1 = arith.constant 0 : index
    %c0_2 = arith.constant 0 : index
    %1 = vector.load %arg2[%c0_1, %c0_2] : memref<256x128xf32, #tpu.memory_space<vmem>>, vector<256x128xf32>
    %cst = arith.constant dense<0.000000e+00> : vector<512x128xf32>
    %2 = tpu.matmul %0, %1, %cst {dimension_numbers = #tpu.dot_dimension_numbers<[1], [0], [0], [1], [0, 0, 1, 1], [], []>} : vector<512x256xf32>, vector<256x128xf32>, vector<512x128xf32> -> vector<512x128xf32>
    %c0_3 = arith.constant 0 : index
    %c0_4 = arith.constant 0 : index
    %3 = vector.load %arg3[%c0_3, %c0_4] : memref<1x128xf32, #tpu.memory_space<vmem>>, vector<1x128xf32>
    %4 = vector.broadcast %3 : vector<1x128xf32> to vector<512x128xf32>
    %5 = arith.mulf %2, %4 : vector<512x128xf32>
    %c0_5 = arith.constant 0 : index
    %c0_6 = arith.constant 0 : index
    %6 = vector.load %arg4[%c0_5, %c0_6] : memref<1x128xf32, #tpu.memory_space<vmem>>, vector<1x128xf32>
    %7 = vector.broadcast %6 : vector<1x128xf32> to vector<512x128xf32>
    %8 = arith.addf %5, %7 : vector<512x128xf32>
    %cst_7 = arith.constant 0.000000e+00 : f32
    %9 = vector.broadcast %cst_7 : f32 to vector<512x128xf32>
    %10 = arith.maximumf %8, %9 : vector<512x128xf32>
    %c0_8 = arith.constant 0 : index
    %c0_9 = arith.constant 0 : index
    %11 = vector.load %arg5[%c0_8, %c0_9] : memref<512x128xf32, #tpu.memory_space<vmem>>, vector<512x128xf32>
    tpu.vector_store %arg5[%c0_8, %c0_9], %10 {strides = array<i32>} : memref<512x128xf32, #tpu.memory_space<vmem>>, vector<512x128xf32>,
    return
  }
  func.func @transform_0(%arg0: i32) -> (i32, i32) {
    %c0_i32 = arith.constant 0 : i32
    %c0_i32_0 = arith.constant 0 : i32
    %c0_i32_1 = arith.constant 0 : i32
    return %c0_i32, %c0_i32_0 : i32, i32
  }
  func.func @transform_1(%arg0: i32) -> (i32, i32) {
    %c0_i32 = arith.constant 0 : i32
    %c0_i32_0 = arith.constant 0 : i32
    %c0_i32_1 = arith.constant 0 : i32
    return %c0_i32, %c0_i32_0 : i32, i32
  }
  func.func @transform_2(%arg0: i32) -> (i32, i32) {
    %c0_i32 = arith.constant 0 : i32
    %c0_i32_0 = arith.constant 0 : i32
    %c0_i32_1 = arith.constant 0 : i32
    return %c0_i32, %c0_i32_0 : i32, i32
  }
  func.func @transform_3(%arg0: i32) -> (i32, i32) {
    %c0_i32 = arith.constant 0 : i32
    %c0_i32_0 = arith.constant 0 : i32
    %c0_i32_1 = arith.constant 0 : i32
    return %c0_i32, %c0_i32_0 : i32, i32
  }
  func.func @transform_4(%arg0: i32) -> (i32, i32) {
    %c0_i32 = arith.constant 0 : i32
    %c0_i32_0 = arith.constant 0 : i32
    %c0_i32_1 = arith.constant 0 : i32
    return %c0_i32, %c0_i32_0 : i32, i32
  }
}

module attributes {stable_mosaic.version = 11 : i64} {
  func.func @_dense_layer_kernel(%arg0: i32, %arg1: memref<200x128xf32, #tpu.memory_space<vmem>>, %arg2: memref<200x1xf32, #tpu.memory_space<vmem>>, %arg3: memref<1x128xf32, #tpu.memory_space<vmem>>, %arg4: memref<1x128xf32, #tpu.memory_space<vmem>>, %arg5: memref<128x128xf32, #tpu.memory_space<vmem>>, %arg6: memref<1x128xf32, #tpu.memory_space<vmem>>, %arg7: memref<1x128xf32, #tpu.memory_space<vmem>>, %arg8: memref<9x128x128xf32, #tpu.memory_space<vmem>>, %arg9: memref<200x128xf32, #tpu.memory_space<vmem>>, %arg10: memref<232x128xf32, #tpu.memory_space<vmem>>) attributes {dimension_semantics = [#tpu.dimension_semantics<arbitrary>], iteration_bounds = array<i64: 1>, scalar_prefetch = 0 : i64, scratch_operands = 1 : i64, tpu.core_type = #tpu.core_type<tc>, window_params = [{pipeline_mode = #tpu.pipeline_mode<synchronous>, transform_indices = @transform_0, window_bounds = array<i64: 200, 128>}, {pipeline_mode = #tpu.pipeline_mode<synchronous>, transform_indices = @transform_1, window_bounds = array<i64: 200, 1>}, {pipeline_mode = #tpu.pipeline_mode<synchronous>, transform_indices = @transform_2, window_bounds = array<i64: 1, 128>}, {pipeline_mode = #tpu.pipeline_mode<synchronous>, transform_indices = @transform_3, window_bounds = array<i64: 1, 128>}, {pipeline_mode = #tpu.pipeline_mode<synchronous>, transform_indices = @transform_4, window_bounds = array<i64: 128, 128>}, {pipeline_mode = #tpu.pipeline_mode<synchronous>, transform_indices = @transform_5, window_bounds = array<i64: 1, 128>}, {pipeline_mode = #tpu.pipeline_mode<synchronous>, transform_indices = @transform_6, window_bounds = array<i64: 1, 128>}, {pipeline_mode = #tpu.pipeline_mode<synchronous>, transform_indices = @transform_7, window_bounds = array<i64: 9, 128, 128>}, {pipeline_mode = #tpu.pipeline_mode<synchronous>, transform_indices = @transform_8, window_bounds = array<i64: 200, 128>}]} {
    %c0 = arith.constant 0 : index
    %c0_0 = arith.constant 0 : index
    %0 = vector.load %arg1[%c0, %c0_0] : memref<200x128xf32, #tpu.memory_space<vmem>>, vector<200x128xf32>
    %c0_1 = arith.constant 0 : index
    %c0_2 = arith.constant 0 : index
    %1 = vector.load %arg2[%c0_1, %c0_2] : memref<200x1xf32, #tpu.memory_space<vmem>>, vector<200x1xf32>
    %c0_3 = arith.constant 0 : index
    %c0_4 = arith.constant 0 : index
    %2 = vector.load %arg3[%c0_3, %c0_4] : memref<1x128xf32, #tpu.memory_space<vmem>>, vector<1x128xf32>
    %3 = vector.broadcast %2 : vector<1x128xf32> to vector<200x128xf32>
    %4 = arith.mulf %0, %3 : vector<200x128xf32>
    %c0_5 = arith.constant 0 : index
    %c0_6 = arith.constant 0 : index
    %5 = vector.load %arg4[%c0_5, %c0_6] : memref<1x128xf32, #tpu.memory_space<vmem>>, vector<1x128xf32>
    %6 = vector.broadcast %5 : vector<1x128xf32> to vector<200x128xf32>
    %7 = arith.addf %4, %6 : vector<200x128xf32>
    %cst = arith.constant 0.000000e+00 : f32
    %8 = vector.broadcast %cst : f32 to vector<200x128xf32>
    %9 = arith.maximumf %7, %8 : vector<200x128xf32>
    %c0_7 = arith.constant 0 : index
    %c0_8 = arith.constant 0 : index
    %10 = vector.load %arg5[%c0_7, %c0_8] : memref<128x128xf32, #tpu.memory_space<vmem>>, vector<128x128xf32>
    %cst_9 = arith.constant dense<0.000000e+00> : vector<200x128xf32>
    %11 = tpu.matmul %9, %10, %cst_9 {dimension_numbers = #tpu.dot_dimension_numbers<[1], [0], [0], [1], [0, 0, 1, 1], [], []>} : vector<200x128xf32>, vector<128x128xf32>, vector<200x128xf32> -> vector<200x128xf32>
    %c0_10 = arith.constant 0 : index
    %c0_11 = arith.constant 0 : index
    %12 = vector.load %arg6[%c0_10, %c0_11] : memref<1x128xf32, #tpu.memory_space<vmem>>, vector<1x128xf32>
    %13 = vector.broadcast %12 : vector<1x128xf32> to vector<200x128xf32>
    %14 = arith.mulf %11, %13 : vector<200x128xf32>
    %c0_12 = arith.constant 0 : index
    %c0_13 = arith.constant 0 : index
    %15 = vector.load %arg7[%c0_12, %c0_13] : memref<1x128xf32, #tpu.memory_space<vmem>>, vector<1x128xf32>
    %16 = vector.broadcast %15 : vector<1x128xf32> to vector<200x128xf32>
    %17 = arith.addf %14, %16 : vector<200x128xf32>
    %cst_14 = arith.constant 0.000000e+00 : f32
    %18 = vector.broadcast %cst_14 : f32 to vector<200x128xf32>
    %19 = arith.maximumf %17, %18 : vector<200x128xf32>
    %20 = vector.broadcast %1 : vector<200x1xf32> to vector<200x128xf32>
    %21 = arith.mulf %19, %20 : vector<200x128xf32>
    %cst_15 = arith.constant 0.000000e+00 : f32
    %22 = vector.broadcast %cst_15 : f32 to vector<232x128xf32>
    %c0_16 = arith.constant 0 : index
    %c0_17 = arith.constant 0 : index
    %23 = vector.load %arg10[%c0_16, %c0_17] : memref<232x128xf32, #tpu.memory_space<vmem>>, vector<232x128xf32>
    tpu.vector_store %arg10[%c0_16, %c0_17], %22 {strides = array<i32>} : memref<232x128xf32, #tpu.memory_space<vmem>>, vector<232x128xf32>,
    %c16 = arith.constant 16 : index
    %c0_18 = arith.constant 0 : index
    %24 = vector.load %arg10[%c16, %c0_18] : memref<232x128xf32, #tpu.memory_space<vmem>>, vector<200x128xf32>
    tpu.vector_store %arg10[%c16, %c0_18], %21 {strides = array<i32>} : memref<232x128xf32, #tpu.memory_space<vmem>>, vector<200x128xf32>,
    %cst_19 = arith.constant 0.000000e+00 : f32
    %25 = vector.broadcast %cst_19 : f32 to vector<200x128xf32>
    %c5 = arith.constant 5 : index
    %c0_20 = arith.constant 0 : index
    %26 = vector.load %arg10[%c5, %c0_20] : memref<232x128xf32, #tpu.memory_space<vmem>>, vector<200x128xf32>
    %c0_21 = arith.constant 0 : index
    %c0_22 = arith.constant 0 : index
    %c0_23 = arith.constant 0 : index
    %27 = vector.load %arg8[%c0_21, %c0_22, %c0_23] : memref<9x128x128xf32, #tpu.memory_space<vmem>>, vector<1x128x128xf32>
    %28 = vector.shape_cast %27 : vector<1x128x128xf32> to vector<128x128xf32>
    %cst_24 = arith.constant dense<0.000000e+00> : vector<200x128xf32>
    %29 = tpu.matmul %26, %28, %cst_24 {dimension_numbers = #tpu.dot_dimension_numbers<[1], [0], [0], [1], [0, 0, 1, 1], [], []>} : vector<200x128xf32>, vector<128x128xf32>, vector<200x128xf32> -> vector<200x128xf32>
    %30 = arith.addf %25, %29 : vector<200x128xf32>
    %c6 = arith.constant 6 : index
    %c0_25 = arith.constant 0 : index
    %31 = vector.load %arg10[%c6, %c0_25] : memref<232x128xf32, #tpu.memory_space<vmem>>, vector<200x128xf32>
    %c1 = arith.constant 1 : index
    %c0_26 = arith.constant 0 : index
    %c0_27 = arith.constant 0 : index
    %32 = vector.load %arg8[%c1, %c0_26, %c0_27] : memref<9x128x128xf32, #tpu.memory_space<vmem>>, vector<1x128x128xf32>
    %33 = vector.shape_cast %32 : vector<1x128x128xf32> to vector<128x128xf32>
    %cst_28 = arith.constant dense<0.000000e+00> : vector<200x128xf32>
    %34 = tpu.matmul %31, %33, %cst_28 {dimension_numbers = #tpu.dot_dimension_numbers<[1], [0], [0], [1], [0, 0, 1, 1], [], []>} : vector<200x128xf32>, vector<128x128xf32>, vector<200x128xf32> -> vector<200x128xf32>
    %35 = arith.addf %30, %34 : vector<200x128xf32>
    %c7 = arith.constant 7 : index
    %c0_29 = arith.constant 0 : index
    %36 = vector.load %arg10[%c7, %c0_29] : memref<232x128xf32, #tpu.memory_space<vmem>>, vector<200x128xf32>
    %c2 = arith.constant 2 : index
    %c0_30 = arith.constant 0 : index
    %c0_31 = arith.constant 0 : index
    %37 = vector.load %arg8[%c2, %c0_30, %c0_31] : memref<9x128x128xf32, #tpu.memory_space<vmem>>, vector<1x128x128xf32>
    %38 = vector.shape_cast %37 : vector<1x128x128xf32> to vector<128x128xf32>
    %cst_32 = arith.constant dense<0.000000e+00> : vector<200x128xf32>
    %39 = tpu.matmul %36, %38, %cst_32 {dimension_numbers = #tpu.dot_dimension_numbers<[1], [0], [0], [1], [0, 0, 1, 1], [], []>} : vector<200x128xf32>, vector<128x128xf32>, vector<200x128xf32> -> vector<200x128xf32>
    %40 = arith.addf %35, %39 : vector<200x128xf32>
    %c15 = arith.constant 15 : index
    %c0_33 = arith.constant 0 : index
    %41 = vector.load %arg10[%c15, %c0_33] : memref<232x128xf32, #tpu.memory_space<vmem>>, vector<200x128xf32>
    %c3 = arith.constant 3 : index
    %c0_34 = arith.constant 0 : index
    %c0_35 = arith.constant 0 : index
    %42 = vector.load %arg8[%c3, %c0_34, %c0_35] : memref<9x128x128xf32, #tpu.memory_space<vmem>>, vector<1x128x128xf32>
    %43 = vector.shape_cast %42 : vector<1x128x128xf32> to vector<128x128xf32>
    %cst_36 = arith.constant dense<0.000000e+00> : vector<200x128xf32>
    %44 = tpu.matmul %41, %43, %cst_36 {dimension_numbers = #tpu.dot_dimension_numbers<[1], [0], [0], [1], [0, 0, 1, 1], [], []>} : vector<200x128xf32>, vector<128x128xf32>, vector<200x128xf32> -> vector<200x128xf32>
    %45 = arith.addf %40, %44 : vector<200x128xf32>
    %c16_37 = arith.constant 16 : index
    %c0_38 = arith.constant 0 : index
    %46 = vector.load %arg10[%c16_37, %c0_38] : memref<232x128xf32, #tpu.memory_space<vmem>>, vector<200x128xf32>
    %c4 = arith.constant 4 : index
    %c0_39 = arith.constant 0 : index
    %c0_40 = arith.constant 0 : index
    %47 = vector.load %arg8[%c4, %c0_39, %c0_40] : memref<9x128x128xf32, #tpu.memory_space<vmem>>, vector<1x128x128xf32>
    %48 = vector.shape_cast %47 : vector<1x128x128xf32> to vector<128x128xf32>
    %cst_41 = arith.constant dense<0.000000e+00> : vector<200x128xf32>
    %49 = tpu.matmul %46, %48, %cst_41 {dimension_numbers = #tpu.dot_dimension_numbers<[1], [0], [0], [1], [0, 0, 1, 1], [], []>} : vector<200x128xf32>, vector<128x128xf32>, vector<200x128xf32> -> vector<200x128xf32>
    %50 = arith.addf %45, %49 : vector<200x128xf32>
    %c17 = arith.constant 17 : index
    %c0_42 = arith.constant 0 : index
    %51 = vector.load %arg10[%c17, %c0_42] : memref<232x128xf32, #tpu.memory_space<vmem>>, vector<200x128xf32>
    %c5_43 = arith.constant 5 : index
    %c0_44 = arith.constant 0 : index
    %c0_45 = arith.constant 0 : index
    %52 = vector.load %arg8[%c5_43, %c0_44, %c0_45] : memref<9x128x128xf32, #tpu.memory_space<vmem>>, vector<1x128x128xf32>
    %53 = vector.shape_cast %52 : vector<1x128x128xf32> to vector<128x128xf32>
    %cst_46 = arith.constant dense<0.000000e+00> : vector<200x128xf32>
    %54 = tpu.matmul %51, %53, %cst_46 {dimension_numbers = #tpu.dot_dimension_numbers<[1], [0], [0], [1], [0, 0, 1, 1], [], []>} : vector<200x128xf32>, vector<128x128xf32>, vector<200x128xf32> -> vector<200x128xf32>
    %55 = arith.addf %50, %54 : vector<200x128xf32>
    %c25 = arith.constant 25 : index
    %c0_47 = arith.constant 0 : index
    %56 = vector.load %arg10[%c25, %c0_47] : memref<232x128xf32, #tpu.memory_space<vmem>>, vector<200x128xf32>
    %c6_48 = arith.constant 6 : index
    %c0_49 = arith.constant 0 : index
    %c0_50 = arith.constant 0 : index
    %57 = vector.load %arg8[%c6_48, %c0_49, %c0_50] : memref<9x128x128xf32, #tpu.memory_space<vmem>>, vector<1x128x128xf32>
    %58 = vector.shape_cast %57 : vector<1x128x128xf32> to vector<128x128xf32>
    %cst_51 = arith.constant dense<0.000000e+00> : vector<200x128xf32>
    %59 = tpu.matmul %56, %58, %cst_51 {dimension_numbers = #tpu.dot_dimension_numbers<[1], [0], [0], [1], [0, 0, 1, 1], [], []>} : vector<200x128xf32>, vector<128x128xf32>, vector<200x128xf32> -> vector<200x128xf32>
    %60 = arith.addf %55, %59 : vector<200x128xf32>
    %c26 = arith.constant 26 : index
    %c0_52 = arith.constant 0 : index
    %61 = vector.load %arg10[%c26, %c0_52] : memref<232x128xf32, #tpu.memory_space<vmem>>, vector<200x128xf32>
    %c7_53 = arith.constant 7 : index
    %c0_54 = arith.constant 0 : index
    %c0_55 = arith.constant 0 : index
    %62 = vector.load %arg8[%c7_53, %c0_54, %c0_55] : memref<9x128x128xf32, #tpu.memory_space<vmem>>, vector<1x128x128xf32>
    %63 = vector.shape_cast %62 : vector<1x128x128xf32> to vector<128x128xf32>
    %cst_56 = arith.constant dense<0.000000e+00> : vector<200x128xf32>
    %64 = tpu.matmul %61, %63, %cst_56 {dimension_numbers = #tpu.dot_dimension_numbers<[1], [0], [0], [1], [0, 0, 1, 1], [], []>} : vector<200x128xf32>, vector<128x128xf32>, vector<200x128xf32> -> vector<200x128xf32>
    %65 = arith.addf %60, %64 : vector<200x128xf32>
    %c27 = arith.constant 27 : index
    %c0_57 = arith.constant 0 : index
    %66 = vector.load %arg10[%c27, %c0_57] : memref<232x128xf32, #tpu.memory_space<vmem>>, vector<200x128xf32>
    %c8 = arith.constant 8 : index
    %c0_58 = arith.constant 0 : index
    %c0_59 = arith.constant 0 : index
    %67 = vector.load %arg8[%c8, %c0_58, %c0_59] : memref<9x128x128xf32, #tpu.memory_space<vmem>>, vector<1x128x128xf32>
    %68 = vector.shape_cast %67 : vector<1x128x128xf32> to vector<128x128xf32>
    %cst_60 = arith.constant dense<0.000000e+00> : vector<200x128xf32>
    %69 = tpu.matmul %66, %68, %cst_60 {dimension_numbers = #tpu.dot_dimension_numbers<[1], [0], [0], [1], [0, 0, 1, 1], [], []>} : vector<200x128xf32>, vector<128x128xf32>, vector<200x128xf32> -> vector<200x128xf32>
    %70 = arith.addf %65, %69 : vector<200x128xf32>
    %71 = vector.broadcast %1 : vector<200x1xf32> to vector<200x128xf32>
    %72 = arith.mulf %70, %71 : vector<200x128xf32>
    %73 = arith.addf %0, %72 : vector<200x128xf32>
    %c0_61 = arith.constant 0 : index
    %c0_62 = arith.constant 0 : index
    %74 = vector.load %arg9[%c0_61, %c0_62] : memref<200x128xf32, #tpu.memory_space<vmem>>, vector<200x128xf32>
    tpu.vector_store %arg9[%c0_61, %c0_62], %73 {strides = array<i32>} : memref<200x128xf32, #tpu.memory_space<vmem>>, vector<200x128xf32>,
    return
  }
  func.func @transform_0(%arg0: i32) -> (i32, i32) {
    %c0_i32 = arith.constant 0 : i32
    %c0_i32_0 = arith.constant 0 : i32
    %c0_i32_1 = arith.constant 0 : i32
    return %c0_i32, %c0_i32_0 : i32, i32
  }
  func.func @transform_1(%arg0: i32) -> (i32, i32) {
    %c0_i32 = arith.constant 0 : i32
    %c0_i32_0 = arith.constant 0 : i32
    %c0_i32_1 = arith.constant 0 : i32
    return %c0_i32, %c0_i32_0 : i32, i32
  }
  func.func @transform_2(%arg0: i32) -> (i32, i32) {
    %c0_i32 = arith.constant 0 : i32
    %c0_i32_0 = arith.constant 0 : i32
    %c0_i32_1 = arith.constant 0 : i32
    return %c0_i32, %c0_i32_0 : i32, i32
  }
  func.func @transform_3(%arg0: i32) -> (i32, i32) {
    %c0_i32 = arith.constant 0 : i32
    %c0_i32_0 = arith.constant 0 : i32
    %c0_i32_1 = arith.constant 0 : i32
    return %c0_i32, %c0_i32_0 : i32, i32
  }
  func.func @transform_4(%arg0: i32) -> (i32, i32) {
    %c0_i32 = arith.constant 0 : i32
    %c0_i32_0 = arith.constant 0 : i32
    %c0_i32_1 = arith.constant 0 : i32
    return %c0_i32, %c0_i32_0 : i32, i32
  }
  func.func @transform_5(%arg0: i32) -> (i32, i32) {
    %c0_i32 = arith.constant 0 : i32
    %c0_i32_0 = arith.constant 0 : i32
    %c0_i32_1 = arith.constant 0 : i32
    return %c0_i32, %c0_i32_0 : i32, i32
  }
  func.func @transform_6(%arg0: i32) -> (i32, i32) {
    %c0_i32 = arith.constant 0 : i32
    %c0_i32_0 = arith.constant 0 : i32
    %c0_i32_1 = arith.constant 0 : i32
    return %c0_i32, %c0_i32_0 : i32, i32
  }
  func.func @transform_7(%arg0: i32) -> (i32, i32, i32) {
    %c0_i32 = arith.constant 0 : i32
    %c0_i32_0 = arith.constant 0 : i32
    %c0_i32_1 = arith.constant 0 : i32
    %c0_i32_2 = arith.constant 0 : i32
    return %c0_i32, %c0_i32_0, %c0_i32_1 : i32, i32, i32
  }
  func.func @transform_8(%arg0: i32) -> (i32, i32) {
    %c0_i32 = arith.constant 0 : i32
    %c0_i32_0 = arith.constant 0 : i32
    %c0_i32_1 = arith.constant 0 : i32
    return %c0_i32, %c0_i32_0 : i32, i32
  }
}

module attributes {stable_mosaic.version = 11 : i64} {
  func.func @_bnrelu_matmul_kernel(%arg0: i32, %arg1: memref<200x128xf32, #tpu.memory_space<vmem>>, %arg2: memref<1x128xf32, #tpu.memory_space<vmem>>, %arg3: memref<1x128xf32, #tpu.memory_space<vmem>>, %arg4: memref<128x128xf32, #tpu.memory_space<vmem>>, %arg5: memref<200x128xf32, #tpu.memory_space<vmem>>) attributes {dimension_semantics = [#tpu.dimension_semantics<arbitrary>], iteration_bounds = array<i64: 1>, scalar_prefetch = 0 : i64, scratch_operands = 0 : i64, tpu.core_type = #tpu.core_type<tc>, window_params = [{pipeline_mode = #tpu.pipeline_mode<synchronous>, transform_indices = @transform_0, window_bounds = array<i64: 200, 128>}, {pipeline_mode = #tpu.pipeline_mode<synchronous>, transform_indices = @transform_1, window_bounds = array<i64: 1, 128>}, {pipeline_mode = #tpu.pipeline_mode<synchronous>, transform_indices = @transform_2, window_bounds = array<i64: 1, 128>}, {pipeline_mode = #tpu.pipeline_mode<synchronous>, transform_indices = @transform_3, window_bounds = array<i64: 128, 128>}, {pipeline_mode = #tpu.pipeline_mode<synchronous>, transform_indices = @transform_4, window_bounds = array<i64: 200, 128>}]} {
    %c0 = arith.constant 0 : index
    %c0_0 = arith.constant 0 : index
    %0 = vector.load %arg1[%c0, %c0_0] : memref<200x128xf32, #tpu.memory_space<vmem>>, vector<200x128xf32>
    %c0_1 = arith.constant 0 : index
    %c0_2 = arith.constant 0 : index
    %1 = vector.load %arg2[%c0_1, %c0_2] : memref<1x128xf32, #tpu.memory_space<vmem>>, vector<1x128xf32>
    %2 = vector.broadcast %1 : vector<1x128xf32> to vector<200x128xf32>
    %3 = arith.mulf %0, %2 : vector<200x128xf32>
    %c0_3 = arith.constant 0 : index
    %c0_4 = arith.constant 0 : index
    %4 = vector.load %arg3[%c0_3, %c0_4] : memref<1x128xf32, #tpu.memory_space<vmem>>, vector<1x128xf32>
    %5 = vector.broadcast %4 : vector<1x128xf32> to vector<200x128xf32>
    %6 = arith.addf %3, %5 : vector<200x128xf32>
    %cst = arith.constant 0.000000e+00 : f32
    %7 = vector.broadcast %cst : f32 to vector<200x128xf32>
    %8 = arith.maximumf %6, %7 : vector<200x128xf32>
    %c0_5 = arith.constant 0 : index
    %c0_6 = arith.constant 0 : index
    %9 = vector.load %arg4[%c0_5, %c0_6] : memref<128x128xf32, #tpu.memory_space<vmem>>, vector<128x128xf32>
    %cst_7 = arith.constant dense<0.000000e+00> : vector<200x128xf32>
    %10 = tpu.matmul %8, %9, %cst_7 {dimension_numbers = #tpu.dot_dimension_numbers<[1], [0], [0], [1], [0, 0, 1, 1], [], []>} : vector<200x128xf32>, vector<128x128xf32>, vector<200x128xf32> -> vector<200x128xf32>
    %c0_8 = arith.constant 0 : index
    %c0_9 = arith.constant 0 : index
    %11 = vector.load %arg5[%c0_8, %c0_9] : memref<200x128xf32, #tpu.memory_space<vmem>>, vector<200x128xf32>
    tpu.vector_store %arg5[%c0_8, %c0_9], %10 {strides = array<i32>} : memref<200x128xf32, #tpu.memory_space<vmem>>, vector<200x128xf32>,
    return
  }
  func.func @transform_0(%arg0: i32) -> (i32, i32) {
    %c0_i32 = arith.constant 0 : i32
    %c0_i32_0 = arith.constant 0 : i32
    %c0_i32_1 = arith.constant 0 : i32
    return %c0_i32, %c0_i32_0 : i32, i32
  }
  func.func @transform_1(%arg0: i32) -> (i32, i32) {
    %c0_i32 = arith.constant 0 : i32
    %c0_i32_0 = arith.constant 0 : i32
    %c0_i32_1 = arith.constant 0 : i32
    return %c0_i32, %c0_i32_0 : i32, i32
  }
  func.func @transform_2(%arg0: i32) -> (i32, i32) {
    %c0_i32 = arith.constant 0 : i32
    %c0_i32_0 = arith.constant 0 : i32
    %c0_i32_1 = arith.constant 0 : i32
    return %c0_i32, %c0_i32_0 : i32, i32
  }
  func.func @transform_3(%arg0: i32) -> (i32, i32) {
    %c0_i32 = arith.constant 0 : i32
    %c0_i32_0 = arith.constant 0 : i32
    %c0_i32_1 = arith.constant 0 : i32
    return %c0_i32, %c0_i32_0 : i32, i32
  }
  func.func @transform_4(%arg0: i32) -> (i32, i32) {
    %c0_i32 = arith.constant 0 : i32
    %c0_i32_0 = arith.constant 0 : i32
    %c0_i32_1 = arith.constant 0 : i32
    return %c0_i32, %c0_i32_0 : i32, i32
  }
}

module attributes {stable_mosaic.version = 11 : i64} {
  func.func @_dense_layer_kernel(%arg0: i32, %arg1: memref<72x128xf32, #tpu.memory_space<vmem>>, %arg2: memref<72x1xf32, #tpu.memory_space<vmem>>, %arg3: memref<1x128xf32, #tpu.memory_space<vmem>>, %arg4: memref<1x128xf32, #tpu.memory_space<vmem>>, %arg5: memref<128x128xf32, #tpu.memory_space<vmem>>, %arg6: memref<1x128xf32, #tpu.memory_space<vmem>>, %arg7: memref<1x128xf32, #tpu.memory_space<vmem>>, %arg8: memref<9x128x128xf32, #tpu.memory_space<vmem>>, %arg9: memref<72x128xf32, #tpu.memory_space<vmem>>, %arg10: memref<88x128xf32, #tpu.memory_space<vmem>>) attributes {dimension_semantics = [#tpu.dimension_semantics<arbitrary>], iteration_bounds = array<i64: 1>, scalar_prefetch = 0 : i64, scratch_operands = 1 : i64, tpu.core_type = #tpu.core_type<tc>, window_params = [{pipeline_mode = #tpu.pipeline_mode<synchronous>, transform_indices = @transform_0, window_bounds = array<i64: 72, 128>}, {pipeline_mode = #tpu.pipeline_mode<synchronous>, transform_indices = @transform_1, window_bounds = array<i64: 72, 1>}, {pipeline_mode = #tpu.pipeline_mode<synchronous>, transform_indices = @transform_2, window_bounds = array<i64: 1, 128>}, {pipeline_mode = #tpu.pipeline_mode<synchronous>, transform_indices = @transform_3, window_bounds = array<i64: 1, 128>}, {pipeline_mode = #tpu.pipeline_mode<synchronous>, transform_indices = @transform_4, window_bounds = array<i64: 128, 128>}, {pipeline_mode = #tpu.pipeline_mode<synchronous>, transform_indices = @transform_5, window_bounds = array<i64: 1, 128>}, {pipeline_mode = #tpu.pipeline_mode<synchronous>, transform_indices = @transform_6, window_bounds = array<i64: 1, 128>}, {pipeline_mode = #tpu.pipeline_mode<synchronous>, transform_indices = @transform_7, window_bounds = array<i64: 9, 128, 128>}, {pipeline_mode = #tpu.pipeline_mode<synchronous>, transform_indices = @transform_8, window_bounds = array<i64: 72, 128>}]} {
    %c0 = arith.constant 0 : index
    %c0_0 = arith.constant 0 : index
    %0 = vector.load %arg1[%c0, %c0_0] : memref<72x128xf32, #tpu.memory_space<vmem>>, vector<72x128xf32>
    %c0_1 = arith.constant 0 : index
    %c0_2 = arith.constant 0 : index
    %1 = vector.load %arg2[%c0_1, %c0_2] : memref<72x1xf32, #tpu.memory_space<vmem>>, vector<72x1xf32>
    %c0_3 = arith.constant 0 : index
    %c0_4 = arith.constant 0 : index
    %2 = vector.load %arg3[%c0_3, %c0_4] : memref<1x128xf32, #tpu.memory_space<vmem>>, vector<1x128xf32>
    %3 = vector.broadcast %2 : vector<1x128xf32> to vector<72x128xf32>
    %4 = arith.mulf %0, %3 : vector<72x128xf32>
    %c0_5 = arith.constant 0 : index
    %c0_6 = arith.constant 0 : index
    %5 = vector.load %arg4[%c0_5, %c0_6] : memref<1x128xf32, #tpu.memory_space<vmem>>, vector<1x128xf32>
    %6 = vector.broadcast %5 : vector<1x128xf32> to vector<72x128xf32>
    %7 = arith.addf %4, %6 : vector<72x128xf32>
    %cst = arith.constant 0.000000e+00 : f32
    %8 = vector.broadcast %cst : f32 to vector<72x128xf32>
    %9 = arith.maximumf %7, %8 : vector<72x128xf32>
    %c0_7 = arith.constant 0 : index
    %c0_8 = arith.constant 0 : index
    %10 = vector.load %arg5[%c0_7, %c0_8] : memref<128x128xf32, #tpu.memory_space<vmem>>, vector<128x128xf32>
    %cst_9 = arith.constant dense<0.000000e+00> : vector<72x128xf32>
    %11 = tpu.matmul %9, %10, %cst_9 {dimension_numbers = #tpu.dot_dimension_numbers<[1], [0], [0], [1], [0, 0, 1, 1], [], []>} : vector<72x128xf32>, vector<128x128xf32>, vector<72x128xf32> -> vector<72x128xf32>
    %c0_10 = arith.constant 0 : index
    %c0_11 = arith.constant 0 : index
    %12 = vector.load %arg6[%c0_10, %c0_11] : memref<1x128xf32, #tpu.memory_space<vmem>>, vector<1x128xf32>
    %13 = vector.broadcast %12 : vector<1x128xf32> to vector<72x128xf32>
    %14 = arith.mulf %11, %13 : vector<72x128xf32>
    %c0_12 = arith.constant 0 : index
    %c0_13 = arith.constant 0 : index
    %15 = vector.load %arg7[%c0_12, %c0_13] : memref<1x128xf32, #tpu.memory_space<vmem>>, vector<1x128xf32>
    %16 = vector.broadcast %15 : vector<1x128xf32> to vector<72x128xf32>
    %17 = arith.addf %14, %16 : vector<72x128xf32>
    %cst_14 = arith.constant 0.000000e+00 : f32
    %18 = vector.broadcast %cst_14 : f32 to vector<72x128xf32>
    %19 = arith.maximumf %17, %18 : vector<72x128xf32>
    %20 = vector.broadcast %1 : vector<72x1xf32> to vector<72x128xf32>
    %21 = arith.mulf %19, %20 : vector<72x128xf32>
    %cst_15 = arith.constant 0.000000e+00 : f32
    %22 = vector.broadcast %cst_15 : f32 to vector<88x128xf32>
    %c0_16 = arith.constant 0 : index
    %c0_17 = arith.constant 0 : index
    %23 = vector.load %arg10[%c0_16, %c0_17] : memref<88x128xf32, #tpu.memory_space<vmem>>, vector<88x128xf32>
    tpu.vector_store %arg10[%c0_16, %c0_17], %22 {strides = array<i32>} : memref<88x128xf32, #tpu.memory_space<vmem>>, vector<88x128xf32>,
    %c8 = arith.constant 8 : index
    %c0_18 = arith.constant 0 : index
    %24 = vector.load %arg10[%c8, %c0_18] : memref<88x128xf32, #tpu.memory_space<vmem>>, vector<72x128xf32>
    tpu.vector_store %arg10[%c8, %c0_18], %21 {strides = array<i32>} : memref<88x128xf32, #tpu.memory_space<vmem>>, vector<72x128xf32>,
    %cst_19 = arith.constant 0.000000e+00 : f32
    %25 = vector.broadcast %cst_19 : f32 to vector<72x128xf32>
    %c1 = arith.constant 1 : index
    %c0_20 = arith.constant 0 : index
    %26 = vector.load %arg10[%c1, %c0_20] : memref<88x128xf32, #tpu.memory_space<vmem>>, vector<72x128xf32>
    %c0_21 = arith.constant 0 : index
    %c0_22 = arith.constant 0 : index
    %c0_23 = arith.constant 0 : index
    %27 = vector.load %arg8[%c0_21, %c0_22, %c0_23] : memref<9x128x128xf32, #tpu.memory_space<vmem>>, vector<1x128x128xf32>
    %28 = vector.shape_cast %27 : vector<1x128x128xf32> to vector<128x128xf32>
    %cst_24 = arith.constant dense<0.000000e+00> : vector<72x128xf32>
    %29 = tpu.matmul %26, %28, %cst_24 {dimension_numbers = #tpu.dot_dimension_numbers<[1], [0], [0], [1], [0, 0, 1, 1], [], []>} : vector<72x128xf32>, vector<128x128xf32>, vector<72x128xf32> -> vector<72x128xf32>
    %30 = arith.addf %25, %29 : vector<72x128xf32>
    %c2 = arith.constant 2 : index
    %c0_25 = arith.constant 0 : index
    %31 = vector.load %arg10[%c2, %c0_25] : memref<88x128xf32, #tpu.memory_space<vmem>>, vector<72x128xf32>
    %c1_26 = arith.constant 1 : index
    %c0_27 = arith.constant 0 : index
    %c0_28 = arith.constant 0 : index
    %32 = vector.load %arg8[%c1_26, %c0_27, %c0_28] : memref<9x128x128xf32, #tpu.memory_space<vmem>>, vector<1x128x128xf32>
    %33 = vector.shape_cast %32 : vector<1x128x128xf32> to vector<128x128xf32>
    %cst_29 = arith.constant dense<0.000000e+00> : vector<72x128xf32>
    %34 = tpu.matmul %31, %33, %cst_29 {dimension_numbers = #tpu.dot_dimension_numbers<[1], [0], [0], [1], [0, 0, 1, 1], [], []>} : vector<72x128xf32>, vector<128x128xf32>, vector<72x128xf32> -> vector<72x128xf32>
    %35 = arith.addf %30, %34 : vector<72x128xf32>
    %c3 = arith.constant 3 : index
    %c0_30 = arith.constant 0 : index
    %36 = vector.load %arg10[%c3, %c0_30] : memref<88x128xf32, #tpu.memory_space<vmem>>, vector<72x128xf32>
    %c2_31 = arith.constant 2 : index
    %c0_32 = arith.constant 0 : index
    %c0_33 = arith.constant 0 : index
    %37 = vector.load %arg8[%c2_31, %c0_32, %c0_33] : memref<9x128x128xf32, #tpu.memory_space<vmem>>, vector<1x128x128xf32>
    %38 = vector.shape_cast %37 : vector<1x128x128xf32> to vector<128x128xf32>
    %cst_34 = arith.constant dense<0.000000e+00> : vector<72x128xf32>
    %39 = tpu.matmul %36, %38, %cst_34 {dimension_numbers = #tpu.dot_dimension_numbers<[1], [0], [0], [1], [0, 0, 1, 1], [], []>} : vector<72x128xf32>, vector<128x128xf32>, vector<72x128xf32> -> vector<72x128xf32>
    %40 = arith.addf %35, %39 : vector<72x128xf32>
    %c7 = arith.constant 7 : index
    %c0_35 = arith.constant 0 : index
    %41 = vector.load %arg10[%c7, %c0_35] : memref<88x128xf32, #tpu.memory_space<vmem>>, vector<72x128xf32>
    %c3_36 = arith.constant 3 : index
    %c0_37 = arith.constant 0 : index
    %c0_38 = arith.constant 0 : index
    %42 = vector.load %arg8[%c3_36, %c0_37, %c0_38] : memref<9x128x128xf32, #tpu.memory_space<vmem>>, vector<1x128x128xf32>
    %43 = vector.shape_cast %42 : vector<1x128x128xf32> to vector<128x128xf32>
    %cst_39 = arith.constant dense<0.000000e+00> : vector<72x128xf32>
    %44 = tpu.matmul %41, %43, %cst_39 {dimension_numbers = #tpu.dot_dimension_numbers<[1], [0], [0], [1], [0, 0, 1, 1], [], []>} : vector<72x128xf32>, vector<128x128xf32>, vector<72x128xf32> -> vector<72x128xf32>
    %45 = arith.addf %40, %44 : vector<72x128xf32>
    %c8_40 = arith.constant 8 : index
    %c0_41 = arith.constant 0 : index
    %46 = vector.load %arg10[%c8_40, %c0_41] : memref<88x128xf32, #tpu.memory_space<vmem>>, vector<72x128xf32>
    %c4 = arith.constant 4 : index
    %c0_42 = arith.constant 0 : index
    %c0_43 = arith.constant 0 : index
    %47 = vector.load %arg8[%c4, %c0_42, %c0_43] : memref<9x128x128xf32, #tpu.memory_space<vmem>>, vector<1x128x128xf32>
    %48 = vector.shape_cast %47 : vector<1x128x128xf32> to vector<128x128xf32>
    %cst_44 = arith.constant dense<0.000000e+00> : vector<72x128xf32>
    %49 = tpu.matmul %46, %48, %cst_44 {dimension_numbers = #tpu.dot_dimension_numbers<[1], [0], [0], [1], [0, 0, 1, 1], [], []>} : vector<72x128xf32>, vector<128x128xf32>, vector<72x128xf32> -> vector<72x128xf32>
    %50 = arith.addf %45, %49 : vector<72x128xf32>
    %c9 = arith.constant 9 : index
    %c0_45 = arith.constant 0 : index
    %51 = vector.load %arg10[%c9, %c0_45] : memref<88x128xf32, #tpu.memory_space<vmem>>, vector<72x128xf32>
    %c5 = arith.constant 5 : index
    %c0_46 = arith.constant 0 : index
    %c0_47 = arith.constant 0 : index
    %52 = vector.load %arg8[%c5, %c0_46, %c0_47] : memref<9x128x128xf32, #tpu.memory_space<vmem>>, vector<1x128x128xf32>
    %53 = vector.shape_cast %52 : vector<1x128x128xf32> to vector<128x128xf32>
    %cst_48 = arith.constant dense<0.000000e+00> : vector<72x128xf32>
    %54 = tpu.matmul %51, %53, %cst_48 {dimension_numbers = #tpu.dot_dimension_numbers<[1], [0], [0], [1], [0, 0, 1, 1], [], []>} : vector<72x128xf32>, vector<128x128xf32>, vector<72x128xf32> -> vector<72x128xf32>
    %55 = arith.addf %50, %54 : vector<72x128xf32>
    %c13 = arith.constant 13 : index
    %c0_49 = arith.constant 0 : index
    %56 = vector.load %arg10[%c13, %c0_49] : memref<88x128xf32, #tpu.memory_space<vmem>>, vector<72x128xf32>
    %c6 = arith.constant 6 : index
    %c0_50 = arith.constant 0 : index
    %c0_51 = arith.constant 0 : index
    %57 = vector.load %arg8[%c6, %c0_50, %c0_51] : memref<9x128x128xf32, #tpu.memory_space<vmem>>, vector<1x128x128xf32>
    %58 = vector.shape_cast %57 : vector<1x128x128xf32> to vector<128x128xf32>
    %cst_52 = arith.constant dense<0.000000e+00> : vector<72x128xf32>
    %59 = tpu.matmul %56, %58, %cst_52 {dimension_numbers = #tpu.dot_dimension_numbers<[1], [0], [0], [1], [0, 0, 1, 1], [], []>} : vector<72x128xf32>, vector<128x128xf32>, vector<72x128xf32> -> vector<72x128xf32>
    %60 = arith.addf %55, %59 : vector<72x128xf32>
    %c14 = arith.constant 14 : index
    %c0_53 = arith.constant 0 : index
    %61 = vector.load %arg10[%c14, %c0_53] : memref<88x128xf32, #tpu.memory_space<vmem>>, vector<72x128xf32>
    %c7_54 = arith.constant 7 : index
    %c0_55 = arith.constant 0 : index
    %c0_56 = arith.constant 0 : index
    %62 = vector.load %arg8[%c7_54, %c0_55, %c0_56] : memref<9x128x128xf32, #tpu.memory_space<vmem>>, vector<1x128x128xf32>
    %63 = vector.shape_cast %62 : vector<1x128x128xf32> to vector<128x128xf32>
    %cst_57 = arith.constant dense<0.000000e+00> : vector<72x128xf32>
    %64 = tpu.matmul %61, %63, %cst_57 {dimension_numbers = #tpu.dot_dimension_numbers<[1], [0], [0], [1], [0, 0, 1, 1], [], []>} : vector<72x128xf32>, vector<128x128xf32>, vector<72x128xf32> -> vector<72x128xf32>
    %65 = arith.addf %60, %64 : vector<72x128xf32>
    %c15 = arith.constant 15 : index
    %c0_58 = arith.constant 0 : index
    %66 = vector.load %arg10[%c15, %c0_58] : memref<88x128xf32, #tpu.memory_space<vmem>>, vector<72x128xf32>
    %c8_59 = arith.constant 8 : index
    %c0_60 = arith.constant 0 : index
    %c0_61 = arith.constant 0 : index
    %67 = vector.load %arg8[%c8_59, %c0_60, %c0_61] : memref<9x128x128xf32, #tpu.memory_space<vmem>>, vector<1x128x128xf32>
    %68 = vector.shape_cast %67 : vector<1x128x128xf32> to vector<128x128xf32>
    %cst_62 = arith.constant dense<0.000000e+00> : vector<72x128xf32>
    %69 = tpu.matmul %66, %68, %cst_62 {dimension_numbers = #tpu.dot_dimension_numbers<[1], [0], [0], [1], [0, 0, 1, 1], [], []>} : vector<72x128xf32>, vector<128x128xf32>, vector<72x128xf32> -> vector<72x128xf32>
    %70 = arith.addf %65, %69 : vector<72x128xf32>
    %71 = vector.broadcast %1 : vector<72x1xf32> to vector<72x128xf32>
    %72 = arith.mulf %70, %71 : vector<72x128xf32>
    %73 = arith.addf %0, %72 : vector<72x128xf32>
    %c0_63 = arith.constant 0 : index
    %c0_64 = arith.constant 0 : index
    %74 = vector.load %arg9[%c0_63, %c0_64] : memref<72x128xf32, #tpu.memory_space<vmem>>, vector<72x128xf32>
    tpu.vector_store %arg9[%c0_63, %c0_64], %73 {strides = array<i32>} : memref<72x128xf32, #tpu.memory_space<vmem>>, vector<72x128xf32>,
    return
  }
  func.func @transform_0(%arg0: i32) -> (i32, i32) {
    %c0_i32 = arith.constant 0 : i32
    %c0_i32_0 = arith.constant 0 : i32
    %c0_i32_1 = arith.constant 0 : i32
    return %c0_i32, %c0_i32_0 : i32, i32
  }
  func.func @transform_1(%arg0: i32) -> (i32, i32) {
    %c0_i32 = arith.constant 0 : i32
    %c0_i32_0 = arith.constant 0 : i32
    %c0_i32_1 = arith.constant 0 : i32
    return %c0_i32, %c0_i32_0 : i32, i32
  }
  func.func @transform_2(%arg0: i32) -> (i32, i32) {
    %c0_i32 = arith.constant 0 : i32
    %c0_i32_0 = arith.constant 0 : i32
    %c0_i32_1 = arith.constant 0 : i32
    return %c0_i32, %c0_i32_0 : i32, i32
  }
  func.func @transform_3(%arg0: i32) -> (i32, i32) {
    %c0_i32 = arith.constant 0 : i32
    %c0_i32_0 = arith.constant 0 : i32
    %c0_i32_1 = arith.constant 0 : i32
    return %c0_i32, %c0_i32_0 : i32, i32
  }
  func.func @transform_4(%arg0: i32) -> (i32, i32) {
    %c0_i32 = arith.constant 0 : i32
    %c0_i32_0 = arith.constant 0 : i32
    %c0_i32_1 = arith.constant 0 : i32
    return %c0_i32, %c0_i32_0 : i32, i32
  }
  func.func @transform_5(%arg0: i32) -> (i32, i32) {
    %c0_i32 = arith.constant 0 : i32
    %c0_i32_0 = arith.constant 0 : i32
    %c0_i32_1 = arith.constant 0 : i32
    return %c0_i32, %c0_i32_0 : i32, i32
  }
  func.func @transform_6(%arg0: i32) -> (i32, i32) {
    %c0_i32 = arith.constant 0 : i32
    %c0_i32_0 = arith.constant 0 : i32
    %c0_i32_1 = arith.constant 0 : i32
    return %c0_i32, %c0_i32_0 : i32, i32
  }
  func.func @transform_7(%arg0: i32) -> (i32, i32, i32) {
    %c0_i32 = arith.constant 0 : i32
    %c0_i32_0 = arith.constant 0 : i32
    %c0_i32_1 = arith.constant 0 : i32
    %c0_i32_2 = arith.constant 0 : i32
    return %c0_i32, %c0_i32_0, %c0_i32_1 : i32, i32, i32
  }
  func.func @transform_8(%arg0: i32) -> (i32, i32) {
    %c0_i32 = arith.constant 0 : i32
    %c0_i32_0 = arith.constant 0 : i32
    %c0_i32_1 = arith.constant 0 : i32
    return %c0_i32, %c0_i32_0 : i32, i32
  }
}

module attributes {stable_mosaic.version = 11 : i64} {
  func.func @_bnrelu_matmul_kernel(%arg0: i32, %arg1: memref<72x128xf32, #tpu.memory_space<vmem>>, %arg2: memref<1x128xf32, #tpu.memory_space<vmem>>, %arg3: memref<1x128xf32, #tpu.memory_space<vmem>>, %arg4: memref<128x128xf32, #tpu.memory_space<vmem>>, %arg5: memref<72x128xf32, #tpu.memory_space<vmem>>) attributes {dimension_semantics = [#tpu.dimension_semantics<arbitrary>], iteration_bounds = array<i64: 1>, scalar_prefetch = 0 : i64, scratch_operands = 0 : i64, tpu.core_type = #tpu.core_type<tc>, window_params = [{pipeline_mode = #tpu.pipeline_mode<synchronous>, transform_indices = @transform_0, window_bounds = array<i64: 72, 128>}, {pipeline_mode = #tpu.pipeline_mode<synchronous>, transform_indices = @transform_1, window_bounds = array<i64: 1, 128>}, {pipeline_mode = #tpu.pipeline_mode<synchronous>, transform_indices = @transform_2, window_bounds = array<i64: 1, 128>}, {pipeline_mode = #tpu.pipeline_mode<synchronous>, transform_indices = @transform_3, window_bounds = array<i64: 128, 128>}, {pipeline_mode = #tpu.pipeline_mode<synchronous>, transform_indices = @transform_4, window_bounds = array<i64: 72, 128>}]} {
    %c0 = arith.constant 0 : index
    %c0_0 = arith.constant 0 : index
    %0 = vector.load %arg1[%c0, %c0_0] : memref<72x128xf32, #tpu.memory_space<vmem>>, vector<72x128xf32>
    %c0_1 = arith.constant 0 : index
    %c0_2 = arith.constant 0 : index
    %1 = vector.load %arg2[%c0_1, %c0_2] : memref<1x128xf32, #tpu.memory_space<vmem>>, vector<1x128xf32>
    %2 = vector.broadcast %1 : vector<1x128xf32> to vector<72x128xf32>
    %3 = arith.mulf %0, %2 : vector<72x128xf32>
    %c0_3 = arith.constant 0 : index
    %c0_4 = arith.constant 0 : index
    %4 = vector.load %arg3[%c0_3, %c0_4] : memref<1x128xf32, #tpu.memory_space<vmem>>, vector<1x128xf32>
    %5 = vector.broadcast %4 : vector<1x128xf32> to vector<72x128xf32>
    %6 = arith.addf %3, %5 : vector<72x128xf32>
    %cst = arith.constant 0.000000e+00 : f32
    %7 = vector.broadcast %cst : f32 to vector<72x128xf32>
    %8 = arith.maximumf %6, %7 : vector<72x128xf32>
    %c0_5 = arith.constant 0 : index
    %c0_6 = arith.constant 0 : index
    %9 = vector.load %arg4[%c0_5, %c0_6] : memref<128x128xf32, #tpu.memory_space<vmem>>, vector<128x128xf32>
    %cst_7 = arith.constant dense<0.000000e+00> : vector<72x128xf32>
    %10 = tpu.matmul %8, %9, %cst_7 {dimension_numbers = #tpu.dot_dimension_numbers<[1], [0], [0], [1], [0, 0, 1, 1], [], []>} : vector<72x128xf32>, vector<128x128xf32>, vector<72x128xf32> -> vector<72x128xf32>
    %c0_8 = arith.constant 0 : index
    %c0_9 = arith.constant 0 : index
    %11 = vector.load %arg5[%c0_8, %c0_9] : memref<72x128xf32, #tpu.memory_space<vmem>>, vector<72x128xf32>
    tpu.vector_store %arg5[%c0_8, %c0_9], %10 {strides = array<i32>} : memref<72x128xf32, #tpu.memory_space<vmem>>, vector<72x128xf32>,
    return
  }
  func.func @transform_0(%arg0: i32) -> (i32, i32) {
    %c0_i32 = arith.constant 0 : i32
    %c0_i32_0 = arith.constant 0 : i32
    %c0_i32_1 = arith.constant 0 : i32
    return %c0_i32, %c0_i32_0 : i32, i32
  }
  func.func @transform_1(%arg0: i32) -> (i32, i32) {
    %c0_i32 = arith.constant 0 : i32
    %c0_i32_0 = arith.constant 0 : i32
    %c0_i32_1 = arith.constant 0 : i32
    return %c0_i32, %c0_i32_0 : i32, i32
  }
  func.func @transform_2(%arg0: i32) -> (i32, i32) {
    %c0_i32 = arith.constant 0 : i32
    %c0_i32_0 = arith.constant 0 : i32
    %c0_i32_1 = arith.constant 0 : i32
    return %c0_i32, %c0_i32_0 : i32, i32
  }
  func.func @transform_3(%arg0: i32) -> (i32, i32) {
    %c0_i32 = arith.constant 0 : i32
    %c0_i32_0 = arith.constant 0 : i32
    %c0_i32_1 = arith.constant 0 : i32
    return %c0_i32, %c0_i32_0 : i32, i32
  }
  func.func @transform_4(%arg0: i32) -> (i32, i32) {
    %c0_i32 = arith.constant 0 : i32
    %c0_i32_0 = arith.constant 0 : i32
    %c0_i32_1 = arith.constant 0 : i32
    return %c0_i32, %c0_i32_0 : i32, i32
  }
}

module attributes {stable_mosaic.version = 11 : i64} {
  func.func @_bnrelu_matmul_kernel(%arg0: i32, %arg1: memref<32x256xf32, #tpu.memory_space<vmem>>, %arg2: memref<1x256xf32, #tpu.memory_space<vmem>>, %arg3: memref<1x256xf32, #tpu.memory_space<vmem>>, %arg4: memref<256x128xf32, #tpu.memory_space<vmem>>, %arg5: memref<32x128xf32, #tpu.memory_space<vmem>>) attributes {dimension_semantics = [#tpu.dimension_semantics<arbitrary>], iteration_bounds = array<i64: 1>, scalar_prefetch = 0 : i64, scratch_operands = 0 : i64, tpu.core_type = #tpu.core_type<tc>, window_params = [{pipeline_mode = #tpu.pipeline_mode<synchronous>, transform_indices = @transform_0, window_bounds = array<i64: 32, 256>}, {pipeline_mode = #tpu.pipeline_mode<synchronous>, transform_indices = @transform_1, window_bounds = array<i64: 1, 256>}, {pipeline_mode = #tpu.pipeline_mode<synchronous>, transform_indices = @transform_2, window_bounds = array<i64: 1, 256>}, {pipeline_mode = #tpu.pipeline_mode<synchronous>, transform_indices = @transform_3, window_bounds = array<i64: 256, 128>}, {pipeline_mode = #tpu.pipeline_mode<synchronous>, transform_indices = @transform_4, window_bounds = array<i64: 32, 128>}]} {
    %c0 = arith.constant 0 : index
    %c0_0 = arith.constant 0 : index
    %0 = vector.load %arg1[%c0, %c0_0] : memref<32x256xf32, #tpu.memory_space<vmem>>, vector<32x256xf32>
    %c0_1 = arith.constant 0 : index
    %c0_2 = arith.constant 0 : index
    %1 = vector.load %arg2[%c0_1, %c0_2] : memref<1x256xf32, #tpu.memory_space<vmem>>, vector<1x256xf32>
    %2 = vector.broadcast %1 : vector<1x256xf32> to vector<32x256xf32>
    %3 = arith.mulf %0, %2 : vector<32x256xf32>
    %c0_3 = arith.constant 0 : index
    %c0_4 = arith.constant 0 : index
    %4 = vector.load %arg3[%c0_3, %c0_4] : memref<1x256xf32, #tpu.memory_space<vmem>>, vector<1x256xf32>
    %5 = vector.broadcast %4 : vector<1x256xf32> to vector<32x256xf32>
    %6 = arith.addf %3, %5 : vector<32x256xf32>
    %cst = arith.constant 0.000000e+00 : f32
    %7 = vector.broadcast %cst : f32 to vector<32x256xf32>
    %8 = arith.maximumf %6, %7 : vector<32x256xf32>
    %c0_5 = arith.constant 0 : index
    %c0_6 = arith.constant 0 : index
    %9 = vector.load %arg4[%c0_5, %c0_6] : memref<256x128xf32, #tpu.memory_space<vmem>>, vector<256x128xf32>
    %cst_7 = arith.constant dense<0.000000e+00> : vector<32x128xf32>
    %10 = tpu.matmul %8, %9, %cst_7 {dimension_numbers = #tpu.dot_dimension_numbers<[1], [0], [0], [1], [0, 0, 1, 1], [], []>} : vector<32x256xf32>, vector<256x128xf32>, vector<32x128xf32> -> vector<32x128xf32>
    %c0_8 = arith.constant 0 : index
    %c0_9 = arith.constant 0 : index
    %11 = vector.load %arg5[%c0_8, %c0_9] : memref<32x128xf32, #tpu.memory_space<vmem>>, vector<32x128xf32>
    tpu.vector_store %arg5[%c0_8, %c0_9], %10 {strides = array<i32>} : memref<32x128xf32, #tpu.memory_space<vmem>>, vector<32x128xf32>,
    return
  }
  func.func @transform_0(%arg0: i32) -> (i32, i32) {
    %c0_i32 = arith.constant 0 : i32
    %c0_i32_0 = arith.constant 0 : i32
    %c0_i32_1 = arith.constant 0 : i32
    return %c0_i32, %c0_i32_0 : i32, i32
  }
  func.func @transform_1(%arg0: i32) -> (i32, i32) {
    %c0_i32 = arith.constant 0 : i32
    %c0_i32_0 = arith.constant 0 : i32
    %c0_i32_1 = arith.constant 0 : i32
    return %c0_i32, %c0_i32_0 : i32, i32
  }
  func.func @transform_2(%arg0: i32) -> (i32, i32) {
    %c0_i32 = arith.constant 0 : i32
    %c0_i32_0 = arith.constant 0 : i32
    %c0_i32_1 = arith.constant 0 : i32
    return %c0_i32, %c0_i32_0 : i32, i32
  }
  func.func @transform_3(%arg0: i32) -> (i32, i32) {
    %c0_i32 = arith.constant 0 : i32
    %c0_i32_0 = arith.constant 0 : i32
    %c0_i32_1 = arith.constant 0 : i32
    return %c0_i32, %c0_i32_0 : i32, i32
  }
  func.func @transform_4(%arg0: i32) -> (i32, i32) {
    %c0_i32 = arith.constant 0 : i32
    %c0_i32_0 = arith.constant 0 : i32
    %c0_i32_1 = arith.constant 0 : i32
    return %c0_i32, %c0_i32_0 : i32, i32
  }
}

module attributes {stable_mosaic.version = 11 : i64} {
  func.func @_dense_layer_kernel(%arg0: i32, %arg1: memref<32x256xf32, #tpu.memory_space<vmem>>, %arg2: memref<32x1xf32, #tpu.memory_space<vmem>>, %arg3: memref<1x256xf32, #tpu.memory_space<vmem>>, %arg4: memref<1x256xf32, #tpu.memory_space<vmem>>, %arg5: memref<256x128xf32, #tpu.memory_space<vmem>>, %arg6: memref<1x128xf32, #tpu.memory_space<vmem>>, %arg7: memref<1x128xf32, #tpu.memory_space<vmem>>, %arg8: memref<9x128x256xf32, #tpu.memory_space<vmem>>, %arg9: memref<32x256xf32, #tpu.memory_space<vmem>>, %arg10: memref<48x128xf32, #tpu.memory_space<vmem>>) attributes {dimension_semantics = [#tpu.dimension_semantics<arbitrary>], iteration_bounds = array<i64: 1>, scalar_prefetch = 0 : i64, scratch_operands = 1 : i64, tpu.core_type = #tpu.core_type<tc>, window_params = [{pipeline_mode = #tpu.pipeline_mode<synchronous>, transform_indices = @transform_0, window_bounds = array<i64: 32, 256>}, {pipeline_mode = #tpu.pipeline_mode<synchronous>, transform_indices = @transform_1, window_bounds = array<i64: 32, 1>}, {pipeline_mode = #tpu.pipeline_mode<synchronous>, transform_indices = @transform_2, window_bounds = array<i64: 1, 256>}, {pipeline_mode = #tpu.pipeline_mode<synchronous>, transform_indices = @transform_3, window_bounds = array<i64: 1, 256>}, {pipeline_mode = #tpu.pipeline_mode<synchronous>, transform_indices = @transform_4, window_bounds = array<i64: 256, 128>}, {pipeline_mode = #tpu.pipeline_mode<synchronous>, transform_indices = @transform_5, window_bounds = array<i64: 1, 128>}, {pipeline_mode = #tpu.pipeline_mode<synchronous>, transform_indices = @transform_6, window_bounds = array<i64: 1, 128>}, {pipeline_mode = #tpu.pipeline_mode<synchronous>, transform_indices = @transform_7, window_bounds = array<i64: 9, 128, 256>}, {pipeline_mode = #tpu.pipeline_mode<synchronous>, transform_indices = @transform_8, window_bounds = array<i64: 32, 256>}]} {
    %c0 = arith.constant 0 : index
    %c0_0 = arith.constant 0 : index
    %0 = vector.load %arg1[%c0, %c0_0] : memref<32x256xf32, #tpu.memory_space<vmem>>, vector<32x256xf32>
    %c0_1 = arith.constant 0 : index
    %c0_2 = arith.constant 0 : index
    %1 = vector.load %arg2[%c0_1, %c0_2] : memref<32x1xf32, #tpu.memory_space<vmem>>, vector<32x1xf32>
    %c0_3 = arith.constant 0 : index
    %c0_4 = arith.constant 0 : index
    %2 = vector.load %arg3[%c0_3, %c0_4] : memref<1x256xf32, #tpu.memory_space<vmem>>, vector<1x256xf32>
    %3 = vector.broadcast %2 : vector<1x256xf32> to vector<32x256xf32>
    %4 = arith.mulf %0, %3 : vector<32x256xf32>
    %c0_5 = arith.constant 0 : index
    %c0_6 = arith.constant 0 : index
    %5 = vector.load %arg4[%c0_5, %c0_6] : memref<1x256xf32, #tpu.memory_space<vmem>>, vector<1x256xf32>
    %6 = vector.broadcast %5 : vector<1x256xf32> to vector<32x256xf32>
    %7 = arith.addf %4, %6 : vector<32x256xf32>
    %cst = arith.constant 0.000000e+00 : f32
    %8 = vector.broadcast %cst : f32 to vector<32x256xf32>
    %9 = arith.maximumf %7, %8 : vector<32x256xf32>
    %c0_7 = arith.constant 0 : index
    %c0_8 = arith.constant 0 : index
    %10 = vector.load %arg5[%c0_7, %c0_8] : memref<256x128xf32, #tpu.memory_space<vmem>>, vector<256x128xf32>
    %cst_9 = arith.constant dense<0.000000e+00> : vector<32x128xf32>
    %11 = tpu.matmul %9, %10, %cst_9 {dimension_numbers = #tpu.dot_dimension_numbers<[1], [0], [0], [1], [0, 0, 1, 1], [], []>} : vector<32x256xf32>, vector<256x128xf32>, vector<32x128xf32> -> vector<32x128xf32>
    %c0_10 = arith.constant 0 : index
    %c0_11 = arith.constant 0 : index
    %12 = vector.load %arg6[%c0_10, %c0_11] : memref<1x128xf32, #tpu.memory_space<vmem>>, vector<1x128xf32>
    %13 = vector.broadcast %12 : vector<1x128xf32> to vector<32x128xf32>
    %14 = arith.mulf %11, %13 : vector<32x128xf32>
    %c0_12 = arith.constant 0 : index
    %c0_13 = arith.constant 0 : index
    %15 = vector.load %arg7[%c0_12, %c0_13] : memref<1x128xf32, #tpu.memory_space<vmem>>, vector<1x128xf32>
    %16 = vector.broadcast %15 : vector<1x128xf32> to vector<32x128xf32>
    %17 = arith.addf %14, %16 : vector<32x128xf32>
    %cst_14 = arith.constant 0.000000e+00 : f32
    %18 = vector.broadcast %cst_14 : f32 to vector<32x128xf32>
    %19 = arith.maximumf %17, %18 : vector<32x128xf32>
    %20 = vector.broadcast %1 : vector<32x1xf32> to vector<32x128xf32>
    %21 = arith.mulf %19, %20 : vector<32x128xf32>
    %cst_15 = arith.constant 0.000000e+00 : f32
    %22 = vector.broadcast %cst_15 : f32 to vector<48x128xf32>
    %c0_16 = arith.constant 0 : index
    %c0_17 = arith.constant 0 : index
    %23 = vector.load %arg10[%c0_16, %c0_17] : memref<48x128xf32, #tpu.memory_space<vmem>>, vector<48x128xf32>
    tpu.vector_store %arg10[%c0_16, %c0_17], %22 {strides = array<i32>} : memref<48x128xf32, #tpu.memory_space<vmem>>, vector<48x128xf32>,
    %c8 = arith.constant 8 : index
    %c0_18 = arith.constant 0 : index
    %24 = vector.load %arg10[%c8, %c0_18] : memref<48x128xf32, #tpu.memory_space<vmem>>, vector<32x128xf32>
    tpu.vector_store %arg10[%c8, %c0_18], %21 {strides = array<i32>} : memref<48x128xf32, #tpu.memory_space<vmem>>, vector<32x128xf32>,
    %cst_19 = arith.constant 0.000000e+00 : f32
    %25 = vector.broadcast %cst_19 : f32 to vector<32x256xf32>
    %c3 = arith.constant 3 : index
    %c0_20 = arith.constant 0 : index
    %26 = vector.load %arg10[%c3, %c0_20] : memref<48x128xf32, #tpu.memory_space<vmem>>, vector<32x128xf32>
    %c0_21 = arith.constant 0 : index
    %c0_22 = arith.constant 0 : index
    %c0_23 = arith.constant 0 : index
    %27 = vector.load %arg8[%c0_21, %c0_22, %c0_23] : memref<9x128x256xf32, #tpu.memory_space<vmem>>, vector<1x128x256xf32>
    %28 = vector.shape_cast %27 : vector<1x128x256xf32> to vector<128x256xf32>
    %cst_24 = arith.constant dense<0.000000e+00> : vector<32x256xf32>
    %29 = tpu.matmul %26, %28, %cst_24 {dimension_numbers = #tpu.dot_dimension_numbers<[1], [0], [0], [1], [0, 0, 1, 1], [], []>} : vector<32x128xf32>, vector<128x256xf32>, vector<32x256xf32> -> vector<32x256xf32>
    %30 = arith.addf %25, %29 : vector<32x256xf32>
    %c4 = arith.constant 4 : index
    %c0_25 = arith.constant 0 : index
    %31 = vector.load %arg10[%c4, %c0_25] : memref<48x128xf32, #tpu.memory_space<vmem>>, vector<32x128xf32>
    %c1 = arith.constant 1 : index
    %c0_26 = arith.constant 0 : index
    %c0_27 = arith.constant 0 : index
    %32 = vector.load %arg8[%c1, %c0_26, %c0_27] : memref<9x128x256xf32, #tpu.memory_space<vmem>>, vector<1x128x256xf32>
    %33 = vector.shape_cast %32 : vector<1x128x256xf32> to vector<128x256xf32>
    %cst_28 = arith.constant dense<0.000000e+00> : vector<32x256xf32>
    %34 = tpu.matmul %31, %33, %cst_28 {dimension_numbers = #tpu.dot_dimension_numbers<[1], [0], [0], [1], [0, 0, 1, 1], [], []>} : vector<32x128xf32>, vector<128x256xf32>, vector<32x256xf32> -> vector<32x256xf32>
    %35 = arith.addf %30, %34 : vector<32x256xf32>
    %c5 = arith.constant 5 : index
    %c0_29 = arith.constant 0 : index
    %36 = vector.load %arg10[%c5, %c0_29] : memref<48x128xf32, #tpu.memory_space<vmem>>, vector<32x128xf32>
    %c2 = arith.constant 2 : index
    %c0_30 = arith.constant 0 : index
    %c0_31 = arith.constant 0 : index
    %37 = vector.load %arg8[%c2, %c0_30, %c0_31] : memref<9x128x256xf32, #tpu.memory_space<vmem>>, vector<1x128x256xf32>
    %38 = vector.shape_cast %37 : vector<1x128x256xf32> to vector<128x256xf32>
    %cst_32 = arith.constant dense<0.000000e+00> : vector<32x256xf32>
    %39 = tpu.matmul %36, %38, %cst_32 {dimension_numbers = #tpu.dot_dimension_numbers<[1], [0], [0], [1], [0, 0, 1, 1], [], []>} : vector<32x128xf32>, vector<128x256xf32>, vector<32x256xf32> -> vector<32x256xf32>
    %40 = arith.addf %35, %39 : vector<32x256xf32>
    %c7 = arith.constant 7 : index
    %c0_33 = arith.constant 0 : index
    %41 = vector.load %arg10[%c7, %c0_33] : memref<48x128xf32, #tpu.memory_space<vmem>>, vector<32x128xf32>
    %c3_34 = arith.constant 3 : index
    %c0_35 = arith.constant 0 : index
    %c0_36 = arith.constant 0 : index
    %42 = vector.load %arg8[%c3_34, %c0_35, %c0_36] : memref<9x128x256xf32, #tpu.memory_space<vmem>>, vector<1x128x256xf32>
    %43 = vector.shape_cast %42 : vector<1x128x256xf32> to vector<128x256xf32>
    %cst_37 = arith.constant dense<0.000000e+00> : vector<32x256xf32>
    %44 = tpu.matmul %41, %43, %cst_37 {dimension_numbers = #tpu.dot_dimension_numbers<[1], [0], [0], [1], [0, 0, 1, 1], [], []>} : vector<32x128xf32>, vector<128x256xf32>, vector<32x256xf32> -> vector<32x256xf32>
    %45 = arith.addf %40, %44 : vector<32x256xf32>
    %c8_38 = arith.constant 8 : index
    %c0_39 = arith.constant 0 : index
    %46 = vector.load %arg10[%c8_38, %c0_39] : memref<48x128xf32, #tpu.memory_space<vmem>>, vector<32x128xf32>
    %c4_40 = arith.constant 4 : index
    %c0_41 = arith.constant 0 : index
    %c0_42 = arith.constant 0 : index
    %47 = vector.load %arg8[%c4_40, %c0_41, %c0_42] : memref<9x128x256xf32, #tpu.memory_space<vmem>>, vector<1x128x256xf32>
    %48 = vector.shape_cast %47 : vector<1x128x256xf32> to vector<128x256xf32>
    %cst_43 = arith.constant dense<0.000000e+00> : vector<32x256xf32>
    %49 = tpu.matmul %46, %48, %cst_43 {dimension_numbers = #tpu.dot_dimension_numbers<[1], [0], [0], [1], [0, 0, 1, 1], [], []>} : vector<32x128xf32>, vector<128x256xf32>, vector<32x256xf32> -> vector<32x256xf32>
    %50 = arith.addf %45, %49 : vector<32x256xf32>
    %c9 = arith.constant 9 : index
    %c0_44 = arith.constant 0 : index
    %51 = vector.load %arg10[%c9, %c0_44] : memref<48x128xf32, #tpu.memory_space<vmem>>, vector<32x128xf32>
    %c5_45 = arith.constant 5 : index
    %c0_46 = arith.constant 0 : index
    %c0_47 = arith.constant 0 : index
    %52 = vector.load %arg8[%c5_45, %c0_46, %c0_47] : memref<9x128x256xf32, #tpu.memory_space<vmem>>, vector<1x128x256xf32>
    %53 = vector.shape_cast %52 : vector<1x128x256xf32> to vector<128x256xf32>
    %cst_48 = arith.constant dense<0.000000e+00> : vector<32x256xf32>
    %54 = tpu.matmul %51, %53, %cst_48 {dimension_numbers = #tpu.dot_dimension_numbers<[1], [0], [0], [1], [0, 0, 1, 1], [], []>} : vector<32x128xf32>, vector<128x256xf32>, vector<32x256xf32> -> vector<32x256xf32>
    %55 = arith.addf %50, %54 : vector<32x256xf32>
    %c11 = arith.constant 11 : index
    %c0_49 = arith.constant 0 : index
    %56 = vector.load %arg10[%c11, %c0_49] : memref<48x128xf32, #tpu.memory_space<vmem>>, vector<32x128xf32>
    %c6 = arith.constant 6 : index
    %c0_50 = arith.constant 0 : index
    %c0_51 = arith.constant 0 : index
    %57 = vector.load %arg8[%c6, %c0_50, %c0_51] : memref<9x128x256xf32, #tpu.memory_space<vmem>>, vector<1x128x256xf32>
    %58 = vector.shape_cast %57 : vector<1x128x256xf32> to vector<128x256xf32>
    %cst_52 = arith.constant dense<0.000000e+00> : vector<32x256xf32>
    %59 = tpu.matmul %56, %58, %cst_52 {dimension_numbers = #tpu.dot_dimension_numbers<[1], [0], [0], [1], [0, 0, 1, 1], [], []>} : vector<32x128xf32>, vector<128x256xf32>, vector<32x256xf32> -> vector<32x256xf32>
    %60 = arith.addf %55, %59 : vector<32x256xf32>
    %c12 = arith.constant 12 : index
    %c0_53 = arith.constant 0 : index
    %61 = vector.load %arg10[%c12, %c0_53] : memref<48x128xf32, #tpu.memory_space<vmem>>, vector<32x128xf32>
    %c7_54 = arith.constant 7 : index
    %c0_55 = arith.constant 0 : index
    %c0_56 = arith.constant 0 : index
    %62 = vector.load %arg8[%c7_54, %c0_55, %c0_56] : memref<9x128x256xf32, #tpu.memory_space<vmem>>, vector<1x128x256xf32>
    %63 = vector.shape_cast %62 : vector<1x128x256xf32> to vector<128x256xf32>
    %cst_57 = arith.constant dense<0.000000e+00> : vector<32x256xf32>
    %64 = tpu.matmul %61, %63, %cst_57 {dimension_numbers = #tpu.dot_dimension_numbers<[1], [0], [0], [1], [0, 0, 1, 1], [], []>} : vector<32x128xf32>, vector<128x256xf32>, vector<32x256xf32> -> vector<32x256xf32>
    %65 = arith.addf %60, %64 : vector<32x256xf32>
    %c13 = arith.constant 13 : index
    %c0_58 = arith.constant 0 : index
    %66 = vector.load %arg10[%c13, %c0_58] : memref<48x128xf32, #tpu.memory_space<vmem>>, vector<32x128xf32>
    %c8_59 = arith.constant 8 : index
    %c0_60 = arith.constant 0 : index
    %c0_61 = arith.constant 0 : index
    %67 = vector.load %arg8[%c8_59, %c0_60, %c0_61] : memref<9x128x256xf32, #tpu.memory_space<vmem>>, vector<1x128x256xf32>
    %68 = vector.shape_cast %67 : vector<1x128x256xf32> to vector<128x256xf32>
    %cst_62 = arith.constant dense<0.000000e+00> : vector<32x256xf32>
    %69 = tpu.matmul %66, %68, %cst_62 {dimension_numbers = #tpu.dot_dimension_numbers<[1], [0], [0], [1], [0, 0, 1, 1], [], []>} : vector<32x128xf32>, vector<128x256xf32>, vector<32x256xf32> -> vector<32x256xf32>
    %70 = arith.addf %65, %69 : vector<32x256xf32>
    %71 = vector.broadcast %1 : vector<32x1xf32> to vector<32x256xf32>
    %72 = arith.mulf %70, %71 : vector<32x256xf32>
    %73 = arith.addf %0, %72 : vector<32x256xf32>
    %c0_63 = arith.constant 0 : index
    %c0_64 = arith.constant 0 : index
    %74 = vector.load %arg9[%c0_63, %c0_64] : memref<32x256xf32, #tpu.memory_space<vmem>>, vector<32x256xf32>
    tpu.vector_store %arg9[%c0_63, %c0_64], %73 {strides = array<i32>} : memref<32x256xf32, #tpu.memory_space<vmem>>, vector<32x256xf32>,
    return
  }
  func.func @transform_0(%arg0: i32) -> (i32, i32) {
    %c0_i32 = arith.constant 0 : i32
    %c0_i32_0 = arith.constant 0 : i32
    %c0_i32_1 = arith.constant 0 : i32
    return %c0_i32, %c0_i32_0 : i32, i32
  }
  func.func @transform_1(%arg0: i32) -> (i32, i32) {
    %c0_i32 = arith.constant 0 : i32
    %c0_i32_0 = arith.constant 0 : i32
    %c0_i32_1 = arith.constant 0 : i32
    return %c0_i32, %c0_i32_0 : i32, i32
  }
  func.func @transform_2(%arg0: i32) -> (i32, i32) {
    %c0_i32 = arith.constant 0 : i32
    %c0_i32_0 = arith.constant 0 : i32
    %c0_i32_1 = arith.constant 0 : i32
    return %c0_i32, %c0_i32_0 : i32, i32
  }
  func.func @transform_3(%arg0: i32) -> (i32, i32) {
    %c0_i32 = arith.constant 0 : i32
    %c0_i32_0 = arith.constant 0 : i32
    %c0_i32_1 = arith.constant 0 : i32
    return %c0_i32, %c0_i32_0 : i32, i32
  }
  func.func @transform_4(%arg0: i32) -> (i32, i32) {
    %c0_i32 = arith.constant 0 : i32
    %c0_i32_0 = arith.constant 0 : i32
    %c0_i32_1 = arith.constant 0 : i32
    return %c0_i32, %c0_i32_0 : i32, i32
  }
  func.func @transform_5(%arg0: i32) -> (i32, i32) {
    %c0_i32 = arith.constant 0 : i32
    %c0_i32_0 = arith.constant 0 : i32
    %c0_i32_1 = arith.constant 0 : i32
    return %c0_i32, %c0_i32_0 : i32, i32
  }
  func.func @transform_6(%arg0: i32) -> (i32, i32) {
    %c0_i32 = arith.constant 0 : i32
    %c0_i32_0 = arith.constant 0 : i32
    %c0_i32_1 = arith.constant 0 : i32
    return %c0_i32, %c0_i32_0 : i32, i32
  }
  func.func @transform_7(%arg0: i32) -> (i32, i32, i32) {
    %c0_i32 = arith.constant 0 : i32
    %c0_i32_0 = arith.constant 0 : i32
    %c0_i32_1 = arith.constant 0 : i32
    %c0_i32_2 = arith.constant 0 : i32
    return %c0_i32, %c0_i32_0, %c0_i32_1 : i32, i32, i32
  }
  func.func @transform_8(%arg0: i32) -> (i32, i32) {
    %c0_i32 = arith.constant 0 : i32
    %c0_i32_0 = arith.constant 0 : i32
    %c0_i32_1 = arith.constant 0 : i32
    return %c0_i32, %c0_i32_0 : i32, i32
  }
}

module attributes {stable_mosaic.version = 11 : i64} {
  func.func @_bnrelu_matmul_kernel(%arg0: i32, %arg1: memref<2x256xf32, #tpu.memory_space<vmem>>, %arg2: memref<1x256xf32, #tpu.memory_space<vmem>>, %arg3: memref<1x256xf32, #tpu.memory_space<vmem>>, %arg4: memref<256x128xf32, #tpu.memory_space<vmem>>, %arg5: memref<2x128xf32, #tpu.memory_space<vmem>>) attributes {dimension_semantics = [#tpu.dimension_semantics<arbitrary>], iteration_bounds = array<i64: 1>, scalar_prefetch = 0 : i64, scratch_operands = 0 : i64, tpu.core_type = #tpu.core_type<tc>, window_params = [{pipeline_mode = #tpu.pipeline_mode<synchronous>, transform_indices = @transform_0, window_bounds = array<i64: 2, 256>}, {pipeline_mode = #tpu.pipeline_mode<synchronous>, transform_indices = @transform_1, window_bounds = array<i64: 1, 256>}, {pipeline_mode = #tpu.pipeline_mode<synchronous>, transform_indices = @transform_2, window_bounds = array<i64: 1, 256>}, {pipeline_mode = #tpu.pipeline_mode<synchronous>, transform_indices = @transform_3, window_bounds = array<i64: 256, 128>}, {pipeline_mode = #tpu.pipeline_mode<synchronous>, transform_indices = @transform_4, window_bounds = array<i64: 2, 128>}]} {
    %c0 = arith.constant 0 : index
    %c0_0 = arith.constant 0 : index
    %0 = vector.load %arg1[%c0, %c0_0] : memref<2x256xf32, #tpu.memory_space<vmem>>, vector<2x256xf32>
    %c0_1 = arith.constant 0 : index
    %c0_2 = arith.constant 0 : index
    %1 = vector.load %arg2[%c0_1, %c0_2] : memref<1x256xf32, #tpu.memory_space<vmem>>, vector<1x256xf32>
    %2 = vector.broadcast %1 : vector<1x256xf32> to vector<2x256xf32>
    %3 = arith.mulf %0, %2 : vector<2x256xf32>
    %c0_3 = arith.constant 0 : index
    %c0_4 = arith.constant 0 : index
    %4 = vector.load %arg3[%c0_3, %c0_4] : memref<1x256xf32, #tpu.memory_space<vmem>>, vector<1x256xf32>
    %5 = vector.broadcast %4 : vector<1x256xf32> to vector<2x256xf32>
    %6 = arith.addf %3, %5 : vector<2x256xf32>
    %cst = arith.constant 0.000000e+00 : f32
    %7 = vector.broadcast %cst : f32 to vector<2x256xf32>
    %8 = arith.maximumf %6, %7 : vector<2x256xf32>
    %c0_5 = arith.constant 0 : index
    %c0_6 = arith.constant 0 : index
    %9 = vector.load %arg4[%c0_5, %c0_6] : memref<256x128xf32, #tpu.memory_space<vmem>>, vector<256x128xf32>
    %cst_7 = arith.constant dense<0.000000e+00> : vector<2x128xf32>
    %10 = tpu.matmul %8, %9, %cst_7 {dimension_numbers = #tpu.dot_dimension_numbers<[1], [0], [0], [1], [0, 0, 1, 1], [], []>} : vector<2x256xf32>, vector<256x128xf32>, vector<2x128xf32> -> vector<2x128xf32>
    %c0_8 = arith.constant 0 : index
    %c0_9 = arith.constant 0 : index
    %11 = vector.load %arg5[%c0_8, %c0_9] : memref<2x128xf32, #tpu.memory_space<vmem>>, vector<2x128xf32>
    tpu.vector_store %arg5[%c0_8, %c0_9], %10 {strides = array<i32>} : memref<2x128xf32, #tpu.memory_space<vmem>>, vector<2x128xf32>,
    return
  }
  func.func @transform_0(%arg0: i32) -> (i32, i32) {
    %c0_i32 = arith.constant 0 : i32
    %c0_i32_0 = arith.constant 0 : i32
    %c0_i32_1 = arith.constant 0 : i32
    return %c0_i32, %c0_i32_0 : i32, i32
  }
  func.func @transform_1(%arg0: i32) -> (i32, i32) {
    %c0_i32 = arith.constant 0 : i32
    %c0_i32_0 = arith.constant 0 : i32
    %c0_i32_1 = arith.constant 0 : i32
    return %c0_i32, %c0_i32_0 : i32, i32
  }
  func.func @transform_2(%arg0: i32) -> (i32, i32) {
    %c0_i32 = arith.constant 0 : i32
    %c0_i32_0 = arith.constant 0 : i32
    %c0_i32_1 = arith.constant 0 : i32
    return %c0_i32, %c0_i32_0 : i32, i32
  }
  func.func @transform_3(%arg0: i32) -> (i32, i32) {
    %c0_i32 = arith.constant 0 : i32
    %c0_i32_0 = arith.constant 0 : i32
    %c0_i32_1 = arith.constant 0 : i32
    return %c0_i32, %c0_i32_0 : i32, i32
  }
  func.func @transform_4(%arg0: i32) -> (i32, i32) {
    %c0_i32 = arith.constant 0 : i32
    %c0_i32_0 = arith.constant 0 : i32
    %c0_i32_1 = arith.constant 0 : i32
    return %c0_i32, %c0_i32_0 : i32, i32
  }
}

module attributes {stable_mosaic.version = 11 : i64} {
  func.func @_dense_layer_kernel(%arg0: i32, %arg1: memref<18x256xf32, #tpu.memory_space<vmem>>, %arg2: memref<18x1xf32, #tpu.memory_space<vmem>>, %arg3: memref<1x256xf32, #tpu.memory_space<vmem>>, %arg4: memref<1x256xf32, #tpu.memory_space<vmem>>, %arg5: memref<256x128xf32, #tpu.memory_space<vmem>>, %arg6: memref<1x128xf32, #tpu.memory_space<vmem>>, %arg7: memref<1x128xf32, #tpu.memory_space<vmem>>, %arg8: memref<9x128x256xf32, #tpu.memory_space<vmem>>, %arg9: memref<18x256xf32, #tpu.memory_space<vmem>>, %arg10: memref<34x128xf32, #tpu.memory_space<vmem>>) attributes {dimension_semantics = [#tpu.dimension_semantics<arbitrary>], iteration_bounds = array<i64: 1>, scalar_prefetch = 0 : i64, scratch_operands = 1 : i64, tpu.core_type = #tpu.core_type<tc>, window_params = [{pipeline_mode = #tpu.pipeline_mode<synchronous>, transform_indices = @transform_0, window_bounds = array<i64: 18, 256>}, {pipeline_mode = #tpu.pipeline_mode<synchronous>, transform_indices = @transform_1, window_bounds = array<i64: 18, 1>}, {pipeline_mode = #tpu.pipeline_mode<synchronous>, transform_indices = @transform_2, window_bounds = array<i64: 1, 256>}, {pipeline_mode = #tpu.pipeline_mode<synchronous>, transform_indices = @transform_3, window_bounds = array<i64: 1, 256>}, {pipeline_mode = #tpu.pipeline_mode<synchronous>, transform_indices = @transform_4, window_bounds = array<i64: 256, 128>}, {pipeline_mode = #tpu.pipeline_mode<synchronous>, transform_indices = @transform_5, window_bounds = array<i64: 1, 128>}, {pipeline_mode = #tpu.pipeline_mode<synchronous>, transform_indices = @transform_6, window_bounds = array<i64: 1, 128>}, {pipeline_mode = #tpu.pipeline_mode<synchronous>, transform_indices = @transform_7, window_bounds = array<i64: 9, 128, 256>}, {pipeline_mode = #tpu.pipeline_mode<synchronous>, transform_indices = @transform_8, window_bounds = array<i64: 18, 256>}]} {
    %c0 = arith.constant 0 : index
    %c0_0 = arith.constant 0 : index
    %0 = vector.load %arg1[%c0, %c0_0] : memref<18x256xf32, #tpu.memory_space<vmem>>, vector<18x256xf32>
    %c0_1 = arith.constant 0 : index
    %c0_2 = arith.constant 0 : index
    %1 = vector.load %arg2[%c0_1, %c0_2] : memref<18x1xf32, #tpu.memory_space<vmem>>, vector<18x1xf32>
    %c0_3 = arith.constant 0 : index
    %c0_4 = arith.constant 0 : index
    %2 = vector.load %arg3[%c0_3, %c0_4] : memref<1x256xf32, #tpu.memory_space<vmem>>, vector<1x256xf32>
    %3 = vector.broadcast %2 : vector<1x256xf32> to vector<18x256xf32>
    %4 = arith.mulf %0, %3 : vector<18x256xf32>
    %c0_5 = arith.constant 0 : index
    %c0_6 = arith.constant 0 : index
    %5 = vector.load %arg4[%c0_5, %c0_6] : memref<1x256xf32, #tpu.memory_space<vmem>>, vector<1x256xf32>
    %6 = vector.broadcast %5 : vector<1x256xf32> to vector<18x256xf32>
    %7 = arith.addf %4, %6 : vector<18x256xf32>
    %cst = arith.constant 0.000000e+00 : f32
    %8 = vector.broadcast %cst : f32 to vector<18x256xf32>
    %9 = arith.maximumf %7, %8 : vector<18x256xf32>
    %c0_7 = arith.constant 0 : index
    %c0_8 = arith.constant 0 : index
    %10 = vector.load %arg5[%c0_7, %c0_8] : memref<256x128xf32, #tpu.memory_space<vmem>>, vector<256x128xf32>
    %cst_9 = arith.constant dense<0.000000e+00> : vector<18x128xf32>
    %11 = tpu.matmul %9, %10, %cst_9 {dimension_numbers = #tpu.dot_dimension_numbers<[1], [0], [0], [1], [0, 0, 1, 1], [], []>} : vector<18x256xf32>, vector<256x128xf32>, vector<18x128xf32> -> vector<18x128xf32>
    %c0_10 = arith.constant 0 : index
    %c0_11 = arith.constant 0 : index
    %12 = vector.load %arg6[%c0_10, %c0_11] : memref<1x128xf32, #tpu.memory_space<vmem>>, vector<1x128xf32>
    %13 = vector.broadcast %12 : vector<1x128xf32> to vector<18x128xf32>
    %14 = arith.mulf %11, %13 : vector<18x128xf32>
    %c0_12 = arith.constant 0 : index
    %c0_13 = arith.constant 0 : index
    %15 = vector.load %arg7[%c0_12, %c0_13] : memref<1x128xf32, #tpu.memory_space<vmem>>, vector<1x128xf32>
    %16 = vector.broadcast %15 : vector<1x128xf32> to vector<18x128xf32>
    %17 = arith.addf %14, %16 : vector<18x128xf32>
    %cst_14 = arith.constant 0.000000e+00 : f32
    %18 = vector.broadcast %cst_14 : f32 to vector<18x128xf32>
    %19 = arith.maximumf %17, %18 : vector<18x128xf32>
    %20 = vector.broadcast %1 : vector<18x1xf32> to vector<18x128xf32>
    %21 = arith.mulf %19, %20 : vector<18x128xf32>
    %cst_15 = arith.constant 0.000000e+00 : f32
    %22 = vector.broadcast %cst_15 : f32 to vector<34x128xf32>
    %c0_16 = arith.constant 0 : index
    %c0_17 = arith.constant 0 : index
    %23 = vector.load %arg10[%c0_16, %c0_17] : memref<34x128xf32, #tpu.memory_space<vmem>>, vector<34x128xf32>
    tpu.vector_store %arg10[%c0_16, %c0_17], %22 {strides = array<i32>} : memref<34x128xf32, #tpu.memory_space<vmem>>, vector<34x128xf32>,
    %c8 = arith.constant 8 : index
    %c0_18 = arith.constant 0 : index
    %24 = vector.load %arg10[%c8, %c0_18] : memref<34x128xf32, #tpu.memory_space<vmem>>, vector<18x128xf32>
    tpu.vector_store %arg10[%c8, %c0_18], %21 {strides = array<i32>} : memref<34x128xf32, #tpu.memory_space<vmem>>, vector<18x128xf32>,
    %cst_19 = arith.constant 0.000000e+00 : f32
    %25 = vector.broadcast %cst_19 : f32 to vector<18x256xf32>
    %c4 = arith.constant 4 : index
    %c0_20 = arith.constant 0 : index
    %26 = vector.load %arg10[%c4, %c0_20] : memref<34x128xf32, #tpu.memory_space<vmem>>, vector<18x128xf32>
    %c0_21 = arith.constant 0 : index
    %c0_22 = arith.constant 0 : index
    %c0_23 = arith.constant 0 : index
    %27 = vector.load %arg8[%c0_21, %c0_22, %c0_23] : memref<9x128x256xf32, #tpu.memory_space<vmem>>, vector<1x128x256xf32>
    %28 = vector.shape_cast %27 : vector<1x128x256xf32> to vector<128x256xf32>
    %cst_24 = arith.constant dense<0.000000e+00> : vector<18x256xf32>
    %29 = tpu.matmul %26, %28, %cst_24 {dimension_numbers = #tpu.dot_dimension_numbers<[1], [0], [0], [1], [0, 0, 1, 1], [], []>} : vector<18x128xf32>, vector<128x256xf32>, vector<18x256xf32> -> vector<18x256xf32>
    %30 = arith.addf %25, %29 : vector<18x256xf32>
    %c5 = arith.constant 5 : index
    %c0_25 = arith.constant 0 : index
    %31 = vector.load %arg10[%c5, %c0_25] : memref<34x128xf32, #tpu.memory_space<vmem>>, vector<18x128xf32>
    %c1 = arith.constant 1 : index
    %c0_26 = arith.constant 0 : index
    %c0_27 = arith.constant 0 : index
    %32 = vector.load %arg8[%c1, %c0_26, %c0_27] : memref<9x128x256xf32, #tpu.memory_space<vmem>>, vector<1x128x256xf32>
    %33 = vector.shape_cast %32 : vector<1x128x256xf32> to vector<128x256xf32>
    %cst_28 = arith.constant dense<0.000000e+00> : vector<18x256xf32>
    %34 = tpu.matmul %31, %33, %cst_28 {dimension_numbers = #tpu.dot_dimension_numbers<[1], [0], [0], [1], [0, 0, 1, 1], [], []>} : vector<18x128xf32>, vector<128x256xf32>, vector<18x256xf32> -> vector<18x256xf32>
    %35 = arith.addf %30, %34 : vector<18x256xf32>
    %c6 = arith.constant 6 : index
    %c0_29 = arith.constant 0 : index
    %36 = vector.load %arg10[%c6, %c0_29] : memref<34x128xf32, #tpu.memory_space<vmem>>, vector<18x128xf32>
    %c2 = arith.constant 2 : index
    %c0_30 = arith.constant 0 : index
    %c0_31 = arith.constant 0 : index
    %37 = vector.load %arg8[%c2, %c0_30, %c0_31] : memref<9x128x256xf32, #tpu.memory_space<vmem>>, vector<1x128x256xf32>
    %38 = vector.shape_cast %37 : vector<1x128x256xf32> to vector<128x256xf32>
    %cst_32 = arith.constant dense<0.000000e+00> : vector<18x256xf32>
    %39 = tpu.matmul %36, %38, %cst_32 {dimension_numbers = #tpu.dot_dimension_numbers<[1], [0], [0], [1], [0, 0, 1, 1], [], []>} : vector<18x128xf32>, vector<128x256xf32>, vector<18x256xf32> -> vector<18x256xf32>
    %40 = arith.addf %35, %39 : vector<18x256xf32>
    %c7 = arith.constant 7 : index
    %c0_33 = arith.constant 0 : index
    %41 = vector.load %arg10[%c7, %c0_33] : memref<34x128xf32, #tpu.memory_space<vmem>>, vector<18x128xf32>
    %c3 = arith.constant 3 : index
    %c0_34 = arith.constant 0 : index
    %c0_35 = arith.constant 0 : index
    %42 = vector.load %arg8[%c3, %c0_34, %c0_35] : memref<9x128x256xf32, #tpu.memory_space<vmem>>, vector<1x128x256xf32>
    %43 = vector.shape_cast %42 : vector<1x128x256xf32> to vector<128x256xf32>
    %cst_36 = arith.constant dense<0.000000e+00> : vector<18x256xf32>
    %44 = tpu.matmul %41, %43, %cst_36 {dimension_numbers = #tpu.dot_dimension_numbers<[1], [0], [0], [1], [0, 0, 1, 1], [], []>} : vector<18x128xf32>, vector<128x256xf32>, vector<18x256xf32> -> vector<18x256xf32>
    %45 = arith.addf %40, %44 : vector<18x256xf32>
    %c8_37 = arith.constant 8 : index
    %c0_38 = arith.constant 0 : index
    %46 = vector.load %arg10[%c8_37, %c0_38] : memref<34x128xf32, #tpu.memory_space<vmem>>, vector<18x128xf32>
    %c4_39 = arith.constant 4 : index
    %c0_40 = arith.constant 0 : index
    %c0_41 = arith.constant 0 : index
    %47 = vector.load %arg8[%c4_39, %c0_40, %c0_41] : memref<9x128x256xf32, #tpu.memory_space<vmem>>, vector<1x128x256xf32>
    %48 = vector.shape_cast %47 : vector<1x128x256xf32> to vector<128x256xf32>
    %cst_42 = arith.constant dense<0.000000e+00> : vector<18x256xf32>
    %49 = tpu.matmul %46, %48, %cst_42 {dimension_numbers = #tpu.dot_dimension_numbers<[1], [0], [0], [1], [0, 0, 1, 1], [], []>} : vector<18x128xf32>, vector<128x256xf32>, vector<18x256xf32> -> vector<18x256xf32>
    %50 = arith.addf %45, %49 : vector<18x256xf32>
    %c9 = arith.constant 9 : index
    %c0_43 = arith.constant 0 : index
    %51 = vector.load %arg10[%c9, %c0_43] : memref<34x128xf32, #tpu.memory_space<vmem>>, vector<18x128xf32>
    %c5_44 = arith.constant 5 : index
    %c0_45 = arith.constant 0 : index
    %c0_46 = arith.constant 0 : index
    %52 = vector.load %arg8[%c5_44, %c0_45, %c0_46] : memref<9x128x256xf32, #tpu.memory_space<vmem>>, vector<1x128x256xf32>
    %53 = vector.shape_cast %52 : vector<1x128x256xf32> to vector<128x256xf32>
    %cst_47 = arith.constant dense<0.000000e+00> : vector<18x256xf32>
    %54 = tpu.matmul %51, %53, %cst_47 {dimension_numbers = #tpu.dot_dimension_numbers<[1], [0], [0], [1], [0, 0, 1, 1], [], []>} : vector<18x128xf32>, vector<128x256xf32>, vector<18x256xf32> -> vector<18x256xf32>
    %55 = arith.addf %50, %54 : vector<18x256xf32>
    %c10 = arith.constant 10 : index
    %c0_48 = arith.constant 0 : index
    %56 = vector.load %arg10[%c10, %c0_48] : memref<34x128xf32, #tpu.memory_space<vmem>>, vector<18x128xf32>
    %c6_49 = arith.constant 6 : index
    %c0_50 = arith.constant 0 : index
    %c0_51 = arith.constant 0 : index
    %57 = vector.load %arg8[%c6_49, %c0_50, %c0_51] : memref<9x128x256xf32, #tpu.memory_space<vmem>>, vector<1x128x256xf32>
    %58 = vector.shape_cast %57 : vector<1x128x256xf32> to vector<128x256xf32>
    %cst_52 = arith.constant dense<0.000000e+00> : vector<18x256xf32>
    %59 = tpu.matmul %56, %58, %cst_52 {dimension_numbers = #tpu.dot_dimension_numbers<[1], [0], [0], [1], [0, 0, 1, 1], [], []>} : vector<18x128xf32>, vector<128x256xf32>, vector<18x256xf32> -> vector<18x256xf32>
    %60 = arith.addf %55, %59 : vector<18x256xf32>
    %c11 = arith.constant 11 : index
    %c0_53 = arith.constant 0 : index
    %61 = vector.load %arg10[%c11, %c0_53] : memref<34x128xf32, #tpu.memory_space<vmem>>, vector<18x128xf32>
    %c7_54 = arith.constant 7 : index
    %c0_55 = arith.constant 0 : index
    %c0_56 = arith.constant 0 : index
    %62 = vector.load %arg8[%c7_54, %c0_55, %c0_56] : memref<9x128x256xf32, #tpu.memory_space<vmem>>, vector<1x128x256xf32>
    %63 = vector.shape_cast %62 : vector<1x128x256xf32> to vector<128x256xf32>
    %cst_57 = arith.constant dense<0.000000e+00> : vector<18x256xf32>
    %64 = tpu.matmul %61, %63, %cst_57 {dimension_numbers = #tpu.dot_dimension_numbers<[1], [0], [0], [1], [0, 0, 1, 1], [], []>} : vector<18x128xf32>, vector<128x256xf32>, vector<18x256xf32> -> vector<18x256xf32>
    %65 = arith.addf %60, %64 : vector<18x256xf32>
    %c12 = arith.constant 12 : index
    %c0_58 = arith.constant 0 : index
    %66 = vector.load %arg10[%c12, %c0_58] : memref<34x128xf32, #tpu.memory_space<vmem>>, vector<18x128xf32>
    %c8_59 = arith.constant 8 : index
    %c0_60 = arith.constant 0 : index
    %c0_61 = arith.constant 0 : index
    %67 = vector.load %arg8[%c8_59, %c0_60, %c0_61] : memref<9x128x256xf32, #tpu.memory_space<vmem>>, vector<1x128x256xf32>
    %68 = vector.shape_cast %67 : vector<1x128x256xf32> to vector<128x256xf32>
    %cst_62 = arith.constant dense<0.000000e+00> : vector<18x256xf32>
    %69 = tpu.matmul %66, %68, %cst_62 {dimension_numbers = #tpu.dot_dimension_numbers<[1], [0], [0], [1], [0, 0, 1, 1], [], []>} : vector<18x128xf32>, vector<128x256xf32>, vector<18x256xf32> -> vector<18x256xf32>
    %70 = arith.addf %65, %69 : vector<18x256xf32>
    %71 = vector.broadcast %1 : vector<18x1xf32> to vector<18x256xf32>
    %72 = arith.mulf %70, %71 : vector<18x256xf32>
    %73 = arith.addf %0, %72 : vector<18x256xf32>
    %c0_63 = arith.constant 0 : index
    %c0_64 = arith.constant 0 : index
    %74 = vector.load %arg9[%c0_63, %c0_64] : memref<18x256xf32, #tpu.memory_space<vmem>>, vector<18x256xf32>
    tpu.vector_store %arg9[%c0_63, %c0_64], %73 {strides = array<i32>} : memref<18x256xf32, #tpu.memory_space<vmem>>, vector<18x256xf32>,
    return
  }
  func.func @transform_0(%arg0: i32) -> (i32, i32) {
    %c0_i32 = arith.constant 0 : i32
    %c0_i32_0 = arith.constant 0 : i32
    %c0_i32_1 = arith.constant 0 : i32
    return %c0_i32, %c0_i32_0 : i32, i32
  }
  func.func @transform_1(%arg0: i32) -> (i32, i32) {
    %c0_i32 = arith.constant 0 : i32
    %c0_i32_0 = arith.constant 0 : i32
    %c0_i32_1 = arith.constant 0 : i32
    return %c0_i32, %c0_i32_0 : i32, i32
  }
  func.func @transform_2(%arg0: i32) -> (i32, i32) {
    %c0_i32 = arith.constant 0 : i32
    %c0_i32_0 = arith.constant 0 : i32
    %c0_i32_1 = arith.constant 0 : i32
    return %c0_i32, %c0_i32_0 : i32, i32
  }
  func.func @transform_3(%arg0: i32) -> (i32, i32) {
    %c0_i32 = arith.constant 0 : i32
    %c0_i32_0 = arith.constant 0 : i32
    %c0_i32_1 = arith.constant 0 : i32
    return %c0_i32, %c0_i32_0 : i32, i32
  }
  func.func @transform_4(%arg0: i32) -> (i32, i32) {
    %c0_i32 = arith.constant 0 : i32
    %c0_i32_0 = arith.constant 0 : i32
    %c0_i32_1 = arith.constant 0 : i32
    return %c0_i32, %c0_i32_0 : i32, i32
  }
  func.func @transform_5(%arg0: i32) -> (i32, i32) {
    %c0_i32 = arith.constant 0 : i32
    %c0_i32_0 = arith.constant 0 : i32
    %c0_i32_1 = arith.constant 0 : i32
    return %c0_i32, %c0_i32_0 : i32, i32
  }
  func.func @transform_6(%arg0: i32) -> (i32, i32) {
    %c0_i32 = arith.constant 0 : i32
    %c0_i32_0 = arith.constant 0 : i32
    %c0_i32_1 = arith.constant 0 : i32
    return %c0_i32, %c0_i32_0 : i32, i32
  }
  func.func @transform_7(%arg0: i32) -> (i32, i32, i32) {
    %c0_i32 = arith.constant 0 : i32
    %c0_i32_0 = arith.constant 0 : i32
    %c0_i32_1 = arith.constant 0 : i32
    %c0_i32_2 = arith.constant 0 : i32
    return %c0_i32, %c0_i32_0, %c0_i32_1 : i32, i32, i32
  }
  func.func @transform_8(%arg0: i32) -> (i32, i32) {
    %c0_i32 = arith.constant 0 : i32
    %c0_i32_0 = arith.constant 0 : i32
    %c0_i32_1 = arith.constant 0 : i32
    return %c0_i32, %c0_i32_0 : i32, i32
  }
}

</mosaic_0001>

<bundles_post_ra>
// kernel: vision_dqn_dense_forward.70
= control target key start
LH: loop header
LB: loop body
LE: loop exit
PB: predicated region body
PF: predicated region fallthrough
CT: control target
= control target key end

     0   :  { %v559_v0 = vmov 0.0|0.0   ;;  %vm560_vm0 = vmmov 0   ;;  %v561_v6 = vmov 0.0   ;;  %s911_s3 = inlined_call_operand.vmem [shape: f32[128,128], index: 3, kind: input, shape index: {}]   ;;  %s912_s0 = inlined_call_operand.vmem [shape: f32[200,128], index: 0, kind: input, shape index: {}]   ;;  %s913_s1 = inlined_call_operand.vmem [shape: f32[1,128], index: 1, kind: input, shape index: {}]   ;;  %s914_s2 = inlined_call_operand.vmem [shape: f32[1,128], index: 2, kind: input, shape index: {}]   ;;  %s915_s4 = inlined_call_operand.vmem [shape: f32[200,128], index: 4, kind: output, shape index: {}]  }
   0x1   :  { %516 = vmatprep.subr.bf16.mxu0 %v559_v0  ;;  %v131_v1 = vld [vmem:[%s911_s3] sm:$0xff]  ;;  %v132_v2 = vld [vmem:[%s911_s3 + $0x8] sm:$0xff]  ;;  %540 = vmatprep.subr.bf16.mxu1 %v559_v0  ;;  %v133_v3 = vld [vmem:[%s911_s3 + $0x10] sm:$0xff] }
   0x2   :  { %v517_v4 = vpack.c.bf16 %v132_v2, %v131_v1  ;;  %v134_v5 = vld [vmem:[%s911_s3 + $0x18] sm:$0xff]  ;;  %441 = vmatprep.mubr.msk.f32.mxu0 %vm560_vm0, %v561_v6  ;;  %480 = vmatprep.mubr.msk.f32.mxu1 %vm560_vm0, %v561_v6  ;;  %v135_v8 = vld [vmem:[%s911_s3 + $0x20] sm:$0xff]  ;;  %v136_v9 = vld [vmem:[%s911_s3 + $0x28] sm:$0xff] }
   0x3   :  { %v520_v7 = vpack.c.bf16 %v134_v5, %v133_v3  ;;  %v523_v10 = vpack.c.bf16 %v136_v9, %v135_v8  ;;  %v137_v11 = vld [vmem:[%s911_s3 + $0x30] sm:$0xff]  ;;  %v138_v12 = vld [vmem:[%s911_s3 + $0x38] sm:$0xff]  ;;  %v139_v14 = vld [vmem:[%s911_s3 + $0x40] sm:$0xff] }
   0x4   :  { %518 = vmatpush3.bf16.msra.mxu0 %v517_v4  ;;  %548 = vmatpush3.bf16.msra.mxu1 %v517_v4  ;;  %v526_v13 = vpack.c.bf16 %v138_v12, %v137_v11  ;;  %v140_v15 = vld [vmem:[%s911_s3 + $0x48] sm:$0xff]  ;;  %v141_v17 = vld [vmem:[%s911_s3 + $0x50] sm:$0xff]  ;;  %v142_v18 = vld [vmem:[%s911_s3 + $0x58] sm:$0xff] }
   0x5   :  { %519 = vmatprep.subr.bf16.mxu0 %v559_v0  ;;  %541 = vmatprep.subr.bf16.mxu1 %v559_v0  ;;  %v529_v16 = vpack.c.bf16 %v140_v15, %v139_v14  ;;  %v532_v19 = vpack.c.bf16 %v142_v18, %v141_v17  ;;  %v17_v20 = vld [vmem:[%s912_s0] sm:$0xff]  ;;  %v30_v22 = vld [vmem:[%s912_s0 + $0x68] sm:$0xff]  ;;  %v31_v30 = vld [vmem:[%s912_s0 + $0x70] sm:$0xff] }
   0x6   :  { %v643_v21 = vld [vmem:[%s913_s1] ss:$0 sm:$0xff]  ;;  %v144_v24 = vld [vmem:[%s911_s3 + $0x68] sm:$0xff]  ;;  %v145_v31 = vld [vmem:[%s911_s3 + $0x70] sm:$0xff] }
   0x7   :  { %v143_v23 = vld [vmem:[%s911_s3 + $0x60] sm:$0xff]  ;;  %v49_v25 = vmul.f32 %v643_v21, %v17_v20  ;;  %v62_v26 = vmul.f32 %v643_v21, %v30_v22  ;;  %v18_v27 = vld [vmem:[%s912_s0 + $0x8] sm:$0xff]  ;;  %v146_v32 = vld [vmem:[%s911_s3 + $0x78] sm:$0xff]  ;;  %v63_v36 = vmul.f32 %v643_v21, %v31_v30 }
   0x8   :  { %521 = vmatpush3.bf16.msra.mxu0 %v520_v7  ;;  %549 = vmatpush3.bf16.msra.mxu1 %v520_v7  ;;  %v535_v28 = vpack.c.bf16 %v144_v24, %v143_v23  ;;  %v664_v29 = vld [vmem:[%s914_s2] ss:$0 sm:$0xff]  ;;  %v50_v33 = vmul.f32 %v643_v21, %v18_v27  ;;  %v19_v37 = vld [vmem:[%s912_s0 + $0x10] sm:$0xff]  ;;  %v538_v38 = vpack.c.bf16 %v146_v32, %v145_v31  ;;  %v32_v39 = vld [vmem:[%s912_s0 + $0x78] sm:$0xff] }
   0x9   :  { %522 = vmatprep.subr.bf16.mxu0 %v559_v0  ;;  %542 = vmatprep.subr.bf16.mxu1 %v559_v0  ;;  %v81_v34 = vadd.f32 %v664_v29, %v49_v25  ;;  %v94_v35 = vadd.f32 %v664_v29, %v62_v26  ;;  %v51_v41 = vmul.f32 %v643_v21, %v19_v37  ;;  %v20_v46 = vld [vmem:[%s912_s0 + $0x18] sm:$0xff]  ;;  %v33_v47 = vld [vmem:[%s912_s0 + $0x80] sm:$0xff]  ;;  %v34_v55 = vld [vmem:[%s912_s0 + $0x88] sm:$0xff] }
   0xa   :  { %v82_v40 = vadd.f32 %v664_v29, %v50_v33  ;;  %v95_v44 = vadd.f32 %v664_v29, %v63_v36  ;;  %v64_v45 = vmul.f32 %v643_v21, %v32_v39  ;;  %v52_v49 = vmul.f32 %v643_v21, %v20_v46  ;;  %v21_v54 = vld [vmem:[%s912_s0 + $0x20] sm:$0xff]  ;;  %v22_v62 = vld [vmem:[%s912_s0 + $0x28] sm:$0xff]  ;;  %v35_v63 = vld [vmem:[%s912_s0 + $0x90] sm:$0xff] }
   0xb   :  { %v106_v42 = vmax.f32 %v81_v34, 0.0  ;;  %v119_v43 = vmax.f32 %v94_v35, 0.0  ;;  %v83_v48 = vadd.f32 %v664_v29, %v51_v41  ;;  %v65_v53 = vmul.f32 %v643_v21, %v33_v47  ;;  %v23_v7 = vld [vmem:[%s912_s0 + $0x30] sm:$0xff]  ;;  %v36_v8 = vld [vmem:[%s912_s0 + $0x98] sm:$0xff]  ;;  %v25_v24 = vld [vmem:[%s912_s0 + $0x40] sm:$0xff] }
   0xc   :  { %524 = vmatpush3.bf16.msra.mxu0 %v523_v10  ;;  %550 = vmatpush3.bf16.msra.mxu1 %v523_v10  ;;  %v107_v50 = vmax.f32 %v82_v40, 0.0  ;;  %v120_v51 = vmax.f32 %v95_v44, 0.0  ;;  %v96_v52 = vadd.f32 %v664_v29, %v64_v45  ;;  %v84_v57 = vadd.f32 %v664_v29, %v52_v49  ;;  %v24_v15 = vld [vmem:[%s912_s0 + $0x38] sm:$0xff]  ;;  %v38_v25 = vld [vmem:[%s912_s0 + $0xa8] sm:$0xff]  ;;  %v39_v34 = vld [vmem:[%s912_s0 + $0xb0] sm:$0xff] }
   0xd   :  { %525 = vmatprep.subr.bf16.mxu0 %v559_v0  ;;  %543 = vmatprep.subr.bf16.mxu1 %v559_v0  ;;  %v108_v56 = vmax.f32 %v83_v48, 0.0  ;;  %v97_v59 = vadd.f32 %v664_v29, %v65_v53  ;;  %v53_v60 = vmul.f32 %v643_v21, %v21_v54  ;;  %v66_v61 = vmul.f32 %v643_v21, %v34_v55  ;;  %v26_v33 = vld [vmem:[%s912_s0 + $0x48] sm:$0xff]  ;;  %v27_v41 = vld [vmem:[%s912_s0 + $0x50] sm:$0xff]  ;;  %v28_v49 = vld [vmem:[%s912_s0 + $0x58] sm:$0xff] }
   0xe   :  { %v121_v58 = vmax.f32 %v96_v52, 0.0  ;;  %v54_v1 = vmul.f32 %v643_v21, %v22_v62  ;;  %v67_v5 = vmul.f32 %v643_v21, %v35_v63  ;;  %v55_v10 = vmul.f32 %v643_v21, %v23_v7 }
   0xf   :  { %v122_v2 = vmax.f32 %v97_v59, 0.0  ;;  %v85_v3 = vadd.f32 %v664_v29, %v53_v60  ;;  %v98_v4 = vadd.f32 %v664_v29, %v66_v61  ;;  %v68_v14 = vmul.f32 %v643_v21, %v36_v8 }
  0x10   :  { %527 = vmatpush3.bf16.msra.mxu0 %v526_v13  ;;  %551 = vmatpush3.bf16.msra.mxu1 %v526_v13  ;;  %v86_v9 = vadd.f32 %v664_v29, %v54_v1  ;;  %v99_v13 = vadd.f32 %v664_v29, %v67_v5  ;;  %v87_v17 = vadd.f32 %v664_v29, %v55_v10 }
  0x11   :  { %528 = vmatprep.subr.bf16.mxu0 %v559_v0  ;;  %544 = vmatprep.subr.bf16.mxu1 %v559_v0  ;;  %v110_v11 = vmax.f32 %v85_v3, 0.0  ;;  %v123_v12 = vmax.f32 %v98_v4, 0.0  ;;  %v56_v18 = vmul.f32 %v643_v21, %v24_v15  ;;  %v100_v22 = vadd.f32 %v664_v29, %v68_v14 }
  0x12   :  { %v124_v20 = vmax.f32 %v99_v13, 0.0  ;;  %v112_v26 = vmax.f32 %v87_v17, 0.0  ;;  %v57_v31 = vmul.f32 %v643_v21, %v25_v24  ;;  %v70_v32 = vmul.f32 %v643_v21, %v38_v25 }
  0x13   :  { %v88_v27 = vadd.f32 %v664_v29, %v56_v18  ;;  %v58_v36 = vmul.f32 %v643_v21, %v26_v33  ;;  %v71_v40 = vmul.f32 %v643_v21, %v39_v34  ;;  %v59_v44 = vmul.f32 %v643_v21, %v27_v41 }
  0x14   :  { %530 = vmatpush3.bf16.msra.mxu0 %v529_v16  ;;  %552 = vmatpush3.bf16.msra.mxu1 %v529_v16  ;;  %v37_v16 = vld [vmem:[%s912_s0 + $0xa0] sm:$0xff]  ;;  %v102_v39 = vadd.f32 %v664_v29, %v70_v32  ;;  %v60_v52 = vmul.f32 %v643_v21, %v28_v49 }
  0x15   :  { %531 = vmatprep.subr.bf16.mxu0 %v559_v0  ;;  %545 = vmatprep.subr.bf16.mxu1 %v559_v0  ;;  %v69_v23 = vmul.f32 %v643_v21, %v37_v16  ;;  %v113_v35 = vmax.f32 %v88_v27, 0.0  ;;  %v103_v47 = vadd.f32 %v664_v29, %v71_v40 }
  0x16   :  { %v127_v46 = vmax.f32 %v102_v39, 0.0  ;;  %v92_v60 = vadd.f32 %v664_v29, %v60_v52 }
  0x17   :  { %v101_v30 = vadd.f32 %v664_v29, %v69_v23  ;;  %v128_v54 = vmax.f32 %v103_v47, 0.0 }
  0x18   :  { %533 = vmatpush3.bf16.msra.mxu0 %v532_v19  ;;  %553 = vmatpush3.bf16.msra.mxu1 %v532_v19  ;;  %v111_v19 = vmax.f32 %v86_v9, 0.0  ;;  %v117_v63 = vmax.f32 %v92_v60, 0.0 }
  0x19   :  { %534 = vmatprep.subr.bf16.mxu0 %v559_v0  ;;  %546 = vmatprep.subr.bf16.mxu1 %v559_v0  ;;  %v126_v37 = vmax.f32 %v101_v30, 0.0 }
  0x1c   :  { %536 = vmatpush3.bf16.msra.mxu0 %v535_v28  ;;  %554 = vmatpush3.bf16.msra.mxu1 %v535_v28  ;;  %v125_v28 = vmax.f32 %v100_v22, 0.0 }
  0x1d   :  { %537 = vmatprep.subr.bf16.mxu0 %v559_v0  ;;  %547 = vmatprep.subr.bf16.mxu1 %v559_v0  ;;  %v109_v0 = vmax.f32 %v84_v57, 0.0  ;;  %v29_v57 = vld [vmem:[%s912_s0 + $0x60] sm:$0xff] }
  0x1e   :  { %v61_v62 = vmul.f32 %v643_v21, %v29_v57 }
  0x20   :  { %539 = vmatpush3.bf16.msra.mxu0 %v538_v38  ;;  %555 = vmatpush3.bf16.msra.mxu1 %v538_v38  ;;  %v89_v38 = vadd.f32 %v664_v29, %v57_v31  ;;  %v93_v1 = vadd.f32 %v664_v29, %v61_v62 }
  0x22   :  { %v114_v45 = vmax.f32 %v89_v38, 0.0 }
  0x23   :  { %442 = vmatmul.mubr.f32.vlgmr.msra.gmra.mrb[0].mxu0 %v106_v42  ;;  %481 = vmatmul.mubr.f32.vlgmr.msra.gmra.mrb[0].mxu1 %v119_v43  ;;  %v40_v42 = vld [vmem:[%s912_s0 + $0xb8] sm:$0xff]  ;;  %v90_v43 = vadd.f32 %v664_v29, %v58_v36 }
  0x24   :  { %444 = vmatprep.mubr.msk.f32.mxu0 %vm560_vm0, %v561_v6  ;;  %483 = vmatprep.mubr.msk.f32.mxu1 %vm560_vm0, %v561_v6  ;;  %v72_v48 = vmul.f32 %v643_v21, %v40_v42 }
  0x25   :  { %v115_v53 = vmax.f32 %v90_v43, 0.0 }
  0x26   :  { %v104_v55 = vadd.f32 %v664_v29, %v72_v48 }
  0x27   :  { %445 = vmatmul.mubr.f32.gmra.mrb[2].mxu0 %v107_v50  ;;  %484 = vmatmul.mubr.f32.gmra.mrb[2].mxu1 %v120_v51  ;;  %v41_v50 = vld [vmem:[%s912_s0 + $0xc0] sm:$0xff]  ;;  %v91_v51 = vadd.f32 %v664_v29, %v59_v44 }
  0x28   :  { %447 = vmatprep.mubr.msk.f32.mxu0 %vm560_vm0, %v561_v6  ;;  %486 = vmatprep.mubr.msk.f32.mxu1 %vm560_vm0, %v561_v6  ;;  %v129_v59 = vmax.f32 %v104_v55, 0.0 }
  0x2b   :  { %448 = vmatmul.mubr.f32.gmra.mrb[4].mxu0 %v108_v56  ;;  %487 = vmatmul.mubr.f32.gmra.mrb[4].mxu1 %v121_v58  ;;  %v73_v56 = vmul.f32 %v643_v21, %v41_v50  ;;  %v116_v58 = vmax.f32 %v91_v51, 0.0  ;;  %v118_v21 = vmax.f32 %v93_v1, 0.0 }
  0x2c   :  { %450 = vmatprep.mubr.msk.f32.mxu0 %vm560_vm0, %v561_v6  ;;  %489 = vmatprep.mubr.msk.f32.mxu1 %vm560_vm0, %v561_v6 }
  0x2d   :  { %v105_v61 = vadd.f32 %v664_v29, %v73_v56 }
  0x2f   :  { %451 = vmatmul.mubr.f32.gmra.mrb[6].mxu0 %v109_v0  ;;  %490 = vmatmul.mubr.f32.gmra.mrb[6].mxu1 %v122_v2  ;;  %v130_v0 = vmax.f32 %v105_v61, 0.0 }
  0x30   :  { %453 = vmatprep.mubr.msk.f32.mxu0 %vm560_vm0, %v561_v6  ;;  %492 = vmatprep.mubr.msk.f32.mxu1 %vm560_vm0, %v561_v6 }
  0x33   :  { %454 = vmatmul.mubr.f32.gmra.mrb[8].mxu0 %v110_v11  ;;  %493 = vmatmul.mubr.f32.gmra.mrb[8].mxu1 %v123_v12 }
  0x34   :  { %456 = vmatprep.mubr.msk.f32.mxu0 %vm560_vm0, %v561_v6  ;;  %495 = vmatprep.mubr.msk.f32.mxu1 %vm560_vm0, %v561_v6 }
  0x37   :  { %457 = vmatmul.mubr.f32.gmra.mrb[10].mxu0 %v111_v19  ;;  %496 = vmatmul.mubr.f32.gmra.mrb[10].mxu1 %v124_v20 }
  0x38   :  { %459 = vmatprep.mubr.msk.f32.mxu0 %vm560_vm0, %v561_v6  ;;  %498 = vmatprep.mubr.msk.f32.mxu1 %vm560_vm0, %v561_v6 }
  0x3b   :  { %460 = vmatmul.mubr.f32.gmra.mrb[12].mxu0 %v112_v26  ;;  %499 = vmatmul.mubr.f32.gmra.mrb[12].mxu1 %v125_v28 }
  0x3c   :  { %462 = vmatprep.mubr.msk.f32.mxu0 %vm560_vm0, %v561_v6  ;;  %501 = vmatprep.mubr.msk.f32.mxu1 %vm560_vm0, %v561_v6 }
  0x3f   :  { %463 = vmatmul.mubr.f32.gmra.mrb[14].mxu0 %v113_v35  ;;  %502 = vmatmul.mubr.f32.gmra.mrb[14].mxu1 %v126_v37 }
  0x40   :  { %465 = vmatprep.mubr.msk.f32.mxu0 %vm560_vm0, %v561_v6  ;;  %504 = vmatprep.mubr.msk.f32.mxu1 %vm560_vm0, %v561_v6 }
  0x43   :  { %466 = vmatmul.mubr.f32.gmra.mrb[16].mxu0 %v114_v45  ;;  %505 = vmatmul.mubr.f32.gmra.mrb[16].mxu1 %v127_v46 }
  0x44   :  { %468 = vmatprep.mubr.msk.f32.mxu0 %vm560_vm0, %v561_v6  ;;  %507 = vmatprep.mubr.msk.f32.mxu1 %vm560_vm0, %v561_v6 }
  0x47   :  { %469 = vmatmul.mubr.f32.gmra.mrb[18].mxu0 %v115_v53  ;;  %508 = vmatmul.mubr.f32.gmra.mrb[18].mxu1 %v128_v54 }
  0x48   :  { %471 = vmatprep.mubr.msk.f32.mxu0 %vm560_vm0, %v561_v6  ;;  %510 = vmatprep.mubr.msk.f32.mxu1 %vm560_vm0, %v561_v6 }
  0x4b   :  { %472 = vmatmul.mubr.f32.gmra.mrb[20].mxu0 %v116_v58  ;;  %511 = vmatmul.mubr.f32.gmra.mrb[20].mxu1 %v129_v59 }
  0x4c   :  { %474 = vmatprep.mubr.msk.f32.mxu0 %vm560_vm0, %v561_v6  ;;  %513 = vmatprep.mubr.msk.f32.mxu1 %vm560_vm0, %v561_v6 }
  0x4f   :  { %475 = vmatmul.mubr.f32.gmra.mrb[22].mxu0 %v117_v63  ;;  %514 = vmatmul.mubr.f32.gmra.mrb[22].mxu1 %v130_v0 }
  0x50   :  { %477 = vmatprep.mubr.msk.f32.mxu0 %vm560_vm0, %v561_v6 }
  0x53   :  { %478 = vmatmul.mubr.f32.gmra.mrb[24].mxu0 %v118_v21 }
  0xf6   :  { %v213_v2 = vpop.f32.mrb[0].mxu0  ;;  %v278_v3 = vpop.f32.mrb[0].mxu1 }
  0xf7   :  { %337 = vst [vmem:[%s915_s4] sm:$0xff] %v213_v2  ;;  %v443_v29 = vpop.f32.mrb[1].mxu0  ;;  %350 = vst [vmem:[%s915_s4 + $0x68] sm:$0xff] %v278_v3  ;;  %v482_v4 = vpop.f32.mrb[1].mxu1 }
  0xfa   :  { %v218_v5 = vpop.f32.mrb[2].mxu0  ;;  %v283_v7 = vpop.f32.mrb[2].mxu1 }
  0xfb   :  { %338 = vst [vmem:[%s915_s4 + $0x8] sm:$0xff] %v218_v5  ;;  %v446_v6 = vpop.f32.mrb[3].mxu0  ;;  %351 = vst [vmem:[%s915_s4 + $0x70] sm:$0xff] %v283_v7  ;;  %v485_v8 = vpop.f32.mrb[3].mxu1 }
  0xfe   :  { %v223_v9 = vpop.f32.mrb[4].mxu0  ;;  %v288_v10 = vpop.f32.mrb[4].mxu1 }
  0xff   :  { %339 = vst [vmem:[%s915_s4 + $0x10] sm:$0xff] %v223_v9  ;;  %v449_v11 = vpop.f32.mrb[5].mxu0  ;;  %352 = vst [vmem:[%s915_s4 + $0x78] sm:$0xff] %v288_v10  ;;  %v488_v12 = vpop.f32.mrb[5].mxu1 }
 0x102   :  { %v228_v13 = vpop.f32.mrb[6].mxu0  ;;  %v293_v14 = vpop.f32.mrb[6].mxu1 }
 0x103   :  { %340 = vst [vmem:[%s915_s4 + $0x18] sm:$0xff] %v228_v13  ;;  %v452_v15 = vpop.f32.mrb[7].mxu0  ;;  %353 = vst [vmem:[%s915_s4 + $0x80] sm:$0xff] %v293_v14  ;;  %v491_v16 = vpop.f32.mrb[7].mxu1 }
 0x106   :  { %v233_v17 = vpop.f32.mrb[8].mxu0  ;;  %v298_v18 = vpop.f32.mrb[8].mxu1 }
 0x107   :  { %341 = vst [vmem:[%s915_s4 + $0x20] sm:$0xff] %v233_v17  ;;  %v455_v19 = vpop.f32.mrb[9].mxu0  ;;  %354 = vst [vmem:[%s915_s4 + $0x88] sm:$0xff] %v298_v18  ;;  %v494_v20 = vpop.f32.mrb[9].mxu1 }
 0x10a   :  { %v238_v22 = vpop.f32.mrb[10].mxu0  ;;  %v303_v23 = vpop.f32.mrb[10].mxu1 }
 0x10b   :  { %342 = vst [vmem:[%s915_s4 + $0x28] sm:$0xff] %v238_v22  ;;  %v458_v24 = vpop.f32.mrb[11].mxu0  ;;  %355 = vst [vmem:[%s915_s4 + $0x90] sm:$0xff] %v303_v23  ;;  %v497_v25 = vpop.f32.mrb[11].mxu1 }
 0x10e   :  { %v243_v26 = vpop.f32.mrb[12].mxu0  ;;  %v308_v27 = vpop.f32.mrb[12].mxu1 }
 0x10f   :  { %343 = vst [vmem:[%s915_s4 + $0x30] sm:$0xff] %v243_v26  ;;  %v461_v28 = vpop.f32.mrb[13].mxu0  ;;  %356 = vst [vmem:[%s915_s4 + $0x98] sm:$0xff] %v308_v27  ;;  %v500_v30 = vpop.f32.mrb[13].mxu1 }
 0x112   :  { %v248_v31 = vpop.f32.mrb[14].mxu0  ;;  %v313_v32 = vpop.f32.mrb[14].mxu1 }
 0x113   :  { %344 = vst [vmem:[%s915_s4 + $0x38] sm:$0xff] %v248_v31  ;;  %v464_v33 = vpop.f32.mrb[15].mxu0  ;;  %357 = vst [vmem:[%s915_s4 + $0xa0] sm:$0xff] %v313_v32  ;;  %v503_v34 = vpop.f32.mrb[15].mxu1 }
 0x116   :  { %v253_v35 = vpop.f32.mrb[16].mxu0  ;;  %v318_v36 = vpop.f32.mrb[16].mxu1 }
 0x117   :  { %345 = vst [vmem:[%s915_s4 + $0x40] sm:$0xff] %v253_v35  ;;  %v467_v37 = vpop.f32.mrb[17].mxu0  ;;  %358 = vst [vmem:[%s915_s4 + $0xa8] sm:$0xff] %v318_v36  ;;  %v506_v38 = vpop.f32.mrb[17].mxu1 }
 0x11a   :  { %v258_v39 = vpop.f32.mrb[18].mxu0  ;;  %v323_v40 = vpop.f32.mrb[18].mxu1 }
 0x11b   :  { %346 = vst [vmem:[%s915_s4 + $0x48] sm:$0xff] %v258_v39  ;;  %v470_v41 = vpop.f32.mrb[19].mxu0  ;;  %359 = vst [vmem:[%s915_s4 + $0xb0] sm:$0xff] %v323_v40  ;;  %v509_v42 = vpop.f32.mrb[19].mxu1 }
 0x11e   :  { %v263_v43 = vpop.f32.mrb[20].mxu0  ;;  %v328_v44 = vpop.f32.mrb[20].mxu1 }
 0x11f   :  { %347 = vst [vmem:[%s915_s4 + $0x50] sm:$0xff] %v263_v43  ;;  %v473_v45 = vpop.f32.mrb[21].mxu0  ;;  %360 = vst [vmem:[%s915_s4 + $0xb8] sm:$0xff] %v328_v44  ;;  %v512_v46 = vpop.f32.mrb[21].mxu1 }
 0x122   :  { %v268_v47 = vpop.f32.mrb[22].mxu0  ;;  %v333_v48 = vpop.f32.mrb[22].mxu1 }
 0x123   :  { %348 = vst [vmem:[%s915_s4 + $0x58] sm:$0xff] %v268_v47  ;;  %v476_v49 = vpop.f32.mrb[23].mxu0  ;;  %361 = vst [vmem:[%s915_s4 + $0xc0] sm:$0xff] %v333_v48  ;;  %v515_v50 = vpop.f32.mrb[23].mxu1 }
 0x126   :  { %v273_v51 = vpop.f32.mrb[24].mxu0 }
 0x127   :  { %349 = vst [vmem:[%s915_s4 + $0x60] sm:$0xff] %v273_v51  ;;  %v479_v52 = vpop.f32.mrb[25].mxu0 }

// kernel: vision_dqn_dense_forward.63
= control target key start
LH: loop header
LB: loop body
LE: loop exit
PB: predicated region body
PF: predicated region fallthrough
CT: control target
= control target key end

     0   :  { %v919_v0 = vmov 0.0|0.0   ;;  %s1787_s1 = inlined_call_operand.vmem [shape: f32[256,128], index: 1, kind: input, shape index: {}]   ;;  %s1788_s0 = inlined_call_operand.vmem [shape: f32[512,256], index: 0, kind: input, shape index: {}]   ;;  %s1789_s2 = inlined_call_operand.vmem [shape: f32[1,128], index: 2, kind: input, shape index: {}]   ;;  %s1790_s3 = inlined_call_operand.vmem [shape: f32[1,128], index: 3, kind: input, shape index: {}]   ;;  %s1791_s4 = inlined_call_operand.vmem [shape: f32[512,128], index: 4, kind: output, shape index: {}]  }
   0x1   :  { %838 = vmatprep.subr.bf16.mxu0 %v919_v0  ;;  %886 = vmatprep.subr.bf16.mxu1 %v919_v0  ;;  %v145_v1 = vld [vmem:[%s1787_s1] sm:$0xff]  ;;  %v146_v2 = vld [vmem:[%s1787_s1 + $0x8] sm:$0xff]  ;;  %v147_v3 = vld [vmem:[%s1787_s1 + $0x10] sm:$0xff] }
   0x2   :  { %v839_v4 = vpack.c.bf16 %v146_v2, %v145_v1  ;;  %v148_v5 = vld [vmem:[%s1787_s1 + $0x18] sm:$0xff]  ;;  %v149_v7 = vld [vmem:[%s1787_s1 + $0x20] sm:$0xff]  ;;  %v150_v8 = vld [vmem:[%s1787_s1 + $0x28] sm:$0xff] }
   0x3   :  { %v842_v6 = vpack.c.bf16 %v148_v5, %v147_v3  ;;  %v845_v9 = vpack.c.bf16 %v150_v8, %v149_v7  ;;  %v151_v10 = vld [vmem:[%s1787_s1 + $0x30] sm:$0xff]  ;;  %v152_v11 = vld [vmem:[%s1787_s1 + $0x38] sm:$0xff]  ;;  %v18_v12 = vld [vmem:[%s1788_s0 + $0x8] sm:$0xff] }
   0x4   :  { %840 = vmatpush1.bf16.msra.mxu0 %v839_v4  ;;  %902 = vmatpush1.bf16.msra.mxu1 %v839_v4  ;;  %v848_v13 = vpack.c.bf16 %v152_v11, %v151_v10  ;;  %v82_v14 = vld [vmem:[%s1788_s0 + $0x208] sm:$0xff]  ;;  %v153_v15 = vld [vmem:[%s1787_s1 + $0x40] sm:$0xff]  ;;  %v155_v18 = vld [vmem:[%s1787_s1 + $0x50] sm:$0xff] }
   0x5   :  { %841 = vmatprep.subr.bf16.mxu0 %v919_v0  ;;  %887 = vmatprep.subr.bf16.mxu1 %v919_v0  ;;  %v154_v16 = vld [vmem:[%s1787_s1 + $0x48] sm:$0xff]  ;;  %v156_v19 = vld [vmem:[%s1787_s1 + $0x58] sm:$0xff]  ;;  %v157_v21 = vld [vmem:[%s1787_s1 + $0x60] sm:$0xff] }
   0x6   :  { %241 = vmatprep.mubr.f32.mxu0 %v18_v12  ;;  %401 = vmatprep.mubr.f32.mxu1 %v82_v14  ;;  %v851_v17 = vpack.c.bf16 %v154_v16, %v153_v15  ;;  %v854_v20 = vpack.c.bf16 %v156_v19, %v155_v18  ;;  %v158_v22 = vld [vmem:[%s1787_s1 + $0x68] sm:$0xff]  ;;  %v159_v24 = vld [vmem:[%s1787_s1 + $0x70] sm:$0xff]  ;;  %v160_v25 = vld [vmem:[%s1787_s1 + $0x78] sm:$0xff] }
   0x7   :  { %v857_v23 = vpack.c.bf16 %v158_v22, %v157_v21  ;;  %v860_v26 = vpack.c.bf16 %v160_v25, %v159_v24  ;;  %v161_v27 = vld [vmem:[%s1787_s1 + $0x80] sm:$0xff]  ;;  %v162_v28 = vld [vmem:[%s1787_s1 + $0x88] sm:$0xff]  ;;  %v163_v30 = vld [vmem:[%s1787_s1 + $0x90] sm:$0xff] }
   0x8   :  { %843 = vmatpush1.bf16.msra.mxu0 %v842_v6  ;;  %903 = vmatpush1.bf16.msra.mxu1 %v842_v6  ;;  %v863_v29 = vpack.c.bf16 %v162_v28, %v161_v27  ;;  %v164_v31 = vld [vmem:[%s1787_s1 + $0x98] sm:$0xff]  ;;  %v165_v33 = vld [vmem:[%s1787_s1 + $0xa0] sm:$0xff]  ;;  %v166_v34 = vld [vmem:[%s1787_s1 + $0xa8] sm:$0xff] }
   0x9   :  { %844 = vmatprep.subr.bf16.mxu0 %v919_v0  ;;  %888 = vmatprep.subr.bf16.mxu1 %v919_v0  ;;  %v866_v32 = vpack.c.bf16 %v164_v31, %v163_v30  ;;  %v869_v35 = vpack.c.bf16 %v166_v34, %v165_v33  ;;  %v167_v36 = vld [vmem:[%s1787_s1 + $0xb0] sm:$0xff]  ;;  %v168_v37 = vld [vmem:[%s1787_s1 + $0xb8] sm:$0xff]  ;;  %v169_v39 = vld [vmem:[%s1787_s1 + $0xc0] sm:$0xff] }
   0xa   :  { %v872_v38 = vpack.c.bf16 %v168_v37, %v167_v36  ;;  %v170_v40 = vld [vmem:[%s1787_s1 + $0xc8] sm:$0xff]  ;;  %v171_v42 = vld [vmem:[%s1787_s1 + $0xd0] sm:$0xff]  ;;  %v172_v43 = vld [vmem:[%s1787_s1 + $0xd8] sm:$0xff] }
   0xb   :  { %v875_v41 = vpack.c.bf16 %v170_v40, %v169_v39  ;;  %v878_v44 = vpack.c.bf16 %v172_v43, %v171_v42  ;;  %v173_v45 = vld [vmem:[%s1787_s1 + $0xe0] sm:$0xff]  ;;  %v174_v46 = vld [vmem:[%s1787_s1 + $0xe8] sm:$0xff]  ;;  %v175_v48 = vld [vmem:[%s1787_s1 + $0xf0] sm:$0xff] }
   0xc   :  { %846 = vmatpush1.bf16.msra.mxu0 %v845_v9  ;;  %904 = vmatpush1.bf16.msra.mxu1 %v845_v9  ;;  %v881_v47 = vpack.c.bf16 %v174_v46, %v173_v45  ;;  %v176_v49 = vld [vmem:[%s1787_s1 + $0xf8] sm:$0xff]  ;;  %v17_v51 = vld [vmem:[%s1788_s0] sm:$0xff]  ;;  %v19_v55 = vld [vmem:[%s1788_s0 + $0x10] sm:$0xff] }
   0xd   :  { %847 = vmatprep.subr.bf16.mxu0 %v919_v0  ;;  %889 = vmatprep.subr.bf16.mxu1 %v919_v0  ;;  %v884_v50 = vpack.c.bf16 %v176_v49, %v175_v48  ;;  %v81_v52 = vld [vmem:[%s1788_s0 + $0x200] sm:$0xff]  ;;  %v20_v53 = vld [vmem:[%s1788_s0 + $0x18] sm:$0xff]  ;;  %v83_v56 = vld [vmem:[%s1788_s0 + $0x210] sm:$0xff] }
   0xe   :  { %v84_v54 = vld [vmem:[%s1788_s0 + $0x218] sm:$0xff]  ;;  %v22_v57 = vld [vmem:[%s1788_s0 + $0x28] sm:$0xff]  ;;  %v21_v59 = vld [vmem:[%s1788_s0 + $0x20] sm:$0xff] }
   0xf   :  { %v86_v58 = vld [vmem:[%s1788_s0 + $0x228] sm:$0xff]  ;;  %v85_v60 = vld [vmem:[%s1788_s0 + $0x220] sm:$0xff]  ;;  %v24_v61 = vld [vmem:[%s1788_s0 + $0x38] sm:$0xff] }
  0x10   :  { %849 = vmatpush1.bf16.msra.mxu0 %v848_v13  ;;  %905 = vmatpush1.bf16.msra.mxu1 %v848_v13  ;;  %v88_v62 = vld [vmem:[%s1788_s0 + $0x238] sm:$0xff]  ;;  %v23_v63 = vld [vmem:[%s1788_s0 + $0x30] sm:$0xff]  ;;  %v26_v1 = vld [vmem:[%s1788_s0 + $0x48] sm:$0xff] }
  0x11   :  { %850 = vmatprep.subr.bf16.mxu0 %v919_v0  ;;  %890 = vmatprep.subr.bf16.mxu1 %v919_v0  ;;  %v90_v2 = vld [vmem:[%s1788_s0 + $0x248] sm:$0xff]  ;;  %v25_v3 = vld [vmem:[%s1788_s0 + $0x40] sm:$0xff]  ;;  %v28_v5 = vld [vmem:[%s1788_s0 + $0x58] sm:$0xff] }
  0x12   :  { %v89_v4 = vld [vmem:[%s1788_s0 + $0x240] sm:$0xff]  ;;  %v92_v6 = vld [vmem:[%s1788_s0 + $0x258] sm:$0xff]  ;;  %v27_v7 = vld [vmem:[%s1788_s0 + $0x50] sm:$0xff] }
  0x13   :  { %v91_v8 = vld [vmem:[%s1788_s0 + $0x250] sm:$0xff]  ;;  %v30_v9 = vld [vmem:[%s1788_s0 + $0x68] sm:$0xff]  ;;  %v29_v11 = vld [vmem:[%s1788_s0 + $0x60] sm:$0xff] }
  0x14   :  { %852 = vmatpush1.bf16.msra.mxu0 %v851_v17  ;;  %906 = vmatpush1.bf16.msra.mxu1 %v851_v17  ;;  %v94_v10 = vld [vmem:[%s1788_s0 + $0x268] sm:$0xff]  ;;  %v93_v12 = vld [vmem:[%s1788_s0 + $0x260] sm:$0xff]  ;;  %v32_v13 = vld [vmem:[%s1788_s0 + $0x78] sm:$0xff] }
  0x15   :  { %853 = vmatprep.subr.bf16.mxu0 %v919_v0  ;;  %891 = vmatprep.subr.bf16.mxu1 %v919_v0  ;;  %v96_v14 = vld [vmem:[%s1788_s0 + $0x278] sm:$0xff]  ;;  %v31_v15 = vld [vmem:[%s1788_s0 + $0x70] sm:$0xff]  ;;  %v34_v17 = vld [vmem:[%s1788_s0 + $0x88] sm:$0xff] }
  0x16   :  { %v95_v16 = vld [vmem:[%s1788_s0 + $0x270] sm:$0xff]  ;;  %v98_v18 = vld [vmem:[%s1788_s0 + $0x288] sm:$0xff]  ;;  %v33_v19 = vld [vmem:[%s1788_s0 + $0x80] sm:$0xff] }
  0x17   :  { %v36_v21 = vld [vmem:[%s1788_s0 + $0x98] sm:$0xff]  ;;  %v99_v24 = vld [vmem:[%s1788_s0 + $0x290] sm:$0xff]  ;;  %v38_v25 = vld [vmem:[%s1788_s0 + $0xa8] sm:$0xff] }
  0x18   :  { %855 = vmatpush1.bf16.msra.mxu0 %v854_v20  ;;  %907 = vmatpush1.bf16.msra.mxu1 %v854_v20  ;;  %v97_v20 = vld [vmem:[%s1788_s0 + $0x280] sm:$0xff]  ;;  %v100_v22 = vld [vmem:[%s1788_s0 + $0x298] sm:$0xff]  ;;  %v39_v31 = vld [vmem:[%s1788_s0 + $0xb0] sm:$0xff] }
  0x19   :  { %856 = vmatprep.subr.bf16.mxu0 %v919_v0  ;;  %892 = vmatprep.subr.bf16.mxu1 %v919_v0  ;;  %v37_v27 = vld [vmem:[%s1788_s0 + $0xa0] sm:$0xff]  ;;  %v104_v30 = vld [vmem:[%s1788_s0 + $0x2b8] sm:$0xff]  ;;  %v42_v33 = vld [vmem:[%s1788_s0 + $0xc8] sm:$0xff] }
  0x1a   :  { %v101_v28 = vld [vmem:[%s1788_s0 + $0x2a0] sm:$0xff]  ;;  %v106_v34 = vld [vmem:[%s1788_s0 + $0x2c8] sm:$0xff]  ;;  %v44_v37 = vld [vmem:[%s1788_s0 + $0xd8] sm:$0xff] }
  0x1b   :  { %v105_v36 = vld [vmem:[%s1788_s0 + $0x2c0] sm:$0xff]  ;;  %v43_v39 = vld [vmem:[%s1788_s0 + $0xd0] sm:$0xff]  ;;  %v110_v42 = vld [vmem:[%s1788_s0 + $0x2e8] sm:$0xff] }
  0x1c   :  { %858 = vmatpush1.bf16.msra.mxu0 %v857_v23  ;;  %908 = vmatpush1.bf16.msra.mxu1 %v857_v23  ;;  %v35_v23 = vld [vmem:[%s1788_s0 + $0x90] sm:$0xff]  ;;  %v45_v43 = vld [vmem:[%s1788_s0 + $0xe0] sm:$0xff]  ;;  %v48_v45 = vld [vmem:[%s1788_s0 + $0xf8] sm:$0xff] }
  0x1d   :  { %859 = vmatprep.subr.bf16.mxu0 %v919_v0  ;;  %893 = vmatprep.subr.bf16.mxu1 %v919_v0  ;;  %v107_v40 = vld [vmem:[%s1788_s0 + $0x2d0] sm:$0xff]  ;;  %v112_v46 = vld [vmem:[%s1788_s0 + $0x2f8] sm:$0xff]  ;;  %v50_v49 = vld [vmem:[%s1788_s0 + $0x108] sm:$0xff] }
  0x1e   :  { %v111_v48 = vld [vmem:[%s1788_s0 + $0x2f0] sm:$0xff] }
  0x20   :  { %861 = vmatpush1.bf16.msra.mxu0 %v860_v26  ;;  %909 = vmatpush1.bf16.msra.mxu1 %v860_v26  ;;  %v102_v26 = vld [vmem:[%s1788_s0 + $0x2a8] sm:$0xff] }
  0x21   :  { %862 = vmatprep.subr.bf16.mxu0 %v919_v0  ;;  %894 = vmatprep.subr.bf16.mxu1 %v919_v0 }
  0x24   :  { %864 = vmatpush1.bf16.msra.mxu0 %v863_v29  ;;  %910 = vmatpush1.bf16.msra.mxu1 %v863_v29  ;;  %v40_v29 = vld [vmem:[%s1788_s0 + $0xb8] sm:$0xff] }
  0x25   :  { %865 = vmatprep.subr.bf16.mxu0 %v919_v0  ;;  %895 = vmatprep.subr.bf16.mxu1 %v919_v0 }
  0x28   :  { %867 = vmatpush1.bf16.msra.mxu0 %v866_v32  ;;  %911 = vmatpush1.bf16.msra.mxu1 %v866_v32  ;;  %v103_v32 = vld [vmem:[%s1788_s0 + $0x2b0] sm:$0xff] }
  0x29   :  { %868 = vmatprep.subr.bf16.mxu0 %v919_v0  ;;  %896 = vmatprep.subr.bf16.mxu1 %v919_v0 }
  0x2c   :  { %870 = vmatpush1.bf16.msra.mxu0 %v869_v35  ;;  %912 = vmatpush1.bf16.msra.mxu1 %v869_v35  ;;  %v41_v35 = vld [vmem:[%s1788_s0 + $0xc0] sm:$0xff] }
  0x2d   :  { %871 = vmatprep.subr.bf16.mxu0 %v919_v0  ;;  %897 = vmatprep.subr.bf16.mxu1 %v919_v0 }
  0x30   :  { %873 = vmatpush1.bf16.msra.mxu0 %v872_v38  ;;  %913 = vmatpush1.bf16.msra.mxu1 %v872_v38  ;;  %v108_v38 = vld [vmem:[%s1788_s0 + $0x2d8] sm:$0xff] }
  0x31   :  { %874 = vmatprep.subr.bf16.mxu0 %v919_v0  ;;  %898 = vmatprep.subr.bf16.mxu1 %v919_v0 }
  0x34   :  { %876 = vmatpush1.bf16.msra.mxu0 %v875_v41  ;;  %914 = vmatpush1.bf16.msra.mxu1 %v875_v41  ;;  %v46_v41 = vld [vmem:[%s1788_s0 + $0xe8] sm:$0xff] }
  0x35   :  { %877 = vmatprep.subr.bf16.mxu0 %v919_v0  ;;  %899 = vmatprep.subr.bf16.mxu1 %v919_v0 }
  0x38   :  { %879 = vmatpush1.bf16.msra.mxu0 %v878_v44  ;;  %915 = vmatpush1.bf16.msra.mxu1 %v878_v44  ;;  %v109_v44 = vld [vmem:[%s1788_s0 + $0x2e0] sm:$0xff] }
  0x39   :  { %880 = vmatprep.subr.bf16.mxu0 %v919_v0  ;;  %900 = vmatprep.subr.bf16.mxu1 %v919_v0 }
  0x3c   :  { %882 = vmatpush1.bf16.msra.mxu0 %v881_v47  ;;  %916 = vmatpush1.bf16.msra.mxu1 %v881_v47  ;;  %v47_v47 = vld [vmem:[%s1788_s0 + $0xf0] sm:$0xff] }
  0x3d   :  { %883 = vmatprep.subr.bf16.mxu0 %v919_v0  ;;  %901 = vmatprep.subr.bf16.mxu1 %v919_v0  ;;  %v87_v0 = vld [vmem:[%s1788_s0 + $0x230] sm:$0xff] }
  0x40   :  { %885 = vmatpush1.bf16.msra.mxu0 %v884_v50  ;;  %917 = vmatpush1.bf16.msra.mxu1 %v884_v50  ;;  %v114_v50 = vld [vmem:[%s1788_s0 + $0x308] sm:$0xff] }
  0x43   :  { %242 = vmatmul.mubr.f32.vlgmr.msra.gmra.mrb[0].mxu0 %v17_v51  ;;  %402 = vmatmul.mubr.f32.vlgmr.msra.gmra.mrb[0].mxu1 %v81_v52  ;;  %v49_v51 = vld [vmem:[%s1788_s0 + $0x100] sm:$0xff] }
  0x44   :  { %246 = vmatprep.mubr.f32.mxu0 %v20_v53  ;;  %406 = vmatprep.mubr.f32.mxu1 %v84_v54  ;;  %v113_v52 = vld [vmem:[%s1788_s0 + $0x300] sm:$0xff]  ;;  %v52_v53 = vld [vmem:[%s1788_s0 + $0x118] sm:$0xff] }
  0x45   :  { %v116_v54 = vld [vmem:[%s1788_s0 + $0x318] sm:$0xff] }
  0x47   :  { %247 = vmatmul.mubr.f32.gmra.mrb[2].mxu0 %v19_v55  ;;  %407 = vmatmul.mubr.f32.gmra.mrb[2].mxu1 %v83_v56  ;;  %v51_v55 = vld [vmem:[%s1788_s0 + $0x110] sm:$0xff] }
  0x48   :  { %251 = vmatprep.mubr.f32.mxu0 %v22_v57  ;;  %411 = vmatprep.mubr.f32.mxu1 %v86_v58  ;;  %v115_v56 = vld [vmem:[%s1788_s0 + $0x310] sm:$0xff]  ;;  %v54_v57 = vld [vmem:[%s1788_s0 + $0x128] sm:$0xff] }
  0x49   :  { %v118_v58 = vld [vmem:[%s1788_s0 + $0x328] sm:$0xff] }
  0x4b   :  { %252 = vmatmul.mubr.f32.gmra.mrb[4].mxu0 %v21_v59  ;;  %412 = vmatmul.mubr.f32.gmra.mrb[4].mxu1 %v85_v60  ;;  %v53_v59 = vld [vmem:[%s1788_s0 + $0x120] sm:$0xff] }
  0x4c   :  { %256 = vmatprep.mubr.f32.mxu0 %v24_v61  ;;  %416 = vmatprep.mubr.f32.mxu1 %v88_v62  ;;  %v117_v60 = vld [vmem:[%s1788_s0 + $0x320] sm:$0xff]  ;;  %v56_v61 = vld [vmem:[%s1788_s0 + $0x138] sm:$0xff] }
  0x4d   :  { %v120_v62 = vld [vmem:[%s1788_s0 + $0x338] sm:$0xff] }
  0x4f   :  { %257 = vmatmul.mubr.f32.gmra.mrb[6].mxu0 %v23_v63  ;;  %417 = vmatmul.mubr.f32.gmra.mrb[6].mxu1 %v87_v0  ;;  %v55_v63 = vld [vmem:[%s1788_s0 + $0x130] sm:$0xff] }
  0x50   :  { %261 = vmatprep.mubr.f32.mxu0 %v26_v1  ;;  %421 = vmatprep.mubr.f32.mxu1 %v90_v2  ;;  %v119_v0 = vld [vmem:[%s1788_s0 + $0x330] sm:$0xff]  ;;  %v58_v1 = vld [vmem:[%s1788_s0 + $0x148] sm:$0xff] }
  0x51   :  { %v122_v2 = vld [vmem:[%s1788_s0 + $0x348] sm:$0xff] }
  0x53   :  { %262 = vmatmul.mubr.f32.gmra.mrb[8].mxu0 %v25_v3  ;;  %422 = vmatmul.mubr.f32.gmra.mrb[8].mxu1 %v89_v4  ;;  %v57_v3 = vld [vmem:[%s1788_s0 + $0x140] sm:$0xff] }
  0x54   :  { %266 = vmatprep.mubr.f32.mxu0 %v28_v5  ;;  %426 = vmatprep.mubr.f32.mxu1 %v92_v6  ;;  %v121_v4 = vld [vmem:[%s1788_s0 + $0x340] sm:$0xff]  ;;  %v60_v5 = vld [vmem:[%s1788_s0 + $0x158] sm:$0xff] }
  0x55   :  { %v124_v6 = vld [vmem:[%s1788_s0 + $0x358] sm:$0xff] }
  0x57   :  { %267 = vmatmul.mubr.f32.gmra.mrb[10].mxu0 %v27_v7  ;;  %427 = vmatmul.mubr.f32.gmra.mrb[10].mxu1 %v91_v8  ;;  %v59_v7 = vld [vmem:[%s1788_s0 + $0x150] sm:$0xff] }
  0x58   :  { %271 = vmatprep.mubr.f32.mxu0 %v30_v9  ;;  %431 = vmatprep.mubr.f32.mxu1 %v94_v10  ;;  %v123_v8 = vld [vmem:[%s1788_s0 + $0x350] sm:$0xff]  ;;  %v62_v9 = vld [vmem:[%s1788_s0 + $0x168] sm:$0xff] }
  0x59   :  { %v126_v10 = vld [vmem:[%s1788_s0 + $0x368] sm:$0xff] }
  0x5b   :  { %272 = vmatmul.mubr.f32.gmra.mrb[12].mxu0 %v29_v11  ;;  %432 = vmatmul.mubr.f32.gmra.mrb[12].mxu1 %v93_v12  ;;  %v61_v11 = vld [vmem:[%s1788_s0 + $0x160] sm:$0xff] }
  0x5c   :  { %276 = vmatprep.mubr.f32.mxu0 %v32_v13  ;;  %436 = vmatprep.mubr.f32.mxu1 %v96_v14  ;;  %v125_v12 = vld [vmem:[%s1788_s0 + $0x360] sm:$0xff]  ;;  %v64_v13 = vld [vmem:[%s1788_s0 + $0x178] sm:$0xff] }
  0x5d   :  { %v128_v14 = vld [vmem:[%s1788_s0 + $0x378] sm:$0xff] }
  0x5f   :  { %277 = vmatmul.mubr.f32.gmra.mrb[14].mxu0 %v31_v15  ;;  %437 = vmatmul.mubr.f32.gmra.mrb[14].mxu1 %v95_v16  ;;  %v63_v15 = vld [vmem:[%s1788_s0 + $0x170] sm:$0xff] }
  0x60   :  { %281 = vmatprep.mubr.f32.mxu0 %v34_v17  ;;  %441 = vmatprep.mubr.f32.mxu1 %v98_v18  ;;  %v127_v16 = vld [vmem:[%s1788_s0 + $0x370] sm:$0xff]  ;;  %v66_v17 = vld [vmem:[%s1788_s0 + $0x188] sm:$0xff] }
  0x61   :  { %v130_v18 = vld [vmem:[%s1788_s0 + $0x388] sm:$0xff] }
  0x63   :  { %282 = vmatmul.mubr.f32.gmra.mrb[16].mxu0 %v33_v19  ;;  %442 = vmatmul.mubr.f32.gmra.mrb[16].mxu1 %v97_v20  ;;  %v65_v19 = vld [vmem:[%s1788_s0 + $0x180] sm:$0xff] }
  0x64   :  { %286 = vmatprep.mubr.f32.mxu0 %v36_v21  ;;  %446 = vmatprep.mubr.f32.mxu1 %v100_v22  ;;  %v129_v20 = vld [vmem:[%s1788_s0 + $0x380] sm:$0xff]  ;;  %v68_v21 = vld [vmem:[%s1788_s0 + $0x198] sm:$0xff] }
  0x65   :  { %v132_v22 = vld [vmem:[%s1788_s0 + $0x398] sm:$0xff] }
  0x67   :  { %287 = vmatmul.mubr.f32.gmra.mrb[18].mxu0 %v35_v23  ;;  %447 = vmatmul.mubr.f32.gmra.mrb[18].mxu1 %v99_v24  ;;  %v67_v23 = vld [vmem:[%s1788_s0 + $0x190] sm:$0xff] }
  0x68   :  { %291 = vmatprep.mubr.f32.mxu0 %v38_v25  ;;  %451 = vmatprep.mubr.f32.mxu1 %v102_v26  ;;  %v131_v24 = vld [vmem:[%s1788_s0 + $0x390] sm:$0xff]  ;;  %v70_v25 = vld [vmem:[%s1788_s0 + $0x1a8] sm:$0xff] }
  0x69   :  { %v134_v26 = vld [vmem:[%s1788_s0 + $0x3a8] sm:$0xff] }
  0x6b   :  { %292 = vmatmul.mubr.f32.gmra.mrb[20].mxu0 %v37_v27  ;;  %452 = vmatmul.mubr.f32.gmra.mrb[20].mxu1 %v101_v28  ;;  %v69_v27 = vld [vmem:[%s1788_s0 + $0x1a0] sm:$0xff] }
  0x6c   :  { %296 = vmatprep.mubr.f32.mxu0 %v40_v29  ;;  %456 = vmatprep.mubr.f32.mxu1 %v104_v30  ;;  %v133_v28 = vld [vmem:[%s1788_s0 + $0x3a0] sm:$0xff]  ;;  %v72_v29 = vld [vmem:[%s1788_s0 + $0x1b8] sm:$0xff] }
  0x6d   :  { %v136_v30 = vld [vmem:[%s1788_s0 + $0x3b8] sm:$0xff] }
  0x6f   :  { %297 = vmatmul.mubr.f32.gmra.mrb[22].mxu0 %v39_v31  ;;  %457 = vmatmul.mubr.f32.gmra.mrb[22].mxu1 %v103_v32  ;;  %v71_v31 = vld [vmem:[%s1788_s0 + $0x1b0] sm:$0xff] }
  0x70   :  { %301 = vmatprep.mubr.f32.mxu0 %v42_v33  ;;  %461 = vmatprep.mubr.f32.mxu1 %v106_v34  ;;  %v135_v32 = vld [vmem:[%s1788_s0 + $0x3b0] sm:$0xff]  ;;  %v74_v33 = vld [vmem:[%s1788_s0 + $0x1c8] sm:$0xff] }
  0x71   :  { %v138_v34 = vld [vmem:[%s1788_s0 + $0x3c8] sm:$0xff] }
  0x73   :  { %302 = vmatmul.mubr.f32.gmra.mrb[24].mxu0 %v41_v35  ;;  %462 = vmatmul.mubr.f32.gmra.mrb[24].mxu1 %v105_v36  ;;  %v73_v35 = vld [vmem:[%s1788_s0 + $0x1c0] sm:$0xff] }
  0x74   :  { %306 = vmatprep.mubr.f32.mxu0 %v44_v37  ;;  %466 = vmatprep.mubr.f32.mxu1 %v108_v38  ;;  %v137_v36 = vld [vmem:[%s1788_s0 + $0x3c0] sm:$0xff]  ;;  %v76_v37 = vld [vmem:[%s1788_s0 + $0x1d8] sm:$0xff] }
  0x75   :  { %v140_v38 = vld [vmem:[%s1788_s0 + $0x3d8] sm:$0xff] }
  0x77   :  { %307 = vmatmul.mubr.f32.gmra.mrb[26].mxu0 %v43_v39  ;;  %467 = vmatmul.mubr.f32.gmra.mrb[26].mxu1 %v107_v40  ;;  %v75_v39 = vld [vmem:[%s1788_s0 + $0x1d0] sm:$0xff] }
  0x78   :  { %311 = vmatprep.mubr.f32.mxu0 %v46_v41  ;;  %471 = vmatprep.mubr.f32.mxu1 %v110_v42  ;;  %v139_v40 = vld [vmem:[%s1788_s0 + $0x3d0] sm:$0xff]  ;;  %v78_v41 = vld [vmem:[%s1788_s0 + $0x1e8] sm:$0xff] }
  0x79   :  { %v142_v42 = vld [vmem:[%s1788_s0 + $0x3e8] sm:$0xff] }
  0x7b   :  { %312 = vmatmul.mubr.f32.gmra.mrb[28].mxu0 %v45_v43  ;;  %472 = vmatmul.mubr.f32.gmra.mrb[28].mxu1 %v109_v44  ;;  %v77_v43 = vld [vmem:[%s1788_s0 + $0x1e0] sm:$0xff] }
  0x7c   :  { %316 = vmatprep.mubr.f32.mxu0 %v48_v45  ;;  %476 = vmatprep.mubr.f32.mxu1 %v112_v46  ;;  %v141_v44 = vld [vmem:[%s1788_s0 + $0x3e0] sm:$0xff]  ;;  %v80_v45 = vld [vmem:[%s1788_s0 + $0x1f8] sm:$0xff] }
  0x7d   :  { %v144_v46 = vld [vmem:[%s1788_s0 + $0x3f8] sm:$0xff] }
  0x7f   :  { %317 = vmatmul.mubr.f32.gmra.mrb[30].mxu0 %v47_v47  ;;  %477 = vmatmul.mubr.f32.gmra.mrb[30].mxu1 %v111_v48  ;;  %v79_v47 = vld [vmem:[%s1788_s0 + $0x1f0] sm:$0xff] }
  0x80   :  { %321 = vmatprep.mubr.f32.mxu0 %v50_v49  ;;  %481 = vmatprep.mubr.f32.mxu1 %v114_v50  ;;  %v143_v48 = vld [vmem:[%s1788_s0 + $0x3f0] sm:$0xff]  ;;  %v1460_v49 = vld [vmem:[%s1789_s2] ss:$0 sm:$0xff] }
  0x83   :  { %322 = vmatmul.mubr.f32.gmra.mrb[32].mxu0 %v49_v51  ;;  %482 = vmatmul.mubr.f32.gmra.mrb[32].mxu1 %v113_v52  ;;  %v1465_v51 = vld [vmem:[%s1790_s3] ss:$0 sm:$0xff] }
  0x84   :  { %326 = vmatprep.mubr.f32.mxu0 %v52_v53  ;;  %486 = vmatprep.mubr.f32.mxu1 %v116_v54 }
  0x87   :  { %327 = vmatmul.mubr.f32.gmra.mrb[34].mxu0 %v51_v55  ;;  %487 = vmatmul.mubr.f32.gmra.mrb[34].mxu1 %v115_v56 }
  0x88   :  { %331 = vmatprep.mubr.f32.mxu0 %v54_v57  ;;  %491 = vmatprep.mubr.f32.mxu1 %v118_v58 }
  0x8b   :  { %332 = vmatmul.mubr.f32.gmra.mrb[36].mxu0 %v53_v59  ;;  %492 = vmatmul.mubr.f32.gmra.mrb[36].mxu1 %v117_v60 }
  0x8c   :  { %336 = vmatprep.mubr.f32.mxu0 %v56_v61  ;;  %496 = vmatprep.mubr.f32.mxu1 %v120_v62 }
  0x8f   :  { %337 = vmatmul.mubr.f32.gmra.mrb[38].mxu0 %v55_v63  ;;  %497 = vmatmul.mubr.f32.gmra.mrb[38].mxu1 %v119_v0 }
  0x90   :  { %341 = vmatprep.mubr.f32.mxu0 %v58_v1  ;;  %501 = vmatprep.mubr.f32.mxu1 %v122_v2 }
  0x93   :  { %342 = vmatmul.mubr.f32.gmra.mrb[40].mxu0 %v57_v3  ;;  %502 = vmatmul.mubr.f32.gmra.mrb[40].mxu1 %v121_v4 }
  0x94   :  { %346 = vmatprep.mubr.f32.mxu0 %v60_v5  ;;  %506 = vmatprep.mubr.f32.mxu1 %v124_v6 }
  0x97   :  { %347 = vmatmul.mubr.f32.gmra.mrb[42].mxu0 %v59_v7  ;;  %507 = vmatmul.mubr.f32.gmra.mrb[42].mxu1 %v123_v8 }
  0x98   :  { %351 = vmatprep.mubr.f32.mxu0 %v62_v9  ;;  %511 = vmatprep.mubr.f32.mxu1 %v126_v10 }
  0x9b   :  { %352 = vmatmul.mubr.f32.gmra.mrb[44].mxu0 %v61_v11  ;;  %512 = vmatmul.mubr.f32.gmra.mrb[44].mxu1 %v125_v12 }
  0x9c   :  { %356 = vmatprep.mubr.f32.mxu0 %v64_v13  ;;  %516 = vmatprep.mubr.f32.mxu1 %v128_v14 }
  0x9f   :  { %357 = vmatmul.mubr.f32.gmra.mrb[46].mxu0 %v63_v15  ;;  %517 = vmatmul.mubr.f32.gmra.mrb[46].mxu1 %v127_v16 }
  0xa0   :  { %361 = vmatprep.mubr.f32.mxu0 %v66_v17  ;;  %521 = vmatprep.mubr.f32.mxu1 %v130_v18 }
  0xa3   :  { %362 = vmatmul.mubr.f32.gmra.mrb[48].mxu0 %v65_v19  ;;  %522 = vmatmul.mubr.f32.gmra.mrb[48].mxu1 %v129_v20 }
  0xa4   :  { %366 = vmatprep.mubr.f32.mxu0 %v68_v21  ;;  %526 = vmatprep.mubr.f32.mxu1 %v132_v22 }
  0xa7   :  { %367 = vmatmul.mubr.f32.gmra.mrb[50].mxu0 %v67_v23  ;;  %527 = vmatmul.mubr.f32.gmra.mrb[50].mxu1 %v131_v24 }
  0xa8   :  { %371 = vmatprep.mubr.f32.mxu0 %v70_v25  ;;  %531 = vmatprep.mubr.f32.mxu1 %v134_v26 }
  0xab   :  { %372 = vmatmul.mubr.f32.gmra.mrb[52].mxu0 %v69_v27  ;;  %532 = vmatmul.mubr.f32.gmra.mrb[52].mxu1 %v133_v28 }
  0xac   :  { %376 = vmatprep.mubr.f32.mxu0 %v72_v29  ;;  %536 = vmatprep.mubr.f32.mxu1 %v136_v30 }
  0xaf   :  { %377 = vmatmul.mubr.f32.gmra.mrb[54].mxu0 %v71_v31  ;;  %537 = vmatmul.mubr.f32.gmra.mrb[54].mxu1 %v135_v32 }
  0xb0   :  { %381 = vmatprep.mubr.f32.mxu0 %v74_v33  ;;  %541 = vmatprep.mubr.f32.mxu1 %v138_v34 }
  0xb3   :  { %382 = vmatmul.mubr.f32.gmra.mrb[56].mxu0 %v73_v35  ;;  %542 = vmatmul.mubr.f32.gmra.mrb[56].mxu1 %v137_v36 }
  0xb4   :  { %386 = vmatprep.mubr.f32.mxu0 %v76_v37  ;;  %546 = vmatprep.mubr.f32.mxu1 %v140_v38 }
  0xb7   :  { %387 = vmatmul.mubr.f32.gmra.mrb[58].mxu0 %v75_v39  ;;  %547 = vmatmul.mubr.f32.gmra.mrb[58].mxu1 %v139_v40 }
  0xb8   :  { %391 = vmatprep.mubr.f32.mxu0 %v78_v41  ;;  %551 = vmatprep.mubr.f32.mxu1 %v142_v42 }
  0xbb   :  { %392 = vmatmul.mubr.f32.gmra.mrb[60].mxu0 %v77_v43  ;;  %552 = vmatmul.mubr.f32.gmra.mrb[60].mxu1 %v141_v44 }
  0xbc   :  { %396 = vmatprep.mubr.f32.mxu0 %v80_v45  ;;  %556 = vmatprep.mubr.f32.mxu1 %v144_v46 }
  0xbf   :  { %397 = vmatmul.mubr.f32.gmra.mrb[62].mxu0 %v79_v47  ;;  %557 = vmatmul.mubr.f32.gmra.mrb[62].mxu1 %v143_v48 }
 0x116   :  { %v243_v50 = vpop.f32.mrb[0].mxu0  ;;  %v403_v52 = vpop.f32.mrb[0].mxu1 }
 0x117   :  { %v569_v53 = vmul.f32 %v1460_v49, %v243_v50  ;;  %v601_v54 = vmul.f32 %v1460_v49, %v403_v52  ;;  %v245_v55 = vpop.f32.mrb[1].mxu0  ;;  %v405_v56 = vpop.f32.mrb[1].mxu1 }
 0x119   :  { %v640_v57 = vadd.f32 %v1465_v51, %v569_v53  ;;  %v672_v58 = vadd.f32 %v1465_v51, %v601_v54 }
 0x11a   :  { %v248_v59 = vpop.f32.mrb[2].mxu0  ;;  %v408_v60 = vpop.f32.mrb[2].mxu1 }
 0x11b   :  { %v704_v61 = vmax.f32 %v640_v57, 0.0  ;;  %v736_v62 = vmax.f32 %v672_v58, 0.0  ;;  %v570_v63 = vmul.f32 %v1460_v49, %v248_v59  ;;  %v602_v0 = vmul.f32 %v1460_v49, %v408_v60  ;;  %v250_v1 = vpop.f32.mrb[3].mxu0  ;;  %v410_v2 = vpop.f32.mrb[3].mxu1 }
 0x11d   :  { %768 = vst [vmem:[%s1791_s4] sm:$0xff] %v704_v61  ;;  %800 = vst [vmem:[%s1791_s4 + $0x100] sm:$0xff] %v736_v62  ;;  %v641_v3 = vadd.f32 %v1465_v51, %v570_v63  ;;  %v673_v4 = vadd.f32 %v1465_v51, %v602_v0 }
 0x11e   :  { %v253_v5 = vpop.f32.mrb[4].mxu0  ;;  %v413_v6 = vpop.f32.mrb[4].mxu1 }
 0x11f   :  { %v705_v7 = vmax.f32 %v641_v3, 0.0  ;;  %v737_v8 = vmax.f32 %v673_v4, 0.0  ;;  %v571_v9 = vmul.f32 %v1460_v49, %v253_v5  ;;  %v603_v10 = vmul.f32 %v1460_v49, %v413_v6  ;;  %v255_v11 = vpop.f32.mrb[5].mxu0  ;;  %v415_v12 = vpop.f32.mrb[5].mxu1 }
 0x121   :  { %769 = vst [vmem:[%s1791_s4 + $0x8] sm:$0xff] %v705_v7  ;;  %801 = vst [vmem:[%s1791_s4 + $0x108] sm:$0xff] %v737_v8  ;;  %v642_v13 = vadd.f32 %v1465_v51, %v571_v9  ;;  %v674_v14 = vadd.f32 %v1465_v51, %v603_v10 }
 0x122   :  { %v258_v15 = vpop.f32.mrb[6].mxu0  ;;  %v418_v16 = vpop.f32.mrb[6].mxu1 }
 0x123   :  { %v706_v17 = vmax.f32 %v642_v13, 0.0  ;;  %v738_v18 = vmax.f32 %v674_v14, 0.0  ;;  %v572_v19 = vmul.f32 %v1460_v49, %v258_v15  ;;  %v604_v20 = vmul.f32 %v1460_v49, %v418_v16  ;;  %v260_v21 = vpop.f32.mrb[7].mxu0  ;;  %v420_v22 = vpop.f32.mrb[7].mxu1 }
 0x125   :  { %770 = vst [vmem:[%s1791_s4 + $0x10] sm:$0xff] %v706_v17  ;;  %802 = vst [vmem:[%s1791_s4 + $0x110] sm:$0xff] %v738_v18  ;;  %v643_v23 = vadd.f32 %v1465_v51, %v572_v19  ;;  %v675_v24 = vadd.f32 %v1465_v51, %v604_v20 }
 0x126   :  { %v263_v25 = vpop.f32.mrb[8].mxu0  ;;  %v423_v26 = vpop.f32.mrb[8].mxu1 }
 0x127   :  { %v707_v27 = vmax.f32 %v643_v23, 0.0  ;;  %v739_v28 = vmax.f32 %v675_v24, 0.0  ;;  %v573_v29 = vmul.f32 %v1460_v49, %v263_v25  ;;  %v605_v30 = vmul.f32 %v1460_v49, %v423_v26  ;;  %v265_v31 = vpop.f32.mrb[9].mxu0  ;;  %v425_v32 = vpop.f32.mrb[9].mxu1 }
 0x129   :  { %771 = vst [vmem:[%s1791_s4 + $0x18] sm:$0xff] %v707_v27  ;;  %803 = vst [vmem:[%s1791_s4 + $0x118] sm:$0xff] %v739_v28  ;;  %v644_v33 = vadd.f32 %v1465_v51, %v573_v29  ;;  %v676_v34 = vadd.f32 %v1465_v51, %v605_v30 }
 0x12a   :  { %v268_v35 = vpop.f32.mrb[10].mxu0  ;;  %v428_v36 = vpop.f32.mrb[10].mxu1 }
 0x12b   :  { %v708_v37 = vmax.f32 %v644_v33, 0.0  ;;  %v740_v38 = vmax.f32 %v676_v34, 0.0  ;;  %v574_v39 = vmul.f32 %v1460_v49, %v268_v35  ;;  %v606_v40 = vmul.f32 %v1460_v49, %v428_v36  ;;  %v270_v41 = vpop.f32.mrb[11].mxu0  ;;  %v430_v42 = vpop.f32.mrb[11].mxu1 }
 0x12d   :  { %772 = vst [vmem:[%s1791_s4 + $0x20] sm:$0xff] %v708_v37  ;;  %804 = vst [vmem:[%s1791_s4 + $0x120] sm:$0xff] %v740_v38  ;;  %v645_v43 = vadd.f32 %v1465_v51, %v574_v39  ;;  %v677_v44 = vadd.f32 %v1465_v51, %v606_v40 }
 0x12e   :  { %v273_v45 = vpop.f32.mrb[12].mxu0  ;;  %v433_v46 = vpop.f32.mrb[12].mxu1 }
 0x12f   :  { %v709_v47 = vmax.f32 %v645_v43, 0.0  ;;  %v741_v48 = vmax.f32 %v677_v44, 0.0  ;;  %v575_v50 = vmul.f32 %v1460_v49, %v273_v45  ;;  %v607_v52 = vmul.f32 %v1460_v49, %v433_v46  ;;  %v275_v53 = vpop.f32.mrb[13].mxu0  ;;  %v435_v54 = vpop.f32.mrb[13].mxu1 }
 0x131   :  { %773 = vst [vmem:[%s1791_s4 + $0x28] sm:$0xff] %v709_v47  ;;  %805 = vst [vmem:[%s1791_s4 + $0x128] sm:$0xff] %v741_v48  ;;  %v646_v55 = vadd.f32 %v1465_v51, %v575_v50  ;;  %v678_v56 = vadd.f32 %v1465_v51, %v607_v52 }
 0x132   :  { %v278_v57 = vpop.f32.mrb[14].mxu0  ;;  %v438_v58 = vpop.f32.mrb[14].mxu1 }
 0x133   :  { %v710_v59 = vmax.f32 %v646_v55, 0.0  ;;  %v742_v60 = vmax.f32 %v678_v56, 0.0  ;;  %v576_v61 = vmul.f32 %v1460_v49, %v278_v57  ;;  %v608_v62 = vmul.f32 %v1460_v49, %v438_v58  ;;  %v280_v63 = vpop.f32.mrb[15].mxu0  ;;  %v440_v0 = vpop.f32.mrb[15].mxu1 }
 0x135   :  { %774 = vst [vmem:[%s1791_s4 + $0x30] sm:$0xff] %v710_v59  ;;  %806 = vst [vmem:[%s1791_s4 + $0x130] sm:$0xff] %v742_v60  ;;  %v647_v1 = vadd.f32 %v1465_v51, %v576_v61  ;;  %v679_v2 = vadd.f32 %v1465_v51, %v608_v62 }
 0x136   :  { %v283_v3 = vpop.f32.mrb[16].mxu0  ;;  %v443_v4 = vpop.f32.mrb[16].mxu1 }
 0x137   :  { %v711_v5 = vmax.f32 %v647_v1, 0.0  ;;  %v743_v6 = vmax.f32 %v679_v2, 0.0  ;;  %v577_v7 = vmul.f32 %v1460_v49, %v283_v3  ;;  %v609_v8 = vmul.f32 %v1460_v49, %v443_v4  ;;  %v285_v9 = vpop.f32.mrb[17].mxu0  ;;  %v445_v10 = vpop.f32.mrb[17].mxu1 }
 0x139   :  { %775 = vst [vmem:[%s1791_s4 + $0x38] sm:$0xff] %v711_v5  ;;  %807 = vst [vmem:[%s1791_s4 + $0x138] sm:$0xff] %v743_v6  ;;  %v648_v11 = vadd.f32 %v1465_v51, %v577_v7  ;;  %v680_v12 = vadd.f32 %v1465_v51, %v609_v8 }
 0x13a   :  { %v288_v13 = vpop.f32.mrb[18].mxu0  ;;  %v448_v14 = vpop.f32.mrb[18].mxu1 }
 0x13b   :  { %v712_v15 = vmax.f32 %v648_v11, 0.0  ;;  %v744_v16 = vmax.f32 %v680_v12, 0.0  ;;  %v578_v17 = vmul.f32 %v1460_v49, %v288_v13  ;;  %v610_v18 = vmul.f32 %v1460_v49, %v448_v14  ;;  %v290_v19 = vpop.f32.mrb[19].mxu0  ;;  %v450_v20 = vpop.f32.mrb[19].mxu1 }
 0x13d   :  { %776 = vst [vmem:[%s1791_s4 + $0x40] sm:$0xff] %v712_v15  ;;  %808 = vst [vmem:[%s1791_s4 + $0x140] sm:$0xff] %v744_v16  ;;  %v649_v21 = vadd.f32 %v1465_v51, %v578_v17  ;;  %v681_v22 = vadd.f32 %v1465_v51, %v610_v18 }
 0x13e   :  { %v293_v23 = vpop.f32.mrb[20].mxu0  ;;  %v453_v24 = vpop.f32.mrb[20].mxu1 }
 0x13f   :  { %v713_v25 = vmax.f32 %v649_v21, 0.0  ;;  %v745_v26 = vmax.f32 %v681_v22, 0.0  ;;  %v579_v27 = vmul.f32 %v1460_v49, %v293_v23  ;;  %v611_v28 = vmul.f32 %v1460_v49, %v453_v24  ;;  %v295_v29 = vpop.f32.mrb[21].mxu0  ;;  %v455_v30 = vpop.f32.mrb[21].mxu1 }
 0x141   :  { %777 = vst [vmem:[%s1791_s4 + $0x48] sm:$0xff] %v713_v25  ;;  %809 = vst [vmem:[%s1791_s4 + $0x148] sm:$0xff] %v745_v26  ;;  %v650_v31 = vadd.f32 %v1465_v51, %v579_v27  ;;  %v682_v32 = vadd.f32 %v1465_v51, %v611_v28 }
 0x142   :  { %v298_v33 = vpop.f32.mrb[22].mxu0  ;;  %v458_v34 = vpop.f32.mrb[22].mxu1 }
 0x143   :  { %v714_v35 = vmax.f32 %v650_v31, 0.0  ;;  %v746_v36 = vmax.f32 %v682_v32, 0.0  ;;  %v580_v37 = vmul.f32 %v1460_v49, %v298_v33  ;;  %v612_v38 = vmul.f32 %v1460_v49, %v458_v34  ;;  %v300_v39 = vpop.f32.mrb[23].mxu0  ;;  %v460_v40 = vpop.f32.mrb[23].mxu1 }
 0x145   :  { %778 = vst [vmem:[%s1791_s4 + $0x50] sm:$0xff] %v714_v35  ;;  %810 = vst [vmem:[%s1791_s4 + $0x150] sm:$0xff] %v746_v36  ;;  %v651_v41 = vadd.f32 %v1465_v51, %v580_v37  ;;  %v683_v42 = vadd.f32 %v1465_v51, %v612_v38 }
 0x146   :  { %v303_v43 = vpop.f32.mrb[24].mxu0  ;;  %v463_v44 = vpop.f32.mrb[24].mxu1 }
 0x147   :  { %v715_v45 = vmax.f32 %v651_v41, 0.0  ;;  %v747_v46 = vmax.f32 %v683_v42, 0.0  ;;  %v581_v47 = vmul.f32 %v1460_v49, %v303_v43  ;;  %v613_v48 = vmul.f32 %v1460_v49, %v463_v44  ;;  %v305_v50 = vpop.f32.mrb[25].mxu0  ;;  %v465_v52 = vpop.f32.mrb[25].mxu1 }
 0x149   :  { %779 = vst [vmem:[%s1791_s4 + $0x58] sm:$0xff] %v715_v45  ;;  %811 = vst [vmem:[%s1791_s4 + $0x158] sm:$0xff] %v747_v46  ;;  %v652_v53 = vadd.f32 %v1465_v51, %v581_v47  ;;  %v684_v54 = vadd.f32 %v1465_v51, %v613_v48 }
 0x14a   :  { %v308_v55 = vpop.f32.mrb[26].mxu0  ;;  %v468_v56 = vpop.f32.mrb[26].mxu1 }
 0x14b   :  { %v716_v57 = vmax.f32 %v652_v53, 0.0  ;;  %v748_v58 = vmax.f32 %v684_v54, 0.0  ;;  %v582_v59 = vmul.f32 %v1460_v49, %v308_v55  ;;  %v614_v60 = vmul.f32 %v1460_v49, %v468_v56  ;;  %v310_v61 = vpop.f32.mrb[27].mxu0  ;;  %v470_v62 = vpop.f32.mrb[27].mxu1 }
 0x14d   :  { %780 = vst [vmem:[%s1791_s4 + $0x60] sm:$0xff] %v716_v57  ;;  %812 = vst [vmem:[%s1791_s4 + $0x160] sm:$0xff] %v748_v58  ;;  %v653_v63 = vadd.f32 %v1465_v51, %v582_v59  ;;  %v685_v0 = vadd.f32 %v1465_v51, %v614_v60 }
 0x14e   :  { %v313_v1 = vpop.f32.mrb[28].mxu0  ;;  %v473_v2 = vpop.f32.mrb[28].mxu1 }
 0x14f   :  { %v717_v3 = vmax.f32 %v653_v63, 0.0  ;;  %v749_v4 = vmax.f32 %v685_v0, 0.0  ;;  %v583_v5 = vmul.f32 %v1460_v49, %v313_v1  ;;  %v615_v6 = vmul.f32 %v1460_v49, %v473_v2  ;;  %v315_v7 = vpop.f32.mrb[29].mxu0  ;;  %v475_v8 = vpop.f32.mrb[29].mxu1 }
 0x151   :  { %781 = vst [vmem:[%s1791_s4 + $0x68] sm:$0xff] %v717_v3  ;;  %813 = vst [vmem:[%s1791_s4 + $0x168] sm:$0xff] %v749_v4  ;;  %v654_v9 = vadd.f32 %v1465_v51, %v583_v5  ;;  %v686_v10 = vadd.f32 %v1465_v51, %v615_v6 }
 0x152   :  { %v318_v11 = vpop.f32.mrb[30].mxu0  ;;  %v478_v12 = vpop.f32.mrb[30].mxu1 }
 0x153   :  { %v718_v13 = vmax.f32 %v654_v9, 0.0  ;;  %v750_v14 = vmax.f32 %v686_v10, 0.0  ;;  %v584_v15 = vmul.f32 %v1460_v49, %v318_v11  ;;  %v616_v16 = vmul.f32 %v1460_v49, %v478_v12  ;;  %v320_v17 = vpop.f32.mrb[31].mxu0  ;;  %v480_v18 = vpop.f32.mrb[31].mxu1 }
 0x155   :  { %782 = vst [vmem:[%s1791_s4 + $0x70] sm:$0xff] %v718_v13  ;;  %814 = vst [vmem:[%s1791_s4 + $0x170] sm:$0xff] %v750_v14  ;;  %v655_v19 = vadd.f32 %v1465_v51, %v584_v15  ;;  %v687_v20 = vadd.f32 %v1465_v51, %v616_v16 }
 0x156   :  { %v323_v21 = vpop.f32.mrb[32].mxu0  ;;  %v483_v22 = vpop.f32.mrb[32].mxu1 }
 0x157   :  { %v719_v23 = vmax.f32 %v655_v19, 0.0  ;;  %v751_v24 = vmax.f32 %v687_v20, 0.0  ;;  %v585_v25 = vmul.f32 %v1460_v49, %v323_v21  ;;  %v617_v26 = vmul.f32 %v1460_v49, %v483_v22  ;;  %v325_v27 = vpop.f32.mrb[33].mxu0  ;;  %v485_v28 = vpop.f32.mrb[33].mxu1 }
 0x159   :  { %783 = vst [vmem:[%s1791_s4 + $0x78] sm:$0xff] %v719_v23  ;;  %815 = vst [vmem:[%s1791_s4 + $0x178] sm:$0xff] %v751_v24  ;;  %v656_v29 = vadd.f32 %v1465_v51, %v585_v25  ;;  %v688_v30 = vadd.f32 %v1465_v51, %v617_v26 }
 0x15a   :  { %v328_v31 = vpop.f32.mrb[34].mxu0  ;;  %v488_v32 = vpop.f32.mrb[34].mxu1 }
 0x15b   :  { %v720_v33 = vmax.f32 %v656_v29, 0.0  ;;  %v752_v34 = vmax.f32 %v688_v30, 0.0  ;;  %v586_v35 = vmul.f32 %v1460_v49, %v328_v31  ;;  %v618_v36 = vmul.f32 %v1460_v49, %v488_v32  ;;  %v330_v37 = vpop.f32.mrb[35].mxu0  ;;  %v490_v38 = vpop.f32.mrb[35].mxu1 }
 0x15d   :  { %784 = vst [vmem:[%s1791_s4 + $0x80] sm:$0xff] %v720_v33  ;;  %816 = vst [vmem:[%s1791_s4 + $0x180] sm:$0xff] %v752_v34  ;;  %v657_v39 = vadd.f32 %v1465_v51, %v586_v35  ;;  %v689_v40 = vadd.f32 %v1465_v51, %v618_v36 }
 0x15e   :  { %v333_v41 = vpop.f32.mrb[36].mxu0  ;;  %v493_v42 = vpop.f32.mrb[36].mxu1 }
 0x15f   :  { %v721_v43 = vmax.f32 %v657_v39, 0.0  ;;  %v753_v44 = vmax.f32 %v689_v40, 0.0  ;;  %v587_v45 = vmul.f32 %v1460_v49, %v333_v41  ;;  %v619_v46 = vmul.f32 %v1460_v49, %v493_v42  ;;  %v335_v47 = vpop.f32.mrb[37].mxu0  ;;  %v495_v48 = vpop.f32.mrb[37].mxu1 }
 0x161   :  { %785 = vst [vmem:[%s1791_s4 + $0x88] sm:$0xff] %v721_v43  ;;  %817 = vst [vmem:[%s1791_s4 + $0x188] sm:$0xff] %v753_v44  ;;  %v658_v50 = vadd.f32 %v1465_v51, %v587_v45  ;;  %v690_v52 = vadd.f32 %v1465_v51, %v619_v46 }
 0x162   :  { %v338_v53 = vpop.f32.mrb[38].mxu0  ;;  %v498_v54 = vpop.f32.mrb[38].mxu1 }
 0x163   :  { %v722_v55 = vmax.f32 %v658_v50, 0.0  ;;  %v754_v56 = vmax.f32 %v690_v52, 0.0  ;;  %v588_v57 = vmul.f32 %v1460_v49, %v338_v53  ;;  %v620_v58 = vmul.f32 %v1460_v49, %v498_v54  ;;  %v340_v59 = vpop.f32.mrb[39].mxu0  ;;  %v500_v60 = vpop.f32.mrb[39].mxu1 }
 0x165   :  { %786 = vst [vmem:[%s1791_s4 + $0x90] sm:$0xff] %v722_v55  ;;  %818 = vst [vmem:[%s1791_s4 + $0x190] sm:$0xff] %v754_v56  ;;  %v659_v61 = vadd.f32 %v1465_v51, %v588_v57  ;;  %v691_v62 = vadd.f32 %v1465_v51, %v620_v58 }
 0x166   :  { %v343_v63 = vpop.f32.mrb[40].mxu0  ;;  %v503_v0 = vpop.f32.mrb[40].mxu1 }
 0x167   :  { %v723_v1 = vmax.f32 %v659_v61, 0.0  ;;  %v755_v2 = vmax.f32 %v691_v62, 0.0  ;;  %v589_v3 = vmul.f32 %v1460_v49, %v343_v63  ;;  %v621_v4 = vmul.f32 %v1460_v49, %v503_v0  ;;  %v345_v5 = vpop.f32.mrb[41].mxu0  ;;  %v505_v6 = vpop.f32.mrb[41].mxu1 }
 0x169   :  { %787 = vst [vmem:[%s1791_s4 + $0x98] sm:$0xff] %v723_v1  ;;  %819 = vst [vmem:[%s1791_s4 + $0x198] sm:$0xff] %v755_v2  ;;  %v660_v7 = vadd.f32 %v1465_v51, %v589_v3  ;;  %v692_v8 = vadd.f32 %v1465_v51, %v621_v4 }
 0x16a   :  { %v348_v9 = vpop.f32.mrb[42].mxu0  ;;  %v508_v10 = vpop.f32.mrb[42].mxu1 }
 0x16b   :  { %v724_v11 = vmax.f32 %v660_v7, 0.0  ;;  %v756_v12 = vmax.f32 %v692_v8, 0.0  ;;  %v590_v13 = vmul.f32 %v1460_v49, %v348_v9  ;;  %v622_v14 = vmul.f32 %v1460_v49, %v508_v10  ;;  %v350_v15 = vpop.f32.mrb[43].mxu0  ;;  %v510_v16 = vpop.f32.mrb[43].mxu1 }
 0x16d   :  { %788 = vst [vmem:[%s1791_s4 + $0xa0] sm:$0xff] %v724_v11  ;;  %820 = vst [vmem:[%s1791_s4 + $0x1a0] sm:$0xff] %v756_v12  ;;  %v661_v17 = vadd.f32 %v1465_v51, %v590_v13  ;;  %v693_v18 = vadd.f32 %v1465_v51, %v622_v14 }
 0x16e   :  { %v353_v19 = vpop.f32.mrb[44].mxu0  ;;  %v513_v20 = vpop.f32.mrb[44].mxu1 }
 0x16f   :  { %v725_v21 = vmax.f32 %v661_v17, 0.0  ;;  %v757_v22 = vmax.f32 %v693_v18, 0.0  ;;  %v591_v23 = vmul.f32 %v1460_v49, %v353_v19  ;;  %v623_v24 = vmul.f32 %v1460_v49, %v513_v20  ;;  %v355_v25 = vpop.f32.mrb[45].mxu0  ;;  %v515_v26 = vpop.f32.mrb[45].mxu1 }
 0x171   :  { %789 = vst [vmem:[%s1791_s4 + $0xa8] sm:$0xff] %v725_v21  ;;  %821 = vst [vmem:[%s1791_s4 + $0x1a8] sm:$0xff] %v757_v22  ;;  %v662_v27 = vadd.f32 %v1465_v51, %v591_v23  ;;  %v694_v28 = vadd.f32 %v1465_v51, %v623_v24 }
 0x172   :  { %v358_v29 = vpop.f32.mrb[46].mxu0  ;;  %v518_v30 = vpop.f32.mrb[46].mxu1 }
 0x173   :  { %v726_v31 = vmax.f32 %v662_v27, 0.0  ;;  %v758_v32 = vmax.f32 %v694_v28, 0.0  ;;  %v592_v33 = vmul.f32 %v1460_v49, %v358_v29  ;;  %v624_v34 = vmul.f32 %v1460_v49, %v518_v30  ;;  %v360_v35 = vpop.f32.mrb[47].mxu0  ;;  %v520_v36 = vpop.f32.mrb[47].mxu1 }
 0x175   :  { %790 = vst [vmem:[%s1791_s4 + $0xb0] sm:$0xff] %v726_v31  ;;  %822 = vst [vmem:[%s1791_s4 + $0x1b0] sm:$0xff] %v758_v32  ;;  %v663_v37 = vadd.f32 %v1465_v51, %v592_v33  ;;  %v695_v38 = vadd.f32 %v1465_v51, %v624_v34 }
 0x176   :  { %v363_v39 = vpop.f32.mrb[48].mxu0  ;;  %v523_v40 = vpop.f32.mrb[48].mxu1 }
 0x177   :  { %v727_v41 = vmax.f32 %v663_v37, 0.0  ;;  %v759_v42 = vmax.f32 %v695_v38, 0.0  ;;  %v593_v43 = vmul.f32 %v1460_v49, %v363_v39  ;;  %v625_v44 = vmul.f32 %v1460_v49, %v523_v40  ;;  %v365_v45 = vpop.f32.mrb[49].mxu0  ;;  %v525_v46 = vpop.f32.mrb[49].mxu1 }
 0x179   :  { %791 = vst [vmem:[%s1791_s4 + $0xb8] sm:$0xff] %v727_v41  ;;  %823 = vst [vmem:[%s1791_s4 + $0x1b8] sm:$0xff] %v759_v42  ;;  %v664_v47 = vadd.f32 %v1465_v51, %v593_v43  ;;  %v696_v48 = vadd.f32 %v1465_v51, %v625_v44 }
 0x17a   :  { %v368_v50 = vpop.f32.mrb[50].mxu0  ;;  %v528_v52 = vpop.f32.mrb[50].mxu1 }
 0x17b   :  { %v728_v53 = vmax.f32 %v664_v47, 0.0  ;;  %v760_v54 = vmax.f32 %v696_v48, 0.0  ;;  %v594_v55 = vmul.f32 %v1460_v49, %v368_v50  ;;  %v626_v56 = vmul.f32 %v1460_v49, %v528_v52  ;;  %v370_v57 = vpop.f32.mrb[51].mxu0  ;;  %v530_v58 = vpop.f32.mrb[51].mxu1 }
 0x17d   :  { %792 = vst [vmem:[%s1791_s4 + $0xc0] sm:$0xff] %v728_v53  ;;  %824 = vst [vmem:[%s1791_s4 + $0x1c0] sm:$0xff] %v760_v54  ;;  %v665_v59 = vadd.f32 %v1465_v51, %v594_v55  ;;  %v697_v60 = vadd.f32 %v1465_v51, %v626_v56 }
 0x17e   :  { %v373_v61 = vpop.f32.mrb[52].mxu0  ;;  %v533_v62 = vpop.f32.mrb[52].mxu1 }
 0x17f   :  { %v729_v63 = vmax.f32 %v665_v59, 0.0  ;;  %v761_v0 = vmax.f32 %v697_v60, 0.0  ;;  %v595_v1 = vmul.f32 %v1460_v49, %v373_v61  ;;  %v627_v2 = vmul.f32 %v1460_v49, %v533_v62  ;;  %v375_v3 = vpop.f32.mrb[53].mxu0  ;;  %v535_v4 = vpop.f32.mrb[53].mxu1 }
 0x181   :  { %793 = vst [vmem:[%s1791_s4 + $0xc8] sm:$0xff] %v729_v63  ;;  %825 = vst [vmem:[%s1791_s4 + $0x1c8] sm:$0xff] %v761_v0  ;;  %v666_v5 = vadd.f32 %v1465_v51, %v595_v1  ;;  %v698_v6 = vadd.f32 %v1465_v51, %v627_v2 }
 0x182   :  { %v378_v7 = vpop.f32.mrb[54].mxu0  ;;  %v538_v8 = vpop.f32.mrb[54].mxu1 }
 0x183   :  { %v730_v9 = vmax.f32 %v666_v5, 0.0  ;;  %v762_v10 = vmax.f32 %v698_v6, 0.0  ;;  %v596_v11 = vmul.f32 %v1460_v49, %v378_v7  ;;  %v628_v12 = vmul.f32 %v1460_v49, %v538_v8  ;;  %v380_v13 = vpop.f32.mrb[55].mxu0  ;;  %v540_v14 = vpop.f32.mrb[55].mxu1 }
 0x185   :  { %794 = vst [vmem:[%s1791_s4 + $0xd0] sm:$0xff] %v730_v9  ;;  %826 = vst [vmem:[%s1791_s4 + $0x1d0] sm:$0xff] %v762_v10  ;;  %v667_v15 = vadd.f32 %v1465_v51, %v596_v11  ;;  %v699_v16 = vadd.f32 %v1465_v51, %v628_v12 }
 0x186   :  { %v383_v17 = vpop.f32.mrb[56].mxu0  ;;  %v543_v18 = vpop.f32.mrb[56].mxu1 }
 0x187   :  { %v731_v19 = vmax.f32 %v667_v15, 0.0  ;;  %v763_v20 = vmax.f32 %v699_v16, 0.0  ;;  %v597_v21 = vmul.f32 %v1460_v49, %v383_v17  ;;  %v629_v22 = vmul.f32 %v1460_v49, %v543_v18  ;;  %v385_v23 = vpop.f32.mrb[57].mxu0  ;;  %v545_v24 = vpop.f32.mrb[57].mxu1 }
 0x189   :  { %795 = vst [vmem:[%s1791_s4 + $0xd8] sm:$0xff] %v731_v19  ;;  %827 = vst [vmem:[%s1791_s4 + $0x1d8] sm:$0xff] %v763_v20  ;;  %v668_v25 = vadd.f32 %v1465_v51, %v597_v21  ;;  %v700_v26 = vadd.f32 %v1465_v51, %v629_v22 }
 0x18a   :  { %v388_v27 = vpop.f32.mrb[58].mxu0  ;;  %v548_v28 = vpop.f32.mrb[58].mxu1 }
 0x18b   :  { %v732_v29 = vmax.f32 %v668_v25, 0.0  ;;  %v764_v30 = vmax.f32 %v700_v26, 0.0  ;;  %v598_v31 = vmul.f32 %v1460_v49, %v388_v27  ;;  %v630_v32 = vmul.f32 %v1460_v49, %v548_v28  ;;  %v390_v33 = vpop.f32.mrb[59].mxu0  ;;  %v550_v34 = vpop.f32.mrb[59].mxu1 }
 0x18d   :  { %796 = vst [vmem:[%s1791_s4 + $0xe0] sm:$0xff] %v732_v29  ;;  %828 = vst [vmem:[%s1791_s4 + $0x1e0] sm:$0xff] %v764_v30  ;;  %v669_v35 = vadd.f32 %v1465_v51, %v598_v31  ;;  %v701_v36 = vadd.f32 %v1465_v51, %v630_v32 }
 0x18e   :  { %v393_v37 = vpop.f32.mrb[60].mxu0  ;;  %v553_v38 = vpop.f32.mrb[60].mxu1 }
 0x18f   :  { %v733_v39 = vmax.f32 %v669_v35, 0.0  ;;  %v765_v40 = vmax.f32 %v701_v36, 0.0  ;;  %v599_v41 = vmul.f32 %v1460_v49, %v393_v37  ;;  %v631_v42 = vmul.f32 %v1460_v49, %v553_v38  ;;  %v395_v43 = vpop.f32.mrb[61].mxu0  ;;  %v555_v44 = vpop.f32.mrb[61].mxu1 }
 0x191   :  { %797 = vst [vmem:[%s1791_s4 + $0xe8] sm:$0xff] %v733_v39  ;;  %829 = vst [vmem:[%s1791_s4 + $0x1e8] sm:$0xff] %v765_v40  ;;  %v670_v45 = vadd.f32 %v1465_v51, %v599_v41  ;;  %v702_v46 = vadd.f32 %v1465_v51, %v631_v42 }
 0x192   :  { %v398_v47 = vpop.f32.mrb[62].mxu0  ;;  %v558_v48 = vpop.f32.mrb[62].mxu1 }
 0x193   :  { %v734_v50 = vmax.f32 %v670_v45, 0.0  ;;  %v766_v52 = vmax.f32 %v702_v46, 0.0  ;;  %v600_v53 = vmul.f32 %v1460_v49, %v398_v47  ;;  %v632_v54 = vmul.f32 %v1460_v49, %v558_v48  ;;  %v400_v55 = vpop.f32.mrb[63].mxu0  ;;  %v560_v56 = vpop.f32.mrb[63].mxu1 }
 0x195   :  { %798 = vst [vmem:[%s1791_s4 + $0xf0] sm:$0xff] %v734_v50  ;;  %830 = vst [vmem:[%s1791_s4 + $0x1f0] sm:$0xff] %v766_v52  ;;  %v671_v57 = vadd.f32 %v1465_v51, %v600_v53  ;;  %v703_v58 = vadd.f32 %v1465_v51, %v632_v54 }
 0x197   :  { %v735_v59 = vmax.f32 %v671_v57, 0.0  ;;  %v767_v60 = vmax.f32 %v703_v58, 0.0 }
 0x199   :  { %799 = vst [vmem:[%s1791_s4 + $0xf8] sm:$0xff] %v735_v59  ;;  %831 = vst [vmem:[%s1791_s4 + $0x1f8] sm:$0xff] %v767_v60 }

// kernel: vision_dqn_dense_forward.64
= control target key start
LH: loop header
LB: loop body
LE: loop exit
PB: predicated region body
PF: predicated region fallthrough
CT: control target
= control target key end

     0   :  { %v5268_v0 = vmov 0.0|0.0   ;;  %vm5269_vm0 = vmmov 0   ;;  %v5270_v4 = vmov 0.0   ;;  %v5271_v7 = vmov 0   ;;  %s7190_s4 = inlined_call_operand.vmem [shape: f32[128,128], index: 4, kind: input, shape index: {}]   ;;  %s7191_s1 = inlined_call_operand.vmem [shape: f32[200,1], index: 1, kind: input, shape index: {}]   ;;  %s7192_s0 = inlined_call_operand.vmem [shape: f32[200,128], index: 0, kind: input, shape index: {}, may-alias: {0,8}]   ;;  %s7193_s2 = inlined_call_operand.vmem [shape: f32[1,128], index: 2, kind: input, shape index: {}]   ;;  %s7194_s3 = inlined_call_operand.vmem [shape: f32[1,128], index: 3, kind: input, shape index: {}]   ;;  %s7195_s7 = inlined_call_operand.vmem [shape: f32[9,128,128], index: 7, kind: input, shape index: {}]   ;;  %s7196_s5 = inlined_call_operand.vmem [shape: f32[1,128], index: 5, kind: input, shape index: {}]   ;;  %s7197_s6 = inlined_call_operand.vmem [shape: f32[1,128], index: 6, kind: input, shape index: {}]   ;;  %s7198_s8 = inlined_call_operand.vmem [shape: f32[200,128], index: 8, kind: output, shape index: {}, may-alias: {0,8}]  }
   0x1   :  { %4620 = vmatprep.subr.bf16.mxu0 %v5268_v0  ;;  %v168_v1 = vld [vmem:[%s7190_s4] sm:$0xff]  ;;  %v169_v2 = vld [vmem:[%s7190_s4 + $0x8] sm:$0xff]  ;;  %v170_v3 = vld [vmem:[%s7190_s4 + $0x10] sm:$0xff]  ;;  %3582 = vmatprep.mubr.msk.f32.mxu0 %vm5269_vm0, %v5270_v4  ;;  %613 = vst [vmem:[#allocation2] sm:$0xff] %v5270_v4 }
   0x2   :  { %614 = vst [vmem:[#allocation2 + $0x8] sm:$0xff] %v5270_v4  ;;  %640 = vst [vmem:[#allocation2 + $0xd8] sm:$0xff] %v5270_v4  ;;  %v4621_v5 = vpack.c.bf16 %v169_v2, %v168_v1  ;;  %v171_v6 = vld [vmem:[%s7190_s4 + $0x18] sm:$0xff]  ;;  %5239 = vset.pattern.permute.xlu0 %v5271_v7  ;;  %5240 = vset.pattern.permute.xlu1 %v5271_v7  ;;  %v172_v9 = vld [vmem:[%s7190_s4 + $0x20] sm:$0xff] }
   0x3   :  { %641 = vst [vmem:[#allocation2 + $0xe0] sm:$0xff] %v5270_v4  ;;  %4740 = vmatprep.subr.bf16.mxu1 %v5268_v0  ;;  %4117 = vmatprep.mubr.msk.f32.mxu1 %vm5269_vm0, %v5270_v4  ;;  %v4624_v8 = vpack.c.bf16 %v171_v6, %v170_v3  ;;  %v173_v10 = vld [vmem:[%s7190_s4 + $0x28] sm:$0xff]  ;;  %v174_v12 = vld [vmem:[%s7190_s4 + $0x30] sm:$0xff]  ;;  %v175_v13 = vld [vmem:[%s7190_s4 + $0x38] sm:$0xff] }
   0x4   :  { %4622 = vmatpush3.bf16.msra.mxu0 %v4621_v5  ;;  %v4627_v11 = vpack.c.bf16 %v173_v10, %v172_v9  ;;  %v54_v14 = vld [vmem:[%s7191_s1] sm:$0xff]  ;;  %v4630_v15 = vpack.c.bf16 %v175_v13, %v174_v12  ;;  %v55_v16 = vld [vmem:[%s7191_s1 + $0x8] sm:$0xff]  ;;  %v56_v17 = vld [vmem:[%s7191_s1 + $0x10] sm:$0xff] }
   0x5   :  { %4623 = vmatprep.subr.bf16.mxu0 %v5268_v0  ;;  %465 = vperm.xlu0 %5239, %v54_v14   ;;  %v176_v18 = vld [vmem:[%s7190_s4 + $0x40] sm:$0xff]  ;;  %v177_v19 = vld [vmem:[%s7190_s4 + $0x48] sm:$0xff]  ;;  %v57_v20 = vld [vmem:[%s7191_s1 + $0x18] sm:$0xff] }
   0x6   :  { %475 = vperm.xlu1 %5240, %v56_v17   ;;  %v4633_v21 = vpack.c.bf16 %v177_v19, %v176_v18  ;;  %v178_v22 = vld [vmem:[%s7190_s4 + $0x50] sm:$0xff]  ;;  %v58_v23 = vld [vmem:[%s7191_s1 + $0x20] sm:$0xff]  ;;  %v179_v25 = vld [vmem:[%s7190_s4 + $0x58] sm:$0xff] }
   0x7   :  { %v45_v24 = vld [vmem:[%s7192_s0 + $0x80] sm:$0xff]  ;;  %v46_v26 = vld [vmem:[%s7192_s0 + $0x88] sm:$0xff]  ;;  %v47_v27 = vld [vmem:[%s7192_s0 + $0x90] sm:$0xff]  ;;  %v4636_v34 = vpack.c.bf16 %v179_v25, %v178_v22 }
   0x8   :  { %4625 = vmatpush3.bf16.msra.mxu0 %v4624_v8  ;;  %v5394_v28 = vld [vmem:[%s7193_s2] ss:$0 sm:$0xff]  ;;  %v59_v29 = vld [vmem:[%s7191_s1 + $0x28] sm:$0xff]  ;;  %v48_v30 = vld [vmem:[%s7192_s0 + $0x98] sm:$0xff] }
   0x9   :  { %4626 = vmatprep.subr.bf16.mxu0 %v5268_v0  ;;  %470 = vperm.xlu0 %5239, %v55_v16   ;;  %v29_v31 = vld [vmem:[%s7192_s0] sm:$0xff]  ;;  %v102_v32 = vmul.f32 %v5394_v28, %v45_v24  ;;  %v60_v36 = vld [vmem:[%s7191_s1 + $0x30] sm:$0xff]  ;;  %v103_v37 = vmul.f32 %v5394_v28, %v46_v26  ;;  %v104_v38 = vmul.f32 %v5394_v28, %v47_v27  ;;  %v50_v39 = vld [vmem:[%s7192_s0 + $0xa8] sm:$0xff] }
   0xa   :  { %480 = vperm.xlu1 %5240, %v57_v20   ;;  %v49_v33 = vld [vmem:[%s7192_s0 + $0xa0] sm:$0xff]  ;;  %v181_v41 = vld [vmem:[%s7190_s4 + $0x68] sm:$0xff]  ;;  %v105_v43 = vmul.f32 %v5394_v28, %v48_v30  ;;  %v51_v45 = vld [vmem:[%s7192_s0 + $0xb0] sm:$0xff]  ;;  %v107_v49 = vmul.f32 %v5394_v28, %v50_v39  ;;  %v86_v52 = vmul.f32 %v5394_v28, %v29_v31 }
   0xb   :  { %v5412_v35 = vld [vmem:[%s7194_s3] ss:$0 sm:$0xff]  ;;  %v106_v44 = vmul.f32 %v5394_v28, %v49_v33  ;;  %v61_v46 = vld [vmem:[%s7191_s1 + $0x38] sm:$0xff]  ;;  %v108_v50 = vmul.f32 %v5394_v28, %v51_v45  ;;  %v30_v58 = vld [vmem:[%s7192_s0 + $0x8] sm:$0xff] }
   0xc   :  { %4628 = vmatpush3.bf16.msra.mxu0 %v4627_v11  ;;  %v180_v40 = vld [vmem:[%s7190_s4 + $0x60] sm:$0xff]  ;;  %v5430_v42 = vadd.f32 %v5412_v35, %v102_v32  ;;  %v5441_v47 = vadd.f32 %v5412_v35, %v103_v37  ;;  %v5444_v48 = vadd.f32 %v5412_v35, %v104_v38  ;;  %v52_v51 = vld [vmem:[%s7192_s0 + $0xb8] sm:$0xff]  ;;  %v5453_v53 = vadd.f32 %v5412_v35, %v105_v43  ;;  %v182_v62 = vld [vmem:[%s7190_s4 + $0x70] sm:$0xff] }
   0xd   :  { %4629 = vmatprep.subr.bf16.mxu0 %v5268_v0  ;;  %485 = vperm.xlu0 %5239, %v58_v23   ;;  %v5456_v54 = vadd.f32 %v5412_v35, %v106_v44  ;;  %v109_v55 = vmul.f32 %v5394_v28, %v52_v51  ;;  %v53_v56 = vld [vmem:[%s7192_s0 + $0xc0] sm:$0xff]  ;;  %v4639_v57 = vpack.c.bf16 %v181_v41, %v180_v40  ;;  %v183_v63 = vld [vmem:[%s7190_s4 + $0x78] sm:$0xff]  ;;  %v63_v3 = vld [vmem:[%s7191_s1 + $0x48] sm:$0xff] }
   0xe   :  { %490 = vperm.xlu1 %5240, %v59_v29   ;;  %v62_v59 = vld [vmem:[%s7191_s1 + $0x40] sm:$0xff]  ;;  %v5469_v60 = vadd.f32 %v5412_v35, %v107_v49  ;;  %v5472_v61 = vadd.f32 %v5412_v35, %v108_v50  ;;  %v110_v2 = vmul.f32 %v5394_v28, %v53_v56  ;;  %v118_v5 = vadd.f32 %v5412_v35, %v86_v52  ;;  %v31_v9 = vld [vmem:[%s7192_s0 + $0x10] sm:$0xff]  ;;  %v65_v11 = vld [vmem:[%s7191_s1 + $0x58] sm:$0xff] }
   0xf   :  { %v5482_v1 = vadd.f32 %v5412_v35, %v109_v55  ;;  %v87_v6 = vmul.f32 %v5394_v28, %v30_v58  ;;  %v4642_v8 = vpack.c.bf16 %v183_v63, %v182_v62  ;;  %v64_v10 = vld [vmem:[%s7191_s1 + $0x50] sm:$0xff]  ;;  %v88_v14 = vmul.f32 %v5394_v28, %v31_v9  ;;  %v66_v16 = vld [vmem:[%s7191_s1 + $0x60] sm:$0xff]  ;;  %v67_v17 = vld [vmem:[%s7191_s1 + $0x68] sm:$0xff] }
  0x10   :  { %4631 = vmatpush3.bf16.msra.mxu0 %v4630_v15  ;;  %v5491_v7 = vadd.f32 %v5412_v35, %v110_v2  ;;  %v143_v12 = vmax.f32 %v118_v5, 0.0  ;;  %v32_v15 = vld [vmem:[%s7192_s0 + $0x18] sm:$0xff]  ;;  %v3013_v22 = vld [vmem:[%s7195_s7 + $0x88] sm:$0xff]  ;;  %v3060_v23 = vld [vmem:[%s7195_s7 + $0x200] sm:$0xff] }
  0x11   :  { %4632 = vmatprep.subr.bf16.mxu0 %v5268_v0  ;;  %495 = vperm.xlu0 %5239, %v60_v36   ;;  %v119_v13 = vadd.f32 %v5412_v35, %v87_v6  ;;  %v120_v19 = vadd.f32 %v5412_v35, %v88_v14  ;;  %v89_v20 = vmul.f32 %v5394_v28, %v32_v15  ;;  %v33_v24 = vld [vmem:[%s7192_s0 + $0x20] sm:$0xff]  ;;  %v68_v25 = vld [vmem:[%s7191_s1 + $0x70] sm:$0xff]  ;;  %v3061_v27 = vld [vmem:[%s7195_s7 + $0x208] sm:$0xff] }
  0x12   :  { %500 = vperm.xlu1 %5240, %v61_v46   ;;  %v69_v29 = vld [vmem:[%s7191_s1 + $0x78] sm:$0xff]  ;;  %v4741_v30 = vpack.c.bf16 %v3061_v27, %v3060_v23  ;;  %v3014_v31 = vld [vmem:[%s7195_s7 + $0x90] sm:$0xff]  ;;  %v90_v37 = vmul.f32 %v5394_v28, %v33_v24  ;;  %v34_v40 = vld [vmem:[%s7192_s0 + $0x28] sm:$0xff] }
  0x13   :  { %v144_v18 = vmax.f32 %v119_v13, 0.0  ;;  %v3015_v32 = vld [vmem:[%s7195_s7 + $0x98] sm:$0xff]  ;;  %v3062_v33 = vld [vmem:[%s7195_s7 + $0x210] sm:$0xff]  ;;  %v121_v36 = vadd.f32 %v5412_v35, %v89_v20  ;;  %v70_v41 = vld [vmem:[%s7191_s1 + $0x80] sm:$0xff]  ;;  %v91_v52 = vmul.f32 %v5394_v28, %v34_v40 }
  0x14   :  { %4634 = vmatpush3.bf16.msra.mxu0 %v4633_v21  ;;  %v3012_v21 = vld [vmem:[%s7195_s7 + $0x80] sm:$0xff]  ;;  %v4648_v38 = vpack.c.bf16 %v3015_v32, %v3014_v31  ;;  %v3063_v39 = vld [vmem:[%s7195_s7 + $0x218] sm:$0xff]  ;;  %v71_v43 = vld [vmem:[%s7191_s1 + $0x88] sm:$0xff]  ;;  %4742 = vmatpush3.bf16.msra.mxu1 %v4741_v30  ;;  %v122_v51 = vadd.f32 %v5412_v35, %v90_v37 }
  0x15   :  { %4635 = vmatprep.subr.bf16.mxu0 %v5268_v0  ;;  %505 = vperm.xlu0 %5239, %v62_v59   ;;  %v4645_v26 = vpack.c.bf16 %v3013_v22, %v3012_v21  ;;  %v4744_v44 = vpack.c.bf16 %v3063_v39, %v3062_v33  ;;  %v3016_v45 = vld [vmem:[%s7195_s7 + $0xa0] sm:$0xff]  ;;  %v3017_v46 = vld [vmem:[%s7195_s7 + $0xa8] sm:$0xff]  ;;  %v146_v50 = vmax.f32 %v121_v36, 0.0  ;;  %v72_v58 = vld [vmem:[%s7191_s1 + $0x90] sm:$0xff]  ;;  %v123_v6 = vadd.f32 %v5412_v35, %v91_v52 }
  0x16   :  { %510 = vperm.xlu1 %5240, %v63_v3   ;;  %4743 = vmatprep.subr.bf16.mxu1 %v5268_v0  ;;  %v3064_v49 = vld [vmem:[%s7195_s7 + $0x220] sm:$0xff]  ;;  %v4651_v55 = vpack.c.bf16 %v3017_v46, %v3016_v45  ;;  %v3065_v56 = vld [vmem:[%s7195_s7 + $0x228] sm:$0xff]  ;;  %v73_v59 = vld [vmem:[%s7191_s1 + $0x98] sm:$0xff]  ;;  %v147_v5 = vmax.f32 %v122_v51, 0.0 }
  0x17   :  { %v4747_v62 = vpack.c.bf16 %v3065_v56, %v3064_v49  ;;  %v3018_v63 = vld [vmem:[%s7195_s7 + $0xb0] sm:$0xff]  ;;  %v3019_v2 = vld [vmem:[%s7195_s7 + $0xb8] sm:$0xff]  ;;  %v75_v14 = vld [vmem:[%s7191_s1 + $0xa8] sm:$0xff] }
  0x18   :  { %4637 = vmatpush3.bf16.msra.mxu0 %v4636_v34  ;;  %v145_v34 = vmax.f32 %v120_v19, 0.0  ;;  %4745 = vmatpush3.bf16.msra.mxu1 %v4744_v44  ;;  %v3066_v3 = vld [vmem:[%s7195_s7 + $0x230] sm:$0xff]  ;;  %v4654_v9 = vpack.c.bf16 %v3019_v2, %v3018_v63  ;;  %v3020_v15 = vld [vmem:[%s7195_s7 + $0xc0] sm:$0xff]  ;;  %v77_v23 = vld [vmem:[%s7191_s1 + $0xb8] sm:$0xff] }
  0x19   :  { %4638 = vmatprep.subr.bf16.mxu0 %v5268_v0  ;;  %515 = vperm.xlu0 %5239, %v64_v10   ;;  %v3067_v10 = vld [vmem:[%s7195_s7 + $0x238] sm:$0xff]  ;;  %v37_v21 = vld [vmem:[%s7192_s0 + $0x40] sm:$0xff]  ;;  %v76_v22 = vld [vmem:[%s7191_s1 + $0xb0] sm:$0xff] }
  0x1a   :  { %520 = vperm.xlu1 %5240, %v65_v11   ;;  %4746 = vmatprep.subr.bf16.mxu1 %v5268_v0  ;;  %v36_v11 = vld [vmem:[%s7192_s0 + $0x38] sm:$0xff]  ;;  %v4750_v13 = vpack.c.bf16 %v3067_v10, %v3066_v3  ;;  %v38_v27 = vld [vmem:[%s7192_s0 + $0x48] sm:$0xff]  ;;  %v39_v33 = vld [vmem:[%s7192_s0 + $0x50] sm:$0xff] }
  0x1b   :  { %v93_v19 = vmul.f32 %v5394_v28, %v36_v11  ;;  %v95_v32 = vmul.f32 %v5394_v28, %v38_v27  ;;  %v96_v37 = vmul.f32 %v5394_v28, %v39_v33  ;;  %v42_v49 = vld [vmem:[%s7192_s0 + $0x68] sm:$0xff]  ;;  %v3071_v11 = vld [vmem:[%s7195_s7 + $0x258] sm:$0xff] }
  0x1c   :  { %4640 = vmatpush3.bf16.msra.mxu0 %v4639_v57  ;;  %v35_v57 = vld [vmem:[%s7192_s0 + $0x30] sm:$0xff]  ;;  %4748 = vmatpush3.bf16.msra.mxu1 %v4747_v62  ;;  %v99_v52 = vmul.f32 %v5394_v28, %v42_v49  ;;  %v695_v33 = vld [vmem:[%s7195_s7 + $0x18] sm:$0xff] }
  0x1d   :  { %4641 = vmatprep.subr.bf16.mxu0 %v5268_v0  ;;  %525 = vperm.xlu0 %5239, %v66_v16   ;;  %v3021_v16 = vld [vmem:[%s7195_s7 + $0xc8] sm:$0xff]  ;;  %v127_v36 = vadd.f32 %v5412_v35, %v95_v32  ;;  %v128_v40 = vadd.f32 %v5412_v35, %v96_v37  ;;  %v694_v32 = vld [vmem:[%s7195_s7 + $0x10] sm:$0xff]  ;;  %v703_v49 = vld [vmem:[%s7195_s7 + $0x58] sm:$0xff] }
  0x1e   :  { %530 = vperm.xlu1 %5240, %v67_v17   ;;  %4749 = vmatprep.subr.bf16.mxu1 %v5268_v0  ;;  %v148_v17 = vmax.f32 %v123_v6, 0.0  ;;  %v4657_v20 = vpack.c.bf16 %v3021_v16, %v3020_v15  ;;  %v3072_v15 = vld [vmem:[%s7195_s7 + $0x260] sm:$0xff]  ;;  %v697_v37 = vld [vmem:[%s7195_s7 + $0x28] sm:$0xff] }
  0x1f   :  { %v152_v39 = vmax.f32 %v127_v36, 0.0  ;;  %v153_v44 = vmax.f32 %v128_v40, 0.0  ;;  %v696_v36 = vld [vmem:[%s7195_s7 + $0x20] sm:$0xff]  ;;  %v699_v40 = vld [vmem:[%s7195_s7 + $0x38] sm:$0xff] }
  0x20   :  { %4643 = vmatpush3.bf16.msra.mxu0 %v4642_v8  ;;  %v92_v8 = vmul.f32 %v5394_v28, %v35_v57  ;;  %4751 = vmatpush3.bf16.msra.mxu1 %v4750_v13  ;;  %v131_v57 = vadd.f32 %v5412_v35, %v99_v52  ;;  %v164_v13 = vmax.f32 %v5469_v60, 0.0  ;;  %v3073_v60 = vld [vmem:[%s7195_s7 + $0x268] sm:$0xff] }
  0x21   :  { %4644 = vmatprep.subr.bf16.mxu0 %v5268_v0  ;;  %535 = vperm.xlu0 %5239, %v68_v25   ;;  %v125_v25 = vadd.f32 %v5412_v35, %v93_v19  ;;  %v3024_v19 = vld [vmem:[%s7195_s7 + $0xe0] sm:$0xff]  ;;  %v705_v52 = vld [vmem:[%s7195_s7 + $0x68] sm:$0xff] }
  0x22   :  { %540 = vperm.xlu1 %5240, %v69_v29   ;;  %4752 = vmatprep.subr.bf16.mxu1 %v5268_v0  ;;  %v78_v29 = vld [vmem:[%s7191_s1 + $0xc0] sm:$0xff]  ;;  %v156_v62 = vmax.f32 %v131_v57, 0.0  ;;  %v707_v57 = vld [vmem:[%s7195_s7 + $0x78] sm:$0xff] }
  0x23   :  { %3583 = vmatmul.mubr.f32.vlgmr.msra.gmra.mrb[0].mxu0 %v143_v12  ;;  %v74_v12 = vld [vmem:[%s7191_s1 + $0xa0] sm:$0xff]  ;;  %v150_v30 = vmax.f32 %v125_v25, 0.0  ;;  %v3026_v25 = vld [vmem:[%s7195_s7 + $0xf0] sm:$0xff] }
  0x24   :  { %3585 = vmatprep.mubr.msk.f32.mxu0 %vm5269_vm0, %v5270_v4  ;;  %4646 = vmatpush3.bf16.msra.mxu0 %v4645_v26  ;;  %v94_v26 = vmul.f32 %v5394_v28, %v37_v21 }
  0x25   :  { %4647 = vmatprep.subr.bf16.mxu0 %v5268_v0  ;;  %545 = vperm.xlu0 %5239, %v70_v41  }
  0x26   :  { %550 = vperm.xlu1 %5240, %v71_v43   ;;  %v126_v31 = vadd.f32 %v5412_v35, %v94_v26  ;;  %v41_v43 = vld [vmem:[%s7192_s0 + $0x60] sm:$0xff]  ;;  %v3027_v26 = vld [vmem:[%s7195_s7 + $0xf8] sm:$0xff] }
  0x27   :  { %3586 = vmatmul.mubr.f32.gmra.mrb[2].mxu0 %v144_v18  ;;  %v124_v18 = vadd.f32 %v5412_v35, %v92_v8  ;;  %v98_v46 = vmul.f32 %v5394_v28, %v41_v43  ;;  %v159_v8 = vmax.f32 %v5430_v42, 0.0  ;;  %v3068_v42 = vld [vmem:[%s7195_s7 + $0x240] sm:$0xff]  ;;  %v4666_v27 = vpack.c.bf16 %v3027_v26, %v3026_v25 }
  0x28   :  { %3588 = vmatprep.mubr.msk.f32.mxu0 %vm5269_vm0, %v5270_v4  ;;  %4649 = vmatpush3.bf16.msra.mxu0 %v4648_v38  ;;  %v40_v38 = vld [vmem:[%s7192_s0 + $0x58] sm:$0xff]  ;;  %v700_v43 = vld [vmem:[%s7195_s7 + $0x40] sm:$0xff] }
  0x29   :  { %4650 = vmatprep.subr.bf16.mxu0 %v5268_v0  ;;  %555 = vperm.xlu0 %5239, %v72_v58   ;;  %v149_v24 = vmax.f32 %v124_v18, 0.0  ;;  %v97_v41 = vmul.f32 %v5394_v28, %v40_v38  ;;  %v130_v51 = vadd.f32 %v5412_v35, %v98_v46  ;;  %v4759_v18 = vpack.c.bf16 %v3073_v60, %v3072_v15  ;;  %v702_v46 = vld [vmem:[%s7195_s7 + $0x50] sm:$0xff] }
  0x2a   :  { %560 = vperm.xlu1 %5240, %v73_v59   ;;  %v44_v59 = vld [vmem:[%s7192_s0 + $0x78] sm:$0xff]  ;;  %v4675_v38 = vpack.c.bf16 %v697_v37, %v696_v36 }
  0x2b   :  { %3589 = vmatmul.mubr.f32.gmra.mrb[4].mxu0 %v145_v34  ;;  %v151_v34 = vmax.f32 %v126_v31, 0.0  ;;  %v129_v45 = vadd.f32 %v5412_v35, %v97_v41  ;;  %v155_v56 = vmax.f32 %v130_v51, 0.0  ;;  %v101_v2 = vmul.f32 %v5394_v28, %v44_v59  ;;  %v704_v51 = vld [vmem:[%s7195_s7 + $0x60] sm:$0xff] }
  0x2c   :  { %3591 = vmatprep.mubr.msk.f32.mxu0 %vm5269_vm0, %v5270_v4  ;;  %4652 = vmatpush3.bf16.msra.mxu0 %v4651_v55  ;;  %v43_v55 = vld [vmem:[%s7192_s0 + $0x70] sm:$0xff]  ;;  %v5843_v59 = vld [vmem:[%s7196_s5] ss:$0 sm:$0xff] }
  0x2d   :  { %4653 = vmatprep.subr.bf16.mxu0 %v5268_v0  ;;  %565 = vperm.xlu0 %5239, %v74_v12   ;;  %v100_v58 = vmul.f32 %v5394_v28, %v43_v55  ;;  %v160_v28 = vmax.f32 %v5441_v47, 0.0  ;;  %v3069_v47 = vld [vmem:[%s7195_s7 + $0x248] sm:$0xff]  ;;  %v4687_v55 = vpack.c.bf16 %v705_v52, %v704_v51 }
  0x2e   :  { %570 = vperm.xlu1 %5240, %v75_v14   ;;  %v4753_v10 = vpack.c.bf16 %v3069_v47, %v3068_v42  ;;  %v3023_v14 = vld [vmem:[%s7195_s7 + $0xd8] sm:$0xff] }
  0x2f   :  { %3592 = vmatmul.mubr.f32.gmra.mrb[6].mxu0 %v146_v50  ;;  %v154_v50 = vmax.f32 %v129_v45, 0.0  ;;  %v132_v63 = vadd.f32 %v5412_v35, %v100_v58 }
  0x30   :  { %3594 = vmatprep.mubr.msk.f32.mxu0 %vm5269_vm0, %v5270_v4  ;;  %4655 = vmatpush3.bf16.msra.mxu0 %v4654_v9  ;;  %v162_v9 = vmax.f32 %v5453_v53, 0.0  ;;  %v3070_v53 = vld [vmem:[%s7195_s7 + $0x250] sm:$0xff] }
  0x31   :  { %4656 = vmatprep.subr.bf16.mxu0 %v5268_v0  ;;  %575 = vperm.xlu0 %5239, %v76_v22   ;;  %v157_v3 = vmax.f32 %v132_v63, 0.0  ;;  %v4756_v12 = vpack.c.bf16 %v3071_v11, %v3070_v53  ;;  %v3075_v22 = vld [vmem:[%s7195_s7 + $0x278] sm:$0xff]  ;;  %v5848_v63 = vld [vmem:[%s7197_s6] ss:$0 sm:$0xff]  ;;  %v3078_v11 = vld [vmem:[%s7195_s7 + $0x290] sm:$0xff] }
  0x32   :  { %580 = vperm.xlu1 %5240, %v77_v23   ;;  %4754 = vmatpush3.bf16.msra.mxu1 %v4753_v10  ;;  %v166_v23 = vmax.f32 %v5482_v1, 0.0  ;;  %v167_v1 = vmax.f32 %v5491_v7, 0.0  ;;  %v693_v7 = vld [vmem:[%s7195_s7 + $0x8] sm:$0xff] }
  0x33   :  { %3595 = vmatmul.mubr.f32.gmra.mrb[8].mxu0 %v147_v5  ;;  %v133_v5 = vadd.f32 %v5412_v35, %v101_v2  ;;  %v161_v35 = vmax.f32 %v5444_v48, 0.0  ;;  %v163_v48 = vmax.f32 %v5456_v54, 0.0  ;;  %4755 = vmatprep.subr.bf16.mxu1 %v5268_v0  ;;  %v3022_v54 = vld [vmem:[%s7195_s7 + $0xd0] sm:$0xff] }
  0x34   :  { %3597 = vmatprep.mubr.msk.f32.mxu0 %vm5269_vm0, %v5270_v4  ;;  %4658 = vmatpush3.bf16.msra.mxu0 %v4657_v20  ;;  %v4660_v16 = vpack.c.bf16 %v3023_v14, %v3022_v54  ;;  %v3025_v20 = vld [vmem:[%s7195_s7 + $0xe8] sm:$0xff] }
  0x35   :  { %4659 = vmatprep.subr.bf16.mxu0 %v5268_v0  ;;  %585 = vperm.xlu0 %5239, %v78_v29   ;;  %v158_v6 = vmax.f32 %v133_v5, 0.0  ;;  %v4663_v21 = vpack.c.bf16 %v3025_v20, %v3024_v19  ;;  %v708_v29 = vld [vmem:[#allocation2 + $0x6] sm:$0xff] }
  0x36   :  { %4757 = vmatpush3.bf16.msra.mxu1 %v4756_v12  ;;  %v3079_v12 = vld [vmem:[%s7195_s7 + $0x298] sm:$0xff] }
  0x37   :  { %3598 = vmatmul.mubr.f32.gmra.mrb[10].mxu0 %v148_v17  ;;  %4758 = vmatprep.subr.bf16.mxu1 %v5268_v0  ;;  %v165_v17 = vmax.f32 %v5472_v61, 0.0  ;;  %v3074_v61 = vld [vmem:[%s7195_s7 + $0x270] sm:$0xff]  ;;  %v4768_v60 = vpack.c.bf16 %v3079_v12, %v3078_v11 }
  0x38   :  { %3600 = vmatprep.mubr.msk.f32.mxu0 %vm5269_vm0, %v5270_v4  ;;  %4661 = vmatpush3.bf16.msra.mxu0 %v4660_v16 }
  0x39   :  { %4662 = vmatprep.subr.bf16.mxu0 %v5268_v0 }
  0x3a   :  { %4760 = vmatpush3.bf16.msra.mxu1 %v4759_v18 }
  0x3b   :  { %3601 = vmatmul.mubr.f32.gmra.mrb[12].mxu0 %v149_v24  ;;  %4761 = vmatprep.subr.bf16.mxu1 %v5268_v0  ;;  %v4762_v24 = vpack.c.bf16 %v3075_v22, %v3074_v61  ;;  %v3080_v61 = vld [vmem:[%s7195_s7 + $0x2a0] sm:$0xff] }
  0x3c   :  { %3603 = vmatprep.mubr.msk.f32.mxu0 %vm5269_vm0, %v5270_v4  ;;  %4664 = vmatpush3.bf16.msra.mxu0 %v4663_v21  ;;  %v3081_v21 = vld [vmem:[%s7195_s7 + $0x2a8] sm:$0xff] }
  0x3d   :  { %4665 = vmatprep.subr.bf16.mxu0 %v5268_v0 }
  0x3e   :  { %4763 = vmatpush3.bf16.msra.mxu1 %v4762_v24 }
  0x3f   :  { %3604 = vmatmul.mubr.f32.gmra.mrb[14].mxu0 %v150_v30  ;;  %4764 = vmatprep.subr.bf16.mxu1 %v5268_v0  ;;  %v692_v30 = vld [vmem:[%s7195_s7] sm:$0xff] }
  0x40   :  { %3606 = vmatprep.mubr.msk.f32.mxu0 %vm5269_vm0, %v5270_v4  ;;  %4667 = vmatpush3.bf16.msra.mxu0 %v4666_v27  ;;  %v4669_v31 = vpack.c.bf16 %v693_v7, %v692_v30  ;;  %v4771_v27 = vpack.c.bf16 %v3081_v21, %v3080_v61  ;;  %v3082_v30 = vld [vmem:[%s7195_s7 + $0x2b0] sm:$0xff]  ;;  %v3083_v7 = vld [vmem:[%s7195_s7 + $0x2b8] sm:$0xff] }
  0x41   :  { %4668 = vmatprep.subr.bf16.mxu0 %v5268_v0 }
  0x43   :  { %3607 = vmatmul.mubr.f32.gmra.mrb[16].mxu0 %v151_v34  ;;  %v4672_v34 = vpack.c.bf16 %v695_v33, %v694_v32 }
  0x44   :  { %3609 = vmatprep.mubr.msk.f32.mxu0 %vm5269_vm0, %v5270_v4 }
  0x47   :  { %3610 = vmatmul.mubr.f32.gmra.mrb[18].mxu0 %v152_v39  ;;  %v698_v39 = vld [vmem:[%s7195_s7 + $0x30] sm:$0xff] }
  0x48   :  { %3612 = vmatprep.mubr.msk.f32.mxu0 %vm5269_vm0, %v5270_v4  ;;  %v4678_v41 = vpack.c.bf16 %v699_v40, %v698_v39 }
  0x4b   :  { %3613 = vmatmul.mubr.f32.gmra.mrb[20].mxu0 %v153_v44  ;;  %v701_v44 = vld [vmem:[%s7195_s7 + $0x48] sm:$0xff] }
  0x4c   :  { %3615 = vmatprep.mubr.msk.f32.mxu0 %vm5269_vm0, %v5270_v4  ;;  %v4681_v45 = vpack.c.bf16 %v701_v44, %v700_v43  ;;  %v3085_v43 = vld [vmem:[%s7195_s7 + $0x2c8] sm:$0xff] }
  0x4f   :  { %3616 = vmatmul.mubr.f32.gmra.mrb[22].mxu0 %v154_v50  ;;  %v4684_v50 = vpack.c.bf16 %v703_v49, %v702_v46 }
  0x50   :  { %3618 = vmatprep.mubr.msk.f32.mxu0 %vm5269_vm0, %v5270_v4 }
  0x53   :  { %3619 = vmatmul.mubr.f32.gmra.mrb[24].mxu0 %v155_v56  ;;  %v706_v56 = vld [vmem:[%s7195_s7 + $0x70] sm:$0xff] }
  0x54   :  { %3621 = vmatprep.mubr.msk.f32.mxu0 %vm5269_vm0, %v5270_v4  ;;  %v4690_v58 = vpack.c.bf16 %v707_v57, %v706_v56  ;;  %v3086_v57 = vld [vmem:[%s7195_s7 + $0x2d0] sm:$0xff] }
  0x57   :  { %3622 = vmatmul.mubr.f32.gmra.mrb[26].mxu0 %v156_v62 }
  0x58   :  { %3624 = vmatprep.mubr.msk.f32.mxu0 %vm5269_vm0, %v5270_v4 }
  0x5b   :  { %3625 = vmatmul.mubr.f32.gmra.mrb[28].mxu0 %v157_v3 }
  0x5c   :  { %3627 = vmatprep.mubr.msk.f32.mxu0 %vm5269_vm0, %v5270_v4 }
  0x5f   :  { %3628 = vmatmul.mubr.f32.gmra.mrb[30].mxu0 %v158_v6  ;;  %v3076_v6 = vld [vmem:[%s7195_s7 + $0x280] sm:$0xff] }
  0x60   :  { %3630 = vmatprep.mubr.msk.f32.mxu0 %vm5269_vm0, %v5270_v4 }
  0x63   :  { %3631 = vmatmul.mubr.f32.gmra.mrb[32].mxu0 %v159_v8  ;;  %v3077_v8 = vld [vmem:[%s7195_s7 + $0x288] sm:$0xff] }
  0x64   :  { %3633 = vmatprep.mubr.msk.f32.mxu0 %vm5269_vm0, %v5270_v4  ;;  %v4765_v10 = vpack.c.bf16 %v3077_v8, %v3076_v6 }
  0x67   :  { %3634 = vmatmul.mubr.f32.gmra.mrb[34].mxu0 %v160_v28 }
  0x68   :  { %3636 = vmatprep.mubr.msk.f32.mxu0 %vm5269_vm0, %v5270_v4 }
  0x6b   :  { %3637 = vmatmul.mubr.f32.gmra.mrb[36].mxu0 %v161_v35 }
  0x6c   :  { %3639 = vmatprep.mubr.msk.f32.mxu0 %vm5269_vm0, %v5270_v4 }
  0x6f   :  { %3640 = vmatmul.mubr.f32.gmra.mrb[38].mxu0 %v162_v9 }
  0x70   :  { %3642 = vmatprep.mubr.msk.f32.mxu0 %vm5269_vm0, %v5270_v4 }
  0x73   :  { %3643 = vmatmul.mubr.f32.gmra.mrb[40].mxu0 %v163_v48 }
  0x74   :  { %3645 = vmatprep.mubr.msk.f32.mxu0 %vm5269_vm0, %v5270_v4 }
  0x77   :  { %3646 = vmatmul.mubr.f32.gmra.mrb[42].mxu0 %v164_v13 }
  0x78   :  { %3648 = vmatprep.mubr.msk.f32.mxu0 %vm5269_vm0, %v5270_v4 }
  0x7b   :  { %3649 = vmatmul.mubr.f32.gmra.mrb[44].mxu0 %v165_v17 }
  0x7c   :  { %3651 = vmatprep.mubr.msk.f32.mxu0 %vm5269_vm0, %v5270_v4 }
  0x7f   :  { %3652 = vmatmul.mubr.f32.gmra.mrb[46].mxu0 %v166_v23 }
  0x80   :  { %3654 = vmatprep.mubr.msk.f32.mxu0 %vm5269_vm0, %v5270_v4 }
  0x83   :  { %3655 = vmatmul.mubr.f32.gmra.mrb[48].mxu0 %v167_v1 }
  0x84   :  { %3689 = vmatprep.mubr.msk.f32.mxu0 %vm5269_vm0, %v5270_v4  ;;  %v5858_v28 = vpop.permute.xlu0 %465 }
  0x85   :  { %v5877_v19 = vpop.permute.xlu1 %475 }
  0x87   :  { %3690 = vmatmul.mubr.f32.vlgmr.msra.gmra.mrb[50].mxu0 %v708_v29 }
  0x88   :  { %3692 = vmatprep.mubr.msk.f32.mxu0 %vm5269_vm0, %v5270_v4  ;;  %4670 = vmatpush3.bf16.msra.mxu0 %v4669_v31  ;;  %v5870_v16 = vpop.permute.xlu0 %470 }
  0x89   :  { %4671 = vmatprep.subr.bf16.mxu0 %v5268_v0 }
  0x8c   :  { %4673 = vmatpush3.bf16.msra.mxu0 %v4672_v34  ;;  %v5898_v34 = vpop.permute.xlu1 %480  ;;  %v5914_v49 = vpop.permute.xlu0 %485 }
  0x8d   :  { %4674 = vmatprep.subr.bf16.mxu0 %v5268_v0 }
  0x90   :  { %4676 = vmatpush3.bf16.msra.mxu0 %v4675_v38  ;;  %v4774_v38 = vpack.c.bf16 %v3083_v7, %v3082_v30  ;;  %v5946_v12 = vpop.permute.xlu0 %495 }
  0x91   :  { %4677 = vmatprep.subr.bf16.mxu0 %v5268_v0 }
  0x94   :  { %4679 = vmatpush3.bf16.msra.mxu0 %v4678_v41  ;;  %v3084_v41 = vld [vmem:[%s7195_s7 + $0x2c0] sm:$0xff]  ;;  %v5972_v7 = vpop.permute.xlu0 %505 }
  0x95   :  { %4680 = vmatprep.subr.bf16.mxu0 %v5268_v0  ;;  %v4777_v52 = vpack.c.bf16 %v3085_v43, %v3084_v41 }
  0x98   :  { %4682 = vmatpush3.bf16.msra.mxu0 %v4681_v45 }
  0x99   :  { %4683 = vmatprep.subr.bf16.mxu0 %v5268_v0 }
  0x9c   :  { %4685 = vmatpush3.bf16.msra.mxu0 %v4684_v50 }
  0x9d   :  { %4686 = vmatprep.subr.bf16.mxu0 %v5268_v0 }
  0xa0   :  { %4688 = vmatpush3.bf16.msra.mxu0 %v4687_v55 }
  0xa1   :  { %4689 = vmatprep.subr.bf16.mxu0 %v5268_v0 }
  0xa4   :  { %4691 = vmatpush3.bf16.msra.mxu0 %v4690_v58  ;;  %v3087_v58 = vld [vmem:[%s7195_s7 + $0x2d8] sm:$0xff] }
  0xa5   :  { %4692 = vmatprep.subr.bf16.mxu0 %v5268_v0 }
  0xf6   :  { %v250_v62 = vpop.f32.mrb[0].mxu0 }
  0xf7   :  { %v381_v2 = vmul.f32 %v5843_v59, %v250_v62  ;;  %v3584_v3 = vpop.f32.mrb[1].mxu0 }
  0xf9   :  { %v413_v5 = vadd.f32 %v5848_v63, %v381_v2 }
  0xfa   :  { %v255_v35 = vpop.f32.mrb[2].mxu0 }
  0xfb   :  { %v438_v9 = vmax.f32 %v413_v5, 0.0  ;;  %v382_v42 = vmul.f32 %v5843_v59, %v255_v35  ;;  %v3587_v47 = vpop.f32.mrb[3].mxu0  ;;  %v5930_v5 = vpop.permute.xlu1 %490  ;;  %v4780_v35 = vpack.c.bf16 %v3087_v58, %v3086_v57 }
  0xfc   :  { %v3088_v47 = vld [vmem:[%s7195_s7 + $0x2e0] sm:$0xff] }
  0xfd   :  { %v588_v48 = vmul.f32 %v5858_v28, %v438_v9  ;;  %v414_v53 = vadd.f32 %v5848_v63, %v382_v42 }
  0xfe   :  { %v260_v13 = vpop.f32.mrb[4].mxu0 }
  0xff   :  { %642 = vst [vmem:[#allocation2 + $0x10] sm:$0xff] %v588_v48  ;;  %v439_v54 = vmax.f32 %v414_v53, 0.0  ;;  %v383_v14 = vmul.f32 %v5843_v59, %v260_v13  ;;  %v3590_v15 = vpop.f32.mrb[5].mxu0  ;;  %4118 = vmatmul.mubr.f32.vlgmr.msra.gmra.mrb[0].mxu1 %v588_v48 }
 0x100   :  { %4766 = vmatpush3.bf16.msra.mxu1 %v4765_v10  ;;  %4120 = vmatprep.mubr.msk.f32.mxu1 %vm5269_vm0, %v5270_v4  ;;  %v3089_v10 = vld [vmem:[%s7195_s7 + $0x2e8] sm:$0xff] }
 0x101   :  { %v589_v17 = vmul.f32 %v5870_v16, %v439_v54  ;;  %v415_v18 = vadd.f32 %v5848_v63, %v383_v14  ;;  %4767 = vmatprep.subr.bf16.mxu1 %v5268_v0  ;;  %v4783_v14 = vpack.c.bf16 %v3089_v10, %v3088_v47 }
 0x102   :  { %v265_v20 = vpop.f32.mrb[6].mxu0 }
 0x103   :  { %643 = vst [vmem:[#allocation2 + $0x18] sm:$0xff] %v589_v17  ;;  %v440_v22 = vmax.f32 %v415_v18, 0.0  ;;  %v384_v23 = vmul.f32 %v5843_v59, %v265_v20  ;;  %v3593_v24 = vpop.f32.mrb[7].mxu0  ;;  %4121 = vmatmul.mubr.f32.gmra.mrb[2].mxu1 %v589_v17  ;;  %v3090_v17 = vld [vmem:[%s7195_s7 + $0x2f0] sm:$0xff]  ;;  %v3091_v18 = vld [vmem:[%s7195_s7 + $0x2f8] sm:$0xff] }
 0x104   :  { %4123 = vmatprep.mubr.msk.f32.mxu1 %vm5269_vm0, %v5270_v4  ;;  %4769 = vmatpush3.bf16.msra.mxu1 %v4768_v60 }
 0x105   :  { %v590_v25 = vmul.f32 %v5877_v19, %v440_v22  ;;  %v416_v26 = vadd.f32 %v5848_v63, %v384_v23  ;;  %4770 = vmatprep.subr.bf16.mxu1 %v5268_v0  ;;  %v5962_v22 = vpop.permute.xlu1 %500 }
 0x106   :  { %v270_v1 = vpop.f32.mrb[8].mxu0  ;;  %v709_v29 = vld [vmem:[#allocation2 + $0xe] sm:$0xff] }
 0x107   :  { %644 = vst [vmem:[#allocation2 + $0x20] sm:$0xff] %v590_v25  ;;  %v441_v31 = vmax.f32 %v416_v26, 0.0  ;;  %v385_v32 = vmul.f32 %v5843_v59, %v270_v1  ;;  %v3596_v33 = vpop.f32.mrb[9].mxu0  ;;  %3693 = vmatmul.mubr.f32.gmra.mrb[52].mxu0 %v709_v29  ;;  %4124 = vmatmul.mubr.f32.gmra.mrb[4].mxu1 %v590_v25  ;;  %v4786_v25 = vpack.c.bf16 %v3091_v18, %v3090_v17 }
 0x108   :  { %3695 = vmatprep.mubr.msk.f32.mxu0 %vm5269_vm0, %v5270_v4  ;;  %4126 = vmatprep.mubr.msk.f32.mxu1 %vm5269_vm0, %v5270_v4 }
 0x109   :  { %v591_v36 = vmul.f32 %v5898_v34, %v441_v31  ;;  %v417_v37 = vadd.f32 %v5848_v63, %v385_v32  ;;  %4772 = vmatpush3.bf16.msra.mxu1 %v4771_v27 }
 0x10a   :  { %v275_v39 = vpop.f32.mrb[10].mxu0  ;;  %v710_v40 = vld [vmem:[#allocation2 + $0x16] sm:$0xff]  ;;  %4773 = vmatprep.subr.bf16.mxu1 %v5268_v0 }
 0x10b   :  { %645 = vst [vmem:[#allocation2 + $0x28] sm:$0xff] %v591_v36  ;;  %v442_v44 = vmax.f32 %v417_v37, 0.0  ;;  %v386_v45 = vmul.f32 %v5843_v59, %v275_v39  ;;  %v3599_v46 = vpop.f32.mrb[11].mxu0  ;;  %3696 = vmatmul.mubr.f32.gmra.mrb[54].mxu0 %v710_v40  ;;  %4127 = vmatmul.mubr.f32.gmra.mrb[6].mxu1 %v591_v36  ;;  %v5984_v40 = vpop.permute.xlu1 %510 }
 0x10c   :  { %3698 = vmatprep.mubr.msk.f32.mxu0 %vm5269_vm0, %v5270_v4  ;;  %4129 = vmatprep.mubr.msk.f32.mxu1 %vm5269_vm0, %v5270_v4 }
 0x10d   :  { %v592_v50 = vmul.f32 %v5914_v49, %v442_v44  ;;  %v418_v51 = vadd.f32 %v5848_v63, %v386_v45  ;;  %4775 = vmatpush3.bf16.msra.mxu1 %v4774_v38 }
 0x10e   :  { %v280_v55 = vpop.f32.mrb[12].mxu0  ;;  %v711_v56 = vld [vmem:[#allocation2 + $0x1e] sm:$0xff]  ;;  %4776 = vmatprep.subr.bf16.mxu1 %v5268_v0 }
 0x10f   :  { %646 = vst [vmem:[#allocation2 + $0x30] sm:$0xff] %v592_v50  ;;  %v443_v62 = vmax.f32 %v418_v51, 0.0  ;;  %v387_v2 = vmul.f32 %v5843_v59, %v280_v55  ;;  %v3602_v3 = vpop.f32.mrb[13].mxu0  ;;  %3699 = vmatmul.mubr.f32.gmra.mrb[56].mxu0 %v711_v56  ;;  %4130 = vmatmul.mubr.f32.gmra.mrb[8].mxu1 %v592_v50 }
 0x110   :  { %3701 = vmatprep.mubr.msk.f32.mxu0 %vm5269_vm0, %v5270_v4  ;;  %4132 = vmatprep.mubr.msk.f32.mxu1 %vm5269_vm0, %v5270_v4 }
 0x111   :  { %v593_v6 = vmul.f32 %v5930_v5, %v443_v62  ;;  %v419_v8 = vadd.f32 %v5848_v63, %v387_v2  ;;  %4778 = vmatpush3.bf16.msra.mxu1 %v4777_v52  ;;  %v5993_v52 = vpop.permute.xlu0 %515 }
 0x112   :  { %v285_v9 = vpop.f32.mrb[14].mxu0  ;;  %v712_v42 = vld [vmem:[#allocation2 + $0x26] sm:$0xff]  ;;  %4779 = vmatprep.subr.bf16.mxu1 %v5268_v0 }
 0x113   :  { %647 = vst [vmem:[#allocation2 + $0x38] sm:$0xff] %v593_v6  ;;  %v444_v48 = vmax.f32 %v419_v8, 0.0  ;;  %v388_v53 = vmul.f32 %v5843_v59, %v285_v9  ;;  %v3605_v11 = vpop.f32.mrb[15].mxu0  ;;  %3702 = vmatmul.mubr.f32.gmra.mrb[58].mxu0 %v712_v42  ;;  %4133 = vmatmul.mubr.f32.gmra.mrb[10].mxu1 %v593_v6  ;;  %v6002_v6 = vpop.permute.xlu1 %520 }
 0x114   :  { %3704 = vmatprep.mubr.msk.f32.mxu0 %vm5269_vm0, %v5270_v4  ;;  %4135 = vmatprep.mubr.msk.f32.mxu1 %vm5269_vm0, %v5270_v4 }
 0x115   :  { %v594_v13 = vmul.f32 %v5946_v12, %v444_v48  ;;  %v420_v54 = vadd.f32 %v5848_v63, %v388_v53  ;;  %4781 = vmatpush3.bf16.msra.mxu1 %v4780_v35  ;;  %v6011_v53 = vpop.permute.xlu0 %525 }
 0x116   :  { %v290_v15 = vpop.f32.mrb[16].mxu0  ;;  %v713_v60 = vld [vmem:[#allocation2 + $0x2e] sm:$0xff]  ;;  %4782 = vmatprep.subr.bf16.mxu1 %v5268_v0 }
 0x117   :  { %648 = vst [vmem:[#allocation2 + $0x40] sm:$0xff] %v594_v13  ;;  %v445_v20 = vmax.f32 %v420_v54, 0.0  ;;  %v389_v61 = vmul.f32 %v5843_v59, %v290_v15  ;;  %v3608_v21 = vpop.f32.mrb[17].mxu0  ;;  %3705 = vmatmul.mubr.f32.gmra.mrb[60].mxu0 %v713_v60  ;;  %4136 = vmatmul.mubr.f32.gmra.mrb[12].mxu1 %v594_v13  ;;  %v6020_v18 = vpop.permute.xlu1 %530 }
 0x118   :  { %3707 = vmatprep.mubr.msk.f32.mxu0 %vm5269_vm0, %v5270_v4  ;;  %4138 = vmatprep.mubr.msk.f32.mxu1 %vm5269_vm0, %v5270_v4  ;;  %v5974_v4 = vld [vmem:[#allocation2] sm:$0xff] }
 0x119   :  { %v595_v23 = vmul.f32 %v5962_v22, %v445_v20  ;;  %v421_v24 = vadd.f32 %v5848_v63, %v389_v61  ;;  %4784 = vmatpush3.bf16.msra.mxu1 %v4783_v14 }
 0x11a   :  { %v295_v26 = vpop.f32.mrb[18].mxu0  ;;  %v714_v27 = vld [vmem:[#allocation2 + $0x36] sm:$0xff]  ;;  %4785 = vmatprep.subr.bf16.mxu1 %v5268_v0 }
 0x11b   :  { %649 = vst [vmem:[#allocation2 + $0x48] sm:$0xff] %v595_v23  ;;  %v446_v1 = vmax.f32 %v421_v24, 0.0  ;;  %v390_v29 = vmul.f32 %v5843_v59, %v295_v26  ;;  %v3611_v30 = vpop.f32.mrb[19].mxu0  ;;  %3708 = vmatmul.mubr.f32.gmra.mrb[62].mxu0 %v714_v27  ;;  %4139 = vmatmul.mubr.f32.gmra.mrb[14].mxu1 %v595_v23  ;;  %v6029_v27 = vpop.permute.xlu0 %535 }
 0x11c   :  { %3710 = vmatprep.mubr.msk.f32.mxu0 %vm5269_vm0, %v5974_v4  ;;  %4141 = vmatprep.mubr.msk.f32.mxu1 %vm5269_vm0, %v5974_v4 }
 0x11d   :  { %v596_v31 = vmul.f32 %v5972_v7, %v446_v1  ;;  %v422_v32 = vadd.f32 %v5848_v63, %v390_v29  ;;  %4787 = vmatpush3.bf16.msra.mxu1 %v4786_v25 }
 0x11e   :  { %v300_v33 = vpop.f32.mrb[20].mxu0  ;;  %v715_v36 = vld [vmem:[#allocation2 + $0x3e] sm:$0xff]  ;;  %4788 = vmatprep.subr.bf16.mxu1 %v5268_v0 }
 0x11f   :  { %650 = vst [vmem:[#allocation2 + $0x50] sm:$0xff] %v596_v31  ;;  %v447_v37 = vmax.f32 %v422_v32, 0.0  ;;  %v391_v38 = vmul.f32 %v5843_v59, %v300_v33  ;;  %v3614_v39 = vpop.f32.mrb[21].mxu0  ;;  %3711 = vmatmul.mubr.f32.gmra.mrb[64].mxu0 %v715_v36  ;;  %4142 = vmatmul.mubr.f32.gmra.mrb[16].mxu1 %v596_v31 }
 0x120   :  { %3713 = vmatprep.mubr.msk.f32.mxu0 %vm5269_vm0, %v5974_v4  ;;  %4144 = vmatprep.mubr.msk.f32.mxu1 %vm5269_vm0, %v5974_v4 }
 0x121   :  { %v597_v41 = vmul.f32 %v5984_v40, %v447_v37  ;;  %v423_v43 = vadd.f32 %v5848_v63, %v391_v38  ;;  %v6038_v37 = vpop.permute.xlu1 %540 }
 0x122   :  { %v305_v44 = vpop.f32.mrb[22].mxu0  ;;  %v716_v45 = vld [vmem:[#allocation2 + $0x46] sm:$0xff] }
 0x123   :  { %651 = vst [vmem:[#allocation2 + $0x58] sm:$0xff] %v597_v41  ;;  %v448_v46 = vmax.f32 %v423_v43, 0.0  ;;  %v392_v50 = vmul.f32 %v5843_v59, %v305_v44  ;;  %v3617_v51 = vpop.f32.mrb[23].mxu0  ;;  %3714 = vmatmul.mubr.f32.gmra.mrb[66].mxu0 %v716_v45  ;;  %4145 = vmatmul.mubr.f32.gmra.mrb[18].mxu1 %v597_v41 }
 0x124   :  { %3716 = vmatprep.mubr.msk.f32.mxu0 %vm5269_vm0, %v5974_v4  ;;  %4147 = vmatprep.mubr.msk.f32.mxu1 %vm5269_vm0, %v5974_v4 }
 0x125   :  { %v598_v55 = vmul.f32 %v5993_v52, %v448_v46  ;;  %v424_v56 = vadd.f32 %v5848_v63, %v392_v50  ;;  %v6047_v50 = vpop.permute.xlu0 %545 }
 0x126   :  { %v310_v57 = vpop.f32.mrb[24].mxu0  ;;  %v717_v58 = vld [vmem:[#allocation2 + $0x4e] sm:$0xff] }
 0x127   :  { %652 = vst [vmem:[#allocation2 + $0x60] sm:$0xff] %v598_v55  ;;  %v449_v62 = vmax.f32 %v424_v56, 0.0  ;;  %v393_v2 = vmul.f32 %v5843_v59, %v310_v57  ;;  %v3620_v3 = vpop.f32.mrb[25].mxu0  ;;  %3717 = vmatmul.mubr.f32.gmra.mrb[68].mxu0 %v717_v58  ;;  %4148 = vmatmul.mubr.f32.gmra.mrb[20].mxu1 %v598_v55 }
 0x128   :  { %3719 = vmatprep.mubr.msk.f32.mxu0 %vm5269_vm0, %v5974_v4  ;;  %4150 = vmatprep.mubr.msk.f32.mxu1 %vm5269_vm0, %v5974_v4  ;;  %v6056_v3 = vpop.permute.xlu1 %550 }
 0x129   :  { %v599_v8 = vmul.f32 %v6002_v6, %v449_v62  ;;  %v425_v35 = vadd.f32 %v5848_v63, %v393_v2 }
 0x12a   :  { %v315_v9 = vpop.f32.mrb[26].mxu0  ;;  %v718_v42 = vld [vmem:[#allocation2 + $0x56] sm:$0xff] }
 0x12b   :  { %653 = vst [vmem:[#allocation2 + $0x68] sm:$0xff] %v599_v8  ;;  %v450_v47 = vmax.f32 %v425_v35, 0.0  ;;  %v394_v10 = vmul.f32 %v5843_v59, %v315_v9  ;;  %v3623_v48 = vpop.f32.mrb[27].mxu0  ;;  %3720 = vmatmul.mubr.f32.gmra.mrb[70].mxu0 %v718_v42  ;;  %4151 = vmatmul.mubr.f32.gmra.mrb[22].mxu1 %v599_v8 }
 0x12c   :  { %3722 = vmatprep.mubr.msk.f32.mxu0 %vm5269_vm0, %v5974_v4  ;;  %4153 = vmatprep.mubr.msk.f32.mxu1 %vm5269_vm0, %v5974_v4 }
 0x12d   :  { %v600_v11 = vmul.f32 %v6011_v53, %v450_v47  ;;  %v426_v13 = vadd.f32 %v5848_v63, %v394_v10 }
 0x12e   :  { %v320_v54 = vpop.f32.mrb[28].mxu0  ;;  %v719_v14 = vld [vmem:[#allocation2 + $0x5e] sm:$0xff] }
 0x12f   :  { %654 = vst [vmem:[#allocation2 + $0x70] sm:$0xff] %v600_v11  ;;  %v451_v15 = vmax.f32 %v426_v13, 0.0  ;;  %v395_v60 = vmul.f32 %v5843_v59, %v320_v54  ;;  %v3626_v17 = vpop.f32.mrb[29].mxu0  ;;  %3723 = vmatmul.mubr.f32.gmra.mrb[72].mxu0 %v719_v14  ;;  %4154 = vmatmul.mubr.f32.gmra.mrb[24].mxu1 %v600_v11  ;;  %v6065_v11 = vpop.permute.xlu0 %555 }
 0x130   :  { %3725 = vmatprep.mubr.msk.f32.mxu0 %vm5269_vm0, %v5974_v4  ;;  %4156 = vmatprep.mubr.msk.f32.mxu1 %vm5269_vm0, %v5974_v4 }
 0x131   :  { %v601_v20 = vmul.f32 %v6020_v18, %v451_v15  ;;  %v427_v61 = vadd.f32 %v5848_v63, %v395_v60 }
 0x132   :  { %v325_v21 = vpop.f32.mrb[30].mxu0  ;;  %v720_v23 = vld [vmem:[#allocation2 + $0x66] sm:$0xff] }
 0x133   :  { %655 = vst [vmem:[#allocation2 + $0x78] sm:$0xff] %v601_v20  ;;  %v452_v24 = vmax.f32 %v427_v61, 0.0  ;;  %v396_v25 = vmul.f32 %v5843_v59, %v325_v21  ;;  %v3629_v26 = vpop.f32.mrb[31].mxu0  ;;  %3726 = vmatmul.mubr.f32.gmra.mrb[74].mxu0 %v720_v23  ;;  %4157 = vmatmul.mubr.f32.gmra.mrb[26].mxu1 %v601_v20  ;;  %v6074_v61 = vpop.permute.xlu1 %560 }
 0x134   :  { %3728 = vmatprep.mubr.msk.f32.mxu0 %vm5269_vm0, %v5974_v4  ;;  %4159 = vmatprep.mubr.msk.f32.mxu1 %vm5269_vm0, %v5974_v4 }
 0x135   :  { %v602_v1 = vmul.f32 %v6029_v27, %v452_v24  ;;  %v428_v29 = vadd.f32 %v5848_v63, %v396_v25 }
 0x136   :  { %v330_v30 = vpop.f32.mrb[32].mxu0  ;;  %v721_v31 = vld [vmem:[#allocation2 + $0x6e] sm:$0xff] }
 0x137   :  { %656 = vst [vmem:[#allocation2 + $0x80] sm:$0xff] %v602_v1  ;;  %v453_v32 = vmax.f32 %v428_v29, 0.0  ;;  %v397_v33 = vmul.f32 %v5843_v59, %v330_v30  ;;  %v3632_v36 = vpop.f32.mrb[33].mxu0  ;;  %3729 = vmatmul.mubr.f32.gmra.mrb[76].mxu0 %v721_v31  ;;  %4160 = vmatmul.mubr.f32.gmra.mrb[28].mxu1 %v602_v1  ;;  %v6083_v30 = vpop.permute.xlu0 %565 }
 0x138   :  { %3731 = vmatprep.mubr.msk.f32.mxu0 %vm5269_vm0, %v5974_v4  ;;  %4162 = vmatprep.mubr.msk.f32.mxu1 %vm5269_vm0, %v5974_v4 }
 0x139   :  { %v603_v38 = vmul.f32 %v6038_v37, %v453_v32  ;;  %v429_v39 = vadd.f32 %v5848_v63, %v397_v33 }
 0x13a   :  { %v335_v41 = vpop.f32.mrb[34].mxu0  ;;  %v722_v43 = vld [vmem:[#allocation2 + $0x76] sm:$0xff] }
 0x13b   :  { %657 = vst [vmem:[#allocation2 + $0x88] sm:$0xff] %v603_v38  ;;  %v454_v44 = vmax.f32 %v429_v39, 0.0  ;;  %v398_v45 = vmul.f32 %v5843_v59, %v335_v41  ;;  %v3635_v46 = vpop.f32.mrb[35].mxu0  ;;  %3732 = vmatmul.mubr.f32.gmra.mrb[78].mxu0 %v722_v43  ;;  %4163 = vmatmul.mubr.f32.gmra.mrb[30].mxu1 %v603_v38  ;;  %v6092_v43 = vpop.permute.xlu1 %570 }
 0x13c   :  { %3734 = vmatprep.mubr.msk.f32.mxu0 %vm5269_vm0, %v5974_v4  ;;  %4165 = vmatprep.mubr.msk.f32.mxu1 %vm5269_vm0, %v5974_v4 }
 0x13d   :  { %v604_v51 = vmul.f32 %v6047_v50, %v454_v44  ;;  %v430_v55 = vadd.f32 %v5848_v63, %v398_v45 }
 0x13e   :  { %v340_v56 = vpop.f32.mrb[36].mxu0  ;;  %v723_v57 = vld [vmem:[#allocation2 + $0x7e] sm:$0xff] }
 0x13f   :  { %658 = vst [vmem:[#allocation2 + $0x90] sm:$0xff] %v604_v51  ;;  %v455_v58 = vmax.f32 %v430_v55, 0.0  ;;  %v399_v62 = vmul.f32 %v5843_v59, %v340_v56  ;;  %v3638_v2 = vpop.f32.mrb[37].mxu0  ;;  %3735 = vmatmul.mubr.f32.gmra.mrb[80].mxu0 %v723_v57  ;;  %4166 = vmatmul.mubr.f32.gmra.mrb[32].mxu1 %v604_v51 }
 0x140   :  { %3737 = vmatprep.mubr.msk.f32.mxu0 %vm5269_vm0, %v5974_v4  ;;  %4168 = vmatprep.mubr.msk.f32.mxu1 %vm5269_vm0, %v5974_v4 }
 0x141   :  { %v605_v8 = vmul.f32 %v6056_v3, %v455_v58  ;;  %v431_v35 = vadd.f32 %v5848_v63, %v399_v62  ;;  %v6101_v58 = vpop.permute.xlu0 %575 }
 0x142   :  { %v345_v9 = vpop.f32.mrb[38].mxu0  ;;  %v724_v42 = vld [vmem:[#allocation2 + $0x86] sm:$0xff] }
 0x143   :  { %659 = vst [vmem:[#allocation2 + $0x98] sm:$0xff] %v605_v8  ;;  %v456_v47 = vmax.f32 %v431_v35, 0.0  ;;  %v400_v10 = vmul.f32 %v5843_v59, %v345_v9  ;;  %v3641_v48 = vpop.f32.mrb[39].mxu0  ;;  %3738 = vmatmul.mubr.f32.gmra.mrb[82].mxu0 %v724_v42  ;;  %4169 = vmatmul.mubr.f32.gmra.mrb[34].mxu1 %v605_v8 }
 0x144   :  { %3740 = vmatprep.mubr.msk.f32.mxu0 %vm5269_vm0, %v5974_v4  ;;  %4171 = vmatprep.mubr.msk.f32.mxu1 %vm5269_vm0, %v5974_v4 }
 0x145   :  { %v606_v13 = vmul.f32 %v6065_v11, %v456_v47  ;;  %v432_v54 = vadd.f32 %v5848_v63, %v400_v10  ;;  %v6110_v10 = vpop.permute.xlu1 %580 }
 0x146   :  { %v350_v14 = vpop.f32.mrb[40].mxu0  ;;  %v725_v15 = vld [vmem:[#allocation2 + $0x8e] sm:$0xff] }
 0x147   :  { %660 = vst [vmem:[#allocation2 + $0xa0] sm:$0xff] %v606_v13  ;;  %v457_v60 = vmax.f32 %v432_v54, 0.0  ;;  %v401_v17 = vmul.f32 %v5843_v59, %v350_v14  ;;  %v3644_v20 = vpop.f32.mrb[41].mxu0  ;;  %3741 = vmatmul.mubr.f32.gmra.mrb[84].mxu0 %v725_v15  ;;  %4172 = vmatmul.mubr.f32.gmra.mrb[36].mxu1 %v606_v13 }
 0x148   :  { %3743 = vmatprep.mubr.msk.f32.mxu0 %vm5269_vm0, %v5974_v4  ;;  %4174 = vmatprep.mubr.msk.f32.mxu1 %vm5269_vm0, %v5974_v4 }
 0x149   :  { %v607_v21 = vmul.f32 %v6074_v61, %v457_v60  ;;  %v433_v23 = vadd.f32 %v5848_v63, %v401_v17  ;;  %v3092_v60 = vld [vmem:[%s7195_s7 + $0x300] sm:$0xff] }
 0x14a   :  { %v355_v24 = vpop.f32.mrb[42].mxu0  ;;  %v726_v25 = vld [vmem:[#allocation2 + $0x96] sm:$0xff] }
 0x14b   :  { %661 = vst [vmem:[#allocation2 + $0xa8] sm:$0xff] %v607_v21  ;;  %v458_v26 = vmax.f32 %v433_v23, 0.0  ;;  %v402_v1 = vmul.f32 %v5843_v59, %v355_v24  ;;  %v3647_v29 = vpop.f32.mrb[43].mxu0  ;;  %3744 = vmatmul.mubr.f32.gmra.mrb[86].mxu0 %v726_v25  ;;  %4175 = vmatmul.mubr.f32.gmra.mrb[38].mxu1 %v607_v21  ;;  %v1901_v21 = vld [vmem:[#allocation2 + $0x11] sm:$0xff] }
 0x14c   :  { %3746 = vmatprep.mubr.msk.f32.mxu0 %vm5269_vm0, %v5974_v4  ;;  %4177 = vmatprep.mubr.msk.f32.mxu1 %vm5269_vm0, %v5974_v4  ;;  %v3094_v23 = vld [vmem:[%s7195_s7 + $0x310] sm:$0xff]  ;;  %v3095_v24 = vld [vmem:[%s7195_s7 + $0x318] sm:$0xff]  ;;  %v667_v29 = vld [vmem:[#allocation2 + $0x5] sm:$0xff] }
 0x14d   :  { %v608_v31 = vmul.f32 %v6083_v30, %v458_v26  ;;  %v434_v32 = vadd.f32 %v5848_v63, %v402_v1  ;;  %v3028_v26 = vld [vmem:[%s7195_s7 + $0x100] sm:$0xff]  ;;  %v3029_v1 = vld [vmem:[%s7195_s7 + $0x108] sm:$0xff] }
 0x14e   :  { %v360_v33 = vpop.f32.mrb[44].mxu0  ;;  %v727_v36 = vld [vmem:[#allocation2 + $0x9e] sm:$0xff] }
 0x14f   :  { %662 = vst [vmem:[#allocation2 + $0xb0] sm:$0xff] %v608_v31  ;;  %v459_v38 = vmax.f32 %v434_v32, 0.0  ;;  %v403_v39 = vmul.f32 %v5843_v59, %v360_v33  ;;  %v3650_v41 = vpop.f32.mrb[45].mxu0  ;;  %3747 = vmatmul.mubr.f32.gmra.mrb[88].mxu0 %v727_v36  ;;  %4178 = vmatmul.mubr.f32.gmra.mrb[40].mxu1 %v608_v31  ;;  %v4792_v31 = vpack.c.bf16 %v3095_v24, %v3094_v23  ;;  %v3096_v32 = vld [vmem:[%s7195_s7 + $0x320] sm:$0xff]  ;;  %v3097_v33 = vld [vmem:[%s7195_s7 + $0x328] sm:$0xff] }
 0x150   :  { %3749 = vmatprep.mubr.msk.f32.mxu0 %vm5269_vm0, %v5974_v4  ;;  %4180 = vmatprep.mubr.msk.f32.mxu1 %vm5269_vm0, %v5974_v4  ;;  %v4693_v36 = vpack.c.bf16 %v3029_v1, %v3028_v26  ;;  %v3031_v41 = vld [vmem:[%s7195_s7 + $0x118] sm:$0xff]  ;;  %v671_v23 = vld [vmem:[#allocation2 + $0x25] sm:$0xff] }
 0x151   :  { %v609_v44 = vmul.f32 %v6092_v43, %v459_v38  ;;  %v435_v45 = vadd.f32 %v5848_v63, %v403_v39  ;;  %v6158_v38 = vld [vmem:[#allocation2 + $0x19] sm:$0xff]  ;;  %v3030_v39 = vld [vmem:[%s7195_s7 + $0x110] sm:$0xff] }
 0x152   :  { %v365_v46 = vpop.f32.mrb[46].mxu0  ;;  %v728_v51 = vld [vmem:[#allocation2 + $0xa6] sm:$0xff]  ;;  %v6234_v24 = vld [vmem:[#allocation2 + $0x39] sm:$0xff] }
 0x153   :  { %663 = vst [vmem:[#allocation2 + $0xb8] sm:$0xff] %v609_v44  ;;  %v460_v55 = vmax.f32 %v435_v45, 0.0  ;;  %v404_v56 = vmul.f32 %v5843_v59, %v365_v46  ;;  %v3653_v57 = vpop.f32.mrb[47].mxu0  ;;  %3750 = vmatmul.mubr.f32.gmra.mrb[90].mxu0 %v728_v51  ;;  %4181 = vmatmul.mubr.f32.gmra.mrb[42].mxu1 %v609_v44  ;;  %v668_v44 = vld [vmem:[#allocation2 + $0xd] sm:$0xff]  ;;  %v4795_v45 = vpack.c.bf16 %v3097_v33, %v3096_v32  ;;  %v3099_v51 = vld [vmem:[%s7195_s7 + $0x338] sm:$0xff]  ;;  %v3104_v26 = vld [vmem:[%s7195_s7 + $0x360] sm:$0xff] }
 0x154   :  { %3752 = vmatprep.mubr.msk.f32.mxu0 %vm5269_vm0, %v5974_v4  ;;  %4183 = vmatprep.mubr.msk.f32.mxu1 %vm5269_vm0, %v5974_v4  ;;  %v3098_v46 = vld [vmem:[%s7195_s7 + $0x330] sm:$0xff]  ;;  %v3032_v57 = vld [vmem:[%s7195_s7 + $0x120] sm:$0xff]  ;;  %v3039_v32 = vld [vmem:[%s7195_s7 + $0x158] sm:$0xff] }
 0x155   :  { %v610_v62 = vmul.f32 %v6101_v58, %v460_v55  ;;  %v436_v2 = vadd.f32 %v5848_v63, %v404_v56  ;;  %v4696_v55 = vpack.c.bf16 %v3031_v41, %v3030_v39  ;;  %v6177_v56 = vld [vmem:[#allocation2 + $0x21] sm:$0xff]  ;;  %v672_v33 = vld [vmem:[#allocation2 + $0x2d] sm:$0xff] }
 0x156   :  { %v370_v8 = vpop.f32.mrb[48].mxu0  ;;  %v729_v35 = vld [vmem:[#allocation2 + $0xae] sm:$0xff] }
 0x157   :  { %664 = vst [vmem:[#allocation2 + $0xc0] sm:$0xff] %v610_v62  ;;  %v461_v9 = vmax.f32 %v436_v2, 0.0  ;;  %v405_v42 = vmul.f32 %v5843_v59, %v370_v8  ;;  %v3656_v47 = vpop.f32.mrb[49].mxu0  ;;  %3753 = vmatmul.mubr.f32.gmra.mrb[92].mxu0 %v729_v35  ;;  %4184 = vmatmul.mubr.f32.gmra.mrb[44].mxu1 %v610_v62  ;;  %v6118_v59 = vpop.permute.xlu0 %585  ;;  %v3033_v62 = vld [vmem:[%s7195_s7 + $0x128] sm:$0xff]  ;;  %v669_v2 = vld [vmem:[#allocation2 + $0x15] sm:$0xff]  ;;  %v4798_v35 = vpack.c.bf16 %v3099_v51, %v3098_v46  ;;  %v3040_v46 = vld [vmem:[%s7195_s7 + $0x160] sm:$0xff] }
 0x158   :  { %3755 = vmatprep.mubr.msk.f32.mxu0 %vm5269_vm0, %v5974_v4  ;;  %4186 = vmatprep.mubr.msk.f32.mxu1 %vm5269_vm0, %v5974_v4  ;;  %v6192_v8 = vld [vmem:[#allocation2 + $0x29] sm:$0xff] }
 0x159   :  { %v611_v48 = vmul.f32 %v6110_v10, %v461_v9  ;;  %v437_v13 = vadd.f32 %v5848_v63, %v405_v42  ;;  %v3093_v63 = vld [vmem:[%s7195_s7 + $0x308] sm:$0xff]  ;;  %v3100_v9 = vld [vmem:[%s7195_s7 + $0x340] sm:$0xff]  ;;  %v4699_v42 = vpack.c.bf16 %v3033_v62, %v3032_v57 }
 0x15a   :  { %v730_v54 = vld [vmem:[#allocation2 + $0xb6] sm:$0xff]  ;;  %v4789_v20 = vpack.c.bf16 %v3093_v63, %v3092_v60  ;;  %v3101_v47 = vld [vmem:[%s7195_s7 + $0x348] sm:$0xff] }
 0x15b   :  { %665 = vst [vmem:[#allocation2 + $0xc8] sm:$0xff] %v611_v48  ;;  %v462_v14 = vmax.f32 %v437_v13, 0.0  ;;  %3756 = vmatmul.mubr.f32.gmra.mrb[94].mxu0 %v730_v54  ;;  %4187 = vmatmul.mubr.f32.gmra.mrb[46].mxu1 %v611_v48  ;;  %v3034_v48 = vld [vmem:[%s7195_s7 + $0x130] sm:$0xff]  ;;  %v3035_v13 = vld [vmem:[%s7195_s7 + $0x138] sm:$0xff]  ;;  %v3041_v51 = vld [vmem:[%s7195_s7 + $0x168] sm:$0xff] }
 0x15c   :  { %3758 = vmatprep.mubr.msk.f32.mxu0 %vm5269_vm0, %v5974_v4  ;;  %4189 = vmatprep.mubr.msk.f32.mxu1 %vm5269_vm0, %v5974_v4  ;;  %v670_v54 = vld [vmem:[#allocation2 + $0x1d] sm:$0xff]  ;;  %v3102_v60 = vld [vmem:[%s7195_s7 + $0x350] sm:$0xff]  ;;  %v4702_v63 = vpack.c.bf16 %v3035_v13, %v3034_v48  ;;  %v4711_v62 = vpack.c.bf16 %v3041_v51, %v3040_v46  ;;  %v675_v13 = vld [vmem:[#allocation2 + $0x45] sm:$0xff] }
 0x15d   :  { %v612_v15 = vmul.f32 %v6118_v59, %v462_v14  ;;  %v6213_v14 = vld [vmem:[#allocation2 + $0x31] sm:$0xff]  ;;  %v6371_v51 = vld [vmem:[#allocation2 + $0xa9] sm:$0xff] }
 0x15e   :  { %v731_v17 = vld [vmem:[#allocation2 + $0xbe] sm:$0xff]  ;;  %v6291_v48 = vld [vmem:[#allocation2 + $0x51] sm:$0xff] }
 0x15f   :  { %666 = vst [vmem:[#allocation2 + $0xd0] sm:$0xff] %v612_v15  ;;  %3759 = vmatmul.mubr.f32.gmra.mrb[96].mxu0 %v731_v17  ;;  %4190 = vmatmul.mubr.f32.gmra.mrb[48].mxu1 %v612_v15  ;;  %v4801_v15 = vpack.c.bf16 %v3101_v47, %v3100_v9  ;;  %v3103_v17 = vld [vmem:[%s7195_s7 + $0x358] sm:$0xff] }
 0x160   :  { %3761 = vmatprep.mubr.msk.f32.mxu0 %vm5269_vm0, %v5974_v4  ;;  %4224 = vmatprep.mubr.msk.f32.mxu1 %vm5269_vm0, %v5974_v4  ;;  %v3043_v9 = vld [vmem:[%s7195_s7 + $0x178] sm:$0xff] }
 0x161   :  { %v674_v47 = vld [vmem:[#allocation2 + $0x3d] sm:$0xff]  ;;  %v685_v46 = vld [vmem:[#allocation2 + $0x95] sm:$0xff] }
 0x162   :  { %v732_v25 = vld [vmem:[#allocation2 + $0xc6] sm:$0xff] }
 0x163   :  { %3762 = vmatmul.mubr.f32.gmra.mrb[98].mxu0 %v732_v25  ;;  %4225 = vmatmul.mubr.f32.vlgmr.msra.gmra.mrb[0].mxu1 %v1901_v21  ;;  %v3037_v21 = vld [vmem:[%s7195_s7 + $0x148] sm:$0xff]  ;;  %v4804_v25 = vpack.c.bf16 %v3103_v17, %v3102_v60 }
 0x164   :  { %3796 = vmatprep.mubr.msk.f32.mxu0 %vm5269_vm0, %v5974_v4  ;;  %4790 = vmatpush3.bf16.msra.mxu1 %v4789_v20  ;;  %v3036_v20 = vld [vmem:[%s7195_s7 + $0x140] sm:$0xff]  ;;  %v6315_v17 = vld [vmem:[#allocation2 + $0x69] sm:$0xff] }
 0x165   :  { %4227 = vmatprep.mubr.msk.f32.mxu1 %vm5269_vm0, %v5974_v4  ;;  %4791 = vmatprep.subr.bf16.mxu1 %v5268_v0  ;;  %v4705_v1 = vpack.c.bf16 %v3037_v21, %v3036_v20  ;;  %v6308_v60 = vld [vmem:[#allocation2 + $0x61] sm:$0xff]  ;;  %v6322_v21 = vld [vmem:[#allocation2 + $0x71] sm:$0xff] }
 0x166   :  { %v678_v20 = vld [vmem:[#allocation2 + $0x5d] sm:$0xff] }
 0x167   :  { %3797 = vmatmul.mubr.f32.vlgmr.msra.gmra.mrb[50].mxu0 %v667_v29  ;;  %4228 = vmatmul.mubr.f32.gmra.mrb[2].mxu1 %v6158_v38  ;;  %v3105_v29 = vld [vmem:[%s7195_s7 + $0x368] sm:$0xff] }
 0x168   :  { %3799 = vmatprep.mubr.msk.f32.mxu0 %vm5269_vm0, %v5974_v4  ;;  %4230 = vmatprep.mubr.msk.f32.mxu1 %vm5269_vm0, %v5974_v4  ;;  %v4807_v39 = vpack.c.bf16 %v3105_v29, %v3104_v26  ;;  %v680_v26 = vld [vmem:[#allocation2 + $0x6d] sm:$0xff]  ;;  %v681_v29 = vld [vmem:[#allocation2 + $0x75] sm:$0xff] }
 0x169   :  { %4793 = vmatpush3.bf16.msra.mxu1 %v4792_v31  ;;  %4694 = vmatpush3.bf16.msra.mxu0 %v4693_v36  ;;  %v3038_v31 = vld [vmem:[%s7195_s7 + $0x150] sm:$0xff]  ;;  %v6255_v36 = vld [vmem:[#allocation2 + $0x41] sm:$0xff] }
 0x16a   :  { %4794 = vmatprep.subr.bf16.mxu1 %v5268_v0  ;;  %4695 = vmatprep.subr.bf16.mxu0 %v5268_v0  ;;  %v4708_v41 = vpack.c.bf16 %v3039_v32, %v3038_v31  ;;  %v6343_v31 = vld [vmem:[#allocation2 + $0x89] sm:$0xff]  ;;  %v682_v32 = vld [vmem:[#allocation2 + $0x7d] sm:$0xff] }
 0x16b   :  { %3800 = vmatmul.mubr.f32.gmra.mrb[52].mxu0 %v668_v44  ;;  %4231 = vmatmul.mubr.f32.gmra.mrb[4].mxu1 %v6177_v56  ;;  %v3106_v44 = vld [vmem:[%s7195_s7 + $0x370] sm:$0xff] }
 0x16c   :  { %3802 = vmatprep.mubr.msk.f32.mxu0 %vm5269_vm0, %v5974_v4  ;;  %4233 = vmatprep.mubr.msk.f32.mxu1 %vm5269_vm0, %v5974_v4 }
 0x16d   :  { %4796 = vmatpush3.bf16.msra.mxu1 %v4795_v45  ;;  %4697 = vmatpush3.bf16.msra.mxu0 %v4696_v55  ;;  %v3107_v45 = vld [vmem:[%s7195_s7 + $0x378] sm:$0xff] }
 0x16e   :  { %4797 = vmatprep.subr.bf16.mxu1 %v5268_v0  ;;  %4698 = vmatprep.subr.bf16.mxu0 %v5268_v0  ;;  %v673_v55 = vld [vmem:[#allocation2 + $0x35] sm:$0xff]  ;;  %v4810_v57 = vpack.c.bf16 %v3107_v45, %v3106_v44  ;;  %v684_v44 = vld [vmem:[#allocation2 + $0x8d] sm:$0xff]  ;;  %v6364_v45 = vld [vmem:[#allocation2 + $0xa1] sm:$0xff] }
 0x16f   :  { %3803 = vmatmul.mubr.f32.gmra.mrb[54].mxu0 %v669_v2  ;;  %4234 = vmatmul.mubr.f32.gmra.mrb[6].mxu1 %v6192_v8  ;;  %v6276_v2 = vld [vmem:[#allocation2 + $0x49] sm:$0xff] }
 0x170   :  { %3805 = vmatprep.mubr.msk.f32.mxu0 %vm5269_vm0, %v5974_v4  ;;  %4236 = vmatprep.mubr.msk.f32.mxu1 %vm5269_vm0, %v5974_v4 }
 0x171   :  { %4799 = vmatpush3.bf16.msra.mxu1 %v4798_v35  ;;  %4700 = vmatpush3.bf16.msra.mxu0 %v4699_v42  ;;  %v3042_v35 = vld [vmem:[%s7195_s7 + $0x170] sm:$0xff] }
 0x172   :  { %4800 = vmatprep.subr.bf16.mxu1 %v5268_v0  ;;  %4701 = vmatprep.subr.bf16.mxu0 %v5268_v0  ;;  %v4714_v42 = vpack.c.bf16 %v3043_v9, %v3042_v35  ;;  %v6385_v35 = vld [vmem:[#allocation2 + $0xb9] sm:$0xff]  ;;  %v688_v9 = vld [vmem:[#allocation2 + $0xad] sm:$0xff] }
 0x173   :  { %3806 = vmatmul.mubr.f32.gmra.mrb[56].mxu0 %v670_v54  ;;  %4237 = vmatmul.mubr.f32.gmra.mrb[8].mxu1 %v6213_v14  ;;  %v6300_v54 = vld [vmem:[#allocation2 + $0x59] sm:$0xff] }
 0x174   :  { %3808 = vmatprep.mubr.msk.f32.mxu0 %vm5269_vm0, %v5974_v4  ;;  %4239 = vmatprep.mubr.msk.f32.mxu1 %vm5269_vm0, %v5974_v4 }
 0x175   :  { %4802 = vmatpush3.bf16.msra.mxu1 %v4801_v15  ;;  %4703 = vmatpush3.bf16.msra.mxu0 %v4702_v63  ;;  %v676_v15 = vld [vmem:[#allocation2 + $0x4d] sm:$0xff]  ;;  %v677_v63 = vld [vmem:[#allocation2 + $0x55] sm:$0xff] }
 0x176   :  { %4803 = vmatprep.subr.bf16.mxu1 %v5268_v0  ;;  %4704 = vmatprep.subr.bf16.mxu0 %v5268_v0 }
 0x177   :  { %3809 = vmatmul.mubr.f32.gmra.mrb[58].mxu0 %v671_v23  ;;  %4240 = vmatmul.mubr.f32.gmra.mrb[10].mxu1 %v6234_v24  ;;  %v679_v23 = vld [vmem:[#allocation2 + $0x65] sm:$0xff] }
 0x178   :  { %3811 = vmatprep.mubr.msk.f32.mxu0 %vm5269_vm0, %v5974_v4  ;;  %4242 = vmatprep.mubr.msk.f32.mxu1 %vm5269_vm0, %v5974_v4 }
 0x179   :  { %4805 = vmatpush3.bf16.msra.mxu1 %v4804_v25  ;;  %4706 = vmatpush3.bf16.msra.mxu0 %v4705_v1  ;;  %v6329_v25 = vld [vmem:[#allocation2 + $0x79] sm:$0xff]  ;;  %v6336_v1 = vld [vmem:[#allocation2 + $0x81] sm:$0xff] }
 0x17a   :  { %4806 = vmatprep.subr.bf16.mxu1 %v5268_v0  ;;  %4707 = vmatprep.subr.bf16.mxu0 %v5268_v0 }
 0x17b   :  { %3812 = vmatmul.mubr.f32.gmra.mrb[60].mxu0 %v672_v33  ;;  %4243 = vmatmul.mubr.f32.gmra.mrb[12].mxu1 %v6255_v36  ;;  %v6350_v33 = vld [vmem:[#allocation2 + $0x91] sm:$0xff] }
 0x17c   :  { %3814 = vmatprep.mubr.msk.f32.mxu0 %vm5269_vm0, %v5974_v4  ;;  %4245 = vmatprep.mubr.msk.f32.mxu1 %vm5269_vm0, %v5974_v4 }
 0x17d   :  { %4808 = vmatpush3.bf16.msra.mxu1 %v4807_v39  ;;  %4709 = vmatpush3.bf16.msra.mxu0 %v4708_v41  ;;  %v683_v39 = vld [vmem:[#allocation2 + $0x85] sm:$0xff]  ;;  %v6357_v41 = vld [vmem:[#allocation2 + $0x99] sm:$0xff] }
 0x17e   :  { %4809 = vmatprep.subr.bf16.mxu1 %v5268_v0  ;;  %4710 = vmatprep.subr.bf16.mxu0 %v5268_v0 }
 0x17f   :  { %3815 = vmatmul.mubr.f32.gmra.mrb[62].mxu0 %v673_v55  ;;  %4246 = vmatmul.mubr.f32.gmra.mrb[14].mxu1 %v6276_v2  ;;  %v686_v55 = vld [vmem:[#allocation2 + $0x9d] sm:$0xff] }
 0x180   :  { %3817 = vmatprep.mubr.msk.f32.mxu0 %vm5269_vm0, %v5974_v4  ;;  %4248 = vmatprep.mubr.msk.f32.mxu1 %vm5269_vm0, %v5974_v4 }
 0x181   :  { %4811 = vmatpush3.bf16.msra.mxu1 %v4810_v57  ;;  %4712 = vmatpush3.bf16.msra.mxu0 %v4711_v62  ;;  %v6378_v57 = vld [vmem:[#allocation2 + $0xb1] sm:$0xff]  ;;  %v687_v62 = vld [vmem:[#allocation2 + $0xa5] sm:$0xff] }
 0x182   :  { %4713 = vmatprep.subr.bf16.mxu0 %v5268_v0  ;;  %4812 = vmatprep.subr.bf16.mxu1 %v5268_v0 }
 0x183   :  { %3818 = vmatmul.mubr.f32.gmra.mrb[64].mxu0 %v674_v47  ;;  %4249 = vmatmul.mubr.f32.gmra.mrb[16].mxu1 %v6291_v48  ;;  %v689_v47 = vld [vmem:[#allocation2 + $0xb5] sm:$0xff] }
 0x184   :  { %3820 = vmatprep.mubr.msk.f32.mxu0 %vm5269_vm0, %v5974_v4  ;;  %4251 = vmatprep.mubr.msk.f32.mxu1 %vm5269_vm0, %v5974_v4 }
 0x185   :  { %4715 = vmatpush3.bf16.msra.mxu0 %v4714_v42  ;;  %v6392_v42 = vld [vmem:[#allocation2 + $0xc1] sm:$0xff] }
 0x186   :  { %4716 = vmatprep.subr.bf16.mxu0 %v5268_v0 }
 0x187   :  { %3821 = vmatmul.mubr.f32.gmra.mrb[66].mxu0 %v675_v13  ;;  %4252 = vmatmul.mubr.f32.gmra.mrb[18].mxu1 %v6300_v54  ;;  %v6399_v13 = vld [vmem:[#allocation2 + $0xc9] sm:$0xff] }
 0x188   :  { %3823 = vmatprep.mubr.msk.f32.mxu0 %vm5269_vm0, %v5974_v4  ;;  %4254 = vmatprep.mubr.msk.f32.mxu1 %vm5269_vm0, %v5974_v4 }
 0x18b   :  { %3824 = vmatmul.mubr.f32.gmra.mrb[68].mxu0 %v676_v15  ;;  %4255 = vmatmul.mubr.f32.gmra.mrb[20].mxu1 %v6308_v60  ;;  %v3108_v15 = vld [vmem:[%s7195_s7 + $0x380] sm:$0xff] }
 0x18c   :  { %3826 = vmatprep.mubr.msk.f32.mxu0 %vm5269_vm0, %v5974_v4  ;;  %4257 = vmatprep.mubr.msk.f32.mxu1 %vm5269_vm0, %v5974_v4 }
 0x18f   :  { %3827 = vmatmul.mubr.f32.gmra.mrb[70].mxu0 %v677_v63  ;;  %4258 = vmatmul.mubr.f32.gmra.mrb[22].mxu1 %v6315_v17  ;;  %v3109_v63 = vld [vmem:[%s7195_s7 + $0x388] sm:$0xff] }
 0x190   :  { %3829 = vmatprep.mubr.msk.f32.mxu0 %vm5269_vm0, %v5974_v4  ;;  %4260 = vmatprep.mubr.msk.f32.mxu1 %vm5269_vm0, %v5974_v4 }
 0x193   :  { %3830 = vmatmul.mubr.f32.gmra.mrb[72].mxu0 %v678_v20  ;;  %4261 = vmatmul.mubr.f32.gmra.mrb[24].mxu1 %v6322_v21  ;;  %v690_v20 = vld [vmem:[#allocation2 + $0xbd] sm:$0xff] }
 0x194   :  { %3832 = vmatprep.mubr.msk.f32.mxu0 %vm5269_vm0, %v5974_v4  ;;  %4263 = vmatprep.mubr.msk.f32.mxu1 %vm5269_vm0, %v5974_v4 }
 0x197   :  { %3833 = vmatmul.mubr.f32.gmra.mrb[74].mxu0 %v679_v23  ;;  %4264 = vmatmul.mubr.f32.gmra.mrb[26].mxu1 %v6329_v25  ;;  %v6412_v23 = vld [vmem:[#allocation2 + $0xd1] sm:$0xff] }
 0x198   :  { %3835 = vmatprep.mubr.msk.f32.mxu0 %vm5269_vm0, %v5974_v4  ;;  %4266 = vmatprep.mubr.msk.f32.mxu1 %vm5269_vm0, %v5974_v4 }
 0x19b   :  { %3836 = vmatmul.mubr.f32.gmra.mrb[76].mxu0 %v680_v26  ;;  %4267 = vmatmul.mubr.f32.gmra.mrb[28].mxu1 %v6336_v1  ;;  %v4813_v26 = vpack.c.bf16 %v3109_v63, %v3108_v15  ;;  %v3046_v15 = vld [vmem:[%s7195_s7 + $0x190] sm:$0xff]  ;;  %v3047_v63 = vld [vmem:[%s7195_s7 + $0x198] sm:$0xff] }
 0x19c   :  { %3838 = vmatprep.mubr.msk.f32.mxu0 %vm5269_vm0, %v5974_v4  ;;  %4269 = vmatprep.mubr.msk.f32.mxu1 %vm5269_vm0, %v5974_v4 }
 0x19f   :  { %3839 = vmatmul.mubr.f32.gmra.mrb[78].mxu0 %v681_v29  ;;  %4270 = vmatmul.mubr.f32.gmra.mrb[30].mxu1 %v6343_v31  ;;  %v3110_v29 = vld [vmem:[%s7195_s7 + $0x390] sm:$0xff] }
 0x1a0   :  { %3841 = vmatprep.mubr.msk.f32.mxu0 %vm5269_vm0, %v5974_v4  ;;  %4272 = vmatprep.mubr.msk.f32.mxu1 %vm5269_vm0, %v5974_v4 }
 0x1a3   :  { %3842 = vmatmul.mubr.f32.gmra.mrb[80].mxu0 %v682_v32  ;;  %4273 = vmatmul.mubr.f32.gmra.mrb[32].mxu1 %v6350_v33  ;;  %v3111_v32 = vld [vmem:[%s7195_s7 + $0x398] sm:$0xff] }
 0x1a4   :  { %3844 = vmatprep.mubr.msk.f32.mxu0 %vm5269_vm0, %v5974_v4  ;;  %4275 = vmatprep.mubr.msk.f32.mxu1 %vm5269_vm0, %v5974_v4 }
 0x1a7   :  { %3845 = vmatmul.mubr.f32.gmra.mrb[82].mxu0 %v683_v39  ;;  %4276 = vmatmul.mubr.f32.gmra.mrb[34].mxu1 %v6357_v41  ;;  %v691_v39 = vld [vmem:[#allocation2 + $0xc5] sm:$0xff] }
 0x1a8   :  { %3847 = vmatprep.mubr.msk.f32.mxu0 %vm5269_vm0, %v5974_v4  ;;  %4278 = vmatprep.mubr.msk.f32.mxu1 %vm5269_vm0, %v5974_v4 }
 0x1ab   :  { %3848 = vmatmul.mubr.f32.gmra.mrb[84].mxu0 %v684_v44  ;;  %4279 = vmatmul.mubr.f32.gmra.mrb[36].mxu1 %v6364_v45  ;;  %v3044_v44 = vld [vmem:[%s7195_s7 + $0x180] sm:$0xff] }
 0x1ac   :  { %3850 = vmatprep.mubr.msk.f32.mxu0 %vm5269_vm0, %v5974_v4  ;;  %4281 = vmatprep.mubr.msk.f32.mxu1 %vm5269_vm0, %v5974_v4 }
 0x1af   :  { %3851 = vmatmul.mubr.f32.gmra.mrb[86].mxu0 %v685_v46  ;;  %4282 = vmatmul.mubr.f32.gmra.mrb[38].mxu1 %v6371_v51  ;;  %v3045_v46 = vld [vmem:[%s7195_s7 + $0x188] sm:$0xff] }
 0x1b0   :  { %3853 = vmatprep.mubr.msk.f32.mxu0 %vm5269_vm0, %v5974_v4  ;;  %4284 = vmatprep.mubr.msk.f32.mxu1 %vm5269_vm0, %v5974_v4 }
 0x1b3   :  { %3854 = vmatmul.mubr.f32.gmra.mrb[88].mxu0 %v686_v55  ;;  %4285 = vmatmul.mubr.f32.gmra.mrb[40].mxu1 %v6378_v57  ;;  %v1130_v55 = vld [vmem:[#allocation2 + $0x7] sm:$0xff] }
 0x1b4   :  { %3856 = vmatprep.mubr.msk.f32.mxu0 %vm5269_vm0, %v5974_v4  ;;  %4287 = vmatprep.mubr.msk.f32.mxu1 %vm5269_vm0, %v5974_v4 }
 0x1b7   :  { %3857 = vmatmul.mubr.f32.gmra.mrb[90].mxu0 %v687_v62  ;;  %4288 = vmatmul.mubr.f32.gmra.mrb[42].mxu1 %v6385_v35  ;;  %v4816_v62 = vpack.c.bf16 %v3111_v32, %v3110_v29  ;;  %v3114_v29 = vld [vmem:[%s7195_s7 + $0x3b0] sm:$0xff]  ;;  %v4720_v32 = vpack.c.bf16 %v3047_v63, %v3046_v15  ;;  %v6498_v15 = vld [vmem:[#allocation2 + $0x1f] sm:$0xff] }
 0x1b8   :  { %3859 = vmatprep.mubr.msk.f32.mxu0 %vm5269_vm0, %v5974_v4  ;;  %4290 = vmatprep.mubr.msk.f32.mxu1 %vm5269_vm0, %v5974_v4 }
 0x1bb   :  { %3860 = vmatmul.mubr.f32.gmra.mrb[92].mxu0 %v688_v9  ;;  %4291 = vmatmul.mubr.f32.gmra.mrb[44].mxu1 %v6392_v42  ;;  %v3112_v9 = vld [vmem:[%s7195_s7 + $0x3a0] sm:$0xff] }
 0x1bc   :  { %3862 = vmatprep.mubr.msk.f32.mxu0 %vm5269_vm0, %v5974_v4  ;;  %4293 = vmatprep.mubr.msk.f32.mxu1 %vm5269_vm0, %v5974_v4 }
 0x1bf   :  { %3863 = vmatmul.mubr.f32.gmra.mrb[94].mxu0 %v689_v47  ;;  %4294 = vmatmul.mubr.f32.gmra.mrb[46].mxu1 %v6399_v13  ;;  %v4717_v47 = vpack.c.bf16 %v3045_v46, %v3044_v44  ;;  %v3049_v44 = vld [vmem:[%s7195_s7 + $0x1a8] sm:$0xff]  ;;  %v6476_v46 = vld [vmem:[#allocation2 + $0x17] sm:$0xff] }
 0x1c0   :  { %3865 = vmatprep.mubr.msk.f32.mxu0 %vm5269_vm0, %v5974_v4  ;;  %4296 = vmatprep.mubr.msk.f32.mxu1 %vm5269_vm0, %v5974_v4 }
 0x1c3   :  { %3866 = vmatmul.mubr.f32.gmra.mrb[96].mxu0 %v690_v20  ;;  %4297 = vmatmul.mubr.f32.gmra.mrb[48].mxu1 %v6412_v23  ;;  %v6454_v20 = vld [vmem:[#allocation2 + $0xf] sm:$0xff] }
 0x1c4   :  { %3868 = vmatprep.mubr.msk.f32.mxu0 %vm5269_vm0, %v5974_v4  ;;  %4331 = vmatprep.mubr.msk.f32.mxu1 %vm5269_vm0, %v5974_v4 }
 0x1c7   :  { %3869 = vmatmul.mubr.f32.gmra.mrb[98].mxu0 %v691_v39  ;;  %4332 = vmatmul.mubr.f32.vlgmr.msra.gmra.mrb[0].mxu1 %v6158_v38  ;;  %v3113_v38 = vld [vmem:[%s7195_s7 + $0x3a8] sm:$0xff]  ;;  %v3048_v39 = vld [vmem:[%s7195_s7 + $0x1a0] sm:$0xff] }
 0x1c8   :  { %3903 = vmatprep.mubr.msk.f32.mxu0 %vm5269_vm0, %v5974_v4  ;;  %4814 = vmatpush3.bf16.msra.mxu1 %v4813_v26  ;;  %v4819_v26 = vpack.c.bf16 %v3113_v38, %v3112_v9  ;;  %v4723_v9 = vpack.c.bf16 %v3049_v44, %v3048_v39  ;;  %v3051_v38 = vld [vmem:[%s7195_s7 + $0x1b8] sm:$0xff]  ;;  %v6522_v39 = vld [vmem:[#allocation2 + $0x27] sm:$0xff] }
 0x1c9   :  { %4334 = vmatprep.mubr.msk.f32.mxu1 %vm5269_vm0, %v5974_v4  ;;  %4815 = vmatprep.subr.bf16.mxu1 %v5268_v0 }
 0x1cb   :  { %3904 = vmatmul.mubr.f32.vlgmr.msra.gmra.mrb[50].mxu0 %v1130_v55  ;;  %4335 = vmatmul.mubr.f32.gmra.mrb[2].mxu1 %v6177_v56  ;;  %v3115_v56 = vld [vmem:[%s7195_s7 + $0x3b8] sm:$0xff] }
 0x1cc   :  { %3906 = vmatprep.mubr.msk.f32.mxu0 %vm5269_vm0, %v5974_v4  ;;  %4337 = vmatprep.mubr.msk.f32.mxu1 %vm5269_vm0, %v5974_v4  ;;  %v4822_v55 = vpack.c.bf16 %v3115_v56, %v3114_v29  ;;  %v6516_v56 = vld [vmem:[#allocation2] sm:$0xff] }
 0x1cd   :  { %4817 = vmatpush3.bf16.msra.mxu1 %v4816_v62  ;;  %4718 = vmatpush3.bf16.msra.mxu0 %v4717_v47  ;;  %v3116_v62 = vld [vmem:[%s7195_s7 + $0x3c0] sm:$0xff]  ;;  %v3050_v47 = vld [vmem:[%s7195_s7 + $0x1b0] sm:$0xff] }
 0x1ce   :  { %4818 = vmatprep.subr.bf16.mxu1 %v5268_v0  ;;  %4719 = vmatprep.subr.bf16.mxu0 %v5268_v0  ;;  %v4726_v29 = vpack.c.bf16 %v3051_v38, %v3050_v47  ;;  %v6544_v47 = vld [vmem:[#allocation2 + $0x2f] sm:$0xff] }
 0x1cf   :  { %3907 = vmatmul.mubr.f32.gmra.mrb[52].mxu0 %v6454_v20  ;;  %4338 = vmatmul.mubr.f32.gmra.mrb[4].mxu1 %v6192_v8  ;;  %v3117_v8 = vld [vmem:[%s7195_s7 + $0x3c8] sm:$0xff] }
 0x1d0   :  { %3909 = vmatprep.mubr.msk.f32.mxu0 %vm5269_vm0, %v5974_v4  ;;  %4340 = vmatprep.mubr.msk.f32.mxu1 %vm5269_vm0, %v5974_v4  ;;  %v4825_v63 = vpack.c.bf16 %v3117_v8, %v3116_v62  ;;  %v3055_v8 = vld [vmem:[%s7195_s7 + $0x1d8] sm:$0xff] }
 0x1d1   :  { %4820 = vmatpush3.bf16.msra.mxu1 %v4819_v26  ;;  %4721 = vmatpush3.bf16.msra.mxu0 %v4720_v32  ;;  %v3118_v26 = vld [vmem:[%s7195_s7 + $0x3d0] sm:$0xff]  ;;  %v3053_v32 = vld [vmem:[%s7195_s7 + $0x1c8] sm:$0xff] }
 0x1d2   :  { %4821 = vmatprep.subr.bf16.mxu1 %v5268_v0  ;;  %4722 = vmatprep.subr.bf16.mxu0 %v5268_v0 }
 0x1d3   :  { %3910 = vmatmul.mubr.f32.gmra.mrb[54].mxu0 %v6476_v46  ;;  %4341 = vmatmul.mubr.f32.gmra.mrb[6].mxu1 %v6213_v14  ;;  %v3119_v14 = vld [vmem:[%s7195_s7 + $0x3d8] sm:$0xff] }
 0x1d4   :  { %3912 = vmatprep.mubr.msk.f32.mxu0 %vm5269_vm0, %v5974_v4  ;;  %4343 = vmatprep.mubr.msk.f32.mxu1 %vm5269_vm0, %v5974_v4  ;;  %v3052_v4 = vld [vmem:[%s7195_s7 + $0x1c0] sm:$0xff]  ;;  %v4828_v44 = vpack.c.bf16 %v3119_v14, %v3118_v26  ;;  %v3122_v26 = vld [vmem:[%s7195_s7 + $0x3f0] sm:$0xff]  ;;  %v3057_v14 = vld [vmem:[%s7195_s7 + $0x1e8] sm:$0xff] }
 0x1d5   :  { %4823 = vmatpush3.bf16.msra.mxu1 %v4822_v55  ;;  %4724 = vmatpush3.bf16.msra.mxu0 %v4723_v9  ;;  %v3120_v55 = vld [vmem:[%s7195_s7 + $0x3e0] sm:$0xff]  ;;  %v4729_v62 = vpack.c.bf16 %v3053_v32, %v3052_v4  ;;  %v3054_v9 = vld [vmem:[%s7195_s7 + $0x1d0] sm:$0xff] }
 0x1d6   :  { %4824 = vmatprep.subr.bf16.mxu1 %v5268_v0  ;;  %4725 = vmatprep.subr.bf16.mxu0 %v5268_v0 }
 0x1d7   :  { %3913 = vmatmul.mubr.f32.gmra.mrb[56].mxu0 %v6498_v15  ;;  %4344 = vmatmul.mubr.f32.gmra.mrb[8].mxu1 %v6234_v24  ;;  %v3121_v24 = vld [vmem:[%s7195_s7 + $0x3e8] sm:$0xff] }
 0x1d8   :  { %3915 = vmatprep.mubr.msk.f32.mxu0 %vm5269_vm0, %v6516_v56  ;;  %4346 = vmatprep.mubr.msk.f32.mxu1 %vm5269_vm0, %v6516_v56  ;;  %v4831_v38 = vpack.c.bf16 %v3121_v24, %v3120_v55  ;;  %v3059_v55 = vld [vmem:[%s7195_s7 + $0x1f8] sm:$0xff] }
 0x1d9   :  { %4826 = vmatpush3.bf16.msra.mxu1 %v4825_v63  ;;  %4727 = vmatpush3.bf16.msra.mxu0 %v4726_v29  ;;  %v4732_v63 = vpack.c.bf16 %v3055_v8, %v3054_v9  ;;  %v3056_v29 = vld [vmem:[%s7195_s7 + $0x1e0] sm:$0xff]  ;;  %v6608_v9 = vld [vmem:[#allocation2 + $0x57] sm:$0xff]  ;;  %v3125_v8 = vld [vmem:[%s7195_s7 + $0x408] sm:$0xff] }
 0x1da   :  { %4827 = vmatprep.subr.bf16.mxu1 %v5268_v0  ;;  %4728 = vmatprep.subr.bf16.mxu0 %v5268_v0  ;;  %v4735_v32 = vpack.c.bf16 %v3057_v14, %v3056_v29  ;;  %v6582_v24 = vld [vmem:[#allocation2 + $0x3f] sm:$0xff] }
 0x1db   :  { %3916 = vmatmul.mubr.f32.gmra.mrb[58].mxu0 %v6522_v39  ;;  %4347 = vmatmul.mubr.f32.gmra.mrb[10].mxu1 %v6255_v36  ;;  %v3123_v36 = vld [vmem:[%s7195_s7 + $0x3f8] sm:$0xff] }
 0x1dc   :  { %3918 = vmatprep.mubr.msk.f32.mxu0 %vm5269_vm0, %v6516_v56  ;;  %4349 = vmatprep.mubr.msk.f32.mxu1 %vm5269_vm0, %v6516_v56  ;;  %v4834_v4 = vpack.c.bf16 %v3123_v36, %v3122_v26  ;;  %v6725_v26 = vld [vmem:[#allocation2 + $0xc7] sm:$0xff]  ;;  %v3126_v36 = vld [vmem:[%s7195_s7 + $0x410] sm:$0xff]  ;;  %v3127_v29 = vld [vmem:[%s7195_s7 + $0x418] sm:$0xff] }
 0x1dd   :  { %4829 = vmatpush3.bf16.msra.mxu1 %v4828_v44  ;;  %4730 = vmatpush3.bf16.msra.mxu0 %v4729_v62  ;;  %v6566_v44 = vld [vmem:[#allocation2 + $0x37] sm:$0xff]  ;;  %v4840_v14 = vpack.c.bf16 %v3127_v29, %v3126_v36 }
 0x1de   :  { %4830 = vmatprep.subr.bf16.mxu1 %v5268_v0  ;;  %4731 = vmatprep.subr.bf16.mxu0 %v5268_v0  ;;  %v2419_v36 = vld [vmem:[#allocation2 + $0x3a] sm:$0xff]  ;;  %v3134_v29 = vld [vmem:[%s7195_s7 + $0x450] sm:$0xff] }
 0x1df   :  { %3919 = vmatmul.mubr.f32.gmra.mrb[60].mxu0 %v6544_v47  ;;  %4350 = vmatmul.mubr.f32.gmra.mrb[12].mxu1 %v6276_v2  ;;  %v3058_v2 = vld [vmem:[%s7195_s7 + $0x1f0] sm:$0xff] }
 0x1e0   :  { %3921 = vmatprep.mubr.msk.f32.mxu0 %vm5269_vm0, %v6516_v56  ;;  %4352 = vmatprep.mubr.msk.f32.mxu1 %vm5269_vm0, %v6516_v56  ;;  %v4738_v62 = vpack.c.bf16 %v3059_v55, %v3058_v2  ;;  %v3129_v2 = vld [vmem:[%s7195_s7 + $0x428] sm:$0xff] }
 0x1e1   :  { %4832 = vmatpush3.bf16.msra.mxu1 %v4831_v38  ;;  %4733 = vmatpush3.bf16.msra.mxu0 %v4732_v63  ;;  %v6718_v38 = vld [vmem:[#allocation2 + $0xbf] sm:$0xff] }
 0x1e2   :  { %4833 = vmatprep.subr.bf16.mxu1 %v5268_v0  ;;  %4734 = vmatprep.subr.bf16.mxu0 %v5268_v0  ;;  %v2415_v63 = vld [vmem:[#allocation2 + $0x1a] sm:$0xff] }
 0x1e3   :  { %3922 = vmatmul.mubr.f32.gmra.mrb[62].mxu0 %v6566_v44  ;;  %4353 = vmatmul.mubr.f32.gmra.mrb[14].mxu1 %v6291_v48  ;;  %v6592_v48 = vld [vmem:[#allocation2 + $0x47] sm:$0xff] }
 0x1e4   :  { %3924 = vmatprep.mubr.msk.f32.mxu0 %vm5269_vm0, %v6516_v56  ;;  %4355 = vmatprep.mubr.msk.f32.mxu1 %vm5269_vm0, %v6516_v56 }
 0x1e5   :  { %4835 = vmatpush3.bf16.msra.mxu1 %v4834_v4  ;;  %4736 = vmatpush3.bf16.msra.mxu0 %v4735_v32  ;;  %v2416_v4 = vld [vmem:[#allocation2 + $0x22] sm:$0xff] }
 0x1e6   :  { %4737 = vmatprep.subr.bf16.mxu0 %v5268_v0  ;;  %4836 = vmatprep.subr.bf16.mxu1 %v5268_v0  ;;  %v3128_v32 = vld [vmem:[%s7195_s7 + $0x420] sm:$0xff] }
 0x1e7   :  { %3925 = vmatmul.mubr.f32.gmra.mrb[64].mxu0 %v6582_v24  ;;  %4356 = vmatmul.mubr.f32.gmra.mrb[16].mxu1 %v6300_v54  ;;  %v6600_v54 = vld [vmem:[#allocation2 + $0x4f] sm:$0xff]  ;;  %v4843_v55 = vpack.c.bf16 %v3129_v2, %v3128_v32  ;;  %v3136_v32 = vld [vmem:[%s7195_s7 + $0x460] sm:$0xff] }
 0x1e8   :  { %3927 = vmatprep.mubr.msk.f32.mxu0 %vm5269_vm0, %v6516_v56  ;;  %4358 = vmatprep.mubr.msk.f32.mxu1 %vm5269_vm0, %v6516_v56 }
 0x1e9   :  { %4739 = vmatpush3.bf16.msra.mxu0 %v4738_v62  ;;  %v2417_v62 = vld [vmem:[#allocation2 + $0x2a] sm:$0xff] }
 0x1eb   :  { %3928 = vmatmul.mubr.f32.gmra.mrb[66].mxu0 %v6592_v48  ;;  %4359 = vmatmul.mubr.f32.gmra.mrb[18].mxu1 %v6308_v60  ;;  %v6616_v60 = vld [vmem:[#allocation2 + $0x5f] sm:$0xff] }
 0x1ec   :  { %3930 = vmatprep.mubr.msk.f32.mxu0 %vm5269_vm0, %v6516_v56  ;;  %4361 = vmatprep.mubr.msk.f32.mxu1 %vm5269_vm0, %v6516_v56 }
 0x1ef   :  { %3931 = vmatmul.mubr.f32.gmra.mrb[68].mxu0 %v6600_v54  ;;  %4362 = vmatmul.mubr.f32.gmra.mrb[20].mxu1 %v6315_v17  ;;  %v6624_v17 = vld [vmem:[#allocation2 + $0x67] sm:$0xff] }
 0x1f0   :  { %3933 = vmatprep.mubr.msk.f32.mxu0 %vm5269_vm0, %v6516_v56  ;;  %4364 = vmatprep.mubr.msk.f32.mxu1 %vm5269_vm0, %v6516_v56 }
 0x1f3   :  { %3934 = vmatmul.mubr.f32.gmra.mrb[70].mxu0 %v6608_v9  ;;  %4365 = vmatmul.mubr.f32.gmra.mrb[22].mxu1 %v6322_v21  ;;  %v6632_v21 = vld [vmem:[#allocation2 + $0x6f] sm:$0xff] }
 0x1f4   :  { %3936 = vmatprep.mubr.msk.f32.mxu0 %vm5269_vm0, %v6516_v56  ;;  %4367 = vmatprep.mubr.msk.f32.mxu1 %vm5269_vm0, %v6516_v56 }
 0x1f7   :  { %3937 = vmatmul.mubr.f32.gmra.mrb[72].mxu0 %v6616_v60  ;;  %4368 = vmatmul.mubr.f32.gmra.mrb[24].mxu1 %v6329_v25  ;;  %v6640_v25 = vld [vmem:[#allocation2 + $0x77] sm:$0xff] }
 0x1f8   :  { %3939 = vmatprep.mubr.msk.f32.mxu0 %vm5269_vm0, %v6516_v56  ;;  %4370 = vmatprep.mubr.msk.f32.mxu1 %vm5269_vm0, %v6516_v56 }
 0x1fb   :  { %3940 = vmatmul.mubr.f32.gmra.mrb[74].mxu0 %v6624_v17  ;;  %4371 = vmatmul.mubr.f32.gmra.mrb[26].mxu1 %v6336_v1  ;;  %v6648_v1 = vld [vmem:[#allocation2 + $0x7f] sm:$0xff] }
 0x1fc   :  { %3942 = vmatprep.mubr.msk.f32.mxu0 %vm5269_vm0, %v6516_v56  ;;  %4373 = vmatprep.mubr.msk.f32.mxu1 %vm5269_vm0, %v6516_v56 }
 0x1ff   :  { %3943 = vmatmul.mubr.f32.gmra.mrb[76].mxu0 %v6632_v21  ;;  %4374 = vmatmul.mubr.f32.gmra.mrb[28].mxu1 %v6343_v31  ;;  %v6656_v31 = vld [vmem:[#allocation2 + $0x87] sm:$0xff] }
 0x200   :  { %3945 = vmatprep.mubr.msk.f32.mxu0 %vm5269_vm0, %v6516_v56  ;;  %4376 = vmatprep.mubr.msk.f32.mxu1 %vm5269_vm0, %v6516_v56 }
 0x203   :  { %3946 = vmatmul.mubr.f32.gmra.mrb[78].mxu0 %v6640_v25  ;;  %4377 = vmatmul.mubr.f32.gmra.mrb[30].mxu1 %v6350_v33  ;;  %v6664_v33 = vld [vmem:[#allocation2 + $0x8f] sm:$0xff] }
 0x204   :  { %3948 = vmatprep.mubr.msk.f32.mxu0 %vm5269_vm0, %v6516_v56  ;;  %4379 = vmatprep.mubr.msk.f32.mxu1 %vm5269_vm0, %v6516_v56 }
 0x207   :  { %3949 = vmatmul.mubr.f32.gmra.mrb[80].mxu0 %v6648_v1  ;;  %4380 = vmatmul.mubr.f32.gmra.mrb[32].mxu1 %v6357_v41  ;;  %v6672_v41 = vld [vmem:[#allocation2 + $0x97] sm:$0xff] }
 0x208   :  { %3951 = vmatprep.mubr.msk.f32.mxu0 %vm5269_vm0, %v6516_v56  ;;  %4382 = vmatprep.mubr.msk.f32.mxu1 %vm5269_vm0, %v6516_v56 }
 0x20b   :  { %3952 = vmatmul.mubr.f32.gmra.mrb[82].mxu0 %v6656_v31  ;;  %4383 = vmatmul.mubr.f32.gmra.mrb[34].mxu1 %v6364_v45  ;;  %v6680_v45 = vld [vmem:[#allocation2 + $0x9f] sm:$0xff] }
 0x20c   :  { %3954 = vmatprep.mubr.msk.f32.mxu0 %vm5269_vm0, %v6516_v56  ;;  %4385 = vmatprep.mubr.msk.f32.mxu1 %vm5269_vm0, %v6516_v56 }
 0x20f   :  { %3955 = vmatmul.mubr.f32.gmra.mrb[84].mxu0 %v6664_v33  ;;  %4386 = vmatmul.mubr.f32.gmra.mrb[36].mxu1 %v6371_v51  ;;  %v6688_v51 = vld [vmem:[#allocation2 + $0xa7] sm:$0xff] }
 0x210   :  { %3957 = vmatprep.mubr.msk.f32.mxu0 %vm5269_vm0, %v6516_v56  ;;  %4388 = vmatprep.mubr.msk.f32.mxu1 %vm5269_vm0, %v6516_v56 }
 0x213   :  { %3958 = vmatmul.mubr.f32.gmra.mrb[86].mxu0 %v6672_v41  ;;  %4389 = vmatmul.mubr.f32.gmra.mrb[38].mxu1 %v6378_v57  ;;  %v6696_v57 = vld [vmem:[#allocation2 + $0xaf] sm:$0xff] }
 0x214   :  { %3960 = vmatprep.mubr.msk.f32.mxu0 %vm5269_vm0, %v6516_v56  ;;  %4391 = vmatprep.mubr.msk.f32.mxu1 %vm5269_vm0, %v6516_v56 }
 0x217   :  { %3961 = vmatmul.mubr.f32.gmra.mrb[88].mxu0 %v6680_v45  ;;  %4392 = vmatmul.mubr.f32.gmra.mrb[40].mxu1 %v6385_v35  ;;  %v6704_v35 = vld [vmem:[#allocation2 + $0xb7] sm:$0xff] }
 0x218   :  { %3963 = vmatprep.mubr.msk.f32.mxu0 %vm5269_vm0, %v6516_v56  ;;  %4394 = vmatprep.mubr.msk.f32.mxu1 %vm5269_vm0, %v6516_v56 }
 0x21b   :  { %3964 = vmatmul.mubr.f32.gmra.mrb[90].mxu0 %v6688_v51  ;;  %4395 = vmatmul.mubr.f32.gmra.mrb[42].mxu1 %v6392_v42  ;;  %v2182_v42 = vld [vmem:[#allocation2 + $0xd9] sm:$0xff] }
 0x21c   :  { %3966 = vmatprep.mubr.msk.f32.mxu0 %vm5269_vm0, %v6516_v56  ;;  %4397 = vmatprep.mubr.msk.f32.mxu1 %vm5269_vm0, %v6516_v56 }
 0x21f   :  { %3967 = vmatmul.mubr.f32.gmra.mrb[92].mxu0 %v6696_v57  ;;  %4398 = vmatmul.mubr.f32.gmra.mrb[44].mxu1 %v6399_v13  ;;  %v3124_v13 = vld [vmem:[%s7195_s7 + $0x400] sm:$0xff] }
 0x220   :  { %3969 = vmatprep.mubr.msk.f32.mxu0 %vm5269_vm0, %v6516_v56  ;;  %4400 = vmatprep.mubr.msk.f32.mxu1 %vm5269_vm0, %v6516_v56 }
 0x223   :  { %3970 = vmatmul.mubr.f32.gmra.mrb[94].mxu0 %v6704_v35  ;;  %4401 = vmatmul.mubr.f32.gmra.mrb[46].mxu1 %v6412_v23  ;;  %v4837_v23 = vpack.c.bf16 %v3125_v8, %v3124_v13  ;;  %v2418_v8 = vld [vmem:[#allocation2 + $0x32] sm:$0xff] }
 0x224   :  { %3972 = vmatprep.mubr.msk.f32.mxu0 %vm5269_vm0, %v6516_v56  ;;  %4403 = vmatprep.mubr.msk.f32.mxu1 %vm5269_vm0, %v6516_v56 }
 0x227   :  { %3973 = vmatmul.mubr.f32.gmra.mrb[96].mxu0 %v6718_v38  ;;  %4404 = vmatmul.mubr.f32.gmra.mrb[48].mxu1 %v2182_v42  ;;  %v3130_v42 = vld [vmem:[%s7195_s7 + $0x430] sm:$0xff] }
 0x228   :  { %3975 = vmatprep.mubr.msk.f32.mxu0 %vm5269_vm0, %v6516_v56  ;;  %4438 = vmatprep.mubr.msk.f32.mxu1 %vm5269_vm0, %v6516_v56 }
 0x22b   :  { %3976 = vmatmul.mubr.f32.gmra.mrb[98].mxu0 %v6725_v26  ;;  %4439 = vmatmul.mubr.f32.vlgmr.msra.gmra.mrb[0].mxu1 %v2415_v63 }
 0x22c   :  { %4010 = vmatprep.mubr.msk.f32.mxu0 %vm5269_vm0, %v6516_v56  ;;  %4838 = vmatpush3.bf16.msra.mxu1 %v4837_v23  ;;  %v3132_v23 = vld [vmem:[%s7195_s7 + $0x440] sm:$0xff] }
 0x22d   :  { %4441 = vmatprep.mubr.msk.f32.mxu1 %vm5269_vm0, %v6516_v56  ;;  %4839 = vmatprep.subr.bf16.mxu1 %v5268_v0 }
 0x22f   :  { %4011 = vmatmul.mubr.f32.vlgmr.msra.gmra.mrb[50].mxu0 %v6454_v20  ;;  %4442 = vmatmul.mubr.f32.gmra.mrb[2].mxu1 %v2416_v4  ;;  %v3131_v20 = vld [vmem:[%s7195_s7 + $0x438] sm:$0xff]  ;;  %v2420_v4 = vld [vmem:[#allocation2 + $0x42] sm:$0xff] }
 0x230   :  { %4013 = vmatprep.mubr.msk.f32.mxu0 %vm5269_vm0, %v6516_v56  ;;  %4444 = vmatprep.mubr.msk.f32.mxu1 %vm5269_vm0, %v6516_v56  ;;  %v4846_v13 = vpack.c.bf16 %v3131_v20, %v3130_v42  ;;  %v2422_v20 = vld [vmem:[#allocation2 + $0x52] sm:$0xff] }
 0x231   :  { %4841 = vmatpush3.bf16.msra.mxu1 %v4840_v14 }
 0x232   :  { %4842 = vmatprep.subr.bf16.mxu1 %v5268_v0 }
 0x233   :  { %4014 = vmatmul.mubr.f32.gmra.mrb[52].mxu0 %v6476_v46  ;;  %4445 = vmatmul.mubr.f32.gmra.mrb[4].mxu1 %v2417_v62  ;;  %v3133_v46 = vld [vmem:[%s7195_s7 + $0x448] sm:$0xff]  ;;  %v3138_v62 = vld [vmem:[%s7195_s7 + $0x470] sm:$0xff] }
 0x234   :  { %4016 = vmatprep.mubr.msk.f32.mxu0 %vm5269_vm0, %v6516_v56  ;;  %4447 = vmatprep.mubr.msk.f32.mxu1 %vm5269_vm0, %v6516_v56  ;;  %v4849_v63 = vpack.c.bf16 %v3133_v46, %v3132_v23  ;;  %v2676_v23 = vld [vmem:[#allocation2 + $0x3b] sm:$0xff]  ;;  %v2677_v46 = vld [vmem:[#allocation2 + $0x43] sm:$0xff] }
 0x235   :  { %4844 = vmatpush3.bf16.msra.mxu1 %v4843_v55  ;;  %v2421_v55 = vld [vmem:[#allocation2 + $0x4a] sm:$0xff] }
 0x236   :  { %4845 = vmatprep.subr.bf16.mxu1 %v5268_v0 }
 0x237   :  { %4017 = vmatmul.mubr.f32.gmra.mrb[54].mxu0 %v6498_v15  ;;  %4448 = vmatmul.mubr.f32.gmra.mrb[6].mxu1 %v2418_v8  ;;  %v3135_v15 = vld [vmem:[%s7195_s7 + $0x458] sm:$0xff] }
 0x238   :  { %4019 = vmatprep.mubr.msk.f32.mxu0 %vm5269_vm0, %v6516_v56  ;;  %4450 = vmatprep.mubr.msk.f32.mxu1 %vm5269_vm0, %v6516_v56  ;;  %v4852_v14 = vpack.c.bf16 %v3135_v15, %v3134_v29  ;;  %v2675_v8 = vld [vmem:[#allocation2 + $0x33] sm:$0xff]  ;;  %v2680_v29 = vld [vmem:[#allocation2 + $0x5b] sm:$0xff]  ;;  %v2681_v15 = vld [vmem:[#allocation2 + $0x63] sm:$0xff] }
 0x239   :  { %4847 = vmatpush3.bf16.msra.mxu1 %v4846_v13  ;;  %v2672_v13 = vld [vmem:[#allocation2 + $0x1b] sm:$0xff] }
 0x23a   :  { %4848 = vmatprep.subr.bf16.mxu1 %v5268_v0 }
 0x23b   :  { %4020 = vmatmul.mubr.f32.gmra.mrb[56].mxu0 %v6522_v39  ;;  %4451 = vmatmul.mubr.f32.gmra.mrb[8].mxu1 %v2419_v36  ;;  %v3137_v39 = vld [vmem:[%s7195_s7 + $0x468] sm:$0xff]  ;;  %v2679_v36 = vld [vmem:[#allocation2 + $0x53] sm:$0xff] }
 0x23c   :  { %4022 = vmatprep.mubr.msk.f32.mxu0 %vm5269_vm0, %v6516_v56  ;;  %4453 = vmatprep.mubr.msk.f32.mxu1 %vm5269_vm0, %v6516_v56  ;;  %v4855_v2 = vpack.c.bf16 %v3137_v39, %v3136_v32  ;;  %v2684_v32 = vld [vmem:[#allocation2 + $0x7b] sm:$0xff]  ;;  %v2685_v39 = vld [vmem:[#allocation2 + $0x83] sm:$0xff] }
 0x23d   :  { %4850 = vmatpush3.bf16.msra.mxu1 %v4849_v63  ;;  %v2678_v63 = vld [vmem:[#allocation2 + $0x4b] sm:$0xff] }
 0x23e   :  { %4851 = vmatprep.subr.bf16.mxu1 %v5268_v0 }
 0x23f   :  { %4023 = vmatmul.mubr.f32.gmra.mrb[58].mxu0 %v6544_v47  ;;  %4454 = vmatmul.mubr.f32.gmra.mrb[10].mxu1 %v2420_v4  ;;  %v3139_v47 = vld [vmem:[%s7195_s7 + $0x478] sm:$0xff] }
 0x240   :  { %4025 = vmatprep.mubr.msk.f32.mxu0 %vm5269_vm0, %v6516_v56  ;;  %4456 = vmatprep.mubr.msk.f32.mxu1 %vm5269_vm0, %v6516_v56  ;;  %v4858_v42 = vpack.c.bf16 %v3139_v47, %v3138_v62  ;;  %v2683_v4 = vld [vmem:[#allocation2 + $0x73] sm:$0xff]  ;;  %v2688_v62 = vld [vmem:[#allocation2 + $0x9b] sm:$0xff]  ;;  %v2689_v47 = vld [vmem:[#allocation2 + $0xa3] sm:$0xff] }
 0x241   :  { %4853 = vmatpush3.bf16.msra.mxu1 %v4852_v14  ;;  %v2682_v14 = vld [vmem:[#allocation2 + $0x6b] sm:$0xff] }
 0x242   :  { %4854 = vmatprep.subr.bf16.mxu1 %v5268_v0 }
 0x243   :  { %4026 = vmatmul.mubr.f32.gmra.mrb[60].mxu0 %v6566_v44  ;;  %4457 = vmatmul.mubr.f32.gmra.mrb[12].mxu1 %v2421_v55  ;;  %v2423_v44 = vld [vmem:[#allocation2 + $0x5a] sm:$0xff] }
 0x244   :  { %4028 = vmatprep.mubr.msk.f32.mxu0 %vm5269_vm0, %v6516_v56  ;;  %4459 = vmatprep.mubr.msk.f32.mxu1 %vm5269_vm0, %v6516_v56  ;;  %v2687_v55 = vld [vmem:[#allocation2 + $0x93] sm:$0xff] }
 0x245   :  { %4856 = vmatpush3.bf16.msra.mxu1 %v4855_v2  ;;  %v2686_v2 = vld [vmem:[#allocation2 + $0x8b] sm:$0xff] }
 0x246   :  { %4857 = vmatprep.subr.bf16.mxu1 %v5268_v0  ;;  %v2424_v0 = vld [vmem:[#allocation2 + $0x62] sm:$0xff] }
 0x247   :  { %4029 = vmatmul.mubr.f32.gmra.mrb[62].mxu0 %v6582_v24  ;;  %4460 = vmatmul.mubr.f32.gmra.mrb[14].mxu1 %v2422_v20  ;;  %v2425_v24 = vld [vmem:[#allocation2 + $0x6a] sm:$0xff]  ;;  %v2691_v20 = vld [vmem:[#allocation2 + $0xb3] sm:$0xff] }
 0x248   :  { %4031 = vmatprep.mubr.msk.f32.mxu0 %vm5269_vm0, %v6516_v56  ;;  %4462 = vmatprep.mubr.msk.f32.mxu1 %vm5269_vm0, %v6516_v56 }
 0x249   :  { %4859 = vmatpush3.bf16.msra.mxu1 %v4858_v42  ;;  %v2690_v42 = vld [vmem:[#allocation2 + $0xab] sm:$0xff] }
 0x24b   :  { %4032 = vmatmul.mubr.f32.gmra.mrb[64].mxu0 %v6592_v48  ;;  %4463 = vmatmul.mubr.f32.gmra.mrb[16].mxu1 %v2423_v44  ;;  %v2426_v48 = vld [vmem:[#allocation2 + $0x72] sm:$0xff]  ;;  %v2692_v44 = vld [vmem:[#allocation2 + $0xbb] sm:$0xff] }
 0x24c   :  { %4034 = vmatprep.mubr.msk.f32.mxu0 %vm5269_vm0, %v6516_v56  ;;  %4465 = vmatprep.mubr.msk.f32.mxu1 %vm5269_vm0, %v6516_v56 }
 0x24f   :  { %4035 = vmatmul.mubr.f32.gmra.mrb[66].mxu0 %v6600_v54  ;;  %4466 = vmatmul.mubr.f32.gmra.mrb[18].mxu1 %v2424_v0  ;;  %v2427_v54 = vld [vmem:[#allocation2 + $0x7a] sm:$0xff]  ;;  %v2693_v0 = vld [vmem:[#allocation2 + $0xc3] sm:$0xff] }
 0x250   :  { %4037 = vmatprep.mubr.msk.f32.mxu0 %vm5269_vm0, %v6516_v56  ;;  %4468 = vmatprep.mubr.msk.f32.mxu1 %vm5269_vm0, %v6516_v56 }
 0x253   :  { %4038 = vmatmul.mubr.f32.gmra.mrb[68].mxu0 %v6608_v9  ;;  %4469 = vmatmul.mubr.f32.gmra.mrb[20].mxu1 %v2425_v24  ;;  %v2428_v9 = vld [vmem:[#allocation2 + $0x82] sm:$0xff]  ;;  %v2694_v24 = vld [vmem:[#allocation2 + $0xcb] sm:$0xff] }
 0x254   :  { %4040 = vmatprep.mubr.msk.f32.mxu0 %vm5269_vm0, %v6516_v56  ;;  %4471 = vmatprep.mubr.msk.f32.mxu1 %vm5269_vm0, %v6516_v56 }
 0x257   :  { %4041 = vmatmul.mubr.f32.gmra.mrb[70].mxu0 %v6616_v60  ;;  %4472 = vmatmul.mubr.f32.gmra.mrb[22].mxu1 %v2426_v48  ;;  %v2429_v60 = vld [vmem:[#allocation2 + $0x8a] sm:$0xff]  ;;  %v2695_v48 = vld [vmem:[#allocation2 + $0xd3] sm:$0xff] }
 0x258   :  { %4043 = vmatprep.mubr.msk.f32.mxu0 %vm5269_vm0, %v6516_v56  ;;  %4474 = vmatprep.mubr.msk.f32.mxu1 %vm5269_vm0, %v6516_v56 }
 0x25b   :  { %4044 = vmatmul.mubr.f32.gmra.mrb[72].mxu0 %v6624_v17  ;;  %4475 = vmatmul.mubr.f32.gmra.mrb[24].mxu1 %v2427_v54  ;;  %v2430_v17 = vld [vmem:[#allocation2 + $0x92] sm:$0xff]  ;;  %v2696_v54 = vld [vmem:[#allocation2 + $0xdb] sm:$0xff] }
 0x25c   :  { %4046 = vmatprep.mubr.msk.f32.mxu0 %vm5269_vm0, %v6516_v56  ;;  %4477 = vmatprep.mubr.msk.f32.mxu1 %vm5269_vm0, %v6516_v56 }
 0x25f   :  { %4047 = vmatmul.mubr.f32.gmra.mrb[74].mxu0 %v6632_v21  ;;  %4478 = vmatmul.mubr.f32.gmra.mrb[26].mxu1 %v2428_v9  ;;  %v2431_v21 = vld [vmem:[#allocation2 + $0x9a] sm:$0xff] }
 0x260   :  { %4049 = vmatprep.mubr.msk.f32.mxu0 %vm5269_vm0, %v6516_v56  ;;  %4480 = vmatprep.mubr.msk.f32.mxu1 %vm5269_vm0, %v6516_v56 }
 0x263   :  { %4050 = vmatmul.mubr.f32.gmra.mrb[76].mxu0 %v6640_v25  ;;  %4481 = vmatmul.mubr.f32.gmra.mrb[28].mxu1 %v2429_v60  ;;  %v2432_v25 = vld [vmem:[#allocation2 + $0xa2] sm:$0xff] }
 0x264   :  { %4052 = vmatprep.mubr.msk.f32.mxu0 %vm5269_vm0, %v6516_v56  ;;  %4483 = vmatprep.mubr.msk.f32.mxu1 %vm5269_vm0, %v6516_v56 }
 0x267   :  { %4053 = vmatmul.mubr.f32.gmra.mrb[78].mxu0 %v6648_v1  ;;  %4484 = vmatmul.mubr.f32.gmra.mrb[30].mxu1 %v2430_v17  ;;  %v2433_v1 = vld [vmem:[#allocation2 + $0xaa] sm:$0xff] }
 0x268   :  { %4055 = vmatprep.mubr.msk.f32.mxu0 %vm5269_vm0, %v6516_v56  ;;  %4486 = vmatprep.mubr.msk.f32.mxu1 %vm5269_vm0, %v6516_v56 }
 0x26b   :  { %4056 = vmatmul.mubr.f32.gmra.mrb[80].mxu0 %v6656_v31  ;;  %4487 = vmatmul.mubr.f32.gmra.mrb[32].mxu1 %v2431_v21  ;;  %v2434_v31 = vld [vmem:[#allocation2 + $0xb2] sm:$0xff] }
 0x26c   :  { %4058 = vmatprep.mubr.msk.f32.mxu0 %vm5269_vm0, %v6516_v56  ;;  %4489 = vmatprep.mubr.msk.f32.mxu1 %vm5269_vm0, %v6516_v56 }
 0x26f   :  { %4059 = vmatmul.mubr.f32.gmra.mrb[82].mxu0 %v6664_v33  ;;  %4490 = vmatmul.mubr.f32.gmra.mrb[34].mxu1 %v2432_v25  ;;  %v2435_v33 = vld [vmem:[#allocation2 + $0xba] sm:$0xff] }
 0x270   :  { %4061 = vmatprep.mubr.msk.f32.mxu0 %vm5269_vm0, %v6516_v56  ;;  %4492 = vmatprep.mubr.msk.f32.mxu1 %vm5269_vm0, %v6516_v56 }
 0x273   :  { %4062 = vmatmul.mubr.f32.gmra.mrb[84].mxu0 %v6672_v41  ;;  %4493 = vmatmul.mubr.f32.gmra.mrb[36].mxu1 %v2433_v1  ;;  %v2436_v41 = vld [vmem:[#allocation2 + $0xc2] sm:$0xff] }
 0x274   :  { %4064 = vmatprep.mubr.msk.f32.mxu0 %vm5269_vm0, %v6516_v56  ;;  %4495 = vmatprep.mubr.msk.f32.mxu1 %vm5269_vm0, %v6516_v56 }
 0x277   :  { %4065 = vmatmul.mubr.f32.gmra.mrb[86].mxu0 %v6680_v45  ;;  %4496 = vmatmul.mubr.f32.gmra.mrb[38].mxu1 %v2434_v31  ;;  %v2437_v45 = vld [vmem:[#allocation2 + $0xca] sm:$0xff] }
 0x278   :  { %4067 = vmatprep.mubr.msk.f32.mxu0 %vm5269_vm0, %v6516_v56  ;;  %4498 = vmatprep.mubr.msk.f32.mxu1 %vm5269_vm0, %v6516_v56 }
 0x27b   :  { %4068 = vmatmul.mubr.f32.gmra.mrb[88].mxu0 %v6688_v51  ;;  %4499 = vmatmul.mubr.f32.gmra.mrb[40].mxu1 %v2435_v33  ;;  %v2438_v51 = vld [vmem:[#allocation2 + $0xd2] sm:$0xff] }
 0x27c   :  { %4070 = vmatprep.mubr.msk.f32.mxu0 %vm5269_vm0, %v6516_v56  ;;  %4501 = vmatprep.mubr.msk.f32.mxu1 %vm5269_vm0, %v6516_v56 }
 0x27f   :  { %4071 = vmatmul.mubr.f32.gmra.mrb[90].mxu0 %v6696_v57  ;;  %4502 = vmatmul.mubr.f32.gmra.mrb[42].mxu1 %v2436_v41  ;;  %v2439_v57 = vld [vmem:[#allocation2 + $0xda] sm:$0xff] }
 0x280   :  { %4073 = vmatprep.mubr.msk.f32.mxu0 %vm5269_vm0, %v6516_v56  ;;  %4504 = vmatprep.mubr.msk.f32.mxu1 %vm5269_vm0, %v6516_v56 }
 0x283   :  { %4074 = vmatmul.mubr.f32.gmra.mrb[92].mxu0 %v6704_v35  ;;  %4505 = vmatmul.mubr.f32.gmra.mrb[44].mxu1 %v2437_v45  ;;  %v1411_v35 = vld [vmem:[#allocation2 + $0xcf] sm:$0xff] }
 0x284   :  { %4076 = vmatprep.mubr.msk.f32.mxu0 %vm5269_vm0, %v6516_v56  ;;  %4507 = vmatprep.mubr.msk.f32.mxu1 %vm5269_vm0, %v6516_v56 }
 0x287   :  { %4077 = vmatmul.mubr.f32.gmra.mrb[94].mxu0 %v6718_v38  ;;  %4508 = vmatmul.mubr.f32.gmra.mrb[46].mxu1 %v2438_v51  ;;  %v2673_v38 = vld [vmem:[#allocation2 + $0x23] sm:$0xff] }
 0x288   :  { %4079 = vmatprep.mubr.msk.f32.mxu0 %vm5269_vm0, %v6516_v56  ;;  %4510 = vmatprep.mubr.msk.f32.mxu1 %vm5269_vm0, %v6516_v56 }
 0x28b   :  { %4080 = vmatmul.mubr.f32.gmra.mrb[96].mxu0 %v6725_v26  ;;  %4511 = vmatmul.mubr.f32.gmra.mrb[48].mxu1 %v2439_v57  ;;  %v2674_v26 = vld [vmem:[#allocation2 + $0x2b] sm:$0xff] }
 0x28c   :  { %4082 = vmatprep.mubr.msk.f32.mxu0 %vm5269_vm0, %v6516_v56  ;;  %4545 = vmatprep.mubr.msk.f32.mxu1 %vm5269_vm0, %v6516_v56 }
 0x28f   :  { %4083 = vmatmul.mubr.f32.gmra.mrb[98].mxu0 %v1411_v35  ;;  %4546 = vmatmul.mubr.f32.vlgmr.msra.gmra.mrb[0].mxu1 %v2672_v13 }
 0x290   :  { %4548 = vmatprep.mubr.msk.f32.mxu1 %vm5269_vm0, %v6516_v56 }
 0x293   :  { %4549 = vmatmul.mubr.f32.gmra.mrb[2].mxu1 %v2673_v38 }
 0x294   :  { %4551 = vmatprep.mubr.msk.f32.mxu1 %vm5269_vm0, %v6516_v56 }
 0x297   :  { %4552 = vmatmul.mubr.f32.gmra.mrb[4].mxu1 %v2674_v26 }
 0x298   :  { %4554 = vmatprep.mubr.msk.f32.mxu1 %vm5269_vm0, %v6516_v56 }
 0x29b   :  { %4555 = vmatmul.mubr.f32.gmra.mrb[6].mxu1 %v2675_v8 }
 0x29c   :  { %4557 = vmatprep.mubr.msk.f32.mxu1 %vm5269_vm0, %v6516_v56 }
 0x29f   :  { %4558 = vmatmul.mubr.f32.gmra.mrb[8].mxu1 %v2676_v23 }
 0x2a0   :  { %4560 = vmatprep.mubr.msk.f32.mxu1 %vm5269_vm0, %v6516_v56 }
 0x2a3   :  { %4561 = vmatmul.mubr.f32.gmra.mrb[10].mxu1 %v2677_v46 }
 0x2a4   :  { %4563 = vmatprep.mubr.msk.f32.mxu1 %vm5269_vm0, %v6516_v56 }
 0x2a7   :  { %4564 = vmatmul.mubr.f32.gmra.mrb[12].mxu1 %v2678_v63 }
 0x2a8   :  { %4566 = vmatprep.mubr.msk.f32.mxu1 %vm5269_vm0, %v6516_v56 }
 0x2ab   :  { %4567 = vmatmul.mubr.f32.gmra.mrb[14].mxu1 %v2679_v36 }
 0x2ac   :  { %4569 = vmatprep.mubr.msk.f32.mxu1 %vm5269_vm0, %v6516_v56 }
 0x2af   :  { %4570 = vmatmul.mubr.f32.gmra.mrb[16].mxu1 %v2680_v29 }
 0x2b0   :  { %4572 = vmatprep.mubr.msk.f32.mxu1 %vm5269_vm0, %v6516_v56 }
 0x2b3   :  { %4573 = vmatmul.mubr.f32.gmra.mrb[18].mxu1 %v2681_v15 }
 0x2b4   :  { %4575 = vmatprep.mubr.msk.f32.mxu1 %vm5269_vm0, %v6516_v56 }
 0x2b7   :  { %4576 = vmatmul.mubr.f32.gmra.mrb[20].mxu1 %v2682_v14 }
 0x2b8   :  { %4578 = vmatprep.mubr.msk.f32.mxu1 %vm5269_vm0, %v6516_v56 }
 0x2bb   :  { %4579 = vmatmul.mubr.f32.gmra.mrb[22].mxu1 %v2683_v4 }
 0x2bc   :  { %4581 = vmatprep.mubr.msk.f32.mxu1 %vm5269_vm0, %v6516_v56 }
 0x2bf   :  { %4582 = vmatmul.mubr.f32.gmra.mrb[24].mxu1 %v2684_v32 }
 0x2c0   :  { %4584 = vmatprep.mubr.msk.f32.mxu1 %vm5269_vm0, %v6516_v56 }
 0x2c3   :  { %4585 = vmatmul.mubr.f32.gmra.mrb[26].mxu1 %v2685_v39 }
 0x2c4   :  { %4587 = vmatprep.mubr.msk.f32.mxu1 %vm5269_vm0, %v6516_v56 }
 0x2c7   :  { %4588 = vmatmul.mubr.f32.gmra.mrb[28].mxu1 %v2686_v2 }
 0x2c8   :  { %4590 = vmatprep.mubr.msk.f32.mxu1 %vm5269_vm0, %v6516_v56 }
 0x2cb   :  { %4591 = vmatmul.mubr.f32.gmra.mrb[30].mxu1 %v2687_v55 }
 0x2cc   :  { %4593 = vmatprep.mubr.msk.f32.mxu1 %vm5269_vm0, %v6516_v56 }
 0x2cf   :  { %4594 = vmatmul.mubr.f32.gmra.mrb[32].mxu1 %v2688_v62 }
 0x2d0   :  { %4596 = vmatprep.mubr.msk.f32.mxu1 %vm5269_vm0, %v6516_v56 }
 0x2d3   :  { %4597 = vmatmul.mubr.f32.gmra.mrb[34].mxu1 %v2689_v47 }
 0x2d4   :  { %4599 = vmatprep.mubr.msk.f32.mxu1 %vm5269_vm0, %v6516_v56 }
 0x2d7   :  { %4600 = vmatmul.mubr.f32.gmra.mrb[36].mxu1 %v2690_v42 }
 0x2d8   :  { %4602 = vmatprep.mubr.msk.f32.mxu1 %vm5269_vm0, %v6516_v56 }
 0x2db   :  { %4603 = vmatmul.mubr.f32.gmra.mrb[38].mxu1 %v2691_v20 }
 0x2dc   :  { %4605 = vmatprep.mubr.msk.f32.mxu1 %vm5269_vm0, %v6516_v56 }
 0x2df   :  { %4606 = vmatmul.mubr.f32.gmra.mrb[40].mxu1 %v2692_v44 }
 0x2e0   :  { %4608 = vmatprep.mubr.msk.f32.mxu1 %vm5269_vm0, %v6516_v56 }
 0x2e3   :  { %4609 = vmatmul.mubr.f32.gmra.mrb[42].mxu1 %v2693_v0 }
 0x2e4   :  { %4611 = vmatprep.mubr.msk.f32.mxu1 %vm5269_vm0, %v6516_v56 }
 0x2e7   :  { %4612 = vmatmul.mubr.f32.gmra.mrb[44].mxu1 %v2694_v24 }
 0x2e8   :  { %4614 = vmatprep.mubr.msk.f32.mxu1 %vm5269_vm0, %v6516_v56 }
 0x2eb   :  { %4615 = vmatmul.mubr.f32.gmra.mrb[46].mxu1 %v2695_v48 }
 0x2ec   :  { %4617 = vmatprep.mubr.msk.f32.mxu1 %vm5269_vm0, %v6516_v56 }
 0x2ef   :  { %4618 = vmatmul.mubr.f32.gmra.mrb[48].mxu1 %v2696_v54 }
 0x302   :  { %v1495_v9 = vpop.f32.mrb[50].mxu0 }
 0x303   :  { %v4012_v60 = vpop.f32.mrb[51].mxu0 }
 0x306   :  { %v1500_v17 = vpop.f32.mrb[52].mxu0 }
 0x307   :  { %v4015_v21 = vpop.f32.mrb[53].mxu0 }
 0x30a   :  { %v1505_v25 = vpop.f32.mrb[54].mxu0 }
 0x30b   :  { %v4018_v1 = vpop.f32.mrb[55].mxu0 }
 0x30e   :  { %v6949_v31 = vpop.f32.mrb[56].mxu0 }
 0x30f   :  { %v4021_v33 = vpop.f32.mrb[57].mxu0 }
 0x312   :  { %v6951_v41 = vpop.f32.mrb[58].mxu0 }
 0x313   :  { %v4024_v45 = vpop.f32.mrb[59].mxu0 }
 0x316   :  { %v6953_v51 = vpop.f32.mrb[60].mxu0 }
 0x317   :  { %v4027_v57 = vpop.f32.mrb[61].mxu0 }
 0x31a   :  { %v6955_v35 = vpop.f32.mrb[62].mxu0 }
 0x31b   :  { %v4030_v56 = vpop.f32.mrb[63].mxu0 }
 0x31e   :  { %v6957_v13 = vpop.f32.mrb[64].mxu0 }
 0x31f   :  { %v4033_v38 = vpop.f32.mrb[65].mxu0 }
 0x322   :  { %v6959_v26 = vpop.f32.mrb[66].mxu0 }
 0x323   :  { %v4036_v8 = vpop.f32.mrb[67].mxu0 }
 0x326   :  { %v6961_v23 = vpop.f32.mrb[68].mxu0 }
 0x327   :  { %v4039_v46 = vpop.f32.mrb[69].mxu0 }
 0x32a   :  { %v6963_v63 = vpop.f32.mrb[70].mxu0 }
 0x32b   :  { %v4042_v36 = vpop.f32.mrb[71].mxu0 }
 0x32e   :  { %v6965_v29 = vpop.f32.mrb[72].mxu0 }
 0x32f   :  { %v4045_v15 = vpop.f32.mrb[73].mxu0 }
 0x332   :  { %v6967_v14 = vpop.f32.mrb[74].mxu0 }
 0x333   :  { %v4048_v4 = vpop.f32.mrb[75].mxu0 }
 0x336   :  { %v6969_v32 = vpop.f32.mrb[76].mxu0 }
 0x337   :  { %v4051_v39 = vpop.f32.mrb[77].mxu0 }
 0x33a   :  { %v6971_v2 = vpop.f32.mrb[78].mxu0 }
 0x33b   :  { %v4054_v55 = vpop.f32.mrb[79].mxu0 }
 0x33e   :  { %v6973_v62 = vpop.f32.mrb[80].mxu0 }
 0x33f   :  { %v4057_v47 = vpop.f32.mrb[81].mxu0 }
 0x342   :  { %v6975_v42 = vpop.f32.mrb[82].mxu0 }
 0x343   :  { %v4060_v20 = vpop.f32.mrb[83].mxu0 }
 0x344   :  { %v5243_v20 = vld [vmem:[%s7192_s0] sm:$0xff] }
 0x346   :  { %v6977_v44 = vpop.f32.mrb[84].mxu0 }
 0x347   :  { %v4063_v0 = vpop.f32.mrb[85].mxu0 }
 0x34a   :  { %v6979_v24 = vpop.f32.mrb[86].mxu0 }
 0x34b   :  { %v4066_v48 = vpop.f32.mrb[87].mxu0 }
 0x34e   :  { %v6981_v54 = vpop.f32.mrb[88].mxu0 }
 0x34f   :  { %v4069_v60 = vpop.f32.mrb[89].mxu0 }
 0x352   :  { %v6983_v21 = vpop.f32.mrb[90].mxu0 }
 0x353   :  { %v4072_v1 = vpop.f32.mrb[91].mxu0 }
 0x356   :  { %v6985_v33 = vpop.f32.mrb[92].mxu0 }
 0x357   :  { %v4075_v45 = vpop.f32.mrb[93].mxu0 }
 0x35a   :  { %v6987_v57 = vpop.f32.mrb[94].mxu0 }
 0x35b   :  { %v4078_v56 = vpop.f32.mrb[95].mxu0 }
 0x35e   :  { %v6989_v38 = vpop.f32.mrb[96].mxu0 }
 0x35f   :  { %v4081_v8 = vpop.f32.mrb[97].mxu0 }
 0x362   :  { %v6991_v46 = vpop.f32.mrb[98].mxu0  ;;  %v2780_v36 = vpop.f32.mrb[0].mxu1 }
 0x363   :  { %v4084_v15 = vpop.f32.mrb[99].mxu0  ;;  %v4860_v4 = vadd.f32 %v2780_v36, %v1495_v9  ;;  %v4547_v39 = vpop.f32.mrb[1].mxu1 }
 0x365   :  { %v2929_v55 = vmul.f32 %v4860_v4, %v5858_v28 }
 0x366   :  { %v2785_v47 = vpop.f32.mrb[2].mxu1 }
 0x367   :  { %v2954_v0 = vadd.f32 %v5243_v20, %v2929_v55  ;;  %v4861_v48 = vadd.f32 %v2785_v47, %v1500_v17  ;;  %v4550_v60 = vpop.f32.mrb[3].mxu1 }
 0x369   :  { %2979 = vst [vmem:[%s7198_s8] sm:$0xff] %v2954_v0  ;;  %v2930_v1 = vmul.f32 %v4861_v48, %v5870_v16 }
 0x36a   :  { %v2790_v45 = vpop.f32.mrb[4].mxu1 }
 0x36b   :  { %v4862_v56 = vadd.f32 %v2790_v45, %v1505_v25  ;;  %v4553_v8 = vpop.f32.mrb[5].mxu1 }
 0x36d   :  { %v2931_v17 = vmul.f32 %v4862_v56, %v5877_v19 }
 0x36e   :  { %v2795_v36 = vpop.f32.mrb[6].mxu1 }
 0x36f   :  { %v4863_v4 = vadd.f32 %v2795_v36, %v6949_v31  ;;  %v4556_v39 = vpop.f32.mrb[7].mxu1 }
 0x370   :  { %v5244_v9 = vld [vmem:[%s7192_s0 + $0x8] sm:$0xff] }
 0x371   :  { %v2955_v28 = vadd.f32 %v5244_v9, %v2930_v1  ;;  %v2932_v25 = vmul.f32 %v4863_v4, %v5898_v34 }
 0x372   :  { %v2800_v55 = vpop.f32.mrb[8].mxu1 }
 0x373   :  { %2980 = vst [vmem:[%s7198_s8 + $0x8] sm:$0xff] %v2955_v28  ;;  %v4864_v20 = vadd.f32 %v2800_v55, %v6951_v41  ;;  %v4559_v0 = vpop.f32.mrb[9].mxu1 }
 0x375   :  { %v2933_v31 = vmul.f32 %v4864_v20, %v5914_v49 }
 0x376   :  { %v2805_v48 = vpop.f32.mrb[10].mxu1 }
 0x377   :  { %v4865_v1 = vadd.f32 %v2805_v48, %v6953_v51  ;;  %v4562_v45 = vpop.f32.mrb[11].mxu1 }
 0x379   :  { %v2934_v41 = vmul.f32 %v4865_v1, %v5930_v5 }
 0x37a   :  { %v5245_v15 = vld [vmem:[%s7192_s0 + $0x10] sm:$0xff]  ;;  %v2810_v9 = vpop.f32.mrb[12].mxu1 }
 0x37b   :  { %v2956_v16 = vadd.f32 %v5245_v15, %v2931_v17  ;;  %v4866_v56 = vadd.f32 %v2810_v9, %v6955_v35  ;;  %v4565_v8 = vpop.f32.mrb[13].mxu1 }
 0x37d   :  { %2981 = vst [vmem:[%s7198_s8 + $0x10] sm:$0xff] %v2956_v16  ;;  %v2935_v51 = vmul.f32 %v4866_v56, %v5946_v12 }
 0x37e   :  { %v2815_v17 = vpop.f32.mrb[14].mxu1 }
 0x37f   :  { %v4867_v15 = vadd.f32 %v2815_v17, %v6957_v13  ;;  %v4568_v16 = vpop.f32.mrb[15].mxu1 }
 0x381   :  { %v2936_v35 = vmul.f32 %v4867_v15, %v5962_v22 }
 0x382   :  { %v2820_v4 = vpop.f32.mrb[16].mxu1 }
 0x383   :  { %v4571_v55 = vpop.f32.mrb[17].mxu1 }
 0x384   :  { %v5246_v19 = vld [vmem:[%s7192_s0 + $0x18] sm:$0xff] }
 0x385   :  { %v2957_v47 = vadd.f32 %v5246_v19, %v2932_v25  ;;  %v4868_v25 = vadd.f32 %v2820_v4, %v6959_v26 }
 0x386   :  { %v2825_v19 = vpop.f32.mrb[18].mxu1 }
 0x387   :  { %2982 = vst [vmem:[%s7198_s8 + $0x18] sm:$0xff] %v2957_v47  ;;  %v2937_v13 = vmul.f32 %v4868_v25, %v5972_v7  ;;  %v4869_v20 = vadd.f32 %v2825_v19, %v6961_v23  ;;  %v4574_v0 = vpop.f32.mrb[19].mxu1 }
 0x389   :  { %v2938_v26 = vmul.f32 %v4869_v20, %v5984_v40 }
 0x38e   :  { %v5247_v34 = vld [vmem:[%s7192_s0 + $0x20] sm:$0xff] }
 0x38f   :  { %v2958_v60 = vadd.f32 %v5247_v34, %v2933_v31  ;;  %v2830_v31 = vpop.f32.mrb[20].mxu1 }
 0x390   :  { %v4870_v34 = vadd.f32 %v2830_v31, %v6963_v63 }
 0x391   :  { %2983 = vst [vmem:[%s7198_s8 + $0x20] sm:$0xff] %v2958_v60  ;;  %v4577_v60 = vpop.f32.mrb[21].mxu1 }
 0x392   :  { %v2939_v23 = vmul.f32 %v4870_v34, %v5993_v52  ;;  %v2835_v1 = vpop.f32.mrb[22].mxu1 }
 0x393   :  { %v4580_v9 = vpop.f32.mrb[23].mxu1 }
 0x398   :  { %v5248_v49 = vld [vmem:[%s7192_s0 + $0x28] sm:$0xff] }
 0x399   :  { %v2959_v28 = vadd.f32 %v5248_v49, %v2934_v41  ;;  %v4871_v41 = vadd.f32 %v2835_v1, %v6965_v29  ;;  %v2840_v49 = vpop.f32.mrb[24].mxu1 }
 0x39a   :  { %v4872_v56 = vadd.f32 %v2840_v49, %v6967_v14  ;;  %v4583_v8 = vpop.f32.mrb[25].mxu1 }
 0x39b   :  { %2984 = vst [vmem:[%s7198_s8 + $0x28] sm:$0xff] %v2959_v28  ;;  %v2940_v63 = vmul.f32 %v4871_v41, %v6002_v6 }
 0x39c   :  { %v2941_v29 = vmul.f32 %v4872_v56, %v6011_v53 }
 0x3a2   :  { %v5249_v5 = vld [vmem:[%s7192_s0 + $0x30] sm:$0xff] }
 0x3a3   :  { %v2960_v36 = vadd.f32 %v5249_v5, %v2935_v51  ;;  %v2845_v51 = vpop.f32.mrb[26].mxu1 }
 0x3a4   :  { %v4873_v5 = vadd.f32 %v2845_v51, %v6969_v32 }
 0x3a5   :  { %2985 = vst [vmem:[%s7198_s8 + $0x30] sm:$0xff] %v2960_v36  ;;  %v4586_v36 = vpop.f32.mrb[27].mxu1 }
 0x3a6   :  { %v2942_v14 = vmul.f32 %v4873_v5, %v6020_v18  ;;  %v2850_v15 = vpop.f32.mrb[28].mxu1 }
 0x3a7   :  { %v4589_v4 = vpop.f32.mrb[29].mxu1 }
 0x3ac   :  { %v5250_v12 = vld [vmem:[%s7192_s0 + $0x38] sm:$0xff] }
 0x3ad   :  { %v2961_v39 = vadd.f32 %v5250_v12, %v2936_v35  ;;  %v4874_v35 = vadd.f32 %v2850_v15, %v6971_v2  ;;  %v2855_v12 = vpop.f32.mrb[30].mxu1 }
 0x3ae   :  { %v4875_v25 = vadd.f32 %v2855_v12, %v6973_v62  ;;  %v4592_v55 = vpop.f32.mrb[31].mxu1 }
 0x3af   :  { %2986 = vst [vmem:[%s7198_s8 + $0x38] sm:$0xff] %v2961_v39  ;;  %v2943_v32 = vmul.f32 %v4874_v35, %v6029_v27 }
 0x3b0   :  { %v2944_v2 = vmul.f32 %v4875_v25, %v6038_v37 }
 0x3b6   :  { %v5251_v22 = vld [vmem:[%s7192_s0 + $0x40] sm:$0xff] }
 0x3b7   :  { %v2962_v47 = vadd.f32 %v5251_v22, %v2937_v13  ;;  %v2860_v13 = vpop.f32.mrb[32].mxu1 }
 0x3b8   :  { %v4876_v22 = vadd.f32 %v2860_v13, %v6975_v42 }
 0x3b9   :  { %2987 = vst [vmem:[%s7198_s8 + $0x40] sm:$0xff] %v2962_v47  ;;  %v4595_v47 = vpop.f32.mrb[33].mxu1 }
 0x3ba   :  { %v2945_v62 = vmul.f32 %v4876_v22, %v6047_v50  ;;  %v2865_v20 = vpop.f32.mrb[34].mxu1 }
 0x3bb   :  { %v4598_v31 = vpop.f32.mrb[35].mxu1 }
 0x3c0   :  { %v5252_v7 = vld [vmem:[%s7192_s0 + $0x48] sm:$0xff] }
 0x3c1   :  { %v2963_v48 = vadd.f32 %v5252_v7, %v2938_v26  ;;  %v4877_v26 = vadd.f32 %v2865_v20, %v6977_v44  ;;  %v2870_v7 = vpop.f32.mrb[36].mxu1 }
 0x3c2   :  { %v4878_v34 = vadd.f32 %v2870_v7, %v6979_v24  ;;  %v4601_v60 = vpop.f32.mrb[37].mxu1 }
 0x3c3   :  { %2988 = vst [vmem:[%s7198_s8 + $0x48] sm:$0xff] %v2963_v48  ;;  %v2946_v42 = vmul.f32 %v4877_v26, %v6056_v3 }
 0x3c4   :  { %v2947_v44 = vmul.f32 %v4878_v34, %v6065_v11 }
 0x3ca   :  { %v5253_v40 = vld [vmem:[%s7192_s0 + $0x50] sm:$0xff] }
 0x3cb   :  { %v2964_v45 = vadd.f32 %v5253_v40, %v2939_v23  ;;  %v2875_v23 = vpop.f32.mrb[38].mxu1 }
 0x3cc   :  { %v4879_v40 = vadd.f32 %v2875_v23, %v6981_v54 }
 0x3cd   :  { %2989 = vst [vmem:[%s7198_s8 + $0x50] sm:$0xff] %v2964_v45  ;;  %v4604_v45 = vpop.f32.mrb[39].mxu1 }
 0x3ce   :  { %v2948_v24 = vmul.f32 %v4879_v40, %v6074_v61  ;;  %v2880_v41 = vpop.f32.mrb[40].mxu1 }
 0x3cf   :  { %v4607_v49 = vpop.f32.mrb[41].mxu1 }
 0x3d4   :  { %v5254_v52 = vld [vmem:[%s7192_s0 + $0x58] sm:$0xff] }
 0x3d5   :  { %v2965_v28 = vadd.f32 %v5254_v52, %v2940_v63  ;;  %v4880_v63 = vadd.f32 %v2880_v41, %v6983_v21  ;;  %v2885_v52 = vpop.f32.mrb[42].mxu1 }
 0x3d6   :  { %v4881_v56 = vadd.f32 %v2885_v52, %v6985_v33  ;;  %v4610_v8 = vpop.f32.mrb[43].mxu1 }
 0x3d7   :  { %2990 = vst [vmem:[%s7198_s8 + $0x58] sm:$0xff] %v2965_v28  ;;  %v2949_v54 = vmul.f32 %v4880_v63, %v6083_v30 }
 0x3d8   :  { %v2950_v21 = vmul.f32 %v4881_v56, %v6092_v43 }
 0x3de   :  { %v5255_v6 = vld [vmem:[%s7192_s0 + $0x60] sm:$0xff] }
 0x3df   :  { %v2966_v17 = vadd.f32 %v5255_v6, %v2941_v29  ;;  %v2890_v29 = vpop.f32.mrb[44].mxu1 }
 0x3e0   :  { %v4882_v6 = vadd.f32 %v2890_v29, %v6987_v57 }
 0x3e1   :  { %2991 = vst [vmem:[%s7198_s8 + $0x60] sm:$0xff] %v2966_v17  ;;  %v4613_v17 = vpop.f32.mrb[45].mxu1 }
 0x3e2   :  { %v2951_v33 = vmul.f32 %v4882_v6, %v6101_v58  ;;  %v2895_v5 = vpop.f32.mrb[46].mxu1 }
 0x3e3   :  { %v4616_v15 = vpop.f32.mrb[47].mxu1 }
 0x3e8   :  { %v5256_v53 = vld [vmem:[%s7192_s0 + $0x68] sm:$0xff] }
 0x3e9   :  { %v2967_v16 = vadd.f32 %v5256_v53, %v2942_v14  ;;  %v4883_v14 = vadd.f32 %v2895_v5, %v6989_v38  ;;  %v2900_v53 = vpop.f32.mrb[48].mxu1 }
 0x3ea   :  { %v4884_v35 = vadd.f32 %v2900_v53, %v6991_v46  ;;  %v4619_v4 = vpop.f32.mrb[49].mxu1 }
 0x3eb   :  { %2992 = vst [vmem:[%s7198_s8 + $0x68] sm:$0xff] %v2967_v16  ;;  %v2952_v57 = vmul.f32 %v4883_v14, %v6110_v10 }
 0x3ec   :  { %v2953_v38 = vmul.f32 %v4884_v35, %v6118_v59 }
 0x3f2   :  { %v5257_v18 = vld [vmem:[%s7192_s0 + $0x70] sm:$0xff] }
 0x3f3   :  { %v2968_v39 = vadd.f32 %v5257_v18, %v2943_v32 }
 0x3f5   :  { %2993 = vst [vmem:[%s7198_s8 + $0x70] sm:$0xff] %v2968_v39 }
 0x3fc   :  { %v5258_v27 = vld [vmem:[%s7192_s0 + $0x78] sm:$0xff] }
 0x3fd   :  { %v2969_v19 = vadd.f32 %v5258_v27, %v2944_v2 }
 0x3ff   :  { %2994 = vst [vmem:[%s7198_s8 + $0x78] sm:$0xff] %v2969_v19 }
 0x406   :  { %v5259_v37 = vld [vmem:[%s7192_s0 + $0x80] sm:$0xff] }
 0x407   :  { %v2970_v0 = vadd.f32 %v5259_v37, %v2945_v62 }
 0x409   :  { %2995 = vst [vmem:[%s7198_s8 + $0x80] sm:$0xff] %v2970_v0 }
 0x410   :  { %v5260_v50 = vld [vmem:[%s7192_s0 + $0x88] sm:$0xff] }
 0x411   :  { %v2971_v48 = vadd.f32 %v5260_v50, %v2946_v42 }
 0x413   :  { %2996 = vst [vmem:[%s7198_s8 + $0x88] sm:$0xff] %v2971_v48 }
 0x41a   :  { %v5261_v3 = vld [vmem:[%s7192_s0 + $0x90] sm:$0xff] }
 0x41b   :  { %v2972_v1 = vadd.f32 %v5261_v3, %v2947_v44 }
 0x41d   :  { %2997 = vst [vmem:[%s7198_s8 + $0x90] sm:$0xff] %v2972_v1 }
 0x424   :  { %v5262_v11 = vld [vmem:[%s7192_s0 + $0x98] sm:$0xff] }
 0x425   :  { %v2973_v9 = vadd.f32 %v5262_v11, %v2948_v24 }
 0x427   :  { %2998 = vst [vmem:[%s7198_s8 + $0x98] sm:$0xff] %v2973_v9 }
 0x42e   :  { %v5263_v61 = vld [vmem:[%s7192_s0 + $0xa0] sm:$0xff] }
 0x42f   :  { %v2974_v28 = vadd.f32 %v5263_v61, %v2949_v54 }
 0x431   :  { %2999 = vst [vmem:[%s7198_s8 + $0xa0] sm:$0xff] %v2974_v28 }
 0x438   :  { %v5264_v30 = vld [vmem:[%s7192_s0 + $0xa8] sm:$0xff] }
 0x439   :  { %v2975_v51 = vadd.f32 %v5264_v30, %v2950_v21 }
 0x43b   :  { %3000 = vst [vmem:[%s7198_s8 + $0xa8] sm:$0xff] %v2975_v51 }
 0x442   :  { %v5265_v43 = vld [vmem:[%s7192_s0 + $0xb0] sm:$0xff] }
 0x443   :  { %v2976_v36 = vadd.f32 %v5265_v43, %v2951_v33 }
 0x445   :  { %3001 = vst [vmem:[%s7198_s8 + $0xb0] sm:$0xff] %v2976_v36 }
 0x44c   :  { %v5266_v58 = vld [vmem:[%s7192_s0 + $0xb8] sm:$0xff] }
 0x44d   :  { %v2977_v16 = vadd.f32 %v5266_v58, %v2952_v57 }
 0x44f   :  { %3002 = vst [vmem:[%s7198_s8 + $0xb8] sm:$0xff] %v2977_v16 }
 0x456   :  { %v5267_v32 = vld [vmem:[%s7192_s0 + $0xc0] sm:$0xff] }
 0x457   :  { %v2978_v10 = vadd.f32 %v5267_v32, %v2953_v38 }
 0x459   :  { %3003 = vst [vmem:[%s7198_s8 + $0xc0] sm:$0xff] %v2978_v10 }

// kernel: vision_dqn_dense_forward.83
= control target key start
LH: loop header
LB: loop body
LE: loop exit
PB: predicated region body
PF: predicated region fallthrough
CT: control target
= control target key end

     0   :  { %v335_v0 = vmov 0.0|0.0   ;;  %vm336_vm0 = vmmov 0   ;;  %v337_v6 = vmov 0.0   ;;  %s505_s3 = inlined_call_operand.vmem [shape: f32[128,128], index: 3, kind: input, shape index: {}]   ;;  %s506_s0 = inlined_call_operand.vmem [shape: f32[72,128], index: 0, kind: input, shape index: {}]   ;;  %s507_s1 = inlined_call_operand.vmem [shape: f32[1,128], index: 1, kind: input, shape index: {}]   ;;  %s508_s2 = inlined_call_operand.vmem [shape: f32[1,128], index: 2, kind: input, shape index: {}]   ;;  %s509_s4 = inlined_call_operand.vmem [shape: f32[72,128], index: 4, kind: output, shape index: {}]  }
   0x1   :  { %292 = vmatprep.subr.bf16.mxu0 %v335_v0  ;;  %v67_v1 = vld [vmem:[%s505_s3] sm:$0xff]  ;;  %v68_v2 = vld [vmem:[%s505_s3 + $0x8] sm:$0xff]  ;;  %316 = vmatprep.subr.bf16.mxu1 %v335_v0  ;;  %v69_v3 = vld [vmem:[%s505_s3 + $0x10] sm:$0xff] }
   0x2   :  { %v293_v4 = vpack.c.bf16 %v68_v2, %v67_v1  ;;  %v70_v5 = vld [vmem:[%s505_s3 + $0x18] sm:$0xff]  ;;  %265 = vmatprep.mubr.msk.f32.mxu0 %vm336_vm0, %v337_v6  ;;  %280 = vmatprep.mubr.msk.f32.mxu1 %vm336_vm0, %v337_v6  ;;  %v71_v8 = vld [vmem:[%s505_s3 + $0x20] sm:$0xff]  ;;  %v72_v9 = vld [vmem:[%s505_s3 + $0x28] sm:$0xff] }
   0x3   :  { %v296_v7 = vpack.c.bf16 %v70_v5, %v69_v3  ;;  %v299_v10 = vpack.c.bf16 %v72_v9, %v71_v8  ;;  %v73_v11 = vld [vmem:[%s505_s3 + $0x30] sm:$0xff]  ;;  %v74_v12 = vld [vmem:[%s505_s3 + $0x38] sm:$0xff]  ;;  %v75_v14 = vld [vmem:[%s505_s3 + $0x40] sm:$0xff] }
   0x4   :  { %294 = vmatpush3.bf16.msra.mxu0 %v293_v4  ;;  %324 = vmatpush3.bf16.msra.mxu1 %v293_v4  ;;  %v302_v13 = vpack.c.bf16 %v74_v12, %v73_v11  ;;  %v76_v15 = vld [vmem:[%s505_s3 + $0x48] sm:$0xff]  ;;  %v77_v17 = vld [vmem:[%s505_s3 + $0x50] sm:$0xff]  ;;  %v78_v18 = vld [vmem:[%s505_s3 + $0x58] sm:$0xff] }
   0x5   :  { %295 = vmatprep.subr.bf16.mxu0 %v335_v0  ;;  %317 = vmatprep.subr.bf16.mxu1 %v335_v0  ;;  %v305_v16 = vpack.c.bf16 %v76_v15, %v75_v14  ;;  %v308_v19 = vpack.c.bf16 %v78_v18, %v77_v17  ;;  %v17_v20 = vld [vmem:[%s506_s0] sm:$0xff]  ;;  %v22_v22 = vld [vmem:[%s506_s0 + $0x28] sm:$0xff]  ;;  %v23_v30 = vld [vmem:[%s506_s0 + $0x30] sm:$0xff] }
   0x6   :  { %v206_v21 = vld [vmem:[%s507_s1] ss:$0 sm:$0xff]  ;;  %v80_v24 = vld [vmem:[%s505_s3 + $0x68] sm:$0xff]  ;;  %v81_v31 = vld [vmem:[%s505_s3 + $0x70] sm:$0xff] }
   0x7   :  { %v79_v23 = vld [vmem:[%s505_s3 + $0x60] sm:$0xff]  ;;  %v33_v25 = vmul.f32 %v206_v21, %v17_v20  ;;  %v38_v26 = vmul.f32 %v206_v21, %v22_v22  ;;  %v18_v27 = vld [vmem:[%s506_s0 + $0x8] sm:$0xff]  ;;  %v82_v32 = vld [vmem:[%s505_s3 + $0x78] sm:$0xff]  ;;  %v39_v36 = vmul.f32 %v206_v21, %v23_v30 }
   0x8   :  { %297 = vmatpush3.bf16.msra.mxu0 %v296_v7  ;;  %325 = vmatpush3.bf16.msra.mxu1 %v296_v7  ;;  %v311_v28 = vpack.c.bf16 %v80_v24, %v79_v23  ;;  %v207_v29 = vld [vmem:[%s508_s2] ss:$0 sm:$0xff]  ;;  %v34_v33 = vmul.f32 %v206_v21, %v18_v27  ;;  %v19_v37 = vld [vmem:[%s506_s0 + $0x10] sm:$0xff]  ;;  %v314_v38 = vpack.c.bf16 %v82_v32, %v81_v31  ;;  %v24_v39 = vld [vmem:[%s506_s0 + $0x38] sm:$0xff] }
   0x9   :  { %298 = vmatprep.subr.bf16.mxu0 %v335_v0  ;;  %318 = vmatprep.subr.bf16.mxu1 %v335_v0  ;;  %v49_v34 = vadd.f32 %v207_v29, %v33_v25  ;;  %v54_v35 = vadd.f32 %v207_v29, %v38_v26  ;;  %v35_v41 = vmul.f32 %v206_v21, %v19_v37  ;;  %v20_v46 = vld [vmem:[%s506_s0 + $0x18] sm:$0xff]  ;;  %v25_v47 = vld [vmem:[%s506_s0 + $0x40] sm:$0xff] }
   0xa   :  { %v50_v40 = vadd.f32 %v207_v29, %v34_v33  ;;  %v55_v44 = vadd.f32 %v207_v29, %v39_v36  ;;  %v40_v45 = vmul.f32 %v206_v21, %v24_v39  ;;  %v36_v49 = vmul.f32 %v206_v21, %v20_v46  ;;  %v21_v54 = vld [vmem:[%s506_s0 + $0x20] sm:$0xff] }
   0xb   :  { %v58_v42 = vmax.f32 %v49_v34, 0.0  ;;  %v63_v43 = vmax.f32 %v54_v35, 0.0  ;;  %v51_v48 = vadd.f32 %v207_v29, %v35_v41  ;;  %v41_v53 = vmul.f32 %v206_v21, %v25_v47 }
   0xc   :  { %300 = vmatpush3.bf16.msra.mxu0 %v299_v10  ;;  %326 = vmatpush3.bf16.msra.mxu1 %v299_v10  ;;  %v59_v50 = vmax.f32 %v50_v40, 0.0  ;;  %v64_v51 = vmax.f32 %v55_v44, 0.0  ;;  %v56_v52 = vadd.f32 %v207_v29, %v40_v45  ;;  %v52_v55 = vadd.f32 %v207_v29, %v36_v49 }
   0xd   :  { %301 = vmatprep.subr.bf16.mxu0 %v335_v0  ;;  %319 = vmatprep.subr.bf16.mxu1 %v335_v0  ;;  %v60_v56 = vmax.f32 %v51_v48, 0.0  ;;  %v57_v58 = vadd.f32 %v207_v29, %v41_v53  ;;  %v37_v59 = vmul.f32 %v206_v21, %v21_v54 }
   0xe   :  { %v65_v57 = vmax.f32 %v56_v52, 0.0  ;;  %v61_v60 = vmax.f32 %v52_v55, 0.0 }
   0xf   :  { %v66_v61 = vmax.f32 %v57_v58, 0.0  ;;  %v53_v62 = vadd.f32 %v207_v29, %v37_v59 }
  0x10   :  { %303 = vmatpush3.bf16.msra.mxu0 %v302_v13  ;;  %327 = vmatpush3.bf16.msra.mxu1 %v302_v13 }
  0x11   :  { %304 = vmatprep.subr.bf16.mxu0 %v335_v0  ;;  %320 = vmatprep.subr.bf16.mxu1 %v335_v0  ;;  %v62_v63 = vmax.f32 %v53_v62, 0.0 }
  0x14   :  { %306 = vmatpush3.bf16.msra.mxu0 %v305_v16  ;;  %328 = vmatpush3.bf16.msra.mxu1 %v305_v16 }
  0x15   :  { %307 = vmatprep.subr.bf16.mxu0 %v335_v0  ;;  %321 = vmatprep.subr.bf16.mxu1 %v335_v0 }
  0x18   :  { %309 = vmatpush3.bf16.msra.mxu0 %v308_v19  ;;  %329 = vmatpush3.bf16.msra.mxu1 %v308_v19 }
  0x19   :  { %310 = vmatprep.subr.bf16.mxu0 %v335_v0  ;;  %322 = vmatprep.subr.bf16.mxu1 %v335_v0 }
  0x1c   :  { %312 = vmatpush3.bf16.msra.mxu0 %v311_v28  ;;  %330 = vmatpush3.bf16.msra.mxu1 %v311_v28 }
  0x1d   :  { %313 = vmatprep.subr.bf16.mxu0 %v335_v0  ;;  %323 = vmatprep.subr.bf16.mxu1 %v335_v0 }
  0x20   :  { %315 = vmatpush3.bf16.msra.mxu0 %v314_v38  ;;  %331 = vmatpush3.bf16.msra.mxu1 %v314_v38 }
  0x23   :  { %266 = vmatmul.mubr.f32.vlgmr.msra.gmra.mrb[0].mxu0 %v58_v42  ;;  %281 = vmatmul.mubr.f32.vlgmr.msra.gmra.mrb[0].mxu1 %v63_v43 }
  0x24   :  { %268 = vmatprep.mubr.msk.f32.mxu0 %vm336_vm0, %v337_v6  ;;  %283 = vmatprep.mubr.msk.f32.mxu1 %vm336_vm0, %v337_v6 }
  0x27   :  { %269 = vmatmul.mubr.f32.gmra.mrb[2].mxu0 %v59_v50  ;;  %284 = vmatmul.mubr.f32.gmra.mrb[2].mxu1 %v64_v51 }
  0x28   :  { %271 = vmatprep.mubr.msk.f32.mxu0 %vm336_vm0, %v337_v6  ;;  %286 = vmatprep.mubr.msk.f32.mxu1 %vm336_vm0, %v337_v6 }
  0x2b   :  { %272 = vmatmul.mubr.f32.gmra.mrb[4].mxu0 %v60_v56  ;;  %287 = vmatmul.mubr.f32.gmra.mrb[4].mxu1 %v65_v57 }
  0x2c   :  { %274 = vmatprep.mubr.msk.f32.mxu0 %vm336_vm0, %v337_v6  ;;  %289 = vmatprep.mubr.msk.f32.mxu1 %vm336_vm0, %v337_v6 }
  0x2f   :  { %275 = vmatmul.mubr.f32.gmra.mrb[6].mxu0 %v61_v60  ;;  %290 = vmatmul.mubr.f32.gmra.mrb[6].mxu1 %v66_v61 }
  0x30   :  { %277 = vmatprep.mubr.msk.f32.mxu0 %vm336_vm0, %v337_v6 }
  0x33   :  { %278 = vmatmul.mubr.f32.gmra.mrb[8].mxu0 %v62_v63 }
  0xf6   :  { %v149_v0 = vpop.f32.mrb[0].mxu0  ;;  %v174_v1 = vpop.f32.mrb[0].mxu1 }
  0xf7   :  { %193 = vst [vmem:[%s509_s4] sm:$0xff] %v149_v0  ;;  %v267_v2 = vpop.f32.mrb[1].mxu0  ;;  %198 = vst [vmem:[%s509_s4 + $0x28] sm:$0xff] %v174_v1  ;;  %v282_v3 = vpop.f32.mrb[1].mxu1 }
  0xfa   :  { %v154_v4 = vpop.f32.mrb[2].mxu0  ;;  %v179_v5 = vpop.f32.mrb[2].mxu1 }
  0xfb   :  { %194 = vst [vmem:[%s509_s4 + $0x8] sm:$0xff] %v154_v4  ;;  %v270_v6 = vpop.f32.mrb[3].mxu0  ;;  %199 = vst [vmem:[%s509_s4 + $0x30] sm:$0xff] %v179_v5  ;;  %v285_v7 = vpop.f32.mrb[3].mxu1 }
  0xfe   :  { %v159_v8 = vpop.f32.mrb[4].mxu0  ;;  %v184_v9 = vpop.f32.mrb[4].mxu1 }
  0xff   :  { %195 = vst [vmem:[%s509_s4 + $0x10] sm:$0xff] %v159_v8  ;;  %v273_v10 = vpop.f32.mrb[5].mxu0  ;;  %200 = vst [vmem:[%s509_s4 + $0x38] sm:$0xff] %v184_v9  ;;  %v288_v11 = vpop.f32.mrb[5].mxu1 }
 0x102   :  { %v164_v12 = vpop.f32.mrb[6].mxu0  ;;  %v189_v13 = vpop.f32.mrb[6].mxu1 }
 0x103   :  { %196 = vst [vmem:[%s509_s4 + $0x18] sm:$0xff] %v164_v12  ;;  %v276_v14 = vpop.f32.mrb[7].mxu0  ;;  %201 = vst [vmem:[%s509_s4 + $0x40] sm:$0xff] %v189_v13  ;;  %v291_v15 = vpop.f32.mrb[7].mxu1 }
 0x106   :  { %v169_v16 = vpop.f32.mrb[8].mxu0 }
 0x107   :  { %197 = vst [vmem:[%s509_s4 + $0x20] sm:$0xff] %v169_v16  ;;  %v279_v17 = vpop.f32.mrb[9].mxu0 }

// kernel: vision_dqn_dense_forward.71
= control target key start
LH: loop header
LB: loop body
LE: loop exit
PB: predicated region body
PF: predicated region fallthrough
CT: control target
= control target key end

     0   :  { %v3009_v0 = vmov 0.0|0.0   ;;  %vm3010_vm0 = vmmov 0   ;;  %v3011_v4 = vmov 0.0   ;;  %v3012_v7 = vmov 0   ;;  %s4006_s4 = inlined_call_operand.vmem [shape: f32[128,128], index: 4, kind: input, shape index: {}]   ;;  %s4007_s1 = inlined_call_operand.vmem [shape: f32[72,1], index: 1, kind: input, shape index: {}]   ;;  %s4008_s7 = inlined_call_operand.vmem [shape: f32[9,128,128], index: 7, kind: input, shape index: {}]   ;;  %s4009_s0 = inlined_call_operand.vmem [shape: f32[72,128], index: 0, kind: input, shape index: {}, may-alias: {0,8}]   ;;  %s4010_s2 = inlined_call_operand.vmem [shape: f32[1,128], index: 2, kind: input, shape index: {}]   ;;  %s4011_s3 = inlined_call_operand.vmem [shape: f32[1,128], index: 3, kind: input, shape index: {}]   ;;  %s4012_s5 = inlined_call_operand.vmem [shape: f32[1,128], index: 5, kind: input, shape index: {}]   ;;  %s4013_s6 = inlined_call_operand.vmem [shape: f32[1,128], index: 6, kind: input, shape index: {}]   ;;  %s4014_s8 = inlined_call_operand.vmem [shape: f32[72,128], index: 8, kind: output, shape index: {}, may-alias: {0,8}]  }
   0x1   :  { %2618 = vmatprep.subr.bf16.mxu0 %v3009_v0  ;;  %v88_v1 = vld [vmem:[%s4006_s4] sm:$0xff]  ;;  %v89_v2 = vld [vmem:[%s4006_s4 + $0x8] sm:$0xff]  ;;  %v90_v3 = vld [vmem:[%s4006_s4 + $0x10] sm:$0xff]  ;;  %2060 = vmatprep.mubr.msk.f32.mxu0 %vm3010_vm0, %v3011_v4  ;;  %309 = vst [vmem:[#allocation2] sm:$0xff] %v3011_v4 }
   0x2   :  { %319 = vst [vmem:[#allocation2 + $0x50] sm:$0xff] %v3011_v4  ;;  %v2619_v5 = vpack.c.bf16 %v89_v2, %v88_v1  ;;  %v91_v6 = vld [vmem:[%s4006_s4 + $0x18] sm:$0xff]  ;;  %2997 = vset.pattern.permute.xlu0 %v3012_v7  ;;  %2998 = vset.pattern.permute.xlu1 %v3012_v7  ;;  %v92_v9 = vld [vmem:[%s4006_s4 + $0x20] sm:$0xff]  ;;  %v93_v10 = vld [vmem:[%s4006_s4 + $0x28] sm:$0xff] }
   0x3   :  { %2738 = vmatprep.subr.bf16.mxu1 %v3009_v0  ;;  %2355 = vmatprep.mubr.msk.f32.mxu1 %vm3010_vm0, %v3011_v4  ;;  %v2622_v8 = vpack.c.bf16 %v91_v6, %v90_v3  ;;  %v2625_v11 = vpack.c.bf16 %v93_v10, %v92_v9  ;;  %v94_v12 = vld [vmem:[%s4006_s4 + $0x30] sm:$0xff]  ;;  %v95_v13 = vld [vmem:[%s4006_s4 + $0x38] sm:$0xff]  ;;  %v38_v14 = vld [vmem:[%s4007_s1] sm:$0xff] }
   0x4   :  { %2620 = vmatpush3.bf16.msra.mxu0 %v2619_v5  ;;  %257 = vperm.xlu0 %2997, %v38_v14   ;;  %v40_v15 = vld [vmem:[%s4007_s1 + $0x10] sm:$0xff]  ;;  %v2628_v16 = vpack.c.bf16 %v95_v13, %v94_v12  ;;  %v96_v17 = vld [vmem:[%s4006_s4 + $0x40] sm:$0xff]  ;;  %v97_v18 = vld [vmem:[%s4006_s4 + $0x48] sm:$0xff] }
   0x5   :  { %2621 = vmatprep.subr.bf16.mxu0 %v3009_v0  ;;  %v39_v19 = vld [vmem:[%s4007_s1 + $0x8] sm:$0xff]  ;;  %267 = vperm.xlu1 %2998, %v40_v15   ;;  %v41_v20 = vld [vmem:[%s4007_s1 + $0x18] sm:$0xff]  ;;  %v1698_v21 = vld [vmem:[%s4008_s7 + $0x200] sm:$0xff]  ;;  %v2631_v26 = vpack.c.bf16 %v97_v18, %v96_v17 }
   0x6   :  { %v1699_v22 = vld [vmem:[%s4008_s7 + $0x208] sm:$0xff]  ;;  %v1700_v24 = vld [vmem:[%s4008_s7 + $0x210] sm:$0xff]  ;;  %v1701_v25 = vld [vmem:[%s4008_s7 + $0x218] sm:$0xff] }
   0x7   :  { %v2739_v23 = vpack.c.bf16 %v1699_v22, %v1698_v21  ;;  %v42_v27 = vld [vmem:[%s4007_s1 + $0x20] sm:$0xff]  ;;  %v98_v28 = vld [vmem:[%s4006_s4 + $0x50] sm:$0xff]  ;;  %v99_v29 = vld [vmem:[%s4006_s4 + $0x58] sm:$0xff]  ;;  %v2742_v31 = vpack.c.bf16 %v1701_v25, %v1700_v24 }
   0x8   :  { %2623 = vmatpush3.bf16.msra.mxu0 %v2622_v8  ;;  %262 = vperm.xlu0 %2997, %v39_v19   ;;  %v43_v30 = vld [vmem:[%s4007_s1 + $0x28] sm:$0xff]  ;;  %v1702_v32 = vld [vmem:[%s4008_s7 + $0x220] sm:$0xff]  ;;  %v2634_v34 = vpack.c.bf16 %v99_v29, %v98_v28  ;;  %v44_v37 = vld [vmem:[%s4007_s1 + $0x30] sm:$0xff] }
   0x9   :  { %2624 = vmatprep.subr.bf16.mxu0 %v3009_v0  ;;  %272 = vperm.xlu1 %2998, %v41_v20   ;;  %v1703_v33 = vld [vmem:[%s4008_s7 + $0x228] sm:$0xff]  ;;  %v29_v35 = vld [vmem:[%s4009_s0] sm:$0xff]  ;;  %v45_v40 = vld [vmem:[%s4007_s1 + $0x38] sm:$0xff] }
   0xa   :  { %2740 = vmatpush3.bf16.msra.mxu1 %v2739_v23  ;;  %v3149_v36 = vld [vmem:[%s4010_s2] ss:$0 sm:$0xff]  ;;  %v101_v39 = vld [vmem:[%s4006_s4 + $0x68] sm:$0xff]  ;;  %v2745_v41 = vpack.c.bf16 %v1703_v33, %v1702_v32  ;;  %v1704_v42 = vld [vmem:[%s4008_s7 + $0x230] sm:$0xff] }
   0xb   :  { %2741 = vmatprep.subr.bf16.mxu1 %v3009_v0  ;;  %v100_v38 = vld [vmem:[%s4006_s4 + $0x60] sm:$0xff]  ;;  %v1705_v43 = vld [vmem:[%s4008_s7 + $0x238] sm:$0xff]  ;;  %v54_v44 = vmul.f32 %v3149_v36, %v29_v35  ;;  %v30_v47 = vld [vmem:[%s4009_s0 + $0x8] sm:$0xff] }
   0xc   :  { %2626 = vmatpush3.bf16.msra.mxu0 %v2625_v11  ;;  %277 = vperm.xlu0 %2997, %v42_v27   ;;  %v2637_v45 = vpack.c.bf16 %v101_v39, %v100_v38  ;;  %v3175_v46 = vld [vmem:[%s4011_s3] ss:$0 sm:$0xff]  ;;  %v102_v49 = vld [vmem:[%s4006_s4 + $0x70] sm:$0xff]  ;;  %v103_v50 = vld [vmem:[%s4006_s4 + $0x78] sm:$0xff]  ;;  %v2748_v51 = vpack.c.bf16 %v1705_v43, %v1704_v42  ;;  %v55_v53 = vmul.f32 %v3149_v36, %v30_v47 }
   0xd   :  { %2627 = vmatprep.subr.bf16.mxu0 %v3009_v0  ;;  %282 = vperm.xlu1 %2998, %v43_v30   ;;  %v46_v48 = vld [vmem:[%s4007_s1 + $0x40] sm:$0xff]  ;;  %v70_v52 = vadd.f32 %v3175_v46, %v54_v44  ;;  %v2640_v54 = vpack.c.bf16 %v103_v50, %v102_v49  ;;  %v31_v55 = vld [vmem:[%s4009_s0 + $0x10] sm:$0xff]  ;;  %v1651_v57 = vld [vmem:[%s4008_s7 + $0x88] sm:$0xff] }
   0xe   :  { %2743 = vmatpush3.bf16.msra.mxu1 %v2742_v31  ;;  %v1650_v56 = vld [vmem:[%s4008_s7 + $0x80] sm:$0xff]  ;;  %v71_v59 = vadd.f32 %v3175_v46, %v55_v53  ;;  %v56_v60 = vmul.f32 %v3149_v36, %v31_v55  ;;  %v32_v61 = vld [vmem:[%s4009_s0 + $0x18] sm:$0xff]  ;;  %v1652_v63 = vld [vmem:[%s4008_s7 + $0x90] sm:$0xff] }
   0xf   :  { %2744 = vmatprep.subr.bf16.mxu1 %v3009_v0  ;;  %v79_v58 = vmax.f32 %v70_v52, 0.0  ;;  %v2643_v62 = vpack.c.bf16 %v1651_v57, %v1650_v56  ;;  %v1653_v1 = vld [vmem:[%s4008_s7 + $0x98] sm:$0xff]  ;;  %v57_v5 = vmul.f32 %v3149_v36, %v32_v61  ;;  %v33_v6 = vld [vmem:[%s4009_s0 + $0x20] sm:$0xff]  ;;  %v1655_v9 = vld [vmem:[%s4008_s7 + $0xa8] sm:$0xff] }
  0x10   :  { %2629 = vmatpush3.bf16.msra.mxu0 %v2628_v16  ;;  %287 = vperm.xlu0 %2997, %v44_v37   ;;  %v80_v2 = vmax.f32 %v71_v59, 0.0  ;;  %v72_v3 = vadd.f32 %v3175_v46, %v56_v60  ;;  %v2646_v7 = vpack.c.bf16 %v1653_v1, %v1652_v63  ;;  %v1654_v8 = vld [vmem:[%s4008_s7 + $0xa0] sm:$0xff]  ;;  %v58_v12 = vmul.f32 %v3149_v36, %v33_v6  ;;  %v34_v13 = vld [vmem:[%s4009_s0 + $0x28] sm:$0xff]  ;;  %v1656_v15 = vld [vmem:[%s4008_s7 + $0xb0] sm:$0xff] }
  0x11   :  { %2630 = vmatprep.subr.bf16.mxu0 %v3009_v0  ;;  %292 = vperm.xlu1 %2998, %v45_v40   ;;  %v73_v11 = vadd.f32 %v3175_v46, %v57_v5  ;;  %v2649_v14 = vpack.c.bf16 %v1655_v9, %v1654_v8  ;;  %v1657_v16 = vld [vmem:[%s4008_s7 + $0xb8] sm:$0xff]  ;;  %v59_v19 = vmul.f32 %v3149_v36, %v34_v13  ;;  %v35_v20 = vld [vmem:[%s4009_s0 + $0x30] sm:$0xff]  ;;  %v37_v29 = vld [vmem:[%s4009_s0 + $0x40] sm:$0xff] }
  0x12   :  { %2746 = vmatpush3.bf16.msra.mxu1 %v2745_v41  ;;  %v81_v10 = vmax.f32 %v72_v3, 0.0  ;;  %v74_v18 = vadd.f32 %v3175_v46, %v58_v12  ;;  %v2652_v21 = vpack.c.bf16 %v1657_v16, %v1656_v15  ;;  %v60_v24 = vmul.f32 %v3149_v36, %v35_v20  ;;  %v36_v25 = vld [vmem:[%s4009_s0 + $0x38] sm:$0xff]  ;;  %v1707_v37 = vld [vmem:[%s4008_s7 + $0x248] sm:$0xff]  ;;  %v1708_v39 = vld [vmem:[%s4008_s7 + $0x250] sm:$0xff] }
  0x13   :  { %2747 = vmatprep.subr.bf16.mxu1 %v3009_v0  ;;  %v82_v17 = vmax.f32 %v73_v11, 0.0  ;;  %v75_v23 = vadd.f32 %v3175_v46, %v59_v19  ;;  %v61_v28 = vmul.f32 %v3149_v36, %v36_v25  ;;  %v62_v32 = vmul.f32 %v3149_v36, %v37_v29  ;;  %v1706_v36 = vld [vmem:[%s4008_s7 + $0x240] sm:$0xff]  ;;  %v1709_v40 = vld [vmem:[%s4008_s7 + $0x258] sm:$0xff]  ;;  %v1659_v43 = vld [vmem:[%s4008_s7 + $0xc8] sm:$0xff] }
  0x14   :  { %2632 = vmatpush3.bf16.msra.mxu0 %v2631_v26  ;;  %297 = vperm.xlu0 %2997, %v46_v48   ;;  %v83_v22 = vmax.f32 %v74_v18, 0.0  ;;  %v76_v27 = vadd.f32 %v3175_v46, %v60_v24  ;;  %v2751_v38 = vpack.c.bf16 %v1707_v37, %v1706_v36  ;;  %v2754_v41 = vpack.c.bf16 %v1709_v40, %v1708_v39  ;;  %v1658_v42 = vld [vmem:[%s4008_s7 + $0xc0] sm:$0xff]  ;;  %v1660_v48 = vld [vmem:[%s4008_s7 + $0xd0] sm:$0xff]  ;;  %v1661_v49 = vld [vmem:[%s4008_s7 + $0xd8] sm:$0xff] }
  0x15   :  { %2633 = vmatprep.subr.bf16.mxu0 %v3009_v0  ;;  %v84_v26 = vmax.f32 %v75_v23, 0.0  ;;  %v77_v31 = vadd.f32 %v3175_v46, %v61_v28  ;;  %v1710_v44 = vld [vmem:[%s4008_s7 + $0x260] sm:$0xff]  ;;  %v1712_v50 = vld [vmem:[%s4008_s7 + $0x270] sm:$0xff]  ;;  %v1713_v52 = vld [vmem:[%s4008_s7 + $0x278] sm:$0xff] }
  0x16   :  { %2749 = vmatpush3.bf16.msra.mxu1 %v2748_v51  ;;  %v85_v30 = vmax.f32 %v76_v27, 0.0  ;;  %v2658_v51 = vpack.c.bf16 %v1661_v49, %v1660_v48  ;;  %v2760_v53 = vpack.c.bf16 %v1713_v52, %v1712_v50  ;;  %v1663_v55 = vld [vmem:[%s4008_s7 + $0xe8] sm:$0xff]  ;;  %v1664_v57 = vld [vmem:[%s4008_s7 + $0xf0] sm:$0xff]  ;;  %v3337_v60 = vld [vmem:[%s4012_s5] ss:$0 sm:$0xff] }
  0x17   :  { %2750 = vmatprep.subr.bf16.mxu1 %v3009_v0  ;;  %v86_v33 = vmax.f32 %v77_v31, 0.0  ;;  %v1714_v3 = vld [vmem:[%s4008_s7 + $0x280] sm:$0xff]  ;;  %v1715_v5 = vld [vmem:[%s4008_s7 + $0x288] sm:$0xff]  ;;  %v1717_v15 = vld [vmem:[%s4008_s7 + $0x298] sm:$0xff] }
  0x18   :  { %2635 = vmatpush3.bf16.msra.mxu0 %v2634_v34  ;;  %v78_v34 = vadd.f32 %v3175_v46, %v62_v32  ;;  %v1711_v46 = vld [vmem:[%s4008_s7 + $0x268] sm:$0xff]  ;;  %v2763_v11 = vpack.c.bf16 %v1715_v5, %v1714_v3  ;;  %v338_v24 = vld [vmem:[%s4008_s7] sm:$0xff]  ;;  %v340_v36 = vld [vmem:[%s4008_s7 + $0x10] sm:$0xff] }
  0x19   :  { %2636 = vmatprep.subr.bf16.mxu0 %v3009_v0  ;;  %v2757_v47 = vpack.c.bf16 %v1711_v46, %v1710_v44  ;;  %v339_v25 = vld [vmem:[%s4008_s7 + $0x8] sm:$0xff]  ;;  %v1718_v28 = vld [vmem:[%s4008_s7 + $0x2a0] sm:$0xff]  ;;  %v341_v37 = vld [vmem:[%s4008_s7 + $0x18] sm:$0xff] }
  0x1a   :  { %v87_v35 = vmax.f32 %v78_v34, 0.0  ;;  %2752 = vmatpush3.bf16.msra.mxu1 %v2751_v38  ;;  %v1719_v29 = vld [vmem:[%s4008_s7 + $0x2a8] sm:$0xff]  ;;  %v342_v50 = vld [vmem:[%s4008_s7 + $0x20] sm:$0xff]  ;;  %v344_v3 = vld [vmem:[%s4008_s7 + $0x30] sm:$0xff] }
  0x1b   :  { %2753 = vmatprep.subr.bf16.mxu1 %v3009_v0  ;;  %v2769_v38 = vpack.c.bf16 %v1719_v29, %v1718_v28  ;;  %v345_v5 = vld [vmem:[%s4008_s7 + $0x38] sm:$0xff]  ;;  %v1726_v29 = vld [vmem:[%s4008_s7 + $0x2e0] sm:$0xff] }
  0x1c   :  { %2638 = vmatpush3.bf16.msra.mxu0 %v2637_v45  ;;  %v2655_v45 = vpack.c.bf16 %v1659_v43, %v1658_v42  ;;  %v1721_v42 = vld [vmem:[%s4008_s7 + $0x2b8] sm:$0xff] }
  0x1d   :  { %2639 = vmatprep.subr.bf16.mxu0 %v3009_v0 }
  0x1e   :  { %2755 = vmatpush3.bf16.msra.mxu1 %v2754_v41  ;;  %v1720_v41 = vld [vmem:[%s4008_s7 + $0x2b0] sm:$0xff] }
  0x1f   :  { %2756 = vmatprep.subr.bf16.mxu1 %v3009_v0  ;;  %v2772_v52 = vpack.c.bf16 %v1721_v42, %v1720_v41 }
  0x20   :  { %2641 = vmatpush3.bf16.msra.mxu0 %v2640_v54  ;;  %v1662_v54 = vld [vmem:[%s4008_s7 + $0xe0] sm:$0xff] }
  0x21   :  { %2642 = vmatprep.subr.bf16.mxu0 %v3009_v0  ;;  %v2661_v56 = vpack.c.bf16 %v1663_v55, %v1662_v54  ;;  %v1722_v55 = vld [vmem:[%s4008_s7 + $0x2c0] sm:$0xff] }
  0x22   :  { %2758 = vmatpush3.bf16.msra.mxu1 %v2757_v47  ;;  %v2670_v47 = vpack.c.bf16 %v341_v37, %v340_v36  ;;  %v349_v36 = vld [vmem:[%s4008_s7 + $0x58] sm:$0xff] }
  0x23   :  { %2061 = vmatmul.mubr.f32.vlgmr.msra.gmra.mrb[0].mxu0 %v79_v58  ;;  %2759 = vmatprep.subr.bf16.mxu1 %v3009_v0  ;;  %v1665_v58 = vld [vmem:[%s4008_s7 + $0xf8] sm:$0xff] }
  0x24   :  { %2063 = vmatprep.mubr.msk.f32.mxu0 %vm3010_vm0, %v3011_v4  ;;  %2644 = vmatpush3.bf16.msra.mxu0 %v2643_v62  ;;  %v2664_v59 = vpack.c.bf16 %v1665_v58, %v1664_v57  ;;  %v3342_v62 = vld [vmem:[%s4013_s6] ss:$0 sm:$0xff] }
  0x25   :  { %2645 = vmatprep.subr.bf16.mxu0 %v3009_v0 }
  0x26   :  { %2761 = vmatpush3.bf16.msra.mxu1 %v2760_v53 }
  0x27   :  { %2064 = vmatmul.mubr.f32.gmra.mrb[2].mxu0 %v80_v2  ;;  %2762 = vmatprep.subr.bf16.mxu1 %v3009_v0 }
  0x28   :  { %2066 = vmatprep.mubr.msk.f32.mxu0 %vm3010_vm0, %v3011_v4  ;;  %2647 = vmatpush3.bf16.msra.mxu0 %v2646_v7 }
  0x29   :  { %2648 = vmatprep.subr.bf16.mxu0 %v3009_v0 }
  0x2b   :  { %2067 = vmatmul.mubr.f32.gmra.mrb[4].mxu0 %v81_v10 }
  0x2c   :  { %2069 = vmatprep.mubr.msk.f32.mxu0 %vm3010_vm0, %v3011_v4  ;;  %2650 = vmatpush3.bf16.msra.mxu0 %v2649_v14  ;;  %v1716_v14 = vld [vmem:[%s4008_s7 + $0x290] sm:$0xff] }
  0x2d   :  { %2651 = vmatprep.subr.bf16.mxu0 %v3009_v0 }
  0x2f   :  { %2070 = vmatmul.mubr.f32.gmra.mrb[6].mxu0 %v82_v17 }
  0x30   :  { %2072 = vmatprep.mubr.msk.f32.mxu0 %vm3010_vm0, %v3011_v4  ;;  %2653 = vmatpush3.bf16.msra.mxu0 %v2652_v21  ;;  %v2766_v21 = vpack.c.bf16 %v1717_v15, %v1716_v14  ;;  %v1725_v14 = vld [vmem:[%s4008_s7 + $0x2d8] sm:$0xff] }
  0x31   :  { %2654 = vmatprep.subr.bf16.mxu0 %v3009_v0 }
  0x33   :  { %2073 = vmatmul.mubr.f32.gmra.mrb[8].mxu0 %v83_v22 }
  0x34   :  { %2075 = vmatprep.mubr.msk.f32.mxu0 %vm3010_vm0, %v3011_v4  ;;  %2656 = vmatpush3.bf16.msra.mxu0 %v2655_v45 }
  0x35   :  { %2657 = vmatprep.subr.bf16.mxu0 %v3009_v0 }
  0x37   :  { %2076 = vmatmul.mubr.f32.gmra.mrb[10].mxu0 %v84_v26 }
  0x38   :  { %2078 = vmatprep.mubr.msk.f32.mxu0 %vm3010_vm0, %v3011_v4  ;;  %2659 = vmatpush3.bf16.msra.mxu0 %v2658_v51  ;;  %v343_v51 = vld [vmem:[%s4008_s7 + $0x28] sm:$0xff] }
  0x39   :  { %2660 = vmatprep.subr.bf16.mxu0 %v3009_v0 }
  0x3b   :  { %2079 = vmatmul.mubr.f32.gmra.mrb[12].mxu0 %v85_v30 }
  0x3c   :  { %2081 = vmatprep.mubr.msk.f32.mxu0 %vm3010_vm0, %v3011_v4  ;;  %2662 = vmatpush3.bf16.msra.mxu0 %v2661_v56  ;;  %v1723_v56 = vld [vmem:[%s4008_s7 + $0x2c8] sm:$0xff] }
  0x3d   :  { %2663 = vmatprep.subr.bf16.mxu0 %v3009_v0 }
  0x3f   :  { %2082 = vmatmul.mubr.f32.gmra.mrb[14].mxu0 %v86_v33  ;;  %v2667_v33 = vpack.c.bf16 %v339_v25, %v338_v24 }
  0x40   :  { %2084 = vmatprep.mubr.msk.f32.mxu0 %vm3010_vm0, %v3011_v4  ;;  %2665 = vmatpush3.bf16.msra.mxu0 %v2664_v59 }
  0x41   :  { %2666 = vmatprep.subr.bf16.mxu0 %v3009_v0 }
  0x43   :  { %2085 = vmatmul.mubr.f32.gmra.mrb[16].mxu0 %v87_v35 }
  0x44   :  { %2119 = vmatprep.mubr.msk.f32.mxu0 %vm3010_vm0, %v3011_v4 }
  0x83   :  { %v3352_v6 = vpop.permute.xlu0 %257 }
  0x84   :  { %v3377_v26 = vpop.permute.xlu1 %267 }
  0x87   :  { %v3364_v20 = vpop.permute.xlu0 %262 }
  0x88   :  { %v3404_v46 = vpop.permute.xlu1 %272 }
  0x8c   :  { %v3450_v15 = vpop.permute.xlu1 %282 }
  0xf6   :  { %v170_v61 = vpop.f32.mrb[0].mxu0 }
  0xf7   :  { %v221_v63 = vmul.f32 %v3337_v60, %v170_v61  ;;  %v2062_v1 = vpop.f32.mrb[1].mxu0  ;;  %v3427_v61 = vpop.permute.xlu0 %277 }
  0xf9   :  { %v237_v2 = vadd.f32 %v3342_v62, %v221_v63  ;;  %v2673_v63 = vpack.c.bf16 %v343_v51, %v342_v50  ;;  %v1729_v50 = vld [vmem:[%s4008_s7 + $0x2f8] sm:$0xff] }
  0xfa   :  { %v175_v7 = vpop.f32.mrb[2].mxu0 }
  0xfb   :  { %v246_v8 = vmax.f32 %v237_v2, 0.0  ;;  %v222_v9 = vmul.f32 %v3337_v60, %v175_v7  ;;  %v2065_v10 = vpop.f32.mrb[3].mxu0  ;;  %v2775_v7 = vpack.c.bf16 %v1723_v56, %v1722_v55  ;;  %v352_v56 = vld [vmem:[%s4008_s7 + $0x70] sm:$0xff] }
  0xfd   :  { %v300_v12 = vmul.f32 %v3352_v6, %v246_v8  ;;  %v238_v13 = vadd.f32 %v3342_v62, %v222_v9 }
  0xfe   :  { %v180_v16 = vpop.f32.mrb[4].mxu0 }
  0xff   :  { %320 = vst [vmem:[#allocation2 + $0x8] sm:$0xff] %v300_v12  ;;  %v247_v17 = vmax.f32 %v238_v13, 0.0  ;;  %v223_v18 = vmul.f32 %v3337_v60, %v180_v16  ;;  %v2068_v19 = vpop.f32.mrb[5].mxu0  ;;  %2356 = vmatmul.mubr.f32.vlgmr.msra.gmra.mrb[0].mxu1 %v300_v12  ;;  %v1724_v13 = vld [vmem:[%s4008_s7 + $0x2d0] sm:$0xff]  ;;  %v2676_v16 = vpack.c.bf16 %v345_v5, %v344_v3 }
 0x100   :  { %2764 = vmatpush3.bf16.msra.mxu1 %v2763_v11  ;;  %2358 = vmatprep.mubr.msk.f32.mxu1 %vm3010_vm0, %v3011_v4  ;;  %v346_v19 = vld [vmem:[%s4008_s7 + $0x40] sm:$0xff]  ;;  %v2778_v24 = vpack.c.bf16 %v1725_v14, %v1724_v13  ;;  %v1732_v5 = vld [vmem:[%s4008_s7 + $0x310] sm:$0xff]  ;;  %v1735_v14 = vld [vmem:[%s4008_s7 + $0x328] sm:$0xff] }
 0x101   :  { %v301_v22 = vmul.f32 %v3364_v20, %v247_v17  ;;  %v239_v23 = vadd.f32 %v3342_v62, %v223_v18  ;;  %2765 = vmatprep.subr.bf16.mxu1 %v3009_v0  ;;  %v1734_v13 = vld [vmem:[%s4008_s7 + $0x320] sm:$0xff] }
 0x102   :  { %v185_v27 = vpop.f32.mrb[6].mxu0 }
 0x103   :  { %321 = vst [vmem:[#allocation2 + $0x10] sm:$0xff] %v301_v22  ;;  %v248_v30 = vmax.f32 %v239_v23, 0.0  ;;  %v224_v31 = vmul.f32 %v3337_v60, %v185_v27  ;;  %v2071_v32 = vpop.f32.mrb[7].mxu0  ;;  %2359 = vmatmul.mubr.f32.gmra.mrb[2].mxu1 %v301_v22 }
 0x104   :  { %2767 = vmatpush3.bf16.msra.mxu1 %v2766_v21  ;;  %2361 = vmatprep.mubr.msk.f32.mxu1 %vm3010_vm0, %v3011_v4  ;;  %v347_v21 = vld [vmem:[%s4008_s7 + $0x48] sm:$0xff] }
 0x105   :  { %v302_v34 = vmul.f32 %v3377_v26, %v248_v30  ;;  %v240_v35 = vadd.f32 %v3342_v62, %v224_v31  ;;  %2768 = vmatprep.subr.bf16.mxu1 %v3009_v0  ;;  %v1727_v30 = vld [vmem:[%s4008_s7 + $0x2e8] sm:$0xff]  ;;  %v3473_v31 = vpop.permute.xlu0 %287  ;;  %v2679_v32 = vpack.c.bf16 %v347_v21, %v346_v19  ;;  %v1669_v19 = vld [vmem:[%s4008_s7 + $0x118] sm:$0xff] }
 0x106   :  { %v190_v39 = vpop.f32.mrb[8].mxu0  ;;  %v354_v40 = vld [vmem:[#allocation2 + $0x2] sm:$0xff] }
 0x107   :  { %322 = vst [vmem:[#allocation2 + $0x18] sm:$0xff] %v302_v34  ;;  %v249_v43 = vmax.f32 %v240_v35, 0.0  ;;  %v225_v44 = vmul.f32 %v3337_v60, %v190_v39  ;;  %v2074_v45 = vpop.f32.mrb[9].mxu0  ;;  %2120 = vmatmul.mubr.f32.vlgmr.msra.gmra.mrb[18].mxu0 %v354_v40  ;;  %2362 = vmatmul.mubr.f32.gmra.mrb[4].mxu1 %v302_v34  ;;  %v348_v35 = vld [vmem:[%s4008_s7 + $0x50] sm:$0xff]  ;;  %v2781_v39 = vpack.c.bf16 %v1727_v30, %v1726_v29  ;;  %v329_v21 = vld [vmem:[#allocation2 + $0x1] sm:$0xff] }
 0x108   :  { %2122 = vmatprep.mubr.msk.f32.mxu0 %vm3010_vm0, %v3011_v4  ;;  %2668 = vmatpush3.bf16.msra.mxu0 %v2667_v33  ;;  %v1671_v29 = vld [vmem:[%s4008_s7 + $0x128] sm:$0xff] }
 0x109   :  { %v303_v48 = vmul.f32 %v3404_v46, %v249_v43  ;;  %v241_v49 = vadd.f32 %v3342_v62, %v225_v44  ;;  %2669 = vmatprep.subr.bf16.mxu0 %v3009_v0  ;;  %2770 = vmatpush3.bf16.msra.mxu1 %v2769_v38  ;;  %v3489_v43 = vpop.permute.xlu1 %292  ;;  %v2682_v44 = vpack.c.bf16 %v349_v36, %v348_v35  ;;  %v1672_v36 = vld [vmem:[%s4008_s7 + $0x130] sm:$0xff] }
 0x10a   :  { %v195_v53 = vpop.f32.mrb[10].mxu0  ;;  %v355_v54 = vld [vmem:[#allocation2 + $0xa] sm:$0xff]  ;;  %2364 = vmatprep.mubr.msk.f32.mxu1 %vm3010_vm0, %v3011_v4  ;;  %2771 = vmatprep.subr.bf16.mxu1 %v3009_v0 }
 0x10b   :  { %323 = vst [vmem:[#allocation2 + $0x20] sm:$0xff] %v303_v48  ;;  %v250_v57 = vmax.f32 %v241_v49, 0.0  ;;  %v226_v58 = vmul.f32 %v3337_v60, %v195_v53  ;;  %v2077_v59 = vpop.f32.mrb[11].mxu0  ;;  %2123 = vmatmul.mubr.f32.gmra.mrb[20].mxu0 %v355_v54  ;;  %2365 = vmatmul.mubr.f32.gmra.mrb[6].mxu1 %v303_v48  ;;  %v351_v48 = vld [vmem:[%s4008_s7 + $0x68] sm:$0xff] }
 0x10c   :  { %2125 = vmatprep.mubr.msk.f32.mxu0 %vm3010_vm0, %v3011_v4  ;;  %2671 = vmatpush3.bf16.msra.mxu0 %v2670_v47  ;;  %v1730_v59 = vld [vmem:[%s4008_s7 + $0x300] sm:$0xff] }
 0x10d   :  { %v304_v1 = vmul.f32 %v3427_v61, %v250_v57  ;;  %v242_v2 = vadd.f32 %v3342_v62, %v226_v58  ;;  %2672 = vmatprep.subr.bf16.mxu0 %v3009_v0  ;;  %2773 = vmatpush3.bf16.msra.mxu1 %v2772_v52  ;;  %v3511_v52 = vpop.permute.xlu0 %297  ;;  %v353_v57 = vld [vmem:[%s4008_s7 + $0x78] sm:$0xff] }
 0x10e   :  { %v200_v8 = vpop.f32.mrb[12].mxu0  ;;  %v356_v9 = vld [vmem:[#allocation2 + $0x12] sm:$0xff]  ;;  %2367 = vmatprep.mubr.msk.f32.mxu1 %vm3010_vm0, %v3011_v4  ;;  %2774 = vmatprep.subr.bf16.mxu1 %v3009_v0 }
 0x10f   :  { %324 = vst [vmem:[#allocation2 + $0x28] sm:$0xff] %v304_v1  ;;  %v251_v10 = vmax.f32 %v242_v2, 0.0  ;;  %v227_v11 = vmul.f32 %v3337_v60, %v200_v8  ;;  %v2080_v12 = vpop.f32.mrb[13].mxu0  ;;  %2126 = vmatmul.mubr.f32.gmra.mrb[22].mxu0 %v356_v9  ;;  %2368 = vmatmul.mubr.f32.gmra.mrb[8].mxu1 %v304_v1  ;;  %v2688_v1 = vpack.c.bf16 %v353_v57, %v352_v56  ;;  %v1035_v8 = vld [vmem:[#allocation2 + $0x9] sm:$0xff]  ;;  %v1666_v9 = vld [vmem:[%s4008_s7 + $0x100] sm:$0xff] }
 0x110   :  { %2128 = vmatprep.mubr.msk.f32.mxu0 %vm3010_vm0, %v3011_v4  ;;  %2674 = vmatpush3.bf16.msra.mxu0 %v2673_v63  ;;  %v1731_v63 = vld [vmem:[%s4008_s7 + $0x308] sm:$0xff] }
 0x111   :  { %v305_v17 = vmul.f32 %v3450_v15, %v251_v10  ;;  %v243_v18 = vadd.f32 %v3342_v62, %v227_v11  ;;  %2675 = vmatprep.subr.bf16.mxu0 %v3009_v0  ;;  %2776 = vmatpush3.bf16.msra.mxu1 %v2775_v7  ;;  %v2787_v3 = vpack.c.bf16 %v1731_v63, %v1730_v59  ;;  %v1733_v7 = vld [vmem:[%s4008_s7 + $0x318] sm:$0xff]  ;;  %v1667_v10 = vld [vmem:[%s4008_s7 + $0x108] sm:$0xff] }
 0x112   :  { %v205_v22 = vpop.f32.mrb[14].mxu0  ;;  %v357_v23 = vld [vmem:[#allocation2 + $0x1a] sm:$0xff]  ;;  %2370 = vmatprep.mubr.msk.f32.mxu1 %vm3010_vm0, %v3011_v4  ;;  %2777 = vmatprep.subr.bf16.mxu1 %v3009_v0  ;;  %v2790_v12 = vpack.c.bf16 %v1733_v7, %v1732_v5  ;;  %v1679_v59 = vld [vmem:[%s4008_s7 + $0x168] sm:$0xff] }
 0x113   :  { %325 = vst [vmem:[#allocation2 + $0x30] sm:$0xff] %v305_v17  ;;  %v252_v25 = vmax.f32 %v243_v18, 0.0  ;;  %v228_v27 = vmul.f32 %v3337_v60, %v205_v22  ;;  %v2083_v28 = vpop.f32.mrb[15].mxu0  ;;  %2129 = vmatmul.mubr.f32.gmra.mrb[24].mxu0 %v357_v23  ;;  %2371 = vmatmul.mubr.f32.gmra.mrb[10].mxu1 %v305_v17  ;;  %v2691_v17 = vpack.c.bf16 %v1667_v10, %v1666_v9  ;;  %v1668_v18 = vld [vmem:[%s4008_s7 + $0x110] sm:$0xff]  ;;  %v1681_v5 = vld [vmem:[%s4008_s7 + $0x178] sm:$0xff]  ;;  %v3672_v7 = vld [vmem:[#allocation2] sm:$0xff] }
 0x114   :  { %2131 = vmatprep.mubr.msk.f32.mxu0 %vm3010_vm0, %v3011_v4  ;;  %2677 = vmatpush3.bf16.msra.mxu0 %v2676_v16  ;;  %v1036_v16 = vld [vmem:[#allocation2 + $0x11] sm:$0xff]  ;;  %v2793_v22 = vpack.c.bf16 %v1735_v14, %v1734_v13  ;;  %v1670_v28 = vld [vmem:[%s4008_s7 + $0x120] sm:$0xff] }
 0x115   :  { %v306_v33 = vmul.f32 %v3473_v31, %v252_v25  ;;  %v244_v34 = vadd.f32 %v3342_v62, %v228_v27  ;;  %2678 = vmatprep.subr.bf16.mxu0 %v3009_v0  ;;  %2373 = vmatprep.mubr.msk.f32.mxu1 %vm3010_vm0, %v3011_v4  ;;  %v1736_v23 = vld [vmem:[%s4008_s7 + $0x330] sm:$0xff]  ;;  %v1037_v25 = vld [vmem:[#allocation2 + $0x19] sm:$0xff]  ;;  %v2694_v27 = vpack.c.bf16 %v1669_v19, %v1668_v18 }
 0x116   :  { %v210_v37 = vpop.f32.mrb[16].mxu0  ;;  %v358_v38 = vld [vmem:[#allocation2 + $0x22] sm:$0xff]  ;;  %2779 = vmatpush3.bf16.msra.mxu1 %v2778_v24  ;;  %v1737_v24 = vld [vmem:[%s4008_s7 + $0x338] sm:$0xff]  ;;  %v2697_v35 = vpack.c.bf16 %v1671_v29, %v1670_v28  ;;  %v1180_v14 = vld [vmem:[#allocation2 + $0xd] sm:$0xff] }
 0x117   :  { %326 = vst [vmem:[#allocation2 + $0x38] sm:$0xff] %v306_v33  ;;  %v253_v40 = vmax.f32 %v244_v34, 0.0  ;;  %v229_v41 = vmul.f32 %v3337_v60, %v210_v37  ;;  %v2086_v42 = vpop.f32.mrb[17].mxu0  ;;  %2132 = vmatmul.mubr.f32.gmra.mrb[26].mxu0 %v358_v38  ;;  %2374 = vmatmul.mubr.f32.gmra.mrb[12].mxu1 %v306_v33  ;;  %v350_v60 = vld [vmem:[%s4008_s7 + $0x60] sm:$0xff]  ;;  %v2796_v30 = vpack.c.bf16 %v1737_v24, %v1736_v23  ;;  %v1739_v33 = vld [vmem:[%s4008_s7 + $0x348] sm:$0xff]  ;;  %v1673_v37 = vld [vmem:[%s4008_s7 + $0x138] sm:$0xff] }
 0x118   :  { %2134 = vmatprep.mubr.msk.f32.mxu0 %vm3010_vm0, %v3011_v4  ;;  %2680 = vmatpush3.bf16.msra.mxu0 %v2679_v32  ;;  %v2685_v53 = vpack.c.bf16 %v351_v48, %v350_v60  ;;  %v1738_v32 = vld [vmem:[%s4008_s7 + $0x340] sm:$0xff]  ;;  %v2700_v42 = vpack.c.bf16 %v1673_v37, %v1672_v36  ;;  %v1743_v48 = vld [vmem:[%s4008_s7 + $0x368] sm:$0xff]  ;;  %v1749_v13 = vld [vmem:[%s4008_s7 + $0x398] sm:$0xff] }
 0x119   :  { %v307_v45 = vmul.f32 %v3489_v43, %v253_v40  ;;  %v245_v47 = vadd.f32 %v3342_v62, %v229_v41  ;;  %2681 = vmatprep.subr.bf16.mxu0 %v3009_v0  ;;  %2780 = vmatprep.subr.bf16.mxu1 %v3009_v0  ;;  %v1728_v62 = vld [vmem:[%s4008_s7 + $0x2f0] sm:$0xff]  ;;  %v1038_v34 = vld [vmem:[#allocation2 + $0x21] sm:$0xff]  ;;  %v2799_v38 = vpack.c.bf16 %v1739_v33, %v1738_v32  ;;  %v1741_v40 = vld [vmem:[%s4008_s7 + $0x358] sm:$0xff] }
 0x11a   :  { %v359_v49 = vld [vmem:[#allocation2 + $0x2a] sm:$0xff]  ;;  %2376 = vmatprep.mubr.msk.f32.mxu1 %vm3010_vm0, %v3011_v4  ;;  %2782 = vmatpush3.bf16.msra.mxu1 %v2781_v39  ;;  %v2784_v55 = vpack.c.bf16 %v1729_v50, %v1728_v62  ;;  %v1742_v60 = vld [vmem:[%s4008_s7 + $0x360] sm:$0xff] }
 0x11b   :  { %327 = vst [vmem:[#allocation2 + $0x40] sm:$0xff] %v307_v45  ;;  %v254_v51 = vmax.f32 %v245_v47, 0.0  ;;  %2135 = vmatmul.mubr.f32.gmra.mrb[28].mxu0 %v359_v49  ;;  %2377 = vmatmul.mubr.f32.gmra.mrb[14].mxu1 %v307_v45  ;;  %v1740_v39 = vld [vmem:[%s4008_s7 + $0x350] sm:$0xff]  ;;  %v1675_v45 = vld [vmem:[%s4008_s7 + $0x148] sm:$0xff]  ;;  %v1750_v19 = vld [vmem:[%s4008_s7 + $0x3a0] sm:$0xff] }
 0x11c   :  { %2137 = vmatprep.mubr.msk.f32.mxu0 %vm3010_vm0, %v3011_v4  ;;  %2683 = vmatpush3.bf16.msra.mxu0 %v2682_v44  ;;  %v1039_v41 = vld [vmem:[#allocation2 + $0x29] sm:$0xff]  ;;  %v1674_v44 = vld [vmem:[%s4008_s7 + $0x140] sm:$0xff]  ;;  %v2802_v47 = vpack.c.bf16 %v1741_v40, %v1740_v39 }
 0x11d   :  { %v308_v54 = vmul.f32 %v3511_v52, %v254_v51  ;;  %2684 = vmatprep.subr.bf16.mxu0 %v3009_v0  ;;  %2379 = vmatprep.mubr.msk.f32.mxu1 %vm3010_vm0, %v3011_v4  ;;  %v2703_v62 = vpack.c.bf16 %v1675_v45, %v1674_v44  ;;  %v1676_v50 = vld [vmem:[%s4008_s7 + $0x150] sm:$0xff]  ;;  %v1677_v51 = vld [vmem:[%s4008_s7 + $0x158] sm:$0xff]  ;;  %v1755_v39 = vld [vmem:[%s4008_s7 + $0x3c8] sm:$0xff] }
 0x11e   :  { %v360_v58 = vld [vmem:[#allocation2 + $0x32] sm:$0xff]  ;;  %2783 = vmatprep.subr.bf16.mxu1 %v3009_v0  ;;  %v2706_v57 = vpack.c.bf16 %v1677_v51, %v1676_v50  ;;  %v1182_v32 = vld [vmem:[#allocation2 + $0x1d] sm:$0xff]  ;;  %v1183_v40 = vld [vmem:[#allocation2 + $0x25] sm:$0xff] }
 0x11f   :  { %328 = vst [vmem:[#allocation2 + $0x48] sm:$0xff] %v308_v54  ;;  %2138 = vmatmul.mubr.f32.gmra.mrb[30].mxu0 %v360_v58  ;;  %2380 = vmatmul.mubr.f32.gmra.mrb[16].mxu1 %v308_v54  ;;  %v1040_v49 = vld [vmem:[#allocation2 + $0x31] sm:$0xff]  ;;  %v1678_v58 = vld [vmem:[%s4008_s7 + $0x160] sm:$0xff]  ;;  %v1691_v51 = vld [vmem:[%s4008_s7 + $0x1c8] sm:$0xff] }
 0x120   :  { %2140 = vmatprep.mubr.msk.f32.mxu0 %vm3010_vm0, %v3011_v4  ;;  %2686 = vmatpush3.bf16.msra.mxu0 %v2685_v53  ;;  %v2805_v53 = vpack.c.bf16 %v1743_v48, %v1742_v60  ;;  %v1744_v54 = vld [vmem:[%s4008_s7 + $0x370] sm:$0xff]  ;;  %v1689_v44 = vld [vmem:[%s4008_s7 + $0x1b8] sm:$0xff]  ;;  %v1690_v50 = vld [vmem:[%s4008_s7 + $0x1c0] sm:$0xff] }
 0x121   :  { %2687 = vmatprep.subr.bf16.mxu0 %v3009_v0  ;;  %2785 = vmatpush3.bf16.msra.mxu1 %v2784_v55  ;;  %v1745_v55 = vld [vmem:[%s4008_s7 + $0x378] sm:$0xff]  ;;  %v1684_v24 = vld [vmem:[%s4008_s7 + $0x190] sm:$0xff] }
 0x122   :  { %v361_v2 = vld [vmem:[#allocation2 + $0x3a] sm:$0xff]  ;;  %2414 = vmatprep.mubr.msk.f32.mxu1 %vm3010_vm0, %v3011_v4  ;;  %2786 = vmatprep.subr.bf16.mxu1 %v3009_v0  ;;  %v2808_v63 = vpack.c.bf16 %v1745_v55, %v1744_v54  ;;  %v1752_v29 = vld [vmem:[%s4008_s7 + $0x3b0] sm:$0xff] }
 0x123   :  { %2141 = vmatmul.mubr.f32.gmra.mrb[32].mxu0 %v361_v2  ;;  %v1041_v56 = vld [vmem:[#allocation2 + $0x39] sm:$0xff]  ;;  %v2709_v2 = vpack.c.bf16 %v1679_v59, %v1678_v58  ;;  %v601_v36 = vld [vmem:[#allocation2 + $0xb] sm:$0xff]  ;;  %v2727_v58 = vpack.c.bf16 %v1691_v51, %v1690_v50 }
 0x124   :  { %2143 = vmatprep.mubr.msk.f32.mxu0 %vm3010_vm0, %v3011_v4  ;;  %2689 = vmatpush3.bf16.msra.mxu0 %v2688_v1  ;;  %v602_v45 = vld [vmem:[#allocation2 + $0x13] sm:$0xff]  ;;  %v1758_v55 = vld [vmem:[%s4008_s7 + $0x3e0] sm:$0xff] }
 0x125   :  { %2415 = vmatmul.mubr.f32.vlgmr.msra.gmra.mrb[0].mxu1 %v1035_v8  ;;  %2690 = vmatprep.subr.bf16.mxu0 %v3009_v0  ;;  %v1756_v60 = vld [vmem:[%s4008_s7 + $0x3d0] sm:$0xff]  ;;  %v1757_v48 = vld [vmem:[%s4008_s7 + $0x3d8] sm:$0xff] }
 0x126   :  { %v362_v11 = vld [vmem:[#allocation2 + $0x42] sm:$0xff]  ;;  %2788 = vmatpush3.bf16.msra.mxu1 %v2787_v3  ;;  %2417 = vmatprep.mubr.msk.f32.mxu1 %vm3010_vm0, %v3011_v4  ;;  %v1680_v3 = vld [vmem:[%s4008_s7 + $0x170] sm:$0xff]  ;;  %v2826_v54 = vpack.c.bf16 %v1757_v48, %v1756_v60 }
 0x127   :  { %2144 = vmatmul.mubr.f32.gmra.mrb[34].mxu0 %v362_v11  ;;  %2789 = vmatprep.subr.bf16.mxu1 %v3009_v0  ;;  %v1042_v1 = vld [vmem:[#allocation2 + $0x41] sm:$0xff]  ;;  %v1043_v9 = vld [vmem:[#allocation2 + $0x49] sm:$0xff]  ;;  %v2712_v10 = vpack.c.bf16 %v1681_v5, %v1680_v3  ;;  %v1761_v5 = vld [vmem:[%s4008_s7 + $0x3f8] sm:$0xff] }
 0x128   :  { %2178 = vmatprep.mubr.msk.f32.mxu0 %vm3010_vm0, %v3011_v4  ;;  %v1692_v59 = vld [vmem:[%s4008_s7 + $0x1d0] sm:$0xff]  ;;  %v748_v51 = vld [vmem:[#allocation2 + $0x1f] sm:$0xff] }
 0x129   :  { %2418 = vmatmul.mubr.f32.gmra.mrb[2].mxu1 %v1036_v16  ;;  %v1760_v3 = vld [vmem:[%s4008_s7 + $0x3f0] sm:$0xff] }
 0x12a   :  { %2791 = vmatpush3.bf16.msra.mxu1 %v2790_v12  ;;  %2420 = vmatprep.mubr.msk.f32.mxu1 %vm3010_vm0, %v3011_v4  ;;  %v1748_v12 = vld [vmem:[%s4008_s7 + $0x390] sm:$0xff] }
 0x12b   :  { %2179 = vmatmul.mubr.f32.vlgmr.msra.gmra.mrb[18].mxu0 %v329_v21  ;;  %2792 = vmatprep.subr.bf16.mxu1 %v3009_v0  ;;  %v2814_v18 = vpack.c.bf16 %v1749_v13, %v1748_v12  ;;  %v1751_v21 = vld [vmem:[%s4008_s7 + $0x3a8] sm:$0xff]  ;;  %v2832_v12 = vpack.c.bf16 %v1761_v5, %v1760_v3  ;;  %v747_v60 = vld [vmem:[#allocation2 + $0x17] sm:$0xff] }
 0x12c   :  { %2181 = vmatprep.mubr.msk.f32.mxu0 %vm3010_vm0, %v3011_v4  ;;  %2692 = vmatpush3.bf16.msra.mxu0 %v2691_v17  ;;  %v1683_v17 = vld [vmem:[%s4008_s7 + $0x188] sm:$0xff]  ;;  %v2817_v28 = vpack.c.bf16 %v1751_v21, %v1750_v19  ;;  %v1762_v19 = vld [vmem:[%s4008_s7 + $0x400] sm:$0xff] }
 0x12d   :  { %2693 = vmatprep.subr.bf16.mxu0 %v3009_v0  ;;  %2421 = vmatmul.mubr.f32.gmra.mrb[4].mxu1 %v1037_v25  ;;  %v1187_v13 = vld [vmem:[#allocation2 + $0x45] sm:$0xff]  ;;  %v1329_v50 = vld [vmem:[#allocation2 + $0x2e] sm:$0xff] }
 0x12e   :  { %2794 = vmatpush3.bf16.msra.mxu1 %v2793_v22  ;;  %2423 = vmatprep.mubr.msk.f32.mxu1 %vm3010_vm0, %v3011_v4  ;;  %v1181_v22 = vld [vmem:[#allocation2 + $0x15] sm:$0xff]  ;;  %v1763_v21 = vld [vmem:[%s4008_s7 + $0x408] sm:$0xff] }
 0x12f   :  { %2182 = vmatmul.mubr.f32.gmra.mrb[20].mxu0 %v1035_v8  ;;  %2795 = vmatprep.subr.bf16.mxu1 %v3009_v0  ;;  %v1747_v8 = vld [vmem:[%s4008_s7 + $0x388] sm:$0xff] }
 0x130   :  { %2184 = vmatprep.mubr.msk.f32.mxu0 %vm3010_vm0, %v3011_v4  ;;  %2695 = vmatpush3.bf16.msra.mxu0 %v2694_v27  ;;  %v600_v27 = vld [vmem:[#allocation2 + $0x3] sm:$0xff] }
 0x131   :  { %2696 = vmatprep.subr.bf16.mxu0 %v3009_v0  ;;  %2424 = vmatmul.mubr.f32.gmra.mrb[6].mxu1 %v1038_v34  ;;  %v1332_v5 = vld [vmem:[#allocation2 + $0x46] sm:$0xff] }
 0x132   :  { %2797 = vmatpush3.bf16.msra.mxu1 %v2796_v30  ;;  %2426 = vmatprep.mubr.msk.f32.mxu1 %vm3010_vm0, %v3011_v4  ;;  %v1753_v30 = vld [vmem:[%s4008_s7 + $0x3b8] sm:$0xff] }
 0x133   :  { %2185 = vmatmul.mubr.f32.gmra.mrb[22].mxu0 %v1036_v16  ;;  %2798 = vmatprep.subr.bf16.mxu1 %v3009_v0  ;;  %v1682_v16 = vld [vmem:[%s4008_s7 + $0x180] sm:$0xff]  ;;  %v2820_v37 = vpack.c.bf16 %v1753_v30, %v1752_v29  ;;  %v1325_v29 = vld [vmem:[#allocation2 + $0xe] sm:$0xff] }
 0x134   :  { %2187 = vmatprep.mubr.msk.f32.mxu0 %vm3010_vm0, %v3011_v4  ;;  %2698 = vmatpush3.bf16.msra.mxu0 %v2697_v35  ;;  %v2715_v23 = vpack.c.bf16 %v1683_v17, %v1682_v16  ;;  %v1687_v35 = vld [vmem:[%s4008_s7 + $0x1a8] sm:$0xff]  ;;  %v1696_v16 = vld [vmem:[%s4008_s7 + $0x1f0] sm:$0xff]  ;;  %v1697_v17 = vld [vmem:[%s4008_s7 + $0x1f8] sm:$0xff] }
 0x135   :  { %2699 = vmatprep.subr.bf16.mxu0 %v3009_v0  ;;  %2427 = vmatmul.mubr.f32.gmra.mrb[8].mxu1 %v1039_v41  ;;  %v608_v30 = vld [vmem:[#allocation2 + $0x43] sm:$0xff] }
 0x136   :  { %2800 = vmatpush3.bf16.msra.mxu1 %v2799_v38  ;;  %2429 = vmatprep.mubr.msk.f32.mxu1 %vm3010_vm0, %v3011_v4  ;;  %v1754_v38 = vld [vmem:[%s4008_s7 + $0x3c0] sm:$0xff] }
 0x137   :  { %2188 = vmatmul.mubr.f32.gmra.mrb[24].mxu0 %v1037_v25  ;;  %2801 = vmatprep.subr.bf16.mxu1 %v3009_v0  ;;  %v1685_v25 = vld [vmem:[%s4008_s7 + $0x198] sm:$0xff] }
 0x138   :  { %2190 = vmatprep.mubr.msk.f32.mxu0 %vm3010_vm0, %v3011_v4  ;;  %2701 = vmatpush3.bf16.msra.mxu0 %v2700_v42  ;;  %v2718_v33 = vpack.c.bf16 %v1685_v25, %v1684_v24  ;;  %v1688_v42 = vld [vmem:[%s4008_s7 + $0x1b0] sm:$0xff]  ;;  %v607_v24 = vld [vmem:[#allocation2 + $0x3b] sm:$0xff]  ;;  %v2835_v25 = vpack.c.bf16 %v1763_v21, %v1762_v19 }
 0x139   :  { %2702 = vmatprep.subr.bf16.mxu0 %v3009_v0  ;;  %2430 = vmatmul.mubr.f32.gmra.mrb[10].mxu1 %v1040_v49 }
 0x13a   :  { %2432 = vmatprep.mubr.msk.f32.mxu1 %vm3010_vm0, %v3011_v4  ;;  %2803 = vmatpush3.bf16.msra.mxu1 %v2802_v47  ;;  %v2823_v47 = vpack.c.bf16 %v1755_v39, %v1754_v38  ;;  %v1768_v38 = vld [vmem:[%s4008_s7 + $0x430] sm:$0xff]  ;;  %v1769_v39 = vld [vmem:[%s4008_s7 + $0x438] sm:$0xff] }
 0x13b   :  { %2191 = vmatmul.mubr.f32.gmra.mrb[26].mxu0 %v1038_v34  ;;  %2804 = vmatprep.subr.bf16.mxu1 %v3009_v0  ;;  %v1686_v34 = vld [vmem:[%s4008_s7 + $0x1a0] sm:$0xff] }
 0x13c   :  { %2193 = vmatprep.mubr.msk.f32.mxu0 %vm3010_vm0, %v3011_v4  ;;  %2704 = vmatpush3.bf16.msra.mxu0 %v2703_v62  ;;  %v2724_v62 = vpack.c.bf16 %v1689_v44, %v1688_v42  ;;  %v2844_v42 = vpack.c.bf16 %v1769_v39, %v1768_v38  ;;  %v1770_v44 = vld [vmem:[%s4008_s7 + $0x440] sm:$0xff] }
 0x13d   :  { %2705 = vmatprep.subr.bf16.mxu0 %v3009_v0  ;;  %2433 = vmatmul.mubr.f32.gmra.mrb[12].mxu1 %v1041_v56 }
 0x13e   :  { %2435 = vmatprep.mubr.msk.f32.mxu1 %vm3010_vm0, %v3011_v4  ;;  %2806 = vmatpush3.bf16.msra.mxu1 %v2805_v53  ;;  %v603_v53 = vld [vmem:[#allocation2 + $0x1b] sm:$0xff] }
 0x13f   :  { %2194 = vmatmul.mubr.f32.gmra.mrb[28].mxu0 %v1039_v41  ;;  %2807 = vmatprep.subr.bf16.mxu1 %v3009_v0  ;;  %v2721_v41 = vpack.c.bf16 %v1687_v35, %v1686_v34  ;;  %v1767_v34 = vld [vmem:[%s4008_s7 + $0x428] sm:$0xff]  ;;  %v1326_v35 = vld [vmem:[#allocation2 + $0x16] sm:$0xff] }
 0x140   :  { %2196 = vmatprep.mubr.msk.f32.mxu0 %vm3010_vm0, %v3011_v4  ;;  %2707 = vmatpush3.bf16.msra.mxu0 %v2706_v57  ;;  %v1746_v4 = vld [vmem:[%s4008_s7 + $0x380] sm:$0xff]  ;;  %v1185_v57 = vld [vmem:[#allocation2 + $0x35] sm:$0xff] }
 0x141   :  { %2708 = vmatprep.subr.bf16.mxu0 %v3009_v0  ;;  %2436 = vmatmul.mubr.f32.gmra.mrb[14].mxu1 %v1042_v1  ;;  %v2811_v11 = vpack.c.bf16 %v1747_v8, %v1746_v4  ;;  %v1186_v4 = vld [vmem:[#allocation2 + $0x3d] sm:$0xff] }
 0x142   :  { %2438 = vmatprep.mubr.msk.f32.mxu1 %vm3010_vm0, %v3672_v7  ;;  %2809 = vmatpush3.bf16.msra.mxu1 %v2808_v63  ;;  %v1693_v63 = vld [vmem:[%s4008_s7 + $0x1d8] sm:$0xff] }
 0x143   :  { %2197 = vmatmul.mubr.f32.gmra.mrb[30].mxu0 %v1040_v49  ;;  %2810 = vmatprep.subr.bf16.mxu1 %v3009_v0  ;;  %v1184_v49 = vld [vmem:[#allocation2 + $0x2d] sm:$0xff]  ;;  %v2730_v8 = vpack.c.bf16 %v1693_v63, %v1692_v59  ;;  %v1777_v63 = vld [vmem:[%s4008_s7 + $0x478] sm:$0xff] }
 0x144   :  { %2199 = vmatprep.mubr.msk.f32.mxu0 %vm3010_vm0, %v3672_v7  ;;  %2710 = vmatpush3.bf16.msra.mxu0 %v2709_v2  ;;  %v1776_v59 = vld [vmem:[%s4008_s7 + $0x470] sm:$0xff] }
 0x145   :  { %2711 = vmatprep.subr.bf16.mxu0 %v3009_v0  ;;  %2439 = vmatmul.mubr.f32.gmra.mrb[16].mxu1 %v1043_v9  ;;  %v1694_v9 = vld [vmem:[%s4008_s7 + $0x1e0] sm:$0xff]  ;;  %v2856_v3 = vpack.c.bf16 %v1777_v63, %v1776_v59 }
 0x146   :  { %2473 = vmatprep.mubr.msk.f32.mxu1 %vm3010_vm0, %v3672_v7 }
 0x147   :  { %2200 = vmatmul.mubr.f32.gmra.mrb[32].mxu0 %v1041_v56  ;;  %v1759_v56 = vld [vmem:[%s4008_s7 + $0x3e8] sm:$0xff] }
 0x148   :  { %2202 = vmatprep.mubr.msk.f32.mxu0 %vm3010_vm0, %v3672_v7  ;;  %2713 = vmatpush3.bf16.msra.mxu0 %v2712_v10  ;;  %v2829_v2 = vpack.c.bf16 %v1759_v56, %v1758_v55  ;;  %v1695_v10 = vld [vmem:[%s4008_s7 + $0x1e8] sm:$0xff]  ;;  %v1330_v56 = vld [vmem:[#allocation2 + $0x36] sm:$0xff] }
 0x149   :  { %2474 = vmatmul.mubr.f32.vlgmr.msra.gmra.mrb[0].mxu1 %v1180_v14  ;;  %2714 = vmatprep.subr.bf16.mxu0 %v3009_v0  ;;  %v2733_v14 = vpack.c.bf16 %v1695_v10, %v1694_v9  ;;  %v1775_v55 = vld [vmem:[%s4008_s7 + $0x468] sm:$0xff]  ;;  %v752_v9 = vld [vmem:[#allocation2 + $0x3f] sm:$0xff] }
 0x14a   :  { %2812 = vmatpush3.bf16.msra.mxu1 %v2811_v11  ;;  %2476 = vmatprep.mubr.msk.f32.mxu1 %vm3010_vm0, %v3672_v7  ;;  %v605_v11 = vld [vmem:[#allocation2 + $0x2b] sm:$0xff] }
 0x14b   :  { %2203 = vmatmul.mubr.f32.gmra.mrb[34].mxu0 %v1042_v1  ;;  %2813 = vmatprep.subr.bf16.mxu1 %v3009_v0  ;;  %v604_v1 = vld [vmem:[#allocation2 + $0x23] sm:$0xff]  ;;  %v1478_v10 = vld [vmem:[#allocation2 + $0x4f] sm:$0xff] }
 0x14c   :  { %2237 = vmatprep.mubr.msk.f32.mxu0 %vm3010_vm0, %v3672_v7 }
 0x14d   :  { %2477 = vmatmul.mubr.f32.gmra.mrb[2].mxu1 %v1181_v22  ;;  %v1188_v22 = vld [vmem:[#allocation2 + $0x4d] sm:$0xff] }
 0x14e   :  { %2815 = vmatpush3.bf16.msra.mxu1 %v2814_v18  ;;  %2479 = vmatprep.mubr.msk.f32.mxu1 %vm3010_vm0, %v3672_v7  ;;  %v606_v18 = vld [vmem:[#allocation2 + $0x33] sm:$0xff] }
 0x14f   :  { %2238 = vmatmul.mubr.f32.vlgmr.msra.gmra.mrb[18].mxu0 %v600_v27  ;;  %2816 = vmatprep.subr.bf16.mxu1 %v3009_v0  ;;  %v1764_v27 = vld [vmem:[%s4008_s7 + $0x410] sm:$0xff] }
 0x150   :  { %2240 = vmatprep.mubr.msk.f32.mxu0 %vm3010_vm0, %v3672_v7  ;;  %2716 = vmatpush3.bf16.msra.mxu0 %v2715_v23  ;;  %v2736_v23 = vpack.c.bf16 %v1697_v17, %v1696_v16 }
 0x151   :  { %2717 = vmatprep.subr.bf16.mxu0 %v3009_v0  ;;  %2480 = vmatmul.mubr.f32.gmra.mrb[4].mxu1 %v1182_v32 }
 0x152   :  { %2818 = vmatpush3.bf16.msra.mxu1 %v2817_v28  ;;  %2482 = vmatprep.mubr.msk.f32.mxu1 %vm3010_vm0, %v3672_v7  ;;  %v1765_v28 = vld [vmem:[%s4008_s7 + $0x418] sm:$0xff] }
 0x153   :  { %2241 = vmatmul.mubr.f32.gmra.mrb[20].mxu0 %v601_v36  ;;  %2819 = vmatprep.subr.bf16.mxu1 %v3009_v0  ;;  %v2838_v32 = vpack.c.bf16 %v1765_v28, %v1764_v27  ;;  %v745_v36 = vld [vmem:[#allocation2 + $0x7] sm:$0xff] }
 0x154   :  { %2243 = vmatprep.mubr.msk.f32.mxu0 %vm3010_vm0, %v3672_v7  ;;  %2719 = vmatpush3.bf16.msra.mxu0 %v2718_v33  ;;  %v1766_v33 = vld [vmem:[%s4008_s7 + $0x420] sm:$0xff] }
 0x155   :  { %2720 = vmatprep.subr.bf16.mxu0 %v3009_v0  ;;  %2483 = vmatmul.mubr.f32.gmra.mrb[6].mxu1 %v1183_v40  ;;  %v1327_v40 = vld [vmem:[#allocation2 + $0x1e] sm:$0xff] }
 0x156   :  { %2821 = vmatpush3.bf16.msra.mxu1 %v2820_v37  ;;  %2485 = vmatprep.mubr.msk.f32.mxu1 %vm3010_vm0, %v3672_v7  ;;  %v2841_v37 = vpack.c.bf16 %v1767_v34, %v1766_v33 }
 0x157   :  { %2244 = vmatmul.mubr.f32.gmra.mrb[22].mxu0 %v602_v45  ;;  %2822 = vmatprep.subr.bf16.mxu1 %v3009_v0  ;;  %v1771_v45 = vld [vmem:[%s4008_s7 + $0x448] sm:$0xff] }
 0x158   :  { %2246 = vmatprep.mubr.msk.f32.mxu0 %vm3010_vm0, %v3672_v7  ;;  %2722 = vmatpush3.bf16.msra.mxu0 %v2721_v41  ;;  %v3866_v41 = vld [vmem:[#allocation2 + $0xf] sm:$0xff]  ;;  %v2847_v48 = vpack.c.bf16 %v1771_v45, %v1770_v44 }
 0x159   :  { %2723 = vmatprep.subr.bf16.mxu0 %v3009_v0  ;;  %2486 = vmatmul.mubr.f32.gmra.mrb[8].mxu1 %v1184_v49  ;;  %v1772_v49 = vld [vmem:[%s4008_s7 + $0x450] sm:$0xff] }
 0x15a   :  { %2824 = vmatpush3.bf16.msra.mxu1 %v2823_v47  ;;  %2488 = vmatprep.mubr.msk.f32.mxu1 %vm3010_vm0, %v3672_v7  ;;  %v1328_v47 = vld [vmem:[#allocation2 + $0x26] sm:$0xff] }
 0x15b   :  { %2247 = vmatmul.mubr.f32.gmra.mrb[24].mxu0 %v603_v53  ;;  %2825 = vmatprep.subr.bf16.mxu1 %v3009_v0 }
 0x15c   :  { %2249 = vmatprep.mubr.msk.f32.mxu0 %vm3010_vm0, %v3672_v7  ;;  %2725 = vmatpush3.bf16.msra.mxu0 %v2724_v62  ;;  %v1773_v62 = vld [vmem:[%s4008_s7 + $0x458] sm:$0xff] }
 0x15d   :  { %2726 = vmatprep.subr.bf16.mxu0 %v3009_v0  ;;  %2489 = vmatmul.mubr.f32.gmra.mrb[10].mxu1 %v1185_v57  ;;  %v2850_v53 = vpack.c.bf16 %v1773_v62, %v1772_v49  ;;  %v749_v57 = vld [vmem:[#allocation2 + $0x27] sm:$0xff] }
 0x15e   :  { %2491 = vmatprep.mubr.msk.f32.mxu1 %vm3010_vm0, %v3672_v7  ;;  %2827 = vmatpush3.bf16.msra.mxu1 %v2826_v54  ;;  %v1774_v54 = vld [vmem:[%s4008_s7 + $0x460] sm:$0xff] }
 0x15f   :  { %2250 = vmatmul.mubr.f32.gmra.mrb[26].mxu0 %v604_v1  ;;  %2828 = vmatprep.subr.bf16.mxu1 %v3009_v0  ;;  %v1331_v1 = vld [vmem:[#allocation2 + $0x3e] sm:$0xff] }
 0x160   :  { %2252 = vmatprep.mubr.msk.f32.mxu0 %vm3010_vm0, %v3672_v7  ;;  %2728 = vmatpush3.bf16.msra.mxu0 %v2727_v58  ;;  %v2853_v58 = vpack.c.bf16 %v1775_v55, %v1774_v54 }
 0x161   :  { %2729 = vmatprep.subr.bf16.mxu0 %v3009_v0  ;;  %2492 = vmatmul.mubr.f32.gmra.mrb[12].mxu1 %v1186_v4  ;;  %v751_v4 = vld [vmem:[#allocation2 + $0x37] sm:$0xff] }
 0x162   :  { %2494 = vmatprep.mubr.msk.f32.mxu1 %vm3010_vm0, %v3672_v7  ;;  %2830 = vmatpush3.bf16.msra.mxu1 %v2829_v2  ;;  %v750_v2 = vld [vmem:[#allocation2 + $0x2f] sm:$0xff] }
 0x163   :  { %2253 = vmatmul.mubr.f32.gmra.mrb[28].mxu0 %v605_v11  ;;  %2831 = vmatprep.subr.bf16.mxu1 %v3009_v0 }
 0x164   :  { %2255 = vmatprep.mubr.msk.f32.mxu0 %vm3010_vm0, %v3672_v7  ;;  %2731 = vmatpush3.bf16.msra.mxu0 %v2730_v8  ;;  %v1333_v8 = vld [vmem:[#allocation2 + $0x4e] sm:$0xff] }
 0x165   :  { %2732 = vmatprep.subr.bf16.mxu0 %v3009_v0  ;;  %2495 = vmatmul.mubr.f32.gmra.mrb[14].mxu1 %v1187_v13 }
 0x166   :  { %2497 = vmatprep.mubr.msk.f32.mxu1 %vm3010_vm0, %v3672_v7  ;;  %2833 = vmatpush3.bf16.msra.mxu1 %v2832_v12 }
 0x167   :  { %2256 = vmatmul.mubr.f32.gmra.mrb[30].mxu0 %v606_v18  ;;  %2834 = vmatprep.subr.bf16.mxu1 %v3009_v0 }
 0x168   :  { %2258 = vmatprep.mubr.msk.f32.mxu0 %vm3010_vm0, %v3672_v7  ;;  %2734 = vmatpush3.bf16.msra.mxu0 %v2733_v14 }
 0x169   :  { %2735 = vmatprep.subr.bf16.mxu0 %v3009_v0  ;;  %2498 = vmatmul.mubr.f32.gmra.mrb[16].mxu1 %v1188_v22 }
 0x16a   :  { %2532 = vmatprep.mubr.msk.f32.mxu1 %vm3010_vm0, %v3672_v7 }
 0x16b   :  { %2259 = vmatmul.mubr.f32.gmra.mrb[32].mxu0 %v607_v24 }
 0x16c   :  { %2261 = vmatprep.mubr.msk.f32.mxu0 %vm3010_vm0, %v3672_v7  ;;  %2737 = vmatpush3.bf16.msra.mxu0 %v2736_v23 }
 0x16d   :  { %2533 = vmatmul.mubr.f32.vlgmr.msra.gmra.mrb[0].mxu1 %v1325_v29 }
 0x16e   :  { %2836 = vmatpush3.bf16.msra.mxu1 %v2835_v25  ;;  %2535 = vmatprep.mubr.msk.f32.mxu1 %vm3010_vm0, %v3672_v7 }
 0x16f   :  { %2262 = vmatmul.mubr.f32.gmra.mrb[34].mxu0 %v608_v30  ;;  %2837 = vmatprep.subr.bf16.mxu1 %v3009_v0 }
 0x170   :  { %2296 = vmatprep.mubr.msk.f32.mxu0 %vm3010_vm0, %v3672_v7 }
 0x171   :  { %2536 = vmatmul.mubr.f32.gmra.mrb[2].mxu1 %v1326_v35 }
 0x172   :  { %2839 = vmatpush3.bf16.msra.mxu1 %v2838_v32  ;;  %2538 = vmatprep.mubr.msk.f32.mxu1 %vm3010_vm0, %v3672_v7 }
 0x173   :  { %2297 = vmatmul.mubr.f32.vlgmr.msra.gmra.mrb[18].mxu0 %v745_v36  ;;  %2840 = vmatprep.subr.bf16.mxu1 %v3009_v0 }
 0x174   :  { %2299 = vmatprep.mubr.msk.f32.mxu0 %vm3010_vm0, %v3672_v7 }
 0x175   :  { %2539 = vmatmul.mubr.f32.gmra.mrb[4].mxu1 %v1327_v40 }
 0x176   :  { %2842 = vmatpush3.bf16.msra.mxu1 %v2841_v37  ;;  %2541 = vmatprep.mubr.msk.f32.mxu1 %vm3010_vm0, %v3672_v7  ;;  %v3000_v37 = vld [vmem:[%s4009_s0] sm:$0xff] }
 0x177   :  { %2300 = vmatmul.mubr.f32.gmra.mrb[20].mxu0 %v3866_v41  ;;  %2843 = vmatprep.subr.bf16.mxu1 %v3009_v0 }
 0x178   :  { %2302 = vmatprep.mubr.msk.f32.mxu0 %vm3010_vm0, %v3672_v7 }
 0x179   :  { %2542 = vmatmul.mubr.f32.gmra.mrb[6].mxu1 %v1328_v47 }
 0x17a   :  { %2845 = vmatpush3.bf16.msra.mxu1 %v2844_v42  ;;  %2544 = vmatprep.mubr.msk.f32.mxu1 %vm3010_vm0, %v3672_v7 }
 0x17b   :  { %2303 = vmatmul.mubr.f32.gmra.mrb[22].mxu0 %v747_v60  ;;  %2846 = vmatprep.subr.bf16.mxu1 %v3009_v0 }
 0x17c   :  { %2305 = vmatprep.mubr.msk.f32.mxu0 %vm3010_vm0, %v3672_v7 }
 0x17d   :  { %2545 = vmatmul.mubr.f32.gmra.mrb[8].mxu1 %v1329_v50 }
 0x17e   :  { %2848 = vmatpush3.bf16.msra.mxu1 %v2847_v48  ;;  %2547 = vmatprep.mubr.msk.f32.mxu1 %vm3010_vm0, %v3672_v7 }
 0x17f   :  { %2306 = vmatmul.mubr.f32.gmra.mrb[24].mxu0 %v748_v51  ;;  %2849 = vmatprep.subr.bf16.mxu1 %v3009_v0 }
 0x180   :  { %2308 = vmatprep.mubr.msk.f32.mxu0 %vm3010_vm0, %v3672_v7 }
 0x181   :  { %2548 = vmatmul.mubr.f32.gmra.mrb[10].mxu1 %v1330_v56 }
 0x182   :  { %2550 = vmatprep.mubr.msk.f32.mxu1 %vm3010_vm0, %v3672_v7  ;;  %2851 = vmatpush3.bf16.msra.mxu1 %v2850_v53 }
 0x183   :  { %2309 = vmatmul.mubr.f32.gmra.mrb[26].mxu0 %v749_v57  ;;  %2852 = vmatprep.subr.bf16.mxu1 %v3009_v0 }
 0x184   :  { %2311 = vmatprep.mubr.msk.f32.mxu0 %vm3010_vm0, %v3672_v7 }
 0x185   :  { %2551 = vmatmul.mubr.f32.gmra.mrb[12].mxu1 %v1331_v1 }
 0x186   :  { %2553 = vmatprep.mubr.msk.f32.mxu1 %vm3010_vm0, %v3672_v7  ;;  %2854 = vmatpush3.bf16.msra.mxu1 %v2853_v58 }
 0x187   :  { %2312 = vmatmul.mubr.f32.gmra.mrb[28].mxu0 %v750_v2  ;;  %2855 = vmatprep.subr.bf16.mxu1 %v3009_v0  ;;  %v753_v0 = vld [vmem:[#allocation2 + $0x47] sm:$0xff] }
 0x188   :  { %2314 = vmatprep.mubr.msk.f32.mxu0 %vm3010_vm0, %v3672_v7 }
 0x189   :  { %2554 = vmatmul.mubr.f32.gmra.mrb[14].mxu1 %v1332_v5 }
 0x18a   :  { %2556 = vmatprep.mubr.msk.f32.mxu1 %vm3010_vm0, %v3672_v7  ;;  %2857 = vmatpush3.bf16.msra.mxu1 %v2856_v3 }
 0x18b   :  { %2315 = vmatmul.mubr.f32.gmra.mrb[30].mxu0 %v751_v4 }
 0x18c   :  { %2317 = vmatprep.mubr.msk.f32.mxu0 %vm3010_vm0, %v3672_v7 }
 0x18d   :  { %2557 = vmatmul.mubr.f32.gmra.mrb[16].mxu1 %v1333_v8 }
 0x18e   :  { %2591 = vmatprep.mubr.msk.f32.mxu1 %vm3010_vm0, %v3672_v7 }
 0x18f   :  { %2318 = vmatmul.mubr.f32.gmra.mrb[32].mxu0 %v752_v9 }
 0x190   :  { %2320 = vmatprep.mubr.msk.f32.mxu0 %vm3010_vm0, %v3672_v7 }
 0x191   :  { %2592 = vmatmul.mubr.f32.vlgmr.msra.gmra.mrb[0].mxu1 %v3866_v41 }
 0x192   :  { %2594 = vmatprep.mubr.msk.f32.mxu1 %vm3010_vm0, %v3672_v7 }
 0x193   :  { %2321 = vmatmul.mubr.f32.gmra.mrb[34].mxu0 %v753_v0 }
 0x195   :  { %2595 = vmatmul.mubr.f32.gmra.mrb[2].mxu1 %v747_v60 }
 0x196   :  { %2597 = vmatprep.mubr.msk.f32.mxu1 %vm3010_vm0, %v3672_v7 }
 0x199   :  { %2598 = vmatmul.mubr.f32.gmra.mrb[4].mxu1 %v748_v51 }
 0x19a   :  { %2600 = vmatprep.mubr.msk.f32.mxu1 %vm3010_vm0, %v3672_v7 }
 0x19d   :  { %2601 = vmatmul.mubr.f32.gmra.mrb[6].mxu1 %v749_v57 }
 0x19e   :  { %2603 = vmatprep.mubr.msk.f32.mxu1 %vm3010_vm0, %v3672_v7 }
 0x1a1   :  { %2604 = vmatmul.mubr.f32.gmra.mrb[8].mxu1 %v750_v2 }
 0x1a2   :  { %2606 = vmatprep.mubr.msk.f32.mxu1 %vm3010_vm0, %v3672_v7 }
 0x1a5   :  { %2607 = vmatmul.mubr.f32.gmra.mrb[10].mxu1 %v751_v4 }
 0x1a6   :  { %2609 = vmatprep.mubr.msk.f32.mxu1 %vm3010_vm0, %v3672_v7 }
 0x1a9   :  { %2610 = vmatmul.mubr.f32.gmra.mrb[12].mxu1 %v752_v9 }
 0x1aa   :  { %2612 = vmatprep.mubr.msk.f32.mxu1 %vm3010_vm0, %v3672_v7 }
 0x1ad   :  { %2613 = vmatmul.mubr.f32.gmra.mrb[14].mxu1 %v753_v0 }
 0x1ae   :  { %2615 = vmatprep.mubr.msk.f32.mxu1 %vm3010_vm0, %v3672_v7 }
 0x1b1   :  { %2616 = vmatmul.mubr.f32.gmra.mrb[16].mxu1 %v1478_v10 }
 0x246   :  { %v837_v11 = vpop.f32.mrb[18].mxu0 }
 0x247   :  { %v2298_v12 = vpop.f32.mrb[19].mxu0 }
 0x24a   :  { %v842_v13 = vpop.f32.mrb[20].mxu0 }
 0x24b   :  { %v2301_v14 = vpop.f32.mrb[21].mxu0 }
 0x24e   :  { %v847_v16 = vpop.f32.mrb[22].mxu0 }
 0x24f   :  { %v2304_v17 = vpop.f32.mrb[23].mxu0 }
 0x252   :  { %v852_v18 = vpop.f32.mrb[24].mxu0 }
 0x253   :  { %v2307_v19 = vpop.f32.mrb[25].mxu0 }
 0x256   :  { %v857_v21 = vpop.f32.mrb[26].mxu0 }
 0x257   :  { %v2310_v22 = vpop.f32.mrb[27].mxu0 }
 0x25a   :  { %v862_v23 = vpop.f32.mrb[28].mxu0 }
 0x25b   :  { %v2313_v24 = vpop.f32.mrb[29].mxu0 }
 0x25e   :  { %v867_v25 = vpop.f32.mrb[30].mxu0 }
 0x25f   :  { %v2316_v27 = vpop.f32.mrb[31].mxu0 }
 0x262   :  { %v872_v28 = vpop.f32.mrb[32].mxu0 }
 0x263   :  { %v2319_v29 = vpop.f32.mrb[33].mxu0 }
 0x264   :  { %v1562_v30 = vpop.f32.mrb[0].mxu1 }
 0x265   :  { %v2858_v7 = vadd.f32 %v1562_v30, %v837_v11  ;;  %v2593_v32 = vpop.f32.mrb[1].mxu1 }
 0x266   :  { %v877_v33 = vpop.f32.mrb[34].mxu0 }
 0x267   :  { %v2322_v34 = vpop.f32.mrb[35].mxu0  ;;  %v1615_v35 = vmul.f32 %v2858_v7, %v3352_v6 }
 0x268   :  { %v1567_v36 = vpop.f32.mrb[2].mxu1 }
 0x269   :  { %v1624_v38 = vadd.f32 %v3000_v37, %v1615_v35  ;;  %v2859_v39 = vadd.f32 %v1567_v36, %v842_v13  ;;  %v2596_v40 = vpop.f32.mrb[3].mxu1 }
 0x26b   :  { %1633 = vst [vmem:[%s4014_s8] sm:$0xff] %v1624_v38  ;;  %v1616_v41 = vmul.f32 %v2859_v39, %v3364_v20 }
 0x26c   :  { %v1572_v42 = vpop.f32.mrb[4].mxu1 }
 0x26d   :  { %v2860_v45 = vadd.f32 %v1572_v42, %v847_v16  ;;  %v2599_v47 = vpop.f32.mrb[5].mxu1 }
 0x26f   :  { %v1617_v60 = vmul.f32 %v2860_v45, %v3377_v26 }
 0x270   :  { %v1577_v48 = vpop.f32.mrb[6].mxu1 }
 0x271   :  { %v2861_v62 = vadd.f32 %v1577_v48, %v852_v18  ;;  %v2602_v50 = vpop.f32.mrb[7].mxu1 }
 0x272   :  { %v3001_v44 = vld [vmem:[%s4009_s0 + $0x8] sm:$0xff] }
 0x273   :  { %v1625_v6 = vadd.f32 %v3001_v44, %v1616_v41  ;;  %v1618_v51 = vmul.f32 %v2861_v62, %v3404_v46 }
 0x274   :  { %v1582_v53 = vpop.f32.mrb[8].mxu1 }
 0x275   :  { %1634 = vst [vmem:[%s4014_s8 + $0x8] sm:$0xff] %v1625_v6  ;;  %v2862_v55 = vadd.f32 %v1582_v53, %v857_v21  ;;  %v2605_v56 = vpop.f32.mrb[9].mxu1 }
 0x277   :  { %v1619_v57 = vmul.f32 %v2862_v55, %v3427_v61 }
 0x278   :  { %v1587_v58 = vpop.f32.mrb[10].mxu1 }
 0x279   :  { %v2863_v63 = vadd.f32 %v1587_v58, %v862_v23  ;;  %v2608_v1 = vpop.f32.mrb[11].mxu1 }
 0x27b   :  { %v1620_v2 = vmul.f32 %v2863_v63, %v3450_v15 }
 0x27c   :  { %v3002_v49 = vld [vmem:[%s4009_s0 + $0x10] sm:$0xff]  ;;  %v1592_v3 = vpop.f32.mrb[12].mxu1 }
 0x27d   :  { %v1626_v20 = vadd.f32 %v3002_v49, %v1617_v60  ;;  %v2864_v4 = vadd.f32 %v1592_v3, %v867_v25  ;;  %v2611_v8 = vpop.f32.mrb[13].mxu1 }
 0x27f   :  { %1635 = vst [vmem:[%s4014_s8 + $0x10] sm:$0xff] %v1626_v20  ;;  %v1621_v9 = vmul.f32 %v2864_v4, %v3473_v31 }
 0x280   :  { %v1597_v0 = vpop.f32.mrb[14].mxu1 }
 0x281   :  { %v2865_v11 = vadd.f32 %v1597_v0, %v872_v28  ;;  %v2614_v12 = vpop.f32.mrb[15].mxu1 }
 0x283   :  { %v1622_v13 = vmul.f32 %v2865_v11, %v3489_v43 }
 0x284   :  { %v1602_v14 = vpop.f32.mrb[16].mxu1 }
 0x285   :  { %v2866_v17 = vadd.f32 %v1602_v14, %v877_v33  ;;  %v2617_v18 = vpop.f32.mrb[17].mxu1 }
 0x286   :  { %v3003_v54 = vld [vmem:[%s4009_s0 + $0x18] sm:$0xff] }
 0x287   :  { %v1627_v26 = vadd.f32 %v3003_v54, %v1618_v51  ;;  %v1623_v19 = vmul.f32 %v2866_v17, %v3511_v52 }
 0x289   :  { %1636 = vst [vmem:[%s4014_s8 + $0x18] sm:$0xff] %v1627_v26 }
 0x290   :  { %v3004_v59 = vld [vmem:[%s4009_s0 + $0x20] sm:$0xff] }
 0x291   :  { %v1628_v46 = vadd.f32 %v3004_v59, %v1619_v57 }
 0x293   :  { %1637 = vst [vmem:[%s4014_s8 + $0x20] sm:$0xff] %v1628_v46 }
 0x29a   :  { %v3005_v5 = vld [vmem:[%s4009_s0 + $0x28] sm:$0xff] }
 0x29b   :  { %v1629_v61 = vadd.f32 %v3005_v5, %v1620_v2 }
 0x29d   :  { %1638 = vst [vmem:[%s4014_s8 + $0x28] sm:$0xff] %v1629_v61 }
 0x2a4   :  { %v3006_v10 = vld [vmem:[%s4009_s0 + $0x30] sm:$0xff] }
 0x2a5   :  { %v1630_v15 = vadd.f32 %v3006_v10, %v1621_v9 }
 0x2a7   :  { %1639 = vst [vmem:[%s4014_s8 + $0x30] sm:$0xff] %v1630_v15 }
 0x2ae   :  { %v3007_v16 = vld [vmem:[%s4009_s0 + $0x38] sm:$0xff] }
 0x2af   :  { %v1631_v31 = vadd.f32 %v3007_v16, %v1622_v13 }
 0x2b1   :  { %1640 = vst [vmem:[%s4014_s8 + $0x38] sm:$0xff] %v1631_v31 }
 0x2b8   :  { %v3008_v21 = vld [vmem:[%s4009_s0 + $0x40] sm:$0xff] }
 0x2b9   :  { %v1632_v22 = vadd.f32 %v3008_v21, %v1623_v19 }
 0x2bb   :  { %1641 = vst [vmem:[%s4014_s8 + $0x40] sm:$0xff] %v1632_v22 }

// kernel: vision_dqn_dense_forward.108
= control target key start
LH: loop header
LB: loop body
LE: loop exit
PB: predicated region body
PF: predicated region fallthrough
CT: control target
= control target key end

     0   :  { %v27_v3 = vlaneseq  ;;  %s457_s3 = inlined_call_operand.vmem [shape: f32[256,128], index: 3, kind: input, shape index: {}]   ;;  %s458_s0 = inlined_call_operand.vmem [shape: f32[32,256], index: 0, kind: input, shape index: {}]   ;;  %s459_s1 = inlined_call_operand.vmem [shape: f32[1,256], index: 1, kind: input, shape index: {}]   ;;  %s460_s2 = inlined_call_operand.vmem [shape: f32[1,256], index: 2, kind: input, shape index: {}]   ;;  %s461_s4 = inlined_call_operand.vmem [shape: f32[32,128], index: 4, kind: output, shape index: {}]  }
   0x1   :  { %v89_v0 = vld [vmem:[%s457_s3 + $0x80] sm:$0xff]  ;;  %v90_v1 = vld [vmem:[%s457_s3 + $0x88] sm:$0xff]  ;;  %v91_v6 = vld [vmem:[%s457_s3 + $0x90] sm:$0xff] }
   0x2   :  { %v73_v2 = vld [vmem:[%s457_s3] sm:$0xff]  ;;  %v242_v4 = vpack.c.bf16 %v90_v1, %v89_v0  ;;  %v74_v5 = vld [vmem:[%s457_s3 + $0x8] sm:$0xff]  ;;  %v92_v7 = vld [vmem:[%s457_s3 + $0x98] sm:$0xff]  ;;  %v345_v15 = vshrl.u32 %v27_v3, 7 }
   0x3   :  { %v244_v8 = vpack.c.bf16 %v74_v5, %v73_v2  ;;  %v246_v9 = vpack.c.bf16 %v92_v7, %v91_v6  ;;  %v75_v10 = vld [vmem:[%s457_s3 + $0x10] sm:$0xff]  ;;  %v76_v11 = vld [vmem:[%s457_s3 + $0x18] sm:$0xff]  ;;  %v93_v12 = vld [vmem:[%s457_s3 + $0xa0] sm:$0xff] }
   0x4   :  { %243 = vmatprep.subr.bf16.mxu0 %v242_v4  ;;  %274 = vmatprep.subr.bf16.mxu1 %v242_v4  ;;  %v94_v13 = vld [vmem:[%s457_s3 + $0xa8] sm:$0xff]  ;;  %v248_v14 = vpack.c.bf16 %v76_v11, %v75_v10  ;;  %v77_v17 = vld [vmem:[%s457_s3 + $0x20] sm:$0xff]  ;;  %v95_v19 = vld [vmem:[%s457_s3 + $0xb0] sm:$0xff]  ;;  %v33_v22 = vsub.s32 1, %v345_v15  ;;  %v29_v42 = vsub.s32 0, %v345_v15 }
   0x5   :  { %245 = vmatpush3.bf16.msra.mxu0 %v244_v8  ;;  %282 = vmatpush3.bf16.msra.mxu1 %v244_v8  ;;  %v250_v16 = vpack.c.bf16 %v94_v13, %v93_v12  ;;  %v78_v18 = vld [vmem:[%s457_s3 + $0x28] sm:$0xff]  ;;  %v96_v20 = vld [vmem:[%s457_s3 + $0xb8] sm:$0xff]  ;;  %v79_v24 = vld [vmem:[%s457_s3 + $0x30] sm:$0xff] }
   0x6   :  { %247 = vmatprep.subr.bf16.mxu0 %v246_v9  ;;  %275 = vmatprep.subr.bf16.mxu1 %v246_v9  ;;  %v252_v21 = vpack.c.bf16 %v78_v18, %v77_v17  ;;  %v254_v23 = vpack.c.bf16 %v96_v20, %v95_v19  ;;  %v80_v25 = vld [vmem:[%s457_s3 + $0x38] sm:$0xff]  ;;  %v97_v26 = vld [vmem:[%s457_s3 + $0xc0] sm:$0xff]  ;;  %v98_v27 = vld [vmem:[%s457_s3 + $0xc8] sm:$0xff] }
   0x7   :  { %v18_v28 = vld [vmem:[%s458_s0 + $0x8] sm:$0xff]  ;;  %v25_v29 = vld [vmem:[%s459_s1] sm:$0x3]  ;;  %v256_v32 = vpack.c.bf16 %v80_v25, %v79_v24  ;;  %v258_v34 = vpack.c.bf16 %v98_v27, %v97_v26  ;;  %v99_v38 = vld [vmem:[%s457_s3 + $0xd0] sm:$0xff] }
   0x8   :  { %v45_v30 = vld [vmem:[%s460_s2] sm:$0x3]  ;;  %v22_v31 = vld [vmem:[%s458_s0 + $0x28] sm:$0xff]  ;;  %v34_v33 = vrot.slane %v25_v29, %v33_v22  ;;  %v100_v39 = vld [vmem:[%s457_s3 + $0xd8] sm:$0xff]  ;;  %v30_v53 = vrot.slane %v25_v29, %v29_v42 }
   0x9   :  { %249 = vmatpush3.bf16.msra.mxu0 %v248_v14  ;;  %283 = vmatpush3.bf16.msra.mxu1 %v248_v14  ;;  %v81_v35 = vld [vmem:[%s457_s3 + $0x40] sm:$0xff]  ;;  %v82_v36 = vld [vmem:[%s457_s3 + $0x48] sm:$0xff]  ;;  %v54_v37 = vrot.slane %v45_v30, %v33_v22  ;;  %v262_v46 = vpack.c.bf16 %v100_v39, %v99_v38  ;;  %v83_v47 = vld [vmem:[%s457_s3 + $0x50] sm:$0xff]  ;;  %v50_v0 = vrot.slane %v45_v30, %v29_v42 }
   0xa   :  { %251 = vmatprep.subr.bf16.mxu0 %v250_v16  ;;  %276 = vmatprep.subr.bf16.mxu1 %v250_v16  ;;  %v38_v40 = vmul.f32 %v34_v33, %v18_v28  ;;  %v42_v41 = vmul.f32 %v34_v33, %v22_v31  ;;  %v260_v43 = vpack.c.bf16 %v82_v36, %v81_v35  ;;  %v84_v48 = vld [vmem:[%s457_s3 + $0x58] sm:$0xff]  ;;  %v101_v49 = vld [vmem:[%s457_s3 + $0xe0] sm:$0xff]  ;;  %v102_v50 = vld [vmem:[%s457_s3 + $0xe8] sm:$0xff] }
   0xb   :  { %v264_v54 = vpack.c.bf16 %v84_v48, %v83_v47  ;;  %v85_v55 = vld [vmem:[%s457_s3 + $0x60] sm:$0xff]  ;;  %v266_v58 = vpack.c.bf16 %v102_v50, %v101_v49  ;;  %v86_v59 = vld [vmem:[%s457_s3 + $0x68] sm:$0xff]  ;;  %v20_v60 = vld [vmem:[%s458_s0 + $0x18] sm:$0xff] }
   0xc   :  { %v58_v44 = vadd.f32 %v54_v37, %v38_v40  ;;  %v62_v45 = vadd.f32 %v54_v37, %v42_v41  ;;  %v17_v56 = vld [vmem:[%s458_s0] sm:$0xff]  ;;  %v24_v61 = vld [vmem:[%s458_s0 + $0x38] sm:$0xff]  ;;  %v103_v62 = vld [vmem:[%s457_s3 + $0xf0] sm:$0xff]  ;;  %v268_v3 = vpack.c.bf16 %v86_v59, %v85_v55  ;;  %v40_v4 = vmul.f32 %v34_v33, %v20_v60 }
   0xd   :  { %253 = vmatpush3.bf16.msra.mxu0 %v252_v21  ;;  %284 = vmatpush3.bf16.msra.mxu1 %v252_v21  ;;  %v21_v57 = vld [vmem:[%s458_s0 + $0x20] sm:$0xff]  ;;  %v104_v63 = vld [vmem:[%s457_s3 + $0xf8] sm:$0xff]  ;;  %v37_v1 = vmul.f32 %v30_v53, %v17_v56  ;;  %v44_v5 = vmul.f32 %v34_v33, %v24_v61  ;;  %v19_v6 = vld [vmem:[%s458_s0 + $0x10] sm:$0xff] }
   0xe   :  { %255 = vmatprep.subr.bf16.mxu0 %v254_v23  ;;  %277 = vmatprep.subr.bf16.mxu1 %v254_v23  ;;  %v66_v51 = vmax.f32 %v58_v44, 0.0  ;;  %v70_v52 = vmax.f32 %v62_v45, 0.0  ;;  %v41_v2 = vmul.f32 %v30_v53, %v21_v57  ;;  %v23_v7 = vld [vmem:[%s458_s0 + $0x30] sm:$0xff]  ;;  %v270_v8 = vpack.c.bf16 %v104_v63, %v103_v62  ;;  %v88_v10 = vld [vmem:[%s457_s3 + $0x78] sm:$0xff] }
   0xf   :  { %v87_v9 = vld [vmem:[%s457_s3 + $0x70] sm:$0xff]  ;;  %v57_v11 = vadd.f32 %v50_v0, %v37_v1  ;;  %v39_v13 = vmul.f32 %v30_v53, %v19_v6  ;;  %v43_v14 = vmul.f32 %v30_v53, %v23_v7  ;;  %v60_v16 = vadd.f32 %v54_v37, %v40_v4 }
  0x10   :  { %169 = vmatprep.mubr.f32.mxu0 %v66_v51  ;;  %179 = vmatprep.mubr.f32.mxu1 %v70_v52  ;;  %v61_v12 = vadd.f32 %v50_v0, %v41_v2  ;;  %v272_v15 = vpack.c.bf16 %v88_v10, %v87_v9  ;;  %v64_v17 = vadd.f32 %v54_v37, %v44_v5 }
  0x11   :  { %257 = vmatpush3.bf16.msra.mxu0 %v256_v32  ;;  %285 = vmatpush3.bf16.msra.mxu1 %v256_v32  ;;  %v65_v18 = vmax.f32 %v57_v11, 0.0  ;;  %v59_v20 = vadd.f32 %v50_v0, %v39_v13  ;;  %v63_v21 = vadd.f32 %v50_v0, %v43_v14  ;;  %v68_v22 = vmax.f32 %v60_v16, 0.0 }
  0x12   :  { %259 = vmatprep.subr.bf16.mxu0 %v258_v34  ;;  %278 = vmatprep.subr.bf16.mxu1 %v258_v34  ;;  %v69_v19 = vmax.f32 %v61_v12, 0.0  ;;  %v72_v23 = vmax.f32 %v64_v17, 0.0 }
  0x13   :  { %v67_v24 = vmax.f32 %v59_v20, 0.0  ;;  %v71_v25 = vmax.f32 %v63_v21, 0.0 }
  0x15   :  { %261 = vmatpush3.bf16.msra.mxu0 %v260_v43  ;;  %286 = vmatpush3.bf16.msra.mxu1 %v260_v43 }
  0x16   :  { %263 = vmatprep.subr.bf16.mxu0 %v262_v46  ;;  %279 = vmatprep.subr.bf16.mxu1 %v262_v46 }
  0x19   :  { %265 = vmatpush3.bf16.msra.mxu0 %v264_v54  ;;  %287 = vmatpush3.bf16.msra.mxu1 %v264_v54 }
  0x1a   :  { %267 = vmatprep.subr.bf16.mxu0 %v266_v58  ;;  %280 = vmatprep.subr.bf16.mxu1 %v266_v58 }
  0x1d   :  { %269 = vmatpush3.bf16.msra.mxu0 %v268_v3  ;;  %288 = vmatpush3.bf16.msra.mxu1 %v268_v3 }
  0x1e   :  { %271 = vmatprep.subr.bf16.mxu0 %v270_v8  ;;  %281 = vmatprep.subr.bf16.mxu1 %v270_v8 }
  0x21   :  { %273 = vmatpush3.bf16.msra.mxu0 %v272_v15  ;;  %289 = vmatpush3.bf16.msra.mxu1 %v272_v15 }
  0x24   :  { %170 = vmatmul.mubr.f32.vlgmr.msra.gmra.mrb[0].mxu0 %v65_v18  ;;  %180 = vmatmul.mubr.f32.vlgmr.msra.gmra.mrb[0].mxu1 %v69_v19 }
  0x25   :  { %174 = vmatprep.mubr.f32.mxu0 %v68_v22  ;;  %184 = vmatprep.mubr.f32.mxu1 %v72_v23 }
  0x28   :  { %175 = vmatmul.mubr.f32.gmra.mrb[2].mxu0 %v67_v24  ;;  %185 = vmatmul.mubr.f32.gmra.mrb[2].mxu1 %v71_v25 }
  0xf7   :  { %v230_v26 = vpop.f32.mrb[0].mxu0  ;;  %v236_v27 = vpop.f32.mrb[0].mxu1 }
  0xf8   :  { %v231_v28 = vpop.f32.mrb[1].mxu0  ;;  %v237_v29 = vpop.f32.mrb[1].mxu1 }
  0xf9   :  { %v232_v30 = vadd.f32 %v231_v28, %v230_v26  ;;  %v238_v31 = vadd.f32 %v237_v29, %v236_v27 }
  0xfb   :  { %190 = vst [vmem:[%s461_s4] sm:$0xff] %v232_v30  ;;  %192 = vst [vmem:[%s461_s4 + $0x10] sm:$0xff] %v238_v31  ;;  %v233_v32 = vpop.f32.mrb[2].mxu0  ;;  %v239_v33 = vpop.f32.mrb[2].mxu1 }
  0xfc   :  { %v234_v34 = vpop.f32.mrb[3].mxu0  ;;  %v240_v35 = vpop.f32.mrb[3].mxu1 }
  0xfd   :  { %v235_v36 = vadd.f32 %v234_v34, %v233_v32  ;;  %v241_v37 = vadd.f32 %v240_v35, %v239_v33 }
  0xff   :  { %191 = vst [vmem:[%s461_s4 + $0x8] sm:$0xff] %v235_v36  ;;  %193 = vst [vmem:[%s461_s4 + $0x18] sm:$0xff] %v241_v37 }

// kernel: vision_dqn_dense_forward.84
= control target key start
LH: loop header
LB: loop body
LE: loop exit
PB: predicated region body
PF: predicated region fallthrough
CT: control target
= control target key end

     0   :  { %v43_v3 = vlaneseq  ;;  %v2182_v4 = vmov 0   ;;  %s3409_s4 = inlined_call_operand.vmem [shape: f32[256,128], index: 4, kind: input, shape index: {}]   ;;  %s3410_s0 = inlined_call_operand.vmem [shape: f32[32,256], index: 0, kind: input, shape index: {}, may-alias: {0,8}]   ;;  %s3411_s2 = inlined_call_operand.vmem [shape: f32[1,256], index: 2, kind: input, shape index: {}]   ;;  %s3412_s3 = inlined_call_operand.vmem [shape: f32[1,256], index: 3, kind: input, shape index: {}]   ;;  %s3413_s1 = inlined_call_operand.vmem [shape: f32[32,1], index: 1, kind: input, shape index: {}]   ;;  %s3414_s7 = inlined_call_operand.vmem [shape: f32[9,128,256], index: 7, kind: input, shape index: {}]   ;;  %s3415_s5 = inlined_call_operand.vmem [shape: f32[1,128], index: 5, kind: input, shape index: {}]   ;;  %s3416_s6 = inlined_call_operand.vmem [shape: f32[1,128], index: 6, kind: input, shape index: {}]   ;;  %s3417_s8 = inlined_call_operand.vmem [shape: f32[32,256], index: 8, kind: output, shape index: {}, may-alias: {0,8}]  }
   0x1   :  { %v105_v0 = vld [vmem:[%s3409_s4 + $0x80] sm:$0xff]  ;;  %v106_v1 = vld [vmem:[%s3409_s4 + $0x88] sm:$0xff]  ;;  %2171 = vset.pattern.permute.xlu0 %v2182_v4  ;;  %2172 = vset.pattern.permute.xlu1 %v2182_v4  ;;  %v107_v7 = vld [vmem:[%s3409_s4 + $0x90] sm:$0xff] }
   0x2   :  { %v89_v2 = vld [vmem:[%s3409_s4] sm:$0xff]  ;;  %v1785_v5 = vpack.c.bf16 %v106_v1, %v105_v0  ;;  %v90_v6 = vld [vmem:[%s3409_s4 + $0x8] sm:$0xff]  ;;  %v108_v8 = vld [vmem:[%s3409_s4 + $0x98] sm:$0xff]  ;;  %v2259_v16 = vshrl.u32 %v43_v3, 7 }
   0x3   :  { %v1787_v9 = vpack.c.bf16 %v90_v6, %v89_v2  ;;  %v1789_v10 = vpack.c.bf16 %v108_v8, %v107_v7  ;;  %v91_v11 = vld [vmem:[%s3409_s4 + $0x10] sm:$0xff]  ;;  %v92_v12 = vld [vmem:[%s3409_s4 + $0x18] sm:$0xff]  ;;  %v109_v13 = vld [vmem:[%s3409_s4 + $0xa0] sm:$0xff] }
   0x4   :  { %1786 = vmatprep.subr.bf16.mxu0 %v1785_v5  ;;  %v110_v14 = vld [vmem:[%s3409_s4 + $0xa8] sm:$0xff]  ;;  %v1791_v15 = vpack.c.bf16 %v92_v12, %v91_v11  ;;  %v93_v18 = vld [vmem:[%s3409_s4 + $0x20] sm:$0xff]  ;;  %v111_v20 = vld [vmem:[%s3409_s4 + $0xb0] sm:$0xff]  ;;  %v49_v23 = vsub.s32 1, %v2259_v16  ;;  %v45_v42 = vsub.s32 0, %v2259_v16 }
   0x5   :  { %1788 = vmatpush3.bf16.msra.mxu0 %v1787_v9  ;;  %v1793_v17 = vpack.c.bf16 %v110_v14, %v109_v13  ;;  %v94_v19 = vld [vmem:[%s3409_s4 + $0x28] sm:$0xff]  ;;  %v112_v21 = vld [vmem:[%s3409_s4 + $0xb8] sm:$0xff]  ;;  %v95_v25 = vld [vmem:[%s3409_s4 + $0x30] sm:$0xff] }
   0x6   :  { %1790 = vmatprep.subr.bf16.mxu0 %v1789_v10  ;;  %v1795_v22 = vpack.c.bf16 %v94_v19, %v93_v18  ;;  %v1797_v24 = vpack.c.bf16 %v112_v21, %v111_v20  ;;  %v96_v26 = vld [vmem:[%s3409_s4 + $0x38] sm:$0xff]  ;;  %v113_v27 = vld [vmem:[%s3409_s4 + $0xc0] sm:$0xff]  ;;  %v114_v28 = vld [vmem:[%s3409_s4 + $0xc8] sm:$0xff] }
   0x7   :  { %v30_v29 = vld [vmem:[%s3410_s0 + $0x8] sm:$0xff]  ;;  %v41_v30 = vld [vmem:[%s3411_s2] sm:$0x3]  ;;  %v1799_v32 = vpack.c.bf16 %v96_v26, %v95_v25  ;;  %v1801_v35 = vpack.c.bf16 %v114_v28, %v113_v27  ;;  %v115_v38 = vld [vmem:[%s3409_s4 + $0xd0] sm:$0xff] }
   0x8   :  { %v61_v31 = vld [vmem:[%s3412_s3] sm:$0x3]  ;;  %v2295_v33 = vrot.slane %v41_v30, %v49_v23  ;;  %v98_v37 = vld [vmem:[%s3409_s4 + $0x48] sm:$0xff]  ;;  %v116_v39 = vld [vmem:[%s3409_s4 + $0xd8] sm:$0xff]  ;;  %v2350_v58 = vrot.slane %v41_v30, %v45_v42 }
   0x9   :  { %1792 = vmatpush3.bf16.msra.mxu0 %v1791_v15  ;;  %v2297_v34 = vrot.slane %v61_v31, %v49_v23  ;;  %v97_v36 = vld [vmem:[%s3409_s4 + $0x40] sm:$0xff]  ;;  %v39_v43 = vld [vmem:[%s3413_s1 + $0x10] sm:$0xff]  ;;  %v100_v46 = vld [vmem:[%s3409_s4 + $0x58] sm:$0xff]  ;;  %v1805_v49 = vpack.c.bf16 %v116_v39, %v115_v38  ;;  %v2394_v14 = vrot.slane %v61_v31, %v45_v42 }
   0xa   :  { %1794 = vmatprep.subr.bf16.mxu0 %v1793_v17  ;;  %v54_v40 = vmul.f32 %v2295_v33, %v30_v29  ;;  %v37_v41 = vld [vmem:[%s3413_s1] sm:$0xff]  ;;  %v1803_v44 = vpack.c.bf16 %v98_v37, %v97_v36  ;;  %v99_v45 = vld [vmem:[%s3409_s4 + $0x50] sm:$0xff]  ;;  %v38_v48 = vld [vmem:[%s3413_s1 + $0x8] sm:$0xff]  ;;  %244 = vperm.xlu1 %2172, %v39_v43  }
   0xb   :  { %234 = vperm.xlu0 %2171, %v37_v41   ;;  %v117_v50 = vld [vmem:[%s3409_s4 + $0xe0] sm:$0xff]  ;;  %v1582_v51 = vld [vmem:[%s3414_s7 + $0x408] sm:$0xff]  ;;  %v1584_v52 = vld [vmem:[%s3414_s7 + $0x418] sm:$0xff]  ;;  %v1807_v62 = vpack.c.bf16 %v100_v46, %v99_v45 }
   0xc   :  { %v74_v47 = vadd.f32 %v2297_v34, %v54_v40  ;;  %v118_v53 = vld [vmem:[%s3409_s4 + $0xe8] sm:$0xff]  ;;  %v1581_v55 = vld [vmem:[%s3414_s7 + $0x400] sm:$0xff]  ;;  %v1583_v56 = vld [vmem:[%s3414_s7 + $0x410] sm:$0xff]  ;;  %v1945_v1 = vpack.c.bf16 %v1584_v52, %v1582_v51 }
   0xd   :  { %1796 = vmatpush3.bf16.msra.mxu0 %v1795_v22  ;;  %v101_v57 = vld [vmem:[%s3409_s4 + $0x60] sm:$0xff]  ;;  %v40_v59 = vld [vmem:[%s3413_s1 + $0x18] sm:$0xff]  ;;  %v1586_v60 = vld [vmem:[%s3414_s7 + $0x428] sm:$0xff]  ;;  %v1809_v3 = vpack.c.bf16 %v118_v53, %v117_v50  ;;  %v1947_v6 = vpack.c.bf16 %v1583_v56, %v1581_v55 }
   0xe   :  { %1798 = vmatprep.subr.bf16.mxu0 %v1797_v24  ;;  %v82_v54 = vmax.f32 %v74_v47, 0.0  ;;  %v1588_v61 = vld [vmem:[%s3414_s7 + $0x438] sm:$0xff]  ;;  %v102_v63 = vld [vmem:[%s3409_s4 + $0x68] sm:$0xff]  ;;  %v29_v0 = vld [vmem:[%s3410_s0] sm:$0xff]  ;;  %249 = vperm.xlu1 %2172, %v40_v59  }
   0xf   :  { %239 = vperm.xlu0 %2171, %v38_v48   ;;  %v1585_v2 = vld [vmem:[%s3414_s7 + $0x420] sm:$0xff]  ;;  %v119_v4 = vld [vmem:[%s3409_s4 + $0xf0] sm:$0xff]  ;;  %v32_v5 = vld [vmem:[%s3410_s0 + $0x18] sm:$0xff]  ;;  %v1949_v7 = vpack.c.bf16 %v1588_v61, %v1586_v60  ;;  %1946 = vmatprep.subr.bf16.mxu1 %v1945_v1  ;;  %v53_v15 = vmul.f32 %v2350_v58, %v29_v0  ;;  %v1811_v17 = vpack.c.bf16 %v102_v63, %v101_v57 }
  0x10   :  { %185 = vmatprep.mubr.f32.mxu0 %v82_v54  ;;  %v1587_v8 = vld [vmem:[%s3414_s7 + $0x430] sm:$0xff]  ;;  %v120_v9 = vld [vmem:[%s3409_s4 + $0xf8] sm:$0xff]  ;;  %v1590_v10 = vld [vmem:[%s3414_s7 + $0x448] sm:$0xff]  ;;  %1948 = vmatpush1.bf16.msra.mxu1 %v1947_v6  ;;  %v56_v18 = vmul.f32 %v2295_v33, %v32_v5 }
  0x11   :  { %1800 = vmatpush3.bf16.msra.mxu0 %v1799_v32  ;;  %v1592_v11 = vld [vmem:[%s3414_s7 + $0x458] sm:$0xff]  ;;  %v103_v12 = vld [vmem:[%s3409_s4 + $0x70] sm:$0xff]  ;;  %v1951_v16 = vpack.c.bf16 %v1587_v8, %v1585_v2  ;;  %1950 = vmatprep.subr.bf16.mxu1 %v1949_v7  ;;  %v1589_v21 = vld [vmem:[%s3414_s7 + $0x440] sm:$0xff]  ;;  %v1813_v23 = vpack.c.bf16 %v120_v9, %v119_v4  ;;  %v73_v30 = vadd.f32 %v2394_v14, %v53_v15 }
  0x12   :  { %1802 = vmatprep.subr.bf16.mxu0 %v1801_v35  ;;  %v104_v13 = vld [vmem:[%s3409_s4 + $0x78] sm:$0xff]  ;;  %v31_v19 = vld [vmem:[%s3410_s0 + $0x10] sm:$0xff]  ;;  %v1953_v20 = vpack.c.bf16 %v1592_v11, %v1590_v10  ;;  %v34_v24 = vld [vmem:[%s3410_s0 + $0x28] sm:$0xff]  ;;  %v76_v35 = vadd.f32 %v2297_v34, %v56_v18 }
  0x13   :  { %v1591_v22 = vld [vmem:[%s3414_s7 + $0x450] sm:$0xff]  ;;  %v1594_v25 = vld [vmem:[%s3414_s7 + $0x468] sm:$0xff]  ;;  %v1596_v26 = vld [vmem:[%s3414_s7 + $0x478] sm:$0xff]  ;;  %v1815_v29 = vpack.c.bf16 %v104_v13, %v103_v12  ;;  %v55_v31 = vmul.f32 %v2350_v58, %v31_v19  ;;  %v58_v36 = vmul.f32 %v2295_v33, %v34_v24  ;;  %v81_v45 = vmax.f32 %v73_v30, 0.0 }
  0x14   :  { %v1486_v27 = vld [vmem:[%s3414_s7 + $0x108] sm:$0xff]  ;;  %v1488_v28 = vld [vmem:[%s3414_s7 + $0x118] sm:$0xff]  ;;  %1952 = vmatpush1.bf16.msra.mxu1 %v1951_v16  ;;  %v1955_v32 = vpack.c.bf16 %v1591_v22, %v1589_v21  ;;  %v33_v37 = vld [vmem:[%s3410_s0 + $0x20] sm:$0xff]  ;;  %v1957_v38 = vpack.c.bf16 %v1596_v26, %v1594_v25  ;;  %v84_v48 = vmax.f32 %v76_v35, 0.0 }
  0x15   :  { %1804 = vmatpush3.bf16.msra.mxu0 %v1803_v44  ;;  %1954 = vmatprep.subr.bf16.mxu1 %v1953_v20  ;;  %v36_v39 = vld [vmem:[%s3410_s0 + $0x38] sm:$0xff]  ;;  %v1817_v40 = vpack.c.bf16 %v1488_v28, %v1486_v27  ;;  %v1485_v41 = vld [vmem:[%s3414_s7 + $0x100] sm:$0xff]  ;;  %v1487_v42 = vld [vmem:[%s3414_s7 + $0x110] sm:$0xff]  ;;  %v75_v46 = vadd.f32 %v2394_v14, %v55_v31  ;;  %v57_v47 = vmul.f32 %v2350_v58, %v33_v37 }
  0x16   :  { %1806 = vmatprep.subr.bf16.mxu0 %v1805_v49  ;;  %v1490_v43 = vld [vmem:[%s3414_s7 + $0x128] sm:$0xff]  ;;  %v1492_v44 = vld [vmem:[%s3414_s7 + $0x138] sm:$0xff]  ;;  %v78_v49 = vadd.f32 %v2297_v34, %v58_v36  ;;  %v60_v50 = vmul.f32 %v2295_v33, %v36_v39  ;;  %v35_v51 = vld [vmem:[%s3410_s0 + $0x30] sm:$0xff]  ;;  %v1819_v52 = vpack.c.bf16 %v1487_v42, %v1485_v41 }
  0x17   :  { %v1821_v53 = vpack.c.bf16 %v1492_v44, %v1490_v43  ;;  %v1489_v54 = vld [vmem:[%s3414_s7 + $0x120] sm:$0xff]  ;;  %v1491_v55 = vld [vmem:[%s3414_s7 + $0x130] sm:$0xff]  ;;  %v1494_v33 = vld [vmem:[%s3414_s7 + $0x148] sm:$0xff]  ;;  %v83_v57 = vmax.f32 %v75_v46, 0.0  ;;  %v77_v59 = vadd.f32 %v2394_v14, %v57_v47  ;;  %v59_v60 = vmul.f32 %v2350_v58, %v35_v51 }
  0x18   :  { %1956 = vmatpush1.bf16.msra.mxu1 %v1955_v32  ;;  %v1496_v56 = vld [vmem:[%s3414_s7 + $0x158] sm:$0xff]  ;;  %v86_v61 = vmax.f32 %v78_v49, 0.0  ;;  %v1823_v63 = vpack.c.bf16 %v1491_v55, %v1489_v54  ;;  %v1493_v1 = vld [vmem:[%s3414_s7 + $0x140] sm:$0xff]  ;;  %v1495_v2 = vld [vmem:[%s3414_s7 + $0x150] sm:$0xff] }
  0x19   :  { %1808 = vmatpush3.bf16.msra.mxu0 %v1807_v62  ;;  %1958 = vmatprep.subr.bf16.mxu1 %v1957_v38  ;;  %v80_v62 = vadd.f32 %v2297_v34, %v60_v50  ;;  %v1825_v0 = vpack.c.bf16 %v1496_v56, %v1494_v33  ;;  %v1498_v58 = vld [vmem:[%s3414_s7 + $0x168] sm:$0xff]  ;;  %v1500_v34 = vld [vmem:[%s3414_s7 + $0x178] sm:$0xff]  ;;  %v79_v4 = vadd.f32 %v2394_v14, %v59_v60  ;;  %v1593_v9 = vld [vmem:[%s3414_s7 + $0x460] sm:$0xff]  ;;  %v2183_v33 = vmov 0.0  }
  0x1a   :  { %1810 = vmatprep.subr.bf16.mxu0 %v1809_v3  ;;  %v85_v3 = vmax.f32 %v77_v59, 0.0  ;;  %v1827_v6 = vpack.c.bf16 %v1495_v2, %v1493_v1  ;;  %v1829_v7 = vpack.c.bf16 %v1500_v34, %v1498_v58  ;;  %v1595_v10 = vld [vmem:[%s3414_s7 + $0x470] sm:$0xff]  ;;  %v1598_v12 = vld [vmem:[%s3414_s7 + $0x488] sm:$0xff]  ;;  %v1600_v13 = vld [vmem:[%s3414_s7 + $0x498] sm:$0xff]  ;;  %256 = vst [vmem:[#allocation2] sm:$0xff] %v2183_v33  ;;  %886 = vmatprep.mubr.f32.mxu1 %v2183_v33 }
  0x1b   :  { %v88_v5 = vmax.f32 %v80_v62, 0.0  ;;  %v87_v8 = vmax.f32 %v79_v4, 0.0  ;;  %v1959_v11 = vpack.c.bf16 %v1595_v10, %v1593_v9  ;;  %v1961_v14 = vpack.c.bf16 %v1600_v13, %v1598_v12  ;;  %v1597_v15 = vld [vmem:[%s3414_s7 + $0x480] sm:$0xff]  ;;  %v1599_v16 = vld [vmem:[%s3414_s7 + $0x490] sm:$0xff]  ;;  %v1602_v18 = vld [vmem:[%s3414_s7 + $0x4a8] sm:$0xff]  ;;  %261 = vst [vmem:[#allocation2 + $0x28] sm:$0xff] %v2183_v33 }
  0x1c   :  { %v1604_v19 = vld [vmem:[%s3414_s7 + $0x4b8] sm:$0xff]  ;;  %v1497_v20 = vld [vmem:[%s3414_s7 + $0x160] sm:$0xff]  ;;  %v1499_v21 = vld [vmem:[%s3414_s7 + $0x170] sm:$0xff] }
  0x1d   :  { %1812 = vmatpush3.bf16.msra.mxu0 %v1811_v17  ;;  %1960 = vmatpush1.bf16.msra.mxu1 %v1959_v11  ;;  %v1963_v17 = vpack.c.bf16 %v1599_v16, %v1597_v15  ;;  %v1965_v22 = vpack.c.bf16 %v1604_v19, %v1602_v18  ;;  %v1831_v24 = vpack.c.bf16 %v1499_v21, %v1497_v20  ;;  %v1603_v25 = vld [vmem:[%s3414_s7 + $0x4b0] sm:$0xff]  ;;  %v1502_v27 = vld [vmem:[%s3414_s7 + $0x188] sm:$0xff]  ;;  %v1504_v28 = vld [vmem:[%s3414_s7 + $0x198] sm:$0xff] }
  0x1e   :  { %1814 = vmatprep.subr.bf16.mxu0 %v1813_v23  ;;  %1962 = vmatprep.subr.bf16.mxu1 %v1961_v14  ;;  %v1601_v23 = vld [vmem:[%s3414_s7 + $0x4a0] sm:$0xff]  ;;  %v1833_v30 = vpack.c.bf16 %v1504_v28, %v1502_v27  ;;  %v1503_v32 = vld [vmem:[%s3414_s7 + $0x190] sm:$0xff]  ;;  %v1608_v35 = vld [vmem:[%s3414_s7 + $0x4d8] sm:$0xff] }
  0x1f   :  { %v1967_v26 = vpack.c.bf16 %v1603_v25, %v1601_v23  ;;  %v1501_v31 = vld [vmem:[%s3414_s7 + $0x180] sm:$0xff]  ;;  %v1607_v39 = vld [vmem:[%s3414_s7 + $0x4d0] sm:$0xff]  ;;  %v1506_v41 = vld [vmem:[%s3414_s7 + $0x1a8] sm:$0xff] }
  0x20   :  { %v1835_v36 = vpack.c.bf16 %v1503_v32, %v1501_v31  ;;  %v1605_v38 = vld [vmem:[%s3414_s7 + $0x4c0] sm:$0xff]  ;;  %v1508_v42 = vld [vmem:[%s3414_s7 + $0x1b8] sm:$0xff]  ;;  %v1610_v46 = vld [vmem:[%s3414_s7 + $0x4e8] sm:$0xff] }
  0x21   :  { %1816 = vmatpush3.bf16.msra.mxu0 %v1815_v29  ;;  %1964 = vmatpush1.bf16.msra.mxu1 %v1963_v17  ;;  %v1606_v29 = vld [vmem:[%s3414_s7 + $0x4c8] sm:$0xff]  ;;  %v1837_v43 = vpack.c.bf16 %v1508_v42, %v1506_v41  ;;  %v1505_v44 = vld [vmem:[%s3414_s7 + $0x1a0] sm:$0xff]  ;;  %v1611_v50 = vld [vmem:[%s3414_s7 + $0x4f0] sm:$0xff] }
  0x22   :  { %1818 = vmatprep.subr.bf16.mxu0 %v1817_v40  ;;  %1966 = vmatprep.subr.bf16.mxu1 %v1965_v22  ;;  %v1969_v37 = vpack.c.bf16 %v1608_v35, %v1606_v29  ;;  %v1971_v40 = vpack.c.bf16 %v1607_v39, %v1605_v38  ;;  %v1609_v49 = vld [vmem:[%s3414_s7 + $0x4e0] sm:$0xff]  ;;  %v1512_v54 = vld [vmem:[%s3414_s7 + $0x1d8] sm:$0xff]  ;;  %v1614_v55 = vld [vmem:[%s3414_s7 + $0x508] sm:$0xff] }
  0x23   :  { %v1511_v59 = vld [vmem:[%s3414_s7 + $0x1d0] sm:$0xff]  ;;  %v1616_v60 = vld [vmem:[%s3414_s7 + $0x518] sm:$0xff]  ;;  %v1513_v2 = vld [vmem:[%s3414_s7 + $0x1e0] sm:$0xff] }
  0x24   :  { %186 = vmatmul.mubr.f32.vlgmr.msra.gmra.mrb[0].mxu0 %v81_v45  ;;  %v1507_v45 = vld [vmem:[%s3414_s7 + $0x1b0] sm:$0xff]  ;;  %v1977_v62 = vpack.c.bf16 %v1616_v60, %v1614_v55  ;;  %v273_v4 = vld [vmem:[%s3414_s7 + $0x18] sm:$0xff]  ;;  %v1484_v10 = vld [vmem:[%s3416_s6] ss:$0 sm:$0xff] }
  0x25   :  { %190 = vmatprep.mubr.f32.mxu0 %v84_v48  ;;  %1820 = vmatpush1.bf16.msra.mxu0 %v1819_v52  ;;  %v1839_v47 = vpack.c.bf16 %v1507_v45, %v1505_v44  ;;  %v1612_v48 = vld [vmem:[%s3414_s7 + $0x4f8] sm:$0xff]  ;;  %v1975_v52 = vpack.c.bf16 %v1611_v50, %v1609_v49  ;;  %v1515_v58 = vld [vmem:[%s3414_s7 + $0x1f0] sm:$0xff]  ;;  %v1613_v16 = vld [vmem:[%s3414_s7 + $0x500] sm:$0xff] }
  0x26   :  { %1822 = vmatprep.subr.bf16.mxu0 %v1821_v53  ;;  %1968 = vmatpush1.bf16.msra.mxu1 %v1967_v26  ;;  %v1973_v51 = vpack.c.bf16 %v1612_v48, %v1610_v46  ;;  %v1510_v53 = vld [vmem:[%s3414_s7 + $0x1c8] sm:$0xff]  ;;  %v1847_v34 = vpack.c.bf16 %v1515_v58, %v1513_v2  ;;  %v1615_v17 = vld [vmem:[%s3414_s7 + $0x510] sm:$0xff]  ;;  %v1620_v20 = vld [vmem:[%s3414_s7 + $0x538] sm:$0xff] }
  0x27   :  { %1970 = vmatprep.subr.bf16.mxu1 %v1969_v37  ;;  %v1841_v56 = vpack.c.bf16 %v1512_v54, %v1510_v53  ;;  %v1618_v19 = vld [vmem:[%s3414_s7 + $0x528] sm:$0xff]  ;;  %v1979_v25 = vpack.c.bf16 %v1615_v17, %v1613_v16  ;;  %v1619_v31 = vld [vmem:[%s3414_s7 + $0x530] sm:$0xff]  ;;  %v1624_v35 = vld [vmem:[%s3414_s7 + $0x558] sm:$0xff] }
  0x28   :  { %191 = vmatmul.mubr.f32.gmra.mrb[2].mxu0 %v83_v57  ;;  %v1509_v57 = vld [vmem:[%s3414_s7 + $0x1c0] sm:$0xff]  ;;  %v1981_v29 = vpack.c.bf16 %v1620_v20, %v1618_v19  ;;  %v1622_v32 = vld [vmem:[%s3414_s7 + $0x548] sm:$0xff]  ;;  %v272_v45 = vld [vmem:[%s3414_s7 + $0x10] sm:$0xff] }
  0x29   :  { %195 = vmatprep.mubr.f32.mxu0 %v86_v61  ;;  %1824 = vmatpush1.bf16.msra.mxu0 %v1823_v63  ;;  %v1843_v61 = vpack.c.bf16 %v1511_v59, %v1509_v57  ;;  %v1514_v63 = vld [vmem:[%s3414_s7 + $0x1e8] sm:$0xff]  ;;  %v270_v44 = vld [vmem:[%s3414_s7] sm:$0xff]  ;;  %v1627_v2 = vld [vmem:[%s3414_s7 + $0x570] sm:$0xff] }
  0x2a   :  { %1826 = vmatprep.subr.bf16.mxu0 %v1825_v0  ;;  %1972 = vmatpush1.bf16.msra.mxu1 %v1971_v40  ;;  %v1516_v0 = vld [vmem:[%s3414_s7 + $0x1f8] sm:$0xff]  ;;  %v1621_v48 = vld [vmem:[%s3414_s7 + $0x540] sm:$0xff]  ;;  %v275_v50 = vld [vmem:[%s3414_s7 + $0x28] sm:$0xff]  ;;  %v1851_v57 = vpack.c.bf16 %v272_v45, %v270_v44 }
  0x2b   :  { %1974 = vmatprep.subr.bf16.mxu1 %v1973_v51  ;;  %v1845_v1 = vpack.c.bf16 %v1516_v0, %v1514_v63  ;;  %v277_v51 = vld [vmem:[%s3414_s7 + $0x38] sm:$0xff]  ;;  %v1626_v55 = vld [vmem:[%s3414_s7 + $0x568] sm:$0xff]  ;;  %v274_v59 = vld [vmem:[%s3414_s7 + $0x20] sm:$0xff] }
  0x2c   :  { %196 = vmatmul.mubr.f32.gmra.mrb[4].mxu0 %v85_v3  ;;  %v271_v3 = vld [vmem:[%s3414_s7 + $0x8] sm:$0xff]  ;;  %v1631_v16 = vld [vmem:[%s3414_s7 + $0x590] sm:$0xff]  ;;  %v285_v20 = vld [vmem:[%s3414_s7 + $0x78] sm:$0xff] }
  0x2d   :  { %200 = vmatprep.mubr.f32.mxu0 %v88_v5  ;;  %1828 = vmatpush1.bf16.msra.mxu0 %v1827_v6  ;;  %v1849_v5 = vpack.c.bf16 %v273_v4, %v271_v3  ;;  %v281_v3 = vld [vmem:[%s3414_s7 + $0x58] sm:$0xff]  ;;  %v283_v19 = vld [vmem:[%s3414_s7 + $0x68] sm:$0xff]  ;;  %v1637_v45 = vld [vmem:[%s3414_s7 + $0x5c0] sm:$0xff] }
  0x2e   :  { %1830 = vmatprep.subr.bf16.mxu0 %v1829_v7  ;;  %1976 = vmatpush1.bf16.msra.mxu1 %v1975_v52  ;;  %v1623_v52 = vld [vmem:[%s3414_s7 + $0x550] sm:$0xff] }
  0x2f   :  { %1978 = vmatprep.subr.bf16.mxu1 %v1977_v62  ;;  %v276_v62 = vld [vmem:[%s3414_s7 + $0x30] sm:$0xff]  ;;  %v1987_v63 = vpack.c.bf16 %v1623_v52, %v1621_v48  ;;  %v293_v48 = vld [vmem:[%s3414_s7 + $0xb8] sm:$0xff]  ;;  %v1642_v52 = vld [vmem:[%s3414_s7 + $0x5e8] sm:$0xff] }
  0x30   :  { %201 = vmatmul.mubr.f32.gmra.mrb[6].mxu0 %v87_v8  ;;  %v1483_v8 = vld [vmem:[%s3415_s5] ss:$0 sm:$0xff] }
  0x31   :  { %1832 = vmatpush1.bf16.msra.mxu0 %v1831_v24  ;;  %403 = vmatprep.mubr.f32.mxu0 %v2183_v33 }
  0x32   :  { %1834 = vmatprep.subr.bf16.mxu0 %v1833_v30  ;;  %v1617_v30 = vld [vmem:[%s3414_s7 + $0x520] sm:$0xff] }
  0x33   :  { %v1983_v41 = vpack.c.bf16 %v1619_v31, %v1617_v30  ;;  %v1635_v30 = vld [vmem:[%s3414_s7 + $0x5b0] sm:$0xff] }
  0x35   :  { %1836 = vmatpush1.bf16.msra.mxu0 %v1835_v36 }
  0x36   :  { %1838 = vmatprep.subr.bf16.mxu0 %v1837_v43 }
  0x39   :  { %1840 = vmatpush1.bf16.msra.mxu0 %v1839_v47  ;;  %v1985_v47 = vpack.c.bf16 %v1624_v35, %v1622_v32  ;;  %v287_v32 = vld [vmem:[%s3414_s7 + $0x88] sm:$0xff]  ;;  %v289_v35 = vld [vmem:[%s3414_s7 + $0x98] sm:$0xff] }
  0x3a   :  { %1842 = vmatprep.subr.bf16.mxu0 %v1841_v56  ;;  %v1628_v56 = vld [vmem:[%s3414_s7 + $0x578] sm:$0xff] }
  0x3b   :  { %v1989_v4 = vpack.c.bf16 %v1628_v56, %v1626_v55  ;;  %v290_v56 = vld [vmem:[%s3414_s7 + $0xa0] sm:$0xff] }
  0x3d   :  { %1844 = vmatpush1.bf16.msra.mxu0 %v1843_v61  ;;  %v1853_v61 = vpack.c.bf16 %v277_v51, %v275_v50 }
  0x3e   :  { %1846 = vmatprep.subr.bf16.mxu0 %v1845_v1  ;;  %v1625_v1 = vld [vmem:[%s3414_s7 + $0x560] sm:$0xff] }
  0x41   :  { %1848 = vmatpush1.bf16.msra.mxu0 %v1847_v34  ;;  %v279_v34 = vld [vmem:[%s3414_s7 + $0x48] sm:$0xff] }
  0x42   :  { %1850 = vmatprep.subr.bf16.mxu0 %v1849_v5 }
  0x89   :  { %v2649_v49 = vpop.permute.xlu1 %244 }
  0x8a   :  { %v2615_v18 = vpop.permute.xlu0 %234 }
  0x8d   :  { %v2686_v5 = vpop.permute.xlu1 %249 }
  0x8e   :  { %v2636_v39 = vpop.permute.xlu0 %239 }
  0xf7   :  { %v1773_v6 = vpop.f32.mrb[0].mxu0 }
  0xf8   :  { %v1774_v7 = vpop.f32.mrb[1].mxu0 }
  0xf9   :  { %v1775_v9 = vadd.f32 %v1774_v7, %v1773_v6  ;;  %v1630_v7 = vld [vmem:[%s3414_s7 + $0x588] sm:$0xff] }
  0xfb   :  { %v213_v11 = vmul.f32 %v1775_v9, %v1483_v8  ;;  %v1776_v12 = vpop.f32.mrb[2].mxu0  ;;  %v1855_v9 = vpack.c.bf16 %v276_v62, %v274_v59  ;;  %v297_v62 = vld [vmem:[%s3414_s7 + $0xd8] sm:$0xff] }
  0xfc   :  { %v1777_v13 = vpop.f32.mrb[3].mxu0 }
  0xfd   :  { %v224_v14 = vadd.f32 %v1484_v10, %v213_v11  ;;  %v1778_v15 = vadd.f32 %v1777_v13, %v1776_v12  ;;  %v1857_v11 = vpack.c.bf16 %v281_v3, %v279_v34  ;;  %v280_v12 = vld [vmem:[%s3414_s7 + $0x50] sm:$0xff]  ;;  %v294_v3 = vld [vmem:[%s3414_s7 + $0xc0] sm:$0xff] }
  0xff   :  { %v228_v21 = vmax.f32 %v224_v14, 0.0  ;;  %v214_v22 = vmul.f32 %v1778_v15, %v1483_v8  ;;  %v1779_v23 = vpop.f32.mrb[4].mxu0  ;;  %v1991_v14 = vpack.c.bf16 %v1627_v2, %v1625_v1  ;;  %v1629_v15 = vld [vmem:[%s3414_s7 + $0x580] sm:$0xff]  ;;  %v1646_v1 = vld [vmem:[%s3414_s7 + $0x608] sm:$0xff]  ;;  %v1648_v2 = vld [vmem:[%s3414_s7 + $0x618] sm:$0xff] }
 0x100   :  { %v1780_v24 = vpop.f32.mrb[5].mxu0 }
 0x101   :  { %v252_v26 = vmul.f32 %v2615_v18, %v228_v21  ;;  %v225_v27 = vadd.f32 %v1484_v10, %v214_v22  ;;  %v1781_v28 = vadd.f32 %v1780_v24, %v1779_v23  ;;  %v1634_v22 = vld [vmem:[%s3414_s7 + $0x5a8] sm:$0xff]  ;;  %v1636_v23 = vld [vmem:[%s3414_s7 + $0x5b8] sm:$0xff] }
 0x103   :  { %262 = vst [vmem:[#allocation2 + $0x8] sm:$0xff] %v252_v26  ;;  %v229_v36 = vmax.f32 %v225_v27, 0.0  ;;  %v215_v37 = vmul.f32 %v1781_v28, %v1483_v8  ;;  %887 = vmatmul.mubr.f32.vlgmr.msra.gmra.mrb[0].mxu1 %v252_v26  ;;  %v1782_v38 = vpop.f32.mrb[6].mxu0  ;;  %v1861_v26 = vpack.c.bf16 %v285_v20, %v283_v19  ;;  %v284_v27 = vld [vmem:[%s3414_s7 + $0x70] sm:$0xff]  ;;  %v1995_v28 = vpack.c.bf16 %v1631_v16, %v1629_v15  ;;  %v298_v16 = vld [vmem:[%s3414_s7 + $0xe0] sm:$0xff] }
 0x104   :  { %1980 = vmatpush1.bf16.msra.mxu1 %v1979_v25  ;;  %892 = vmatprep.mubr.f32.mxu1 %v2183_v33  ;;  %v1783_v40 = vpop.f32.mrb[7].mxu0  ;;  %v282_v25 = vld [vmem:[%s3414_s7 + $0x60] sm:$0xff]  ;;  %v300_v19 = vld [vmem:[%s3414_s7 + $0xf0] sm:$0xff] }
 0x105   :  { %v253_v42 = vmul.f32 %v2636_v39, %v229_v36  ;;  %v226_v43 = vadd.f32 %v1484_v10, %v215_v37  ;;  %1982 = vmatprep.subr.bf16.mxu1 %v1981_v29  ;;  %v1784_v46 = vadd.f32 %v1783_v40, %v1782_v38  ;;  %v1633_v29 = vld [vmem:[%s3414_s7 + $0x5a0] sm:$0xff]  ;;  %v1997_v36 = vpack.c.bf16 %v1636_v23, %v1634_v22  ;;  %v1638_v37 = vld [vmem:[%s3414_s7 + $0x5c8] sm:$0xff]  ;;  %v1640_v38 = vld [vmem:[%s3414_s7 + $0x5d8] sm:$0xff] }
 0x106   :  { %v1863_v40 = vpack.c.bf16 %v284_v27, %v282_v25  ;;  %v1999_v44 = vpack.c.bf16 %v1635_v30, %v1633_v29  ;;  %v2001_v51 = vpack.c.bf16 %v1640_v38, %v1638_v37  ;;  %v1518_v22 = vld [vmem:[%s3414_s7 + $0x208] sm:$0xff]  ;;  %v1520_v23 = vld [vmem:[%s3414_s7 + $0x218] sm:$0xff]  ;;  %v1651_v25 = vld [vmem:[%s3414_s7 + $0x630] sm:$0xff]  ;;  %v1879_v29 = vpack.c.bf16 %v300_v19, %v298_v16 }
 0x107   :  { %263 = vst [vmem:[#allocation2 + $0x10] sm:$0xff] %v253_v42  ;;  %v230_v53 = vmax.f32 %v226_v43, 0.0  ;;  %v216_v54 = vmul.f32 %v1784_v46, %v1483_v8  ;;  %893 = vmatmul.mubr.f32.gmra.mrb[2].mxu1 %v253_v42  ;;  %v1632_v8 = vld [vmem:[%s3414_s7 + $0x598] sm:$0xff]  ;;  %v1865_v42 = vpack.c.bf16 %v289_v35, %v287_v32  ;;  %v288_v43 = vld [vmem:[%s3414_s7 + $0x90] sm:$0xff]  ;;  %v1654_v27 = vld [vmem:[%s3414_s7 + $0x648] sm:$0xff]  ;;  %v1881_v30 = vpack.c.bf16 %v1520_v23, %v1518_v22 }
 0x108   :  { %1984 = vmatpush1.bf16.msra.mxu1 %v1983_v41  ;;  %898 = vmatprep.mubr.f32.mxu1 %v2183_v33  ;;  %v1993_v21 = vpack.c.bf16 %v1632_v8, %v1630_v7  ;;  %v286_v41 = vld [vmem:[%s3414_s7 + $0x80] sm:$0xff]  ;;  %v1639_v46 = vld [vmem:[%s3414_s7 + $0x5d0] sm:$0xff]  ;;  %v299_v8 = vld [vmem:[%s3414_s7 + $0xe8] sm:$0xff] }
 0x109   :  { %v254_v60 = vmul.f32 %v2649_v49, %v230_v53  ;;  %1986 = vmatprep.subr.bf16.mxu1 %v1985_v47  ;;  %v227_v0 = vadd.f32 %v1484_v10, %v216_v54  ;;  %v278_v10 = vld [vmem:[%s3414_s7 + $0x40] sm:$0xff]  ;;  %v291_v47 = vld [vmem:[%s3414_s7 + $0xa8] sm:$0xff]  ;;  %v1644_v53 = vld [vmem:[%s3414_s7 + $0x5f8] sm:$0xff]  ;;  %v1867_v54 = vpack.c.bf16 %v288_v43, %v286_v41  ;;  %v2003_v59 = vpack.c.bf16 %v1639_v46, %v1637_v45 }
 0x10a   :  { %v302_v58 = vld [vmem:[#allocation2 + $0x4] sm:$0xff]  ;;  %v1859_v24 = vpack.c.bf16 %v280_v12, %v278_v10  ;;  %v1869_v55 = vpack.c.bf16 %v293_v48, %v291_v47  ;;  %v2009_v10 = vpack.c.bf16 %v1648_v2, %v1646_v1  ;;  %v1519_v35 = vld [vmem:[%s3414_s7 + $0x210] sm:$0xff]  ;;  %v1524_v38 = vld [vmem:[%s3414_s7 + $0x238] sm:$0xff] }
 0x10b   :  { %264 = vst [vmem:[#allocation2 + $0x18] sm:$0xff] %v254_v60  ;;  %404 = vmatmul.mubr.f32.vlgmr.msra.gmra.mrb[8].mxu0 %v302_v58  ;;  %v231_v6 = vmax.f32 %v227_v0, 0.0  ;;  %899 = vmatmul.mubr.f32.gmra.mrb[4].mxu1 %v254_v60  ;;  %v1641_v60 = vld [vmem:[%s3414_s7 + $0x5e0] sm:$0xff]  ;;  %v1643_v0 = vld [vmem:[%s3414_s7 + $0x5f0] sm:$0xff]  ;;  %v1650_v12 = vld [vmem:[%s3414_s7 + $0x628] sm:$0xff] }
 0x10c   :  { %1852 = vmatpush1.bf16.msra.mxu0 %v1851_v57  ;;  %409 = vmatprep.mubr.f32.mxu0 %v2183_v33  ;;  %v292_v57 = vld [vmem:[%s3414_s7 + $0xb0] sm:$0xff]  ;;  %v1645_v7 = vld [vmem:[%s3414_s7 + $0x600] sm:$0xff]  ;;  %v1522_v37 = vld [vmem:[%s3414_s7 + $0x228] sm:$0xff] }
 0x10d   :  { %1854 = vmatprep.subr.bf16.mxu0 %v1853_v61  ;;  %1988 = vmatpush1.bf16.msra.mxu1 %v1987_v63  ;;  %v255_v13 = vmul.f32 %v2686_v5, %v231_v6  ;;  %v295_v61 = vld [vmem:[%s3414_s7 + $0xc8] sm:$0xff]  ;;  %v2005_v63 = vpack.c.bf16 %v1644_v53, %v1642_v52  ;;  %v1871_v58 = vpack.c.bf16 %v292_v57, %v290_v56  ;;  %v1517_v32 = vld [vmem:[%s3414_s7 + $0x200] sm:$0xff]  ;;  %v1655_v43 = vld [vmem:[%s3414_s7 + $0x650] sm:$0xff] }
 0x10e   :  { %v2708_v17 = vld [vmem:[#allocation2 + $0xc] sm:$0xff]  ;;  %1990 = vmatprep.subr.bf16.mxu1 %v1989_v4  ;;  %904 = vmatprep.mubr.f32.mxu1 %v2183_v33  ;;  %v1873_v34 = vpack.c.bf16 %v297_v62, %v295_v61  ;;  %v2007_v6 = vpack.c.bf16 %v1643_v0, %v1641_v60  ;;  %v1660_v46 = vld [vmem:[%s3414_s7 + $0x678] sm:$0xff]  ;;  %v1885_v47 = vpack.c.bf16 %v1524_v38, %v1522_v37  ;;  %v1521_v48 = vld [vmem:[%s3414_s7 + $0x220] sm:$0xff] }
 0x10f   :  { %410 = vmatmul.mubr.f32.gmra.mrb[10].mxu0 %v2708_v17  ;;  %265 = vst [vmem:[#allocation2 + $0x20] sm:$0xff] %v255_v13  ;;  %905 = vmatmul.mubr.f32.gmra.mrb[6].mxu1 %v255_v13  ;;  %v296_v4 = vld [vmem:[%s3414_s7 + $0xd0] sm:$0xff]  ;;  %v1652_v13 = vld [vmem:[%s3414_s7 + $0x638] sm:$0xff]  ;;  %v1658_v45 = vld [vmem:[%s3414_s7 + $0x668] sm:$0xff] }
 0x110   :  { %1856 = vmatpush1.bf16.msra.mxu0 %v1855_v9  ;;  %415 = vmatprep.mubr.f32.mxu0 %v2183_v33  ;;  %v301_v9 = vld [vmem:[%s3414_s7 + $0xf8] sm:$0xff]  ;;  %v266_v52 = vld [vmem:[#allocation2 + $0x3] sm:$0xff]  ;;  %v2021_v56 = vpack.c.bf16 %v1660_v46, %v1658_v45  ;;  %v1527_v2 = vld [vmem:[%s3414_s7 + $0x250] sm:$0xff] }
 0x111   :  { %1858 = vmatprep.subr.bf16.mxu0 %v1857_v11  ;;  %1992 = vmatpush1.bf16.msra.mxu1 %v1991_v14  ;;  %v1647_v11 = vld [vmem:[%s3414_s7 + $0x610] sm:$0xff]  ;;  %v1875_v14 = vpack.c.bf16 %v296_v4, %v294_v3  ;;  %v1877_v15 = vpack.c.bf16 %v301_v9, %v299_v8  ;;  %v1526_v53 = vld [vmem:[%s3414_s7 + $0x248] sm:$0xff]  ;;  %v1657_v57 = vld [vmem:[%s3414_s7 + $0x660] sm:$0xff] }
 0x112   :  { %v2737_v31 = vld [vmem:[#allocation2 + $0x14] sm:$0xff]  ;;  %1994 = vmatprep.subr.bf16.mxu1 %v1993_v21  ;;  %1020 = vmatprep.mubr.f32.mxu1 %v2183_v33  ;;  %v2011_v20 = vpack.c.bf16 %v1647_v11, %v1645_v7  ;;  %v1649_v21 = vld [vmem:[%s3414_s7 + $0x620] sm:$0xff]  ;;  %v1662_v62 = vld [vmem:[%s3414_s7 + $0x688] sm:$0xff] }
 0x113   :  { %416 = vmatmul.mubr.f32.gmra.mrb[12].mxu0 %v2737_v31  ;;  %v920_v41 = vld [vmem:[#allocation2 + $0x11] sm:$0xff]  ;;  %v1525_v1 = vld [vmem:[%s3414_s7 + $0x240] sm:$0xff]  ;;  %v1666_v11 = vld [vmem:[%s3414_s7 + $0x6a8] sm:$0xff] }
 0x114   :  { %1860 = vmatpush1.bf16.msra.mxu0 %v1859_v24  ;;  %421 = vmatprep.mubr.f32.mxu0 %v2183_v33  ;;  %v2013_v24 = vpack.c.bf16 %v1652_v13, %v1650_v12  ;;  %v1532_v3 = vld [vmem:[%s3414_s7 + $0x278] sm:$0xff]  ;;  %v1661_v7 = vld [vmem:[%s3414_s7 + $0x680] sm:$0xff]  ;;  %v1663_v8 = vld [vmem:[%s3414_s7 + $0x690] sm:$0xff]  ;;  %v1891_v9 = vpack.c.bf16 %v1527_v2, %v1525_v1 }
 0x115   :  { %1862 = vmatprep.subr.bf16.mxu0 %v1861_v26  ;;  %1996 = vmatpush1.bf16.msra.mxu1 %v1995_v28  ;;  %v919_v26 = vld [vmem:[#allocation2 + $0x9] sm:$0xff]  ;;  %v1656_v28 = vld [vmem:[%s3414_s7 + $0x658] sm:$0xff]  ;;  %v1665_v23 = vld [vmem:[%s3414_s7 + $0x6a0] sm:$0xff] }
 0x116   :  { %1998 = vmatprep.subr.bf16.mxu1 %v1997_v36  ;;  %v2772_v50 = vld [vmem:[#allocation2 + $0x1c] sm:$0xff]  ;;  %v2015_v36 = vpack.c.bf16 %v1651_v25, %v1649_v21  ;;  %v2940_v16 = vld [vmem:[#allocation2 + $0x13] sm:$0xff]  ;;  %v1534_v19 = vld [vmem:[%s3414_s7 + $0x288] sm:$0xff]  ;;  %v2027_v21 = vpack.c.bf16 %v1663_v8, %v1661_v7 }
 0x117   :  { %422 = vmatmul.mubr.f32.gmra.mrb[14].mxu0 %v2772_v50  ;;  %v921_v61 = vld [vmem:[#allocation2 + $0x19] sm:$0xff] }
 0x118   :  { %1864 = vmatpush1.bf16.msra.mxu0 %v1863_v40  ;;  %492 = vmatprep.mubr.f32.mxu0 %v2183_v33  ;;  %v2017_v40 = vpack.c.bf16 %v1656_v28, %v1654_v27  ;;  %v1668_v12 = vld [vmem:[%s3414_s7 + $0x6b8] sm:$0xff]  ;;  %v1537_v46 = vld [vmem:[%s3414_s7 + $0x2a0] sm:$0xff] }
 0x119   :  { %1866 = vmatprep.subr.bf16.mxu0 %v1865_v42  ;;  %2000 = vmatpush1.bf16.msra.mxu1 %v1999_v44  ;;  %v1653_v42 = vld [vmem:[%s3414_s7 + $0x640] sm:$0xff]  ;;  %v1883_v44 = vpack.c.bf16 %v1519_v35, %v1517_v32  ;;  %v2029_v22 = vpack.c.bf16 %v1668_v12, %v1666_v11  ;;  %v1672_v27 = vld [vmem:[%s3414_s7 + $0x6d8] sm:$0xff]  ;;  %v1538_v35 = vld [vmem:[%s3414_s7 + $0x2a8] sm:$0xff] }
 0x11a   :  { %2002 = vmatprep.subr.bf16.mxu1 %v2001_v51  ;;  %v1523_v51 = vld [vmem:[%s3414_s7 + $0x230] sm:$0xff]  ;;  %v2969_v32 = vld [vmem:[#allocation2 + $0x1b] sm:$0xff]  ;;  %v1550_v11 = vld [vmem:[%s3414_s7 + $0x308] sm:$0xff] }
 0x11b   :  { %v1887_v60 = vpack.c.bf16 %v1523_v51, %v1521_v48  ;;  %v1542_v48 = vld [vmem:[%s3414_s7 + $0x2c8] sm:$0xff]  ;;  %v1544_v51 = vld [vmem:[%s3414_s7 + $0x2d8] sm:$0xff] }
 0x11c   :  { %1868 = vmatpush1.bf16.msra.mxu0 %v1867_v54  ;;  %v1528_v54 = vld [vmem:[%s3414_s7 + $0x258] sm:$0xff] }
 0x11d   :  { %1870 = vmatprep.subr.bf16.mxu0 %v1869_v55  ;;  %2004 = vmatpush1.bf16.msra.mxu1 %v2003_v59  ;;  %v2019_v55 = vpack.c.bf16 %v1655_v43, %v1653_v42  ;;  %v1659_v59 = vld [vmem:[%s3414_s7 + $0x670] sm:$0xff]  ;;  %v1889_v0 = vpack.c.bf16 %v1528_v54, %v1526_v53  ;;  %v1674_v43 = vld [vmem:[%s3414_s7 + $0x6e8] sm:$0xff]  ;;  %v1673_v54 = vld [vmem:[%s3414_s7 + $0x6e0] sm:$0xff] }
 0x11e   :  { %2006 = vmatprep.subr.bf16.mxu1 %v2005_v63  ;;  %v1664_v63 = vld [vmem:[%s3414_s7 + $0x698] sm:$0xff]  ;;  %v2023_v4 = vpack.c.bf16 %v1659_v59, %v1657_v57  ;;  %v1678_v57 = vld [vmem:[%s3414_s7 + $0x708] sm:$0xff] }
 0x11f   :  { %v1680_v59 = vld [vmem:[%s3414_s7 + $0x718] sm:$0xff] }
 0x120   :  { %1872 = vmatpush1.bf16.msra.mxu0 %v1871_v58  ;;  %v2911_v58 = vld [vmem:[#allocation2 + $0xb] sm:$0xff]  ;;  %v2041_v2 = vpack.c.bf16 %v1680_v59, %v1678_v57  ;;  %v1684_v7 = vld [vmem:[%s3414_s7 + $0x738] sm:$0xff] }
 0x121   :  { %1874 = vmatprep.subr.bf16.mxu0 %v1873_v34  ;;  %2008 = vmatpush1.bf16.msra.mxu1 %v2007_v6  ;;  %v1530_v34 = vld [vmem:[%s3414_s7 + $0x268] sm:$0xff]  ;;  %v2025_v6 = vpack.c.bf16 %v1664_v63, %v1662_v62  ;;  %v1543_v62 = vld [vmem:[%s3414_s7 + $0x2d0] sm:$0xff]  ;;  %v1552_v12 = vld [vmem:[%s3414_s7 + $0x318] sm:$0xff] }
 0x122   :  { %2010 = vmatprep.subr.bf16.mxu1 %v2009_v10  ;;  %v922_v10 = vld [vmem:[#allocation2 + $0x21] sm:$0xff]  ;;  %v1893_v13 = vpack.c.bf16 %v1532_v3, %v1530_v34  ;;  %v1679_v3 = vld [vmem:[%s3414_s7 + $0x710] sm:$0xff] }
 0x123   :  { %v1546_v63 = vld [vmem:[%s3414_s7 + $0x2e8] sm:$0xff]  ;;  %v1677_v34 = vld [vmem:[%s3414_s7 + $0x700] sm:$0xff] }
 0x124   :  { %1876 = vmatpush1.bf16.msra.mxu0 %v1875_v14  ;;  %1021 = vmatmul.mubr.f32.vlgmr.msra.gmra.mrb[0].mxu1 %v919_v26  ;;  %v1529_v14 = vld [vmem:[%s3414_s7 + $0x260] sm:$0xff]  ;;  %v1670_v26 = vld [vmem:[%s3414_s7 + $0x6c8] sm:$0xff] }
 0x125   :  { %1878 = vmatprep.subr.bf16.mxu0 %v1877_v15  ;;  %2012 = vmatpush1.bf16.msra.mxu1 %v2011_v20  ;;  %v1531_v15 = vld [vmem:[%s3414_s7 + $0x270] sm:$0xff]  ;;  %v1536_v20 = vld [vmem:[%s3414_s7 + $0x298] sm:$0xff]  ;;  %v2033_v38 = vpack.c.bf16 %v1672_v27, %v1670_v26  ;;  %v1554_v26 = vld [vmem:[%s3414_s7 + $0x328] sm:$0xff] }
 0x126   :  { %1026 = vmatprep.mubr.f32.mxu1 %v2183_v33  ;;  %2014 = vmatprep.subr.bf16.mxu1 %v2013_v24  ;;  %v1667_v24 = vld [vmem:[%s3414_s7 + $0x6b0] sm:$0xff]  ;;  %v1895_v25 = vpack.c.bf16 %v1531_v15, %v1529_v14  ;;  %v1897_v28 = vpack.c.bf16 %v1536_v20, %v1534_v19  ;;  %v1681_v15 = vld [vmem:[%s3414_s7 + $0x720] sm:$0xff]  ;;  %v1556_v27 = vld [vmem:[%s3414_s7 + $0x338] sm:$0xff] }
 0x127   :  { %v2031_v37 = vpack.c.bf16 %v1667_v24, %v1665_v23  ;;  %v1683_v19 = vld [vmem:[%s3414_s7 + $0x730] sm:$0xff]  ;;  %v1913_v23 = vpack.c.bf16 %v1552_v12, %v1550_v11  ;;  %v1549_v24 = vld [vmem:[%s3414_s7 + $0x300] sm:$0xff]  ;;  %v1562_v57 = vld [vmem:[%s3414_s7 + $0x368] sm:$0xff] }
 0x128   :  { %1880 = vmatpush1.bf16.msra.mxu0 %v1879_v29  ;;  %1027 = vmatmul.mubr.f32.gmra.mrb[2].mxu1 %v920_v41  ;;  %v1533_v29 = vld [vmem:[%s3414_s7 + $0x280] sm:$0xff]  ;;  %v1671_v41 = vld [vmem:[%s3414_s7 + $0x6d0] sm:$0xff] }
 0x129   :  { %1882 = vmatprep.subr.bf16.mxu0 %v1881_v30  ;;  %2016 = vmatpush1.bf16.msra.mxu1 %v2015_v36  ;;  %v1535_v30 = vld [vmem:[%s3414_s7 + $0x290] sm:$0xff]  ;;  %v1540_v36 = vld [vmem:[%s3414_s7 + $0x2b8] sm:$0xff]  ;;  %v1697_v11 = vld [vmem:[%s3414_s7 + $0x7a0] sm:$0xff] }
 0x12a   :  { %1032 = vmatprep.mubr.f32.mxu1 %v2183_v33  ;;  %2018 = vmatprep.subr.bf16.mxu1 %v2017_v40  ;;  %v1669_v40 = vld [vmem:[%s3414_s7 + $0x6c0] sm:$0xff]  ;;  %v1899_v42 = vpack.c.bf16 %v1535_v30, %v1533_v29  ;;  %v1901_v45 = vpack.c.bf16 %v1540_v36, %v1538_v35  ;;  %v1687_v30 = vld [vmem:[%s3414_s7 + $0x750] sm:$0xff]  ;;  %v1690_v36 = vld [vmem:[%s3414_s7 + $0x768] sm:$0xff] }
 0x12b   :  { %493 = vmatmul.mubr.f32.vlgmr.msra.gmra.mrb[8].mxu0 %v266_v52  ;;  %v2035_v52 = vpack.c.bf16 %v1671_v41, %v1669_v40  ;;  %v1685_v29 = vld [vmem:[%s3414_s7 + $0x740] sm:$0xff]  ;;  %v1555_v41 = vld [vmem:[%s3414_s7 + $0x330] sm:$0xff] }
 0x12c   :  { %1884 = vmatpush1.bf16.msra.mxu0 %v1883_v44  ;;  %498 = vmatprep.mubr.f32.mxu0 %v2183_v33  ;;  %v1676_v44 = vld [vmem:[%s3414_s7 + $0x6f8] sm:$0xff]  ;;  %v1553_v40 = vld [vmem:[%s3414_s7 + $0x320] sm:$0xff]  ;;  %v1699_v12 = vld [vmem:[%s3414_s7 + $0x7b0] sm:$0xff] }
 0x12d   :  { %1886 = vmatprep.subr.bf16.mxu0 %v1885_v47  ;;  %1033 = vmatmul.mubr.f32.gmra.mrb[4].mxu1 %v921_v61  ;;  %v1539_v47 = vld [vmem:[%s3414_s7 + $0x2b0] sm:$0xff]  ;;  %v2037_v53 = vpack.c.bf16 %v1676_v44, %v1674_v43  ;;  %v1541_v61 = vld [vmem:[%s3414_s7 + $0x2c0] sm:$0xff]  ;;  %v1558_v43 = vld [vmem:[%s3414_s7 + $0x348] sm:$0xff]  ;;  %v2051_v44 = vpack.c.bf16 %v1687_v30, %v1685_v29 }
 0x12e   :  { %2020 = vmatpush1.bf16.msra.mxu1 %v2019_v55  ;;  %1038 = vmatprep.mubr.f32.mxu1 %v2183_v33  ;;  %v1675_v55 = vld [vmem:[%s3414_s7 + $0x6f0] sm:$0xff]  ;;  %v1706_v29 = vld [vmem:[%s3414_s7 + $0x7e8] sm:$0xff]  ;;  %v1708_v30 = vld [vmem:[%s3414_s7 + $0x7f8] sm:$0xff] }
 0x12f   :  { %499 = vmatmul.mubr.f32.gmra.mrb[10].mxu0 %v2911_v58  ;;  %2022 = vmatprep.subr.bf16.mxu1 %v2021_v56  ;;  %v1903_v56 = vpack.c.bf16 %v1539_v47, %v1537_v46  ;;  %v2039_v1 = vpack.c.bf16 %v1675_v55, %v1673_v54  ;;  %v1689_v46 = vld [vmem:[%s3414_s7 + $0x760] sm:$0xff]  ;;  %v1691_v47 = vld [vmem:[%s3414_s7 + $0x770] sm:$0xff] }
 0x130   :  { %1888 = vmatpush1.bf16.msra.mxu0 %v1887_v60  ;;  %504 = vmatprep.mubr.f32.mxu0 %v2183_v33  ;;  %v1905_v60 = vpack.c.bf16 %v1544_v51, %v1542_v48  ;;  %v1919_v48 = vpack.c.bf16 %v1555_v41, %v1553_v40  ;;  %v1694_v51 = vld [vmem:[%s3414_s7 + $0x788] sm:$0xff]  ;;  %v1557_v54 = vld [vmem:[%s3414_s7 + $0x340] sm:$0xff]  ;;  %v1559_v55 = vld [vmem:[%s3414_s7 + $0x350] sm:$0xff]  ;;  %v2055_v59 = vpack.c.bf16 %v1691_v47, %v1689_v46 }
 0x131   :  { %1890 = vmatprep.subr.bf16.mxu0 %v1889_v0  ;;  %1039 = vmatmul.mubr.f32.gmra.mrb[6].mxu1 %v922_v10  ;;  %v1548_v0 = vld [vmem:[%s3414_s7 + $0x2f8] sm:$0xff]  ;;  %v1547_v10 = vld [vmem:[%s3414_s7 + $0x2f0] sm:$0xff]  ;;  %v2069_v41 = vpack.c.bf16 %v1708_v30, %v1706_v29  ;;  %v1573_v47 = vld [vmem:[%s3414_s7 + $0x3c0] sm:$0xff] }
 0x132   :  { %2024 = vmatpush1.bf16.msra.mxu1 %v2023_v4  ;;  %1154 = vmatprep.mubr.f32.mxu1 %v2183_v33  ;;  %v1907_v4 = vpack.c.bf16 %v1543_v62, %v1541_v61  ;;  %v1909_v8 = vpack.c.bf16 %v1548_v0, %v1546_v63  ;;  %v1693_v61 = vld [vmem:[%s3414_s7 + $0x780] sm:$0xff]  ;;  %v1695_v62 = vld [vmem:[%s3414_s7 + $0x790] sm:$0xff]  ;;  %v1923_v63 = vpack.c.bf16 %v1559_v55, %v1557_v54  ;;  %v1576_v40 = vld [vmem:[%s3414_s7 + $0x3d8] sm:$0xff] }
 0x133   :  { %505 = vmatmul.mubr.f32.gmra.mrb[12].mxu0 %v2940_v16  ;;  %2026 = vmatprep.subr.bf16.mxu1 %v2025_v6  ;;  %v1682_v6 = vld [vmem:[%s3414_s7 + $0x728] sm:$0xff]  ;;  %v1709_v55 = vld [vmem:[%s3414_s7 + $0x800] sm:$0xff]  ;;  %v1732_v29 = vld [vmem:[%s3414_s7 + $0x8b8] sm:$0xff] }
 0x134   :  { %1892 = vmatpush1.bf16.msra.mxu0 %v1891_v9  ;;  %510 = vmatprep.mubr.f32.mxu0 %v2183_v33  ;;  %v1545_v9 = vld [vmem:[%s3414_s7 + $0x2e0] sm:$0xff]  ;;  %v2045_v14 = vpack.c.bf16 %v1684_v7, %v1682_v6  ;;  %v3152_v6 = vld [vmem:[#allocation2 + $0x15] sm:$0xff]  ;;  %v1566_v7 = vld [vmem:[%s3414_s7 + $0x388] sm:$0xff] }
 0x135   :  { %1894 = vmatprep.subr.bf16.mxu0 %v1893_v13  ;;  %v2043_v13 = vpack.c.bf16 %v1679_v3, %v1677_v34  ;;  %v1911_v20 = vpack.c.bf16 %v1547_v10, %v1545_v9  ;;  %v1056_v0 = vld [vmem:[#allocation2 + $0x23] sm:$0xff]  ;;  %v2059_v9 = vpack.c.bf16 %v1695_v62, %v1693_v61  ;;  %v653_v30 = vld [vmem:[#allocation2 + $0x17] sm:$0xff] }
 0x136   :  { %2028 = vmatpush1.bf16.msra.mxu1 %v2027_v21  ;;  %v1686_v21 = vld [vmem:[%s3414_s7 + $0x748] sm:$0xff]  ;;  %v1561_v3 = vld [vmem:[%s3414_s7 + $0x360] sm:$0xff] }
 0x137   :  { %511 = vmatmul.mubr.f32.gmra.mrb[14].mxu0 %v2969_v32  ;;  %2030 = vmatprep.subr.bf16.mxu1 %v2029_v22  ;;  %v1688_v22 = vld [vmem:[%s3414_s7 + $0x758] sm:$0xff]  ;;  %v1577_v62 = vld [vmem:[%s3414_s7 + $0x3e0] sm:$0xff] }
 0x138   :  { %1896 = vmatpush1.bf16.msra.mxu0 %v1895_v25  ;;  %618 = vmatprep.mubr.f32.mxu0 %v2183_v33  ;;  %v1551_v25 = vld [vmem:[%s3414_s7 + $0x310] sm:$0xff] }
 0x139   :  { %1898 = vmatprep.subr.bf16.mxu0 %v1897_v28  ;;  %v2049_v28 = vpack.c.bf16 %v1688_v22, %v1686_v21  ;;  %v1915_v35 = vpack.c.bf16 %v1551_v25, %v1549_v24  ;;  %v1567_v21 = vld [vmem:[%s3414_s7 + $0x390] sm:$0xff]  ;;  %v3181_v22 = vld [vmem:[#allocation2 + $0x1d] sm:$0xff]  ;;  %v2063_v25 = vpack.c.bf16 %v1699_v12, %v1697_v11 }
 0x13a   :  { %2032 = vmatpush1.bf16.msra.mxu1 %v2031_v37  ;;  %v1692_v37 = vld [vmem:[%s3414_s7 + $0x778] sm:$0xff]  ;;  %v1717_v11 = vld [vmem:[%s3414_s7 + $0x840] sm:$0xff]  ;;  %v1719_v12 = vld [vmem:[%s3414_s7 + $0x850] sm:$0xff] }
 0x13b   :  { %2034 = vmatprep.subr.bf16.mxu1 %v2033_v38  ;;  %v1917_v38 = vpack.c.bf16 %v1556_v27, %v1554_v26  ;;  %v1572_v24 = vld [vmem:[%s3414_s7 + $0x3b8] sm:$0xff]  ;;  %v1701_v27 = vld [vmem:[%s3414_s7 + $0x7c0] sm:$0xff] }
 0x13c   :  { %1900 = vmatpush1.bf16.msra.mxu0 %v1899_v42  ;;  %v517_v42 = vld [vmem:[#allocation2 + $0x5] sm:$0xff] }
 0x13d   :  { %1902 = vmatprep.subr.bf16.mxu0 %v1901_v45  ;;  %v2053_v45 = vpack.c.bf16 %v1692_v37, %v1690_v36  ;;  %v1569_v36 = vld [vmem:[%s3414_s7 + $0x3a0] sm:$0xff]  ;;  %v1571_v37 = vld [vmem:[%s3414_s7 + $0x3b0] sm:$0xff] }
 0x13e   :  { %2036 = vmatpush1.bf16.msra.mxu1 %v2035_v52  ;;  %v1696_v52 = vld [vmem:[%s3414_s7 + $0x798] sm:$0xff] }
 0x13f   :  { %2038 = vmatprep.subr.bf16.mxu1 %v2037_v53 }
 0x140   :  { %1904 = vmatpush1.bf16.msra.mxu0 %v1903_v56  ;;  %v3123_v56 = vld [vmem:[#allocation2 + $0xd] sm:$0xff] }
 0x141   :  { %1906 = vmatprep.subr.bf16.mxu0 %v1905_v60  ;;  %v2057_v60 = vpack.c.bf16 %v1696_v52, %v1694_v51  ;;  %v1578_v51 = vld [vmem:[%s3414_s7 + $0x3e8] sm:$0xff]  ;;  %v1580_v52 = vld [vmem:[%s3414_s7 + $0x3f8] sm:$0xff] }
 0x142   :  { %2040 = vmatpush1.bf16.msra.mxu1 %v2039_v1  ;;  %v1698_v1 = vld [vmem:[%s3414_s7 + $0x7a8] sm:$0xff]  ;;  %v1941_v61 = vpack.c.bf16 %v1580_v52, %v1578_v51  ;;  %v1737_v51 = vld [vmem:[%s3414_s7 + $0x8e0] sm:$0xff]  ;;  %v1739_v52 = vld [vmem:[%s3414_s7 + $0x8f0] sm:$0xff] }
 0x143   :  { %2042 = vmatprep.subr.bf16.mxu1 %v2041_v2  ;;  %v1700_v2 = vld [vmem:[%s3414_s7 + $0x7b8] sm:$0xff] }
 0x144   :  { %1908 = vmatpush1.bf16.msra.mxu0 %v1907_v4  ;;  %v1563_v4 = vld [vmem:[%s3414_s7 + $0x370] sm:$0xff]  ;;  %v2061_v10 = vpack.c.bf16 %v1700_v2, %v1698_v1  ;;  %v1713_v2 = vld [vmem:[%s3414_s7 + $0x820] sm:$0xff] }
 0x145   :  { %1910 = vmatprep.subr.bf16.mxu0 %v1909_v8  ;;  %1155 = vmatmul.mubr.f32.vlgmr.msra.gmra.mrb[0].mxu1 %v2911_v58  ;;  %v2047_v58 = vpack.c.bf16 %v1683_v19, %v1681_v15  ;;  %v1568_v8 = vld [vmem:[%s3414_s7 + $0x398] sm:$0xff] }
 0x146   :  { %2044 = vmatpush1.bf16.msra.mxu1 %v2043_v13  ;;  %1160 = vmatprep.mubr.f32.mxu1 %v2183_v33  ;;  %v1927_v13 = vpack.c.bf16 %v1563_v4, %v1561_v3  ;;  %v1704_v15 = vld [vmem:[%s3414_s7 + $0x7d8] sm:$0xff]  ;;  %v1929_v19 = vpack.c.bf16 %v1568_v8, %v1566_v7  ;;  %v1718_v4 = vld [vmem:[%s3414_s7 + $0x848] sm:$0xff]  ;;  %v3270_v8 = vld [vmem:[#allocation2] sm:$0xff] }
 0x147   :  { %2046 = vmatprep.subr.bf16.mxu1 %v2045_v14  ;;  %v1702_v14 = vld [vmem:[%s3414_s7 + $0x7c8] sm:$0xff]  ;;  %v1720_v7 = vld [vmem:[%s3414_s7 + $0x858] sm:$0xff] }
 0x148   :  { %1912 = vmatpush1.bf16.msra.mxu0 %v1911_v20  ;;  %v1565_v20 = vld [vmem:[%s3414_s7 + $0x380] sm:$0xff]  ;;  %v2065_v26 = vpack.c.bf16 %v1704_v15, %v1702_v14  ;;  %v2083_v15 = vpack.c.bf16 %v1719_v12, %v1717_v11 }
 0x149   :  { %1914 = vmatprep.subr.bf16.mxu0 %v1913_v23  ;;  %1161 = vmatmul.mubr.f32.gmra.mrb[2].mxu1 %v2940_v16  ;;  %v1560_v16 = vld [vmem:[%s3414_s7 + $0x358] sm:$0xff]  ;;  %v1570_v23 = vld [vmem:[%s3414_s7 + $0x3a8] sm:$0xff] }
 0x14a   :  { %2048 = vmatpush1.bf16.msra.mxu1 %v2047_v58  ;;  %1166 = vmatprep.mubr.f32.mxu1 %v2183_v33  ;;  %v1921_v53 = vpack.c.bf16 %v1560_v16, %v1558_v43  ;;  %v1703_v58 = vld [vmem:[%s3414_s7 + $0x7d0] sm:$0xff]  ;;  %v1935_v16 = vpack.c.bf16 %v1571_v37, %v1569_v36  ;;  %v651_v14 = vld [vmem:[#allocation2 + $0x7] sm:$0xff] }
 0x14b   :  { %619 = vmatmul.mubr.f32.vlgmr.msra.gmra.mrb[8].mxu0 %v517_v42  ;;  %2050 = vmatprep.subr.bf16.mxu1 %v2049_v28  ;;  %v1931_v28 = vpack.c.bf16 %v1567_v21, %v1565_v20  ;;  %v1705_v42 = vld [vmem:[%s3414_s7 + $0x7e0] sm:$0xff]  ;;  %v1707_v43 = vld [vmem:[%s3414_s7 + $0x7f0] sm:$0xff] }
 0x14c   :  { %1916 = vmatpush1.bf16.msra.mxu0 %v1915_v35  ;;  %624 = vmatprep.mubr.f32.mxu0 %v2183_v33  ;;  %v1933_v35 = vpack.c.bf16 %v1572_v24, %v1570_v23  ;;  %v1721_v20 = vld [vmem:[%s3414_s7 + $0x860] sm:$0xff]  ;;  %v1723_v21 = vld [vmem:[%s3414_s7 + $0x870] sm:$0xff]  ;;  %v1728_v23 = vld [vmem:[%s3414_s7 + $0x898] sm:$0xff] }
 0x14d   :  { %1918 = vmatprep.subr.bf16.mxu0 %v1917_v38  ;;  %1167 = vmatmul.mubr.f32.gmra.mrb[4].mxu1 %v2969_v32  ;;  %v1564_v32 = vld [vmem:[%s3414_s7 + $0x378] sm:$0xff]  ;;  %v1574_v38 = vld [vmem:[%s3414_s7 + $0x3c8] sm:$0xff]  ;;  %v1729_v37 = vld [vmem:[%s3414_s7 + $0x8a0] sm:$0xff] }
 0x14e   :  { %2052 = vmatpush1.bf16.msra.mxu1 %v2051_v44  ;;  %1172 = vmatprep.mubr.f32.mxu1 %v2183_v33  ;;  %v1925_v34 = vpack.c.bf16 %v1564_v32, %v1562_v57  ;;  %v1710_v44 = vld [vmem:[%s3414_s7 + $0x808] sm:$0xff]  ;;  %v1937_v46 = vpack.c.bf16 %v1576_v40, %v1574_v38  ;;  %v1711_v57 = vld [vmem:[%s3414_s7 + $0x810] sm:$0xff] }
 0x14f   :  { %625 = vmatmul.mubr.f32.gmra.mrb[10].mxu0 %v3123_v56  ;;  %2054 = vmatprep.subr.bf16.mxu1 %v2053_v45  ;;  %v1712_v45 = vld [vmem:[%s3414_s7 + $0x818] sm:$0xff]  ;;  %v652_v24 = vld [vmem:[#allocation2 + $0xf] sm:$0xff] }
 0x150   :  { %1920 = vmatpush1.bf16.msra.mxu0 %v1919_v48  ;;  %630 = vmatprep.mubr.f32.mxu0 %v2183_v33  ;;  %v1575_v48 = vld [vmem:[%s3414_s7 + $0x3d0] sm:$0xff]  ;;  %v2073_v54 = vpack.c.bf16 %v1712_v45, %v1710_v44  ;;  %v1734_v40 = vld [vmem:[%s3414_s7 + $0x8c8] sm:$0xff] }
 0x151   :  { %1922 = vmatprep.subr.bf16.mxu0 %v1921_v53  ;;  %1173 = vmatmul.mubr.f32.gmra.mrb[6].mxu1 %v1056_v0  ;;  %v2071_v53 = vpack.c.bf16 %v1707_v43, %v1705_v42  ;;  %v1939_v32 = vpack.c.bf16 %v1575_v48, %v1573_v47  ;;  %v2075_v0 = vpack.c.bf16 %v1711_v57, %v1709_v55  ;;  %v1731_v38 = vld [vmem:[%s3414_s7 + $0x8b0] sm:$0xff]  ;;  %v1738_v45 = vld [vmem:[%s3414_s7 + $0x8e8] sm:$0xff] }
 0x152   :  { %2056 = vmatpush1.bf16.msra.mxu1 %v2055_v59  ;;  %1288 = vmatprep.mubr.f32.mxu1 %v2183_v33  ;;  %v1714_v59 = vld [vmem:[%s3414_s7 + $0x828] sm:$0xff]  ;;  %v2095_v42 = vpack.c.bf16 %v1731_v38, %v1729_v37  ;;  %v1735_v44 = vld [vmem:[%s3414_s7 + $0x8d0] sm:$0xff] }
 0x153   :  { %631 = vmatmul.mubr.f32.gmra.mrb[12].mxu0 %v3152_v6  ;;  %2058 = vmatprep.subr.bf16.mxu1 %v2057_v60  ;;  %v1716_v60 = vld [vmem:[%s3414_s7 + $0x838] sm:$0xff] }
 0x154   :  { %1924 = vmatpush1.bf16.msra.mxu0 %v1923_v63  ;;  %636 = vmatprep.mubr.f32.mxu0 %v2183_v33  ;;  %v1579_v63 = vld [vmem:[%s3414_s7 + $0x3f0] sm:$0xff]  ;;  %v2077_v1 = vpack.c.bf16 %v1716_v60, %v1714_v59 }
 0x155   :  { %1926 = vmatprep.subr.bf16.mxu0 %v1925_v34  ;;  %v1715_v34 = vld [vmem:[%s3414_s7 + $0x830] sm:$0xff]  ;;  %v1943_v3 = vpack.c.bf16 %v1579_v63, %v1577_v62 }
 0x156   :  { %2060 = vmatpush1.bf16.msra.mxu1 %v2059_v9  ;;  %v2079_v9 = vpack.c.bf16 %v1715_v34, %v1713_v2 }
 0x157   :  { %637 = vmatmul.mubr.f32.gmra.mrb[14].mxu0 %v3181_v22  ;;  %2062 = vmatprep.subr.bf16.mxu1 %v2061_v10  ;;  %v2081_v10 = vpack.c.bf16 %v1720_v7, %v1718_v4 }
 0x158   :  { %1928 = vmatpush1.bf16.msra.mxu0 %v1927_v13  ;;  %752 = vmatprep.mubr.f32.mxu0 %v2183_v33  ;;  %v2067_v33 = vpack.c.bf16 %v1703_v58, %v1701_v27  ;;  %v1724_v13 = vld [vmem:[%s3414_s7 + $0x878] sm:$0xff]  ;;  %v1725_v27 = vld [vmem:[%s3414_s7 + $0x880] sm:$0xff]  ;;  %v1727_v58 = vld [vmem:[%s3414_s7 + $0x890] sm:$0xff] }
 0x159   :  { %1930 = vmatprep.subr.bf16.mxu0 %v1929_v19 }
 0x15a   :  { %2064 = vmatpush1.bf16.msra.mxu1 %v2063_v25  ;;  %v2087_v25 = vpack.c.bf16 %v1723_v21, %v1721_v20 }
 0x15b   :  { %2066 = vmatprep.subr.bf16.mxu1 %v2065_v26 }
 0x15c   :  { %1932 = vmatpush1.bf16.msra.mxu0 %v1931_v28  ;;  %v1190_v28 = vld [vmem:[#allocation2 + $0x24] sm:$0xff] }
 0x15d   :  { %1934 = vmatprep.subr.bf16.mxu0 %v1933_v35  ;;  %v2091_v35 = vpack.c.bf16 %v1727_v58, %v1725_v27 }
 0x15e   :  { %2068 = vmatpush1.bf16.msra.mxu1 %v2067_v33  ;;  %v1736_v33 = vld [vmem:[%s3414_s7 + $0x8d8] sm:$0xff] }
 0x15f   :  { %2070 = vmatprep.subr.bf16.mxu1 %v2069_v41  ;;  %v654_v41 = vld [vmem:[#allocation2 + $0x1f] sm:$0xff]  ;;  %v2097_v43 = vpack.c.bf16 %v1736_v33, %v1734_v40 }
 0x160   :  { %1936 = vmatpush1.bf16.msra.mxu0 %v1935_v16  ;;  %v1733_v16 = vld [vmem:[%s3414_s7 + $0x8c0] sm:$0xff] }
 0x161   :  { %1938 = vmatprep.subr.bf16.mxu0 %v1937_v46  ;;  %v1740_v46 = vld [vmem:[%s3414_s7 + $0x8f8] sm:$0xff]  ;;  %v2099_v47 = vpack.c.bf16 %v1735_v44, %v1733_v16 }
 0x162   :  { %2072 = vmatpush1.bf16.msra.mxu1 %v2071_v53  ;;  %v2101_v48 = vpack.c.bf16 %v1740_v46, %v1738_v45  ;;  %v2103_v53 = vpack.c.bf16 %v1739_v52, %v1737_v51 }
 0x163   :  { %2074 = vmatprep.subr.bf16.mxu1 %v2073_v54  ;;  %v1324_v54 = vld [vmem:[#allocation2 + $0x25] sm:$0xff] }
 0x164   :  { %1940 = vmatpush1.bf16.msra.mxu0 %v1939_v32 }
 0x165   :  { %1942 = vmatprep.subr.bf16.mxu0 %v1941_v61  ;;  %1289 = vmatmul.mubr.f32.vlgmr.msra.gmra.mrb[0].mxu1 %v2708_v17  ;;  %v1722_v17 = vld [vmem:[%s3414_s7 + $0x868] sm:$0xff] }
 0x166   :  { %2076 = vmatpush1.bf16.msra.mxu1 %v2075_v0  ;;  %1294 = vmatprep.mubr.f32.mxu1 %v3270_v8  ;;  %v2085_v19 = vpack.c.bf16 %v1724_v13, %v1722_v17 }
 0x167   :  { %2078 = vmatprep.subr.bf16.mxu1 %v2077_v1 }
 0x168   :  { %1944 = vmatpush1.bf16.msra.mxu0 %v1943_v3  ;;  %v2174_v3 = vld [vmem:[%s3410_s0] sm:$0xff] }
 0x169   :  { %1295 = vmatmul.mubr.f32.gmra.mrb[2].mxu1 %v2737_v31  ;;  %v1726_v31 = vld [vmem:[%s3414_s7 + $0x888] sm:$0xff] }
 0x16a   :  { %2080 = vmatpush1.bf16.msra.mxu1 %v2079_v9  ;;  %1300 = vmatprep.mubr.f32.mxu1 %v3270_v8  ;;  %v2089_v26 = vpack.c.bf16 %v1728_v23, %v1726_v31  ;;  %v2175_v9 = vld [vmem:[%s3410_s0 + $0x8] sm:$0xff] }
 0x16b   :  { %753 = vmatmul.mubr.f32.vlgmr.msra.gmra.mrb[8].mxu0 %v651_v14  ;;  %2082 = vmatprep.subr.bf16.mxu1 %v2081_v10 }
 0x16c   :  { %758 = vmatprep.mubr.f32.mxu0 %v3270_v8 }
 0x16d   :  { %1301 = vmatmul.mubr.f32.gmra.mrb[4].mxu1 %v2772_v50  ;;  %v1730_v50 = vld [vmem:[%s3414_s7 + $0x8a8] sm:$0xff] }
 0x16e   :  { %2084 = vmatpush1.bf16.msra.mxu1 %v2083_v15  ;;  %1306 = vmatprep.mubr.f32.mxu1 %v3270_v8  ;;  %v2093_v36 = vpack.c.bf16 %v1732_v29, %v1730_v50 }
 0x16f   :  { %759 = vmatmul.mubr.f32.gmra.mrb[10].mxu0 %v652_v24  ;;  %2086 = vmatprep.subr.bf16.mxu1 %v2085_v19 }
 0x170   :  { %764 = vmatprep.mubr.f32.mxu0 %v3270_v8 }
 0x171   :  { %1307 = vmatmul.mubr.f32.gmra.mrb[6].mxu1 %v1190_v28 }
 0x172   :  { %2088 = vmatpush1.bf16.msra.mxu1 %v2087_v25  ;;  %1422 = vmatprep.mubr.f32.mxu1 %v3270_v8 }
 0x173   :  { %765 = vmatmul.mubr.f32.gmra.mrb[12].mxu0 %v653_v30  ;;  %2090 = vmatprep.subr.bf16.mxu1 %v2089_v26 }
 0x174   :  { %770 = vmatprep.mubr.f32.mxu0 %v3270_v8 }
 0x176   :  { %2092 = vmatpush1.bf16.msra.mxu1 %v2091_v35 }
 0x177   :  { %771 = vmatmul.mubr.f32.gmra.mrb[14].mxu0 %v654_v41  ;;  %2094 = vmatprep.subr.bf16.mxu1 %v2093_v36 }
 0x17a   :  { %2096 = vmatpush1.bf16.msra.mxu1 %v2095_v42 }
 0x17b   :  { %2098 = vmatprep.subr.bf16.mxu1 %v2097_v43 }
 0x17e   :  { %2100 = vmatpush1.bf16.msra.mxu1 %v2099_v47 }
 0x17f   :  { %2102 = vmatprep.subr.bf16.mxu1 %v2101_v48 }
 0x182   :  { %2104 = vmatpush1.bf16.msra.mxu1 %v2103_v53 }
 0x185   :  { %1423 = vmatmul.mubr.f32.vlgmr.msra.gmra.mrb[0].mxu1 %v3123_v56 }
 0x186   :  { %1428 = vmatprep.mubr.f32.mxu1 %v3270_v8 }
 0x189   :  { %1429 = vmatmul.mubr.f32.gmra.mrb[2].mxu1 %v3152_v6 }
 0x18a   :  { %1434 = vmatprep.mubr.f32.mxu1 %v3270_v8 }
 0x18d   :  { %1435 = vmatmul.mubr.f32.gmra.mrb[4].mxu1 %v3181_v22 }
 0x18e   :  { %1440 = vmatprep.mubr.f32.mxu1 %v3270_v8 }
 0x191   :  { %1441 = vmatmul.mubr.f32.gmra.mrb[6].mxu1 %v1324_v54 }
 0x23e   :  { %v754_v55 = vpop.f32.mrb[8].mxu0 }
 0x23f   :  { %v756_v57 = vpop.f32.mrb[9].mxu0 }
 0x242   :  { %v760_v32 = vpop.f32.mrb[10].mxu0 }
 0x243   :  { %v762_v59 = vpop.f32.mrb[11].mxu0 }
 0x246   :  { %v766_v60 = vpop.f32.mrb[12].mxu0 }
 0x247   :  { %v768_v61 = vpop.f32.mrb[13].mxu0 }
 0x24a   :  { %v772_v62 = vpop.f32.mrb[14].mxu0 }
 0x24b   :  { %v774_v56 = vpop.f32.mrb[15].mxu0 }
 0x258   :  { %v1424_v63 = vpop.f32.mrb[0].mxu1 }
 0x259   :  { %v2105_v0 = vadd.f32 %v1424_v63, %v754_v55  ;;  %v1426_v1 = vpop.f32.mrb[1].mxu1 }
 0x25a   :  { %v2106_v6 = vadd.f32 %v1426_v1, %v756_v57 }
 0x25b   :  { %v1455_v2 = vmul.f32 %v2105_v0, %v2615_v18 }
 0x25c   :  { %v1456_v22 = vmul.f32 %v2106_v6, %v2615_v18  ;;  %v1430_v34 = vpop.f32.mrb[2].mxu1 }
 0x25d   :  { %v1463_v4 = vadd.f32 %v2174_v3, %v1455_v2  ;;  %v2107_v7 = vadd.f32 %v1430_v34, %v760_v32  ;;  %v1432_v8 = vpop.f32.mrb[3].mxu1 }
 0x25e   :  { %v1464_v10 = vadd.f32 %v2175_v9, %v1456_v22  ;;  %v2108_v11 = vadd.f32 %v1432_v8, %v762_v59 }
 0x25f   :  { %1471 = vst [vmem:[%s3417_s8] sm:$0xff] %v1463_v4  ;;  %v1457_v18 = vmul.f32 %v2107_v7, %v2636_v39 }
 0x260   :  { %1472 = vst [vmem:[%s3417_s8 + $0x8] sm:$0xff] %v1464_v10  ;;  %v1458_v12 = vmul.f32 %v2108_v11, %v2636_v39  ;;  %v1436_v17 = vpop.f32.mrb[4].mxu1 }
 0x261   :  { %v2109_v15 = vadd.f32 %v1436_v17, %v766_v60  ;;  %v1438_v19 = vpop.f32.mrb[5].mxu1 }
 0x262   :  { %v2110_v31 = vadd.f32 %v1438_v19, %v768_v61 }
 0x263   :  { %v1459_v39 = vmul.f32 %v2109_v15, %v2649_v49 }
 0x264   :  { %v1460_v23 = vmul.f32 %v2110_v31, %v2649_v49  ;;  %v1442_v24 = vpop.f32.mrb[6].mxu1 }
 0x265   :  { %v2111_v27 = vadd.f32 %v1442_v24, %v772_v62  ;;  %v1444_v58 = vpop.f32.mrb[7].mxu1 }
 0x266   :  { %v2112_v29 = vadd.f32 %v1444_v58, %v774_v56 }
 0x267   :  { %v2176_v13 = vld [vmem:[%s3410_s0 + $0x10] sm:$0xff]  ;;  %v2177_v20 = vld [vmem:[%s3410_s0 + $0x18] sm:$0xff]  ;;  %v1461_v49 = vmul.f32 %v2111_v27, %v2686_v5 }
 0x268   :  { %v1465_v14 = vadd.f32 %v2176_v13, %v1457_v18  ;;  %v1466_v21 = vadd.f32 %v2177_v20, %v1458_v12  ;;  %v1462_v30 = vmul.f32 %v2112_v29, %v2686_v5 }
 0x26a   :  { %1473 = vst [vmem:[%s3417_s8 + $0x10] sm:$0xff] %v1465_v14  ;;  %1474 = vst [vmem:[%s3417_s8 + $0x18] sm:$0xff] %v1466_v21 }
 0x271   :  { %v2178_v25 = vld [vmem:[%s3410_s0 + $0x20] sm:$0xff]  ;;  %v2179_v28 = vld [vmem:[%s3410_s0 + $0x28] sm:$0xff] }
 0x272   :  { %v1467_v26 = vadd.f32 %v2178_v25, %v1459_v39  ;;  %v1468_v50 = vadd.f32 %v2179_v28, %v1460_v23 }
 0x274   :  { %1475 = vst [vmem:[%s3417_s8 + $0x20] sm:$0xff] %v1467_v26  ;;  %1476 = vst [vmem:[%s3417_s8 + $0x28] sm:$0xff] %v1468_v50 }
 0x27b   :  { %v2180_v35 = vld [vmem:[%s3410_s0 + $0x30] sm:$0xff]  ;;  %v2181_v37 = vld [vmem:[%s3410_s0 + $0x38] sm:$0xff] }
 0x27c   :  { %v1469_v36 = vadd.f32 %v2180_v35, %v1461_v49  ;;  %v1470_v38 = vadd.f32 %v2181_v37, %v1462_v30 }
 0x27e   :  { %1477 = vst [vmem:[%s3417_s8 + $0x30] sm:$0xff] %v1469_v36  ;;  %1478 = vst [vmem:[%s3417_s8 + $0x38] sm:$0xff] %v1470_v38 }

// kernel: vision_dqn_dense_forward.125
= control target key start
LH: loop header
LB: loop body
LE: loop exit
PB: predicated region body
PF: predicated region fallthrough
CT: control target
= control target key end

     0   :  { %v20_v3 = vlaneseq  ;;  %v245_v14 = vmov 1983009808   ;;  %s379_s3 = inlined_call_operand.vmem [shape: f32[256,128], index: 3, kind: input, shape index: {}]   ;;  %s380_s1 = inlined_call_operand.vmem [shape: f32[1,256], index: 1, kind: input, shape index: {}]   ;;  %s381_s2 = inlined_call_operand.vmem [shape: f32[1,256], index: 2, kind: input, shape index: {}]   ;;  %s382_s0 = inlined_call_operand.vmem [shape: f32[2,256], index: 0, kind: input, shape index: {}]   ;;  %s383_s4 = inlined_call_operand.vmem [shape: f32[2,128], index: 4, kind: output, shape index: {}]  }
   0x1   :  { %v75_v0 = vld [vmem:[%s379_s3 + $0x80] sm:$0xff]  ;;  %v76_v1 = vld [vmem:[%s379_s3 + $0x88] sm:$0xff]  ;;  %v77_v6 = vld [vmem:[%s379_s3 + $0x90] sm:$0xff]  ;;  %v30_v15 = vunpack.c.l.s4 %v245_v14 }
   0x2   :  { %v59_v2 = vld [vmem:[%s379_s3] sm:$0xff]  ;;  %v212_v4 = vpack.c.bf16 %v76_v1, %v75_v0  ;;  %v60_v5 = vld [vmem:[%s379_s3 + $0x8] sm:$0xff]  ;;  %v78_v7 = vld [vmem:[%s379_s3 + $0x98] sm:$0xff]  ;;  %v21_v17 = vshrl.u32 %v20_v3, 7 }
   0x3   :  { %v214_v8 = vpack.c.bf16 %v60_v5, %v59_v2  ;;  %v216_v9 = vpack.c.bf16 %v78_v7, %v77_v6  ;;  %v61_v10 = vld [vmem:[%s379_s3 + $0x10] sm:$0xff]  ;;  %v62_v11 = vld [vmem:[%s379_s3 + $0x18] sm:$0xff]  ;;  %v79_v12 = vld [vmem:[%s379_s3 + $0xa0] sm:$0xff]  ;;  %v31_v23 = vunpack.c.0.s8 %v30_v15 }
   0x4   :  { %213 = vmatprep.subr.bf16.mxu0 %v212_v4  ;;  %v80_v13 = vld [vmem:[%s379_s3 + $0xa8] sm:$0xff]  ;;  %v218_v16 = vpack.c.bf16 %v62_v11, %v61_v10  ;;  %v63_v19 = vld [vmem:[%s379_s3 + $0x20] sm:$0xff]  ;;  %v81_v21 = vld [vmem:[%s379_s3 + $0xb0] sm:$0xff]  ;;  %v22_v27 = vsub.s32 0, %v21_v17  ;;  %v26_v28 = vsub.s32 1, %v21_v17 }
   0x5   :  { %215 = vmatpush3.bf16.msra.mxu0 %v214_v8  ;;  %v220_v18 = vpack.c.bf16 %v80_v13, %v79_v12  ;;  %v64_v20 = vld [vmem:[%s379_s3 + $0x28] sm:$0xff]  ;;  %v82_v22 = vld [vmem:[%s379_s3 + $0xb8] sm:$0xff]  ;;  %v65_v25 = vld [vmem:[%s379_s3 + $0x30] sm:$0xff]  ;;  %v34_v34 = vsub.s32 %v31_v23, %v21_v17 }
   0x6   :  { %217 = vmatprep.subr.bf16.mxu0 %v216_v9  ;;  %v222_v24 = vpack.c.bf16 %v64_v20, %v63_v19  ;;  %v66_v26 = vld [vmem:[%s379_s3 + $0x38] sm:$0xff]  ;;  %v224_v29 = vpack.c.bf16 %v82_v22, %v81_v21  ;;  %v83_v30 = vld [vmem:[%s379_s3 + $0xc0] sm:$0xff]  ;;  %v84_v31 = vld [vmem:[%s379_s3 + $0xc8] sm:$0xff] }
   0x7   :  { %v226_v32 = vpack.c.bf16 %v66_v26, %v65_v25  ;;  %v18_v33 = vld [vmem:[%s380_s1] sm:$0x3]  ;;  %v228_v40 = vpack.c.bf16 %v84_v31, %v83_v30  ;;  %v68_v42 = vld [vmem:[%s379_s3 + $0x48] sm:$0xff]  ;;  %v85_v43 = vld [vmem:[%s379_s3 + $0xd0] sm:$0xff] }
   0x8   :  { %v38_v35 = vld [vmem:[%s381_s2] sm:$0x3]  ;;  %v23_v36 = vrot.slane %v18_v33, %v22_v27  ;;  %v27_v37 = vrot.slane %v18_v33, %v26_v28  ;;  %v86_v44 = vld [vmem:[%s379_s3 + $0xd8] sm:$0xff]  ;;  %v69_v52 = vld [vmem:[%s379_s3 + $0x50] sm:$0xff] }
   0x9   :  { %219 = vmatpush3.bf16.msra.mxu0 %v218_v16  ;;  %v43_v38 = vrot.slane %v38_v35, %v22_v27  ;;  %v47_v39 = vrot.slane %v38_v35, %v26_v28  ;;  %v67_v41 = vld [vmem:[%s379_s3 + $0x40] sm:$0xff]  ;;  %v232_v51 = vpack.c.bf16 %v86_v44, %v85_v43  ;;  %v70_v53 = vld [vmem:[%s379_s3 + $0x58] sm:$0xff]  ;;  %v88_v55 = vld [vmem:[%s379_s3 + $0xe8] sm:$0xff] }
   0xa   :  { %221 = vmatprep.subr.bf16.mxu0 %v220_v18  ;;  %v28_v45 = vcombine.low %v23_v36, %v27_v37  ;;  %v17_v47 = vld [vmem:[%s382_s0] sm:$0xf]  ;;  %v230_v48 = vpack.c.bf16 %v68_v42, %v67_v41  ;;  %v234_v57 = vpack.c.bf16 %v70_v53, %v69_v52  ;;  %v72_v61 = vld [vmem:[%s379_s3 + $0x68] sm:$0xff]  ;;  %v89_v62 = vld [vmem:[%s379_s3 + $0xf0] sm:$0xff] }
   0xb   :  { %v48_v46 = vcombine.low %v43_v38, %v47_v39  ;;  %v87_v54 = vld [vmem:[%s379_s3 + $0xe0] sm:$0xff]  ;;  %v90_v63 = vld [vmem:[%s379_s3 + $0xf8] sm:$0xff]  ;;  %v73_v4 = vld [vmem:[%s379_s3 + $0x70] sm:$0xff] }
   0xc   :  { %v35_v49 = vrot.slane %v28_v45, %v34_v34  ;;  %v236_v59 = vpack.c.bf16 %v88_v55, %v87_v54  ;;  %v71_v60 = vld [vmem:[%s379_s3 + $0x60] sm:$0xff]  ;;  %v240_v3 = vpack.c.bf16 %v90_v63, %v89_v62  ;;  %v74_v5 = vld [vmem:[%s379_s3 + $0x78] sm:$0xff] }
   0xd   :  { %223 = vmatpush3.bf16.msra.mxu0 %v222_v24  ;;  %v55_v50 = vrot.slane %v48_v46, %v34_v34  ;;  %v238_v1 = vpack.c.bf16 %v72_v61, %v71_v60  ;;  %v242_v7 = vpack.c.bf16 %v74_v5, %v73_v4 }
   0xe   :  { %225 = vmatprep.subr.bf16.mxu0 %v224_v29  ;;  %v37_v56 = vmul.f32 %v35_v49, %v17_v47 }
  0x10   :  { %v57_v58 = vadd.f32 %v55_v50, %v37_v56 }
  0x11   :  { %227 = vmatpush3.bf16.msra.mxu0 %v226_v32 }
  0x12   :  { %229 = vmatprep.subr.bf16.mxu0 %v228_v40  ;;  %v58_v0 = vmax.f32 %v57_v58, 0.0 }
  0x14   :  { %v98_v2 = vrot.slane %v58_v0, %v34_v34 }
  0x15   :  { %231 = vmatpush3.bf16.msra.mxu0 %v230_v48 }
  0x16   :  { %233 = vmatprep.subr.bf16.mxu0 %v232_v51  ;;  %v99_v6 = vcombine.high %v98_v2, %v98_v2 }
  0x18   :  { %166 = vmatprep.mubr.f32.mxu0 %v99_v6 }
  0x19   :  { %235 = vmatpush3.bf16.msra.mxu0 %v234_v57 }
  0x1a   :  { %237 = vmatprep.subr.bf16.mxu0 %v236_v59 }
  0x1d   :  { %239 = vmatpush3.bf16.msra.mxu0 %v238_v1 }
  0x1e   :  { %241 = vmatprep.subr.bf16.mxu0 %v240_v3 }
  0x21   :  { %243 = vmatpush3.bf16.msra.mxu0 %v242_v7 }
  0x24   :  { %167 = vmatmul.mubr.f32.vlgmr.msra.gmra.mrb[0].mxu0 %v98_v2 }
  0xf7   :  { %v209_v8 = vpop.f32.mrb[0].mxu0 }
  0xf8   :  { %v210_v9 = vpop.f32.mrb[1].mxu0 }
  0xf9   :  { %v211_v10 = vadd.f32 %v210_v9, %v209_v8 }
  0xfb   :  { %172 = vst [vmem:[%s383_s4] sm:$0x3] %v211_v10 }

// kernel: vision_dqn_dense_forward.109
= control target key start
LH: loop header
LB: loop body
LE: loop exit
PB: predicated region body
PF: predicated region fallthrough
CT: control target
= control target key end

     0   :  { %v40_v3 = vlaneseq  ;;  %v2053_v4 = vmov 0   ;;  %s3191_s4 = inlined_call_operand.vmem [shape: f32[256,128], index: 4, kind: input, shape index: {}]   ;;  %s3192_s0 = inlined_call_operand.vmem [shape: f32[18,256], index: 0, kind: input, shape index: {}, may-alias: {0,8}]   ;;  %s3193_s2 = inlined_call_operand.vmem [shape: f32[1,256], index: 2, kind: input, shape index: {}]   ;;  %s3194_s3 = inlined_call_operand.vmem [shape: f32[1,256], index: 3, kind: input, shape index: {}]   ;;  %s3195_s1 = inlined_call_operand.vmem [shape: f32[18,1], index: 1, kind: input, shape index: {}]   ;;  %s3196_s7 = inlined_call_operand.vmem [shape: f32[9,128,256], index: 7, kind: input, shape index: {}]   ;;  %s3197_s5 = inlined_call_operand.vmem [shape: f32[1,128], index: 5, kind: input, shape index: {}]   ;;  %s3198_s6 = inlined_call_operand.vmem [shape: f32[1,128], index: 6, kind: input, shape index: {}]   ;;  %s3199_s8 = inlined_call_operand.vmem [shape: f32[18,256], index: 8, kind: output, shape index: {}, may-alias: {0,8}]  }
   0x1   :  { %v96_v0 = vld [vmem:[%s3191_s4 + $0x80] sm:$0xff]  ;;  %v97_v1 = vld [vmem:[%s3191_s4 + $0x88] sm:$0xff]  ;;  %2044 = vset.pattern.permute.xlu0 %v2053_v4  ;;  %2045 = vset.pattern.permute.xlu1 %v2053_v4  ;;  %v98_v7 = vld [vmem:[%s3191_s4 + $0x90] sm:$0xff] }
   0x2   :  { %v80_v2 = vld [vmem:[%s3191_s4] sm:$0xff]  ;;  %v1674_v5 = vpack.c.bf16 %v97_v1, %v96_v0  ;;  %v81_v6 = vld [vmem:[%s3191_s4 + $0x8] sm:$0xff]  ;;  %v99_v8 = vld [vmem:[%s3191_s4 + $0x98] sm:$0xff]  ;;  %v2130_v16 = vshrl.u32 %v40_v3, 7 }
   0x3   :  { %v1676_v9 = vpack.c.bf16 %v81_v6, %v80_v2  ;;  %v1678_v10 = vpack.c.bf16 %v99_v8, %v98_v7  ;;  %v82_v11 = vld [vmem:[%s3191_s4 + $0x10] sm:$0xff]  ;;  %v83_v12 = vld [vmem:[%s3191_s4 + $0x18] sm:$0xff]  ;;  %v100_v13 = vld [vmem:[%s3191_s4 + $0xa0] sm:$0xff] }
   0x4   :  { %1675 = vmatprep.subr.bf16.mxu0 %v1674_v5  ;;  %v101_v14 = vld [vmem:[%s3191_s4 + $0xa8] sm:$0xff]  ;;  %v1680_v15 = vpack.c.bf16 %v83_v12, %v82_v11  ;;  %v84_v18 = vld [vmem:[%s3191_s4 + $0x20] sm:$0xff]  ;;  %v102_v20 = vld [vmem:[%s3191_s4 + $0xb0] sm:$0xff]  ;;  %v46_v23 = vsub.s32 1, %v2130_v16  ;;  %v42_v43 = vsub.s32 0, %v2130_v16 }
   0x5   :  { %1677 = vmatpush3.bf16.msra.mxu0 %v1676_v9  ;;  %v1682_v17 = vpack.c.bf16 %v101_v14, %v100_v13  ;;  %v85_v19 = vld [vmem:[%s3191_s4 + $0x28] sm:$0xff]  ;;  %v103_v21 = vld [vmem:[%s3191_s4 + $0xb8] sm:$0xff]  ;;  %v86_v25 = vld [vmem:[%s3191_s4 + $0x30] sm:$0xff] }
   0x6   :  { %1679 = vmatprep.subr.bf16.mxu0 %v1678_v10  ;;  %v1684_v22 = vpack.c.bf16 %v85_v19, %v84_v18  ;;  %v1686_v24 = vpack.c.bf16 %v103_v21, %v102_v20  ;;  %v87_v26 = vld [vmem:[%s3191_s4 + $0x38] sm:$0xff]  ;;  %v104_v27 = vld [vmem:[%s3191_s4 + $0xc0] sm:$0xff]  ;;  %v105_v28 = vld [vmem:[%s3191_s4 + $0xc8] sm:$0xff] }
   0x7   :  { %v30_v29 = vld [vmem:[%s3192_s0 + $0x8] sm:$0xff]  ;;  %v38_v30 = vld [vmem:[%s3193_s2] sm:$0x3]  ;;  %v1688_v32 = vpack.c.bf16 %v87_v26, %v86_v25  ;;  %v1690_v35 = vpack.c.bf16 %v105_v28, %v104_v27  ;;  %v106_v39 = vld [vmem:[%s3191_s4 + $0xd0] sm:$0xff] }
   0x8   :  { %v56_v31 = vld [vmem:[%s3194_s3] sm:$0x3]  ;;  %v2166_v33 = vrot.slane %v38_v30, %v46_v23  ;;  %v89_v37 = vld [vmem:[%s3191_s4 + $0x48] sm:$0xff]  ;;  %v107_v40 = vld [vmem:[%s3191_s4 + $0xd8] sm:$0xff]  ;;  %v43_v61 = vrot.slane %v38_v30, %v42_v43 }
   0x9   :  { %1681 = vmatpush3.bf16.msra.mxu0 %v1680_v15  ;;  %v2168_v34 = vrot.slane %v56_v31, %v46_v23  ;;  %v88_v36 = vld [vmem:[%s3191_s4 + $0x40] sm:$0xff]  ;;  %v37_v42 = vld [vmem:[%s3195_s1 + $0x10] sm:$0x3]  ;;  %v36_v44 = vld [vmem:[%s3195_s1 + $0x8] sm:$0xff]  ;;  %v1694_v51 = vpack.c.bf16 %v107_v40, %v106_v39  ;;  %v61_v15 = vrot.slane %v56_v31, %v42_v43 }
   0xa   :  { %1683 = vmatprep.subr.bf16.mxu0 %v1682_v17  ;;  %v35_v38 = vld [vmem:[%s3195_s1] sm:$0xff]  ;;  %v51_v41 = vmul.f32 %v2166_v33, %v30_v29  ;;  %227 = vperm.xlu1 %2045, %v37_v42   ;;  %v1474_v45 = vld [vmem:[%s3196_s7 + $0x408] sm:$0xff]  ;;  %v1476_v46 = vld [vmem:[%s3196_s7 + $0x418] sm:$0xff]  ;;  %v1692_v47 = vpack.c.bf16 %v89_v37, %v88_v36 }
   0xb   :  { %217 = vperm.xlu0 %2044, %v35_v38   ;;  %v1473_v49 = vld [vmem:[%s3196_s7 + $0x400] sm:$0xff]  ;;  %v1475_v50 = vld [vmem:[%s3196_s7 + $0x410] sm:$0xff]  ;;  %v91_v53 = vld [vmem:[%s3191_s4 + $0x58] sm:$0xff]  ;;  %v1834_v54 = vpack.c.bf16 %v1476_v46, %v1474_v45 }
   0xc   :  { %v69_v48 = vadd.f32 %v2168_v34, %v51_v41  ;;  %v90_v52 = vld [vmem:[%s3191_s4 + $0x50] sm:$0xff]  ;;  %v1478_v55 = vld [vmem:[%s3196_s7 + $0x428] sm:$0xff]  ;;  %v108_v56 = vld [vmem:[%s3191_s4 + $0xe0] sm:$0xff]  ;;  %v1836_v62 = vpack.c.bf16 %v1475_v50, %v1473_v49 }
   0xd   :  { %1685 = vmatpush3.bf16.msra.mxu0 %v1684_v22  ;;  %v109_v57 = vld [vmem:[%s3191_s4 + $0xe8] sm:$0xff]  ;;  %v1480_v59 = vld [vmem:[%s3196_s7 + $0x438] sm:$0xff]  ;;  %v92_v60 = vld [vmem:[%s3191_s4 + $0x60] sm:$0xff]  ;;  %1835 = vmatprep.subr.bf16.mxu1 %v1834_v54  ;;  %v1696_v1 = vpack.c.bf16 %v91_v53, %v90_v52 }
   0xe   :  { %1687 = vmatprep.subr.bf16.mxu0 %v1686_v24  ;;  %v75_v58 = vmax.f32 %v69_v48, 0.0  ;;  %v1477_v63 = vld [vmem:[%s3196_s7 + $0x420] sm:$0xff]  ;;  %v1479_v0 = vld [vmem:[%s3196_s7 + $0x430] sm:$0xff]  ;;  %v93_v2 = vld [vmem:[%s3191_s4 + $0x68] sm:$0xff]  ;;  %v1838_v4 = vpack.c.bf16 %v1480_v59, %v1478_v55  ;;  %v1698_v6 = vpack.c.bf16 %v109_v57, %v108_v56  ;;  %1837 = vmatpush1.bf16.msra.mxu1 %v1836_v62 }
   0xf   :  { %222 = vperm.xlu0 %2044, %v36_v44   ;;  %v29_v3 = vld [vmem:[%s3192_s0] sm:$0xff]  ;;  %v1482_v5 = vld [vmem:[%s3196_s7 + $0x448] sm:$0xff]  ;;  %v110_v7 = vld [vmem:[%s3191_s4 + $0xf0] sm:$0xff]  ;;  %v1840_v9 = vpack.c.bf16 %v1479_v0, %v1477_v63  ;;  %v1700_v19 = vpack.c.bf16 %v93_v2, %v92_v60 }
  0x10   :  { %176 = vmatprep.mubr.f32.mxu0 %v75_v58  ;;  %v32_v8 = vld [vmem:[%s3192_s0 + $0x18] sm:$0xff]  ;;  %1839 = vmatprep.subr.bf16.mxu1 %v1838_v4  ;;  %v1481_v13 = vld [vmem:[%s3196_s7 + $0x440] sm:$0xff]  ;;  %v1483_v14 = vld [vmem:[%s3196_s7 + $0x450] sm:$0xff]  ;;  %v50_v16 = vmul.f32 %v43_v61, %v29_v3 }
  0x11   :  { %1689 = vmatpush3.bf16.msra.mxu0 %v1688_v32  ;;  %v1484_v10 = vld [vmem:[%s3196_s7 + $0x458] sm:$0xff]  ;;  %v1486_v17 = vld [vmem:[%s3196_s7 + $0x468] sm:$0xff]  ;;  %v53_v20 = vmul.f32 %v2166_v33, %v32_v8  ;;  %v31_v21 = vld [vmem:[%s3192_s0 + $0x10] sm:$0xff]  ;;  %v1844_v26 = vpack.c.bf16 %v1483_v14, %v1481_v13 }
  0x12   :  { %1691 = vmatprep.subr.bf16.mxu0 %v1690_v35  ;;  %v111_v11 = vld [vmem:[%s3191_s4 + $0xf8] sm:$0xff]  ;;  %v1842_v12 = vpack.c.bf16 %v1484_v10, %v1482_v5  ;;  %v94_v23 = vld [vmem:[%s3191_s4 + $0x70] sm:$0xff]  ;;  %v34_v25 = vld [vmem:[%s3192_s0 + $0x28] sm:$0x3]  ;;  %1841 = vmatpush1.bf16.msra.mxu1 %v1840_v9  ;;  %v68_v30 = vadd.f32 %v61_v15, %v50_v16  ;;  %v52_v31 = vmul.f32 %v43_v61, %v31_v21 }
  0x13   :  { %v1488_v18 = vld [vmem:[%s3196_s7 + $0x478] sm:$0xff]  ;;  %v1702_v22 = vpack.c.bf16 %v111_v11, %v110_v7  ;;  %v1378_v27 = vld [vmem:[%s3196_s7 + $0x108] sm:$0xff]  ;;  %v71_v35 = vadd.f32 %v2168_v34, %v53_v20  ;;  %v55_v36 = vmul.f32 %v2166_v33, %v34_v25  ;;  %v33_v37 = vld [vmem:[%s3192_s0 + $0x20] sm:$0x3] }
  0x14   :  { %v95_v24 = vld [vmem:[%s3191_s4 + $0x78] sm:$0xff]  ;;  %1843 = vmatprep.subr.bf16.mxu1 %v1842_v12  ;;  %v1846_v29 = vpack.c.bf16 %v1488_v18, %v1486_v17  ;;  %v1377_v39 = vld [vmem:[%s3196_s7 + $0x100] sm:$0xff]  ;;  %v1379_v40 = vld [vmem:[%s3196_s7 + $0x110] sm:$0xff]  ;;  %v74_v42 = vmax.f32 %v68_v30, 0.0  ;;  %v70_v43 = vadd.f32 %v61_v15, %v52_v31  ;;  %v54_v44 = vmul.f32 %v43_v61, %v33_v37 }
  0x15   :  { %1693 = vmatpush3.bf16.msra.mxu0 %v1692_v47  ;;  %v1380_v28 = vld [vmem:[%s3196_s7 + $0x118] sm:$0xff]  ;;  %v1704_v32 = vpack.c.bf16 %v95_v24, %v94_v23  ;;  %v1382_v41 = vld [vmem:[%s3196_s7 + $0x128] sm:$0xff]  ;;  %v77_v45 = vmax.f32 %v71_v35, 0.0  ;;  %v73_v46 = vadd.f32 %v2168_v34, %v55_v36  ;;  %v1708_v47 = vpack.c.bf16 %v1379_v40, %v1377_v39  ;;  %v1381_v49 = vld [vmem:[%s3196_s7 + $0x120] sm:$0xff] }
  0x16   :  { %1695 = vmatprep.subr.bf16.mxu0 %v1694_v51  ;;  %v1706_v38 = vpack.c.bf16 %v1380_v28, %v1378_v27  ;;  %1845 = vmatpush1.bf16.msra.mxu1 %v1844_v26  ;;  %v1384_v33 = vld [vmem:[%s3196_s7 + $0x138] sm:$0xff]  ;;  %v1383_v50 = vld [vmem:[%s3196_s7 + $0x130] sm:$0xff]  ;;  %v1386_v51 = vld [vmem:[%s3196_s7 + $0x148] sm:$0xff]  ;;  %v76_v34 = vmax.f32 %v70_v43, 0.0  ;;  %v72_v53 = vadd.f32 %v61_v15, %v54_v44 }
  0x17   :  { %1847 = vmatprep.subr.bf16.mxu1 %v1846_v29  ;;  %v1710_v48 = vpack.c.bf16 %v1384_v33, %v1382_v41  ;;  %v1388_v52 = vld [vmem:[%s3196_s7 + $0x158] sm:$0xff]  ;;  %v79_v54 = vmax.f32 %v73_v46, 0.0  ;;  %v1712_v55 = vpack.c.bf16 %v1383_v50, %v1381_v49  ;;  %v1385_v57 = vld [vmem:[%s3196_s7 + $0x140] sm:$0xff]  ;;  %v1387_v58 = vld [vmem:[%s3196_s7 + $0x150] sm:$0xff]  ;;  %v2054_v46 = vmov 0.0  }
  0x18   :  { %v1714_v56 = vpack.c.bf16 %v1388_v52, %v1386_v51  ;;  %v1390_v59 = vld [vmem:[%s3196_s7 + $0x168] sm:$0xff]  ;;  %v1392_v60 = vld [vmem:[%s3196_s7 + $0x178] sm:$0xff]  ;;  %v78_v61 = vmax.f32 %v72_v53, 0.0  ;;  %v1716_v62 = vpack.c.bf16 %v1387_v58, %v1385_v57  ;;  %v1485_v0 = vld [vmem:[%s3196_s7 + $0x460] sm:$0xff]  ;;  %233 = vst [vmem:[#allocation2] sm:$0xff] %v2054_v46  ;;  %828 = vmatprep.mubr.f32.mxu1 %v2054_v46 }
  0x19   :  { %1697 = vmatpush3.bf16.msra.mxu0 %v1696_v1  ;;  %v1718_v63 = vpack.c.bf16 %v1392_v60, %v1390_v59  ;;  %v1487_v1 = vld [vmem:[%s3196_s7 + $0x470] sm:$0xff]  ;;  %v1490_v3 = vld [vmem:[%s3196_s7 + $0x488] sm:$0xff]  ;;  %v1492_v4 = vld [vmem:[%s3196_s7 + $0x498] sm:$0xff]  ;;  %236 = vst [vmem:[#allocation2 + $0x18] sm:$0xff] %v2054_v46 }
  0x1a   :  { %1699 = vmatprep.subr.bf16.mxu0 %v1698_v6  ;;  %v1848_v2 = vpack.c.bf16 %v1487_v1, %v1485_v0  ;;  %v1850_v5 = vpack.c.bf16 %v1492_v4, %v1490_v3  ;;  %v1489_v6 = vld [vmem:[%s3196_s7 + $0x480] sm:$0xff]  ;;  %v1491_v7 = vld [vmem:[%s3196_s7 + $0x490] sm:$0xff]  ;;  %v1494_v9 = vld [vmem:[%s3196_s7 + $0x4a8] sm:$0xff] }
  0x1b   :  { %v1852_v8 = vpack.c.bf16 %v1491_v7, %v1489_v6  ;;  %v1496_v10 = vld [vmem:[%s3196_s7 + $0x4b8] sm:$0xff]  ;;  %v1389_v11 = vld [vmem:[%s3196_s7 + $0x160] sm:$0xff]  ;;  %v1391_v12 = vld [vmem:[%s3196_s7 + $0x170] sm:$0xff] }
  0x1c   :  { %1849 = vmatpush1.bf16.msra.mxu1 %v1848_v2  ;;  %v1854_v13 = vpack.c.bf16 %v1496_v10, %v1494_v9  ;;  %v1493_v14 = vld [vmem:[%s3196_s7 + $0x4a0] sm:$0xff]  ;;  %v1720_v15 = vpack.c.bf16 %v1391_v12, %v1389_v11  ;;  %v1495_v16 = vld [vmem:[%s3196_s7 + $0x4b0] sm:$0xff]  ;;  %v1394_v18 = vld [vmem:[%s3196_s7 + $0x188] sm:$0xff] }
  0x1d   :  { %1701 = vmatpush3.bf16.msra.mxu0 %v1700_v19  ;;  %1851 = vmatprep.subr.bf16.mxu1 %v1850_v5  ;;  %v1856_v17 = vpack.c.bf16 %v1495_v16, %v1493_v14  ;;  %v1396_v19 = vld [vmem:[%s3196_s7 + $0x198] sm:$0xff]  ;;  %v1498_v20 = vld [vmem:[%s3196_s7 + $0x4c8] sm:$0xff]  ;;  %v1395_v23 = vld [vmem:[%s3196_s7 + $0x190] sm:$0xff] }
  0x1e   :  { %1703 = vmatprep.subr.bf16.mxu0 %v1702_v22  ;;  %v1722_v21 = vpack.c.bf16 %v1396_v19, %v1394_v18  ;;  %v1393_v22 = vld [vmem:[%s3196_s7 + $0x180] sm:$0xff]  ;;  %v1500_v24 = vld [vmem:[%s3196_s7 + $0x4d8] sm:$0xff]  ;;  %v1499_v28 = vld [vmem:[%s3196_s7 + $0x4d0] sm:$0xff] }
  0x1f   :  { %v1724_v25 = vpack.c.bf16 %v1395_v23, %v1393_v22  ;;  %v1858_v26 = vpack.c.bf16 %v1500_v24, %v1498_v20  ;;  %v1497_v27 = vld [vmem:[%s3196_s7 + $0x4c0] sm:$0xff]  ;;  %v1398_v30 = vld [vmem:[%s3196_s7 + $0x1a8] sm:$0xff]  ;;  %v1400_v31 = vld [vmem:[%s3196_s7 + $0x1b8] sm:$0xff] }
  0x20   :  { %1853 = vmatpush1.bf16.msra.mxu1 %v1852_v8  ;;  %v1860_v29 = vpack.c.bf16 %v1499_v28, %v1497_v27  ;;  %v1397_v35 = vld [vmem:[%s3196_s7 + $0x1a0] sm:$0xff]  ;;  %v1399_v36 = vld [vmem:[%s3196_s7 + $0x1b0] sm:$0xff]  ;;  %v1502_v37 = vld [vmem:[%s3196_s7 + $0x4e8] sm:$0xff] }
  0x21   :  { %1705 = vmatpush3.bf16.msra.mxu0 %v1704_v32  ;;  %1855 = vmatprep.subr.bf16.mxu1 %v1854_v13  ;;  %v1726_v32 = vpack.c.bf16 %v1400_v31, %v1398_v30  ;;  %v1504_v39 = vld [vmem:[%s3196_s7 + $0x4f8] sm:$0xff]  ;;  %v1501_v40 = vld [vmem:[%s3196_s7 + $0x4e0] sm:$0xff]  ;;  %v1503_v41 = vld [vmem:[%s3196_s7 + $0x4f0] sm:$0xff] }
  0x22   :  { %1707 = vmatprep.subr.bf16.mxu0 %v1706_v38  ;;  %v1728_v38 = vpack.c.bf16 %v1399_v36, %v1397_v35  ;;  %v1862_v33 = vpack.c.bf16 %v1504_v39, %v1502_v37  ;;  %v1402_v43 = vld [vmem:[%s3196_s7 + $0x1c8] sm:$0xff]  ;;  %v1404_v44 = vld [vmem:[%s3196_s7 + $0x1d8] sm:$0xff]  ;;  %v1403_v49 = vld [vmem:[%s3196_s7 + $0x1d0] sm:$0xff] }
  0x23   :  { %v1508_v50 = vld [vmem:[%s3196_s7 + $0x518] sm:$0xff]  ;;  %v245_v58 = vld [vmem:[%s3196_s7 + $0x8] sm:$0xff]  ;;  %v1376_v1 = vld [vmem:[%s3198_s6] ss:$0 sm:$0xff] }
  0x24   :  { %177 = vmatmul.mubr.f32.vlgmr.msra.gmra.mrb[0].mxu0 %v74_v42  ;;  %1857 = vmatpush1.bf16.msra.mxu1 %v1856_v17  ;;  %v1864_v42 = vpack.c.bf16 %v1503_v41, %v1501_v40  ;;  %v1408_v53 = vld [vmem:[%s3196_s7 + $0x1f8] sm:$0xff]  ;;  %v1505_v7 = vld [vmem:[%s3196_s7 + $0x500] sm:$0xff]  ;;  %v1507_v8 = vld [vmem:[%s3196_s7 + $0x510] sm:$0xff] }
  0x25   :  { %181 = vmatprep.mubr.f32.mxu0 %v77_v45  ;;  %1709 = vmatpush1.bf16.msra.mxu0 %v1708_v47  ;;  %v1506_v45 = vld [vmem:[%s3196_s7 + $0x508] sm:$0xff]  ;;  %v1730_v47 = vpack.c.bf16 %v1404_v44, %v1402_v43  ;;  %v247_v59 = vld [vmem:[%s3196_s7 + $0x18] sm:$0xff]  ;;  %v1868_v16 = vpack.c.bf16 %v1507_v8, %v1505_v7  ;;  %v1511_v22 = vld [vmem:[%s3196_s7 + $0x530] sm:$0xff] }
  0x26   :  { %1711 = vmatprep.subr.bf16.mxu0 %v1710_v48  ;;  %1859 = vmatprep.subr.bf16.mxu1 %v1858_v26  ;;  %v1401_v48 = vld [vmem:[%s3196_s7 + $0x1c0] sm:$0xff]  ;;  %v1866_v52 = vpack.c.bf16 %v1508_v50, %v1506_v45  ;;  %v1738_v60 = vpack.c.bf16 %v247_v59, %v245_v58  ;;  %v1510_v10 = vld [vmem:[%s3196_s7 + $0x528] sm:$0xff]  ;;  %v1512_v11 = vld [vmem:[%s3196_s7 + $0x538] sm:$0xff] }
  0x27   :  { %v1732_v51 = vpack.c.bf16 %v1403_v49, %v1401_v48  ;;  %v1870_v20 = vpack.c.bf16 %v1512_v11, %v1510_v10  ;;  %v1514_v23 = vld [vmem:[%s3196_s7 + $0x548] sm:$0xff]  ;;  %v1516_v24 = vld [vmem:[%s3196_s7 + $0x558] sm:$0xff]  ;;  %v244_v31 = vld [vmem:[%s3196_s7] sm:$0xff] }
  0x28   :  { %182 = vmatmul.mubr.f32.gmra.mrb[2].mxu0 %v76_v34  ;;  %1861 = vmatpush1.bf16.msra.mxu1 %v1860_v29  ;;  %v1406_v34 = vld [vmem:[%s3196_s7 + $0x1e8] sm:$0xff]  ;;  %v1874_v35 = vpack.c.bf16 %v1516_v24, %v1514_v23  ;;  %v1513_v36 = vld [vmem:[%s3196_s7 + $0x540] sm:$0xff]  ;;  %v251_v39 = vld [vmem:[%s3196_s7 + $0x38] sm:$0xff] }
  0x29   :  { %186 = vmatprep.mubr.f32.mxu0 %v79_v54  ;;  %1713 = vmatpush1.bf16.msra.mxu0 %v1712_v55  ;;  %v1734_v54 = vpack.c.bf16 %v1408_v53, %v1406_v34  ;;  %v1405_v55 = vld [vmem:[%s3196_s7 + $0x1e0] sm:$0xff]  ;;  %v1515_v40 = vld [vmem:[%s3196_s7 + $0x550] sm:$0xff]  ;;  %v253_v34 = vld [vmem:[%s3196_s7 + $0x48] sm:$0xff] }
  0x2a   :  { %1715 = vmatprep.subr.bf16.mxu0 %v1714_v56  ;;  %1863 = vmatprep.subr.bf16.mxu1 %v1862_v33  ;;  %v1407_v56 = vld [vmem:[%s3196_s7 + $0x1f0] sm:$0xff]  ;;  %v1518_v33 = vld [vmem:[%s3196_s7 + $0x568] sm:$0xff]  ;;  %v248_v44 = vld [vmem:[%s3196_s7 + $0x20] sm:$0xff]  ;;  %v1876_v49 = vpack.c.bf16 %v1515_v40, %v1513_v36 }
  0x2b   :  { %v1736_v57 = vpack.c.bf16 %v1407_v56, %v1405_v55  ;;  %v250_v48 = vld [vmem:[%s3196_s7 + $0x30] sm:$0xff]  ;;  %v1517_v50 = vld [vmem:[%s3196_s7 + $0x560] sm:$0xff]  ;;  %v255_v53 = vld [vmem:[%s3196_s7 + $0x58] sm:$0xff] }
  0x2c   :  { %187 = vmatmul.mubr.f32.gmra.mrb[4].mxu0 %v78_v61  ;;  %1865 = vmatpush1.bf16.msra.mxu1 %v1864_v42  ;;  %v1520_v42 = vld [vmem:[%s3196_s7 + $0x578] sm:$0xff]  ;;  %v1522_v55 = vld [vmem:[%s3196_s7 + $0x588] sm:$0xff]  ;;  %v252_v58 = vld [vmem:[%s3196_s7 + $0x40] sm:$0xff]  ;;  %v1746_v59 = vpack.c.bf16 %v255_v53, %v253_v34 }
  0x2d   :  { %1717 = vmatpush1.bf16.msra.mxu0 %v1716_v62  ;;  %376 = vmatprep.mubr.f32.mxu0 %v2054_v46  ;;  %v1524_v56 = vld [vmem:[%s3196_s7 + $0x598] sm:$0xff]  ;;  %v256_v7 = vld [vmem:[%s3196_s7 + $0x60] sm:$0xff]  ;;  %v258_v8 = vld [vmem:[%s3196_s7 + $0x70] sm:$0xff] }
  0x2e   :  { %1719 = vmatprep.subr.bf16.mxu0 %v1718_v63  ;;  %1867 = vmatprep.subr.bf16.mxu1 %v1866_v52  ;;  %v1375_v63 = vld [vmem:[%s3197_s5] ss:$0 sm:$0xff]  ;;  %v261_v11 = vld [vmem:[%s3196_s7 + $0x88] sm:$0xff]  ;;  %v262_v24 = vld [vmem:[%s3196_s7 + $0x90] sm:$0xff] }
  0x2f   :  { %v260_v23 = vld [vmem:[%s3196_s7 + $0x80] sm:$0xff]  ;;  %v266_v40 = vld [vmem:[%s3196_s7 + $0xb0] sm:$0xff] }
  0x30   :  { %v1756_v36 = vpack.c.bf16 %v262_v24, %v260_v23  ;;  %v1537_v53 = vld [vmem:[%s3196_s7 + $0x600] sm:$0xff]  ;;  %v1552_v23 = vld [vmem:[%s3196_s7 + $0x678] sm:$0xff] }
  0x31   :  { %1721 = vmatpush1.bf16.msra.mxu0 %v1720_v15 }
  0x32   :  { %1723 = vmatprep.subr.bf16.mxu0 %v1722_v21  ;;  %v1509_v21 = vld [vmem:[%s3196_s7 + $0x520] sm:$0xff] }
  0x33   :  { %v1872_v28 = vpack.c.bf16 %v1511_v22, %v1509_v21  ;;  %v1752_v21 = vpack.c.bf16 %v258_v8, %v256_v7  ;;  %v1546_v7 = vld [vmem:[%s3196_s7 + $0x648] sm:$0xff]  ;;  %v1548_v8 = vld [vmem:[%s3196_s7 + $0x658] sm:$0xff] }
  0x35   :  { %1725 = vmatpush1.bf16.msra.mxu0 %v1724_v25 }
  0x36   :  { %1727 = vmatprep.subr.bf16.mxu0 %v1726_v32  ;;  %v246_v32 = vld [vmem:[%s3196_s7 + $0x10] sm:$0xff] }
  0x37   :  { %v1740_v43 = vpack.c.bf16 %v246_v32, %v244_v31  ;;  %v1531_v31 = vld [vmem:[%s3196_s7 + $0x5d0] sm:$0xff]  ;;  %v1534_v32 = vld [vmem:[%s3196_s7 + $0x5e8] sm:$0xff] }
  0x39   :  { %1729 = vmatpush1.bf16.msra.mxu0 %v1728_v38  ;;  %v249_v38 = vld [vmem:[%s3196_s7 + $0x28] sm:$0xff] }
  0x3a   :  { %1731 = vmatprep.subr.bf16.mxu0 %v1730_v47  ;;  %v1742_v47 = vpack.c.bf16 %v251_v39, %v249_v38  ;;  %v264_v39 = vld [vmem:[%s3196_s7 + $0xa0] sm:$0xff] }
  0x3d   :  { %1733 = vmatpush1.bf16.msra.mxu0 %v1732_v51  ;;  %v1519_v51 = vld [vmem:[%s3196_s7 + $0x570] sm:$0xff] }
  0x3e   :  { %1735 = vmatprep.subr.bf16.mxu0 %v1734_v54  ;;  %v1878_v54 = vpack.c.bf16 %v1520_v42, %v1518_v33  ;;  %v1533_v33 = vld [vmem:[%s3196_s7 + $0x5e0] sm:$0xff]  ;;  %v269_v42 = vld [vmem:[%s3196_s7 + $0xc8] sm:$0xff] }
  0x41   :  { %1737 = vmatpush1.bf16.msra.mxu0 %v1736_v57  ;;  %v1744_v57 = vpack.c.bf16 %v250_v48, %v248_v44  ;;  %v1540_v48 = vld [vmem:[%s3196_s7 + $0x618] sm:$0xff] }
  0x42   :  { %1739 = vmatprep.subr.bf16.mxu0 %v1738_v60  ;;  %v254_v60 = vld [vmem:[%s3196_s7 + $0x50] sm:$0xff] }
  0x89   :  { %v2497_v37 = vpop.permute.xlu1 %227 }
  0x8a   :  { %v2463_v9 = vpop.permute.xlu0 %217 }
  0x8e   :  { %v2484_v27 = vpop.permute.xlu0 %222 }
  0xf7   :  { %v1665_v61 = vpop.f32.mrb[0].mxu0 }
  0xf8   :  { %v1666_v62 = vpop.f32.mrb[1].mxu0 }
  0xf9   :  { %v1667_v0 = vadd.f32 %v1666_v62, %v1665_v61  ;;  %v1880_v61 = vpack.c.bf16 %v1519_v51, %v1517_v50  ;;  %v1521_v62 = vld [vmem:[%s3196_s7 + $0x580] sm:$0xff] }
  0xfa   :  { %v268_v51 = vld [vmem:[%s3196_s7 + $0xc0] sm:$0xff] }
  0xfb   :  { %v199_v2 = vmul.f32 %v1667_v0, %v1375_v63  ;;  %v1668_v3 = vpop.f32.mrb[2].mxu0 }
  0xfc   :  { %v1669_v4 = vpop.f32.mrb[3].mxu0 }
  0xfd   :  { %v209_v5 = vadd.f32 %v1376_v1, %v199_v2  ;;  %v1670_v6 = vadd.f32 %v1669_v4, %v1668_v3  ;;  %v259_v2 = vld [vmem:[%s3196_s7 + $0x78] sm:$0xff]  ;;  %v1882_v3 = vpack.c.bf16 %v1524_v56, %v1522_v55  ;;  %v1526_v4 = vld [vmem:[%s3196_s7 + $0x5a8] sm:$0xff] }
  0xfe   :  { %v275_v55 = vld [vmem:[%s3196_s7 + $0xf8] sm:$0xff] }
  0xff   :  { %v212_v12 = vmax.f32 %v209_v5, 0.0  ;;  %v200_v13 = vmul.f32 %v1670_v6, %v1375_v63  ;;  %v1671_v14 = vpop.f32.mrb[4].mxu0  ;;  %v1528_v5 = vld [vmem:[%s3196_s7 + $0x5b8] sm:$0xff]  ;;  %v1748_v6 = vpack.c.bf16 %v254_v60, %v252_v58  ;;  %v1542_v58 = vld [vmem:[%s3196_s7 + $0x628] sm:$0xff] }
 0x100   :  { %v1672_v15 = vpop.f32.mrb[5].mxu0 }
 0x101   :  { %v230_v17 = vmul.f32 %v2463_v9, %v212_v12  ;;  %v210_v18 = vadd.f32 %v1376_v1, %v200_v13  ;;  %v1673_v19 = vadd.f32 %v1672_v15, %v1671_v14  ;;  %v1525_v13 = vld [vmem:[%s3196_s7 + $0x5a0] sm:$0xff]  ;;  %v1527_v14 = vld [vmem:[%s3196_s7 + $0x5b0] sm:$0xff] }
 0x103   :  { %238 = vst [vmem:[#allocation2 + $0x8] sm:$0xff] %v230_v17  ;;  %v213_v25 = vmax.f32 %v210_v18, 0.0  ;;  %v201_v26 = vmul.f32 %v1673_v19, %v1375_v63  ;;  %829 = vmatmul.mubr.f32.vlgmr.msra.gmra.mrb[0].mxu1 %v230_v17  ;;  %v1523_v63 = vld [vmem:[%s3196_s7 + $0x590] sm:$0xff]  ;;  %v1886_v17 = vpack.c.bf16 %v1528_v5, %v1526_v4  ;;  %v1530_v19 = vld [vmem:[%s3196_s7 + $0x5c8] sm:$0xff] }
 0x104   :  { %1869 = vmatpush1.bf16.msra.mxu1 %v1868_v16  ;;  %834 = vmatprep.mubr.f32.mxu1 %v2054_v46  ;;  %v1884_v12 = vpack.c.bf16 %v1523_v63, %v1521_v62  ;;  %v263_v16 = vld [vmem:[%s3196_s7 + $0x98] sm:$0xff]  ;;  %v272_v62 = vld [vmem:[%s3196_s7 + $0xe0] sm:$0xff]  ;;  %v274_v63 = vld [vmem:[%s3196_s7 + $0xf0] sm:$0xff] }
 0x105   :  { %v231_v29 = vmul.f32 %v2484_v27, %v213_v25  ;;  %v211_v30 = vadd.f32 %v1376_v1, %v201_v26  ;;  %1871 = vmatprep.subr.bf16.mxu1 %v1870_v20  ;;  %v257_v1 = vld [vmem:[%s3196_s7 + $0x68] sm:$0xff]  ;;  %v1532_v20 = vld [vmem:[%s3196_s7 + $0x5d8] sm:$0xff]  ;;  %v1754_v22 = vpack.c.bf16 %v263_v16, %v261_v11  ;;  %v1888_v25 = vpack.c.bf16 %v1527_v14, %v1525_v13  ;;  %v1529_v26 = vld [vmem:[%s3196_s7 + $0x5c0] sm:$0xff] }
 0x106   :  { %v1750_v10 = vpack.c.bf16 %v259_v2, %v257_v1  ;;  %v1541_v1 = vld [vmem:[%s3196_s7 + $0x620] sm:$0xff]  ;;  %v1410_v2 = vld [vmem:[%s3196_s7 + $0x208] sm:$0xff]  ;;  %v1543_v5 = vld [vmem:[%s3196_s7 + $0x630] sm:$0xff] }
 0x107   :  { %239 = vst [vmem:[#allocation2 + $0x10] sm:$0xff] %v231_v29  ;;  %v214_v41 = vmax.f32 %v211_v30, 0.0  ;;  %835 = vmatmul.mubr.f32.gmra.mrb[2].mxu1 %v231_v29  ;;  %v267_v29 = vld [vmem:[%s3196_s7 + $0xb8] sm:$0xff]  ;;  %v1890_v30 = vpack.c.bf16 %v1532_v20, %v1530_v19  ;;  %v1411_v13 = vld [vmem:[%s3196_s7 + $0x210] sm:$0xff]  ;;  %v1904_v14 = vpack.c.bf16 %v1543_v5, %v1541_v1  ;;  %v1545_v19 = vld [vmem:[%s3196_s7 + $0x640] sm:$0xff] }
 0x108   :  { %1873 = vmatpush1.bf16.msra.mxu1 %v1872_v28  ;;  %840 = vmatprep.mubr.f32.mxu1 %v2054_v46  ;;  %v265_v28 = vld [vmem:[%s3196_s7 + $0xa8] sm:$0xff]  ;;  %v1416_v16 = vld [vmem:[%s3196_s7 + $0x238] sm:$0xff]  ;;  %v1547_v20 = vld [vmem:[%s3196_s7 + $0x650] sm:$0xff] }
 0x109   :  { %v232_v45 = vmul.f32 %v2497_v37, %v214_v41  ;;  %1875 = vmatprep.subr.bf16.mxu1 %v1874_v35  ;;  %v1536_v35 = vld [vmem:[%s3196_s7 + $0x5f8] sm:$0xff]  ;;  %v1758_v38 = vpack.c.bf16 %v267_v29, %v265_v28  ;;  %v1892_v41 = vpack.c.bf16 %v1531_v31, %v1529_v26  ;;  %v1415_v26 = vld [vmem:[%s3196_s7 + $0x230] sm:$0xff]  ;;  %v1418_v29 = vld [vmem:[%s3196_s7 + $0x248] sm:$0xff]  ;;  %v1908_v31 = vpack.c.bf16 %v1547_v20, %v1545_v19 }
 0x10a   :  { %v276_v52 = vld [vmem:[#allocation2 + $0x5] sm:$0xff]  ;;  %v1894_v44 = vpack.c.bf16 %v1536_v35, %v1534_v32  ;;  %v1427_v5 = vld [vmem:[%s3196_s7 + $0x290] sm:$0xff]  ;;  %v1436_v20 = vld [vmem:[%s3196_s7 + $0x2d8] sm:$0xff] }
 0x10b   :  { %240 = vst [vmem:[#allocation2 + $0x18] sm:$0x3] %v232_v45  ;;  %377 = vmatmul.mubr.f32.vlgmr.msra.gmra.mrb[6].mxu0 %v276_v52  ;;  %v1535_v45 = vld [vmem:[%s3196_s7 + $0x5f0] sm:$0xff]  ;;  %v241_v28 = vld [vmem:[#allocation2 + $0x4] sm:$0xff] }
 0x10c   :  { %1741 = vmatpush1.bf16.msra.mxu0 %v1740_v43  ;;  %382 = vmatprep.mubr.f32.mxu0 %v2054_v46  ;;  %v271_v43 = vld [vmem:[%s3196_s7 + $0xd8] sm:$0xff]  ;;  %v270_v52 = vld [vmem:[%s3196_s7 + $0xd0] sm:$0xff]  ;;  %v1896_v34 = vpack.c.bf16 %v1535_v45, %v1533_v33  ;;  %v1549_v35 = vld [vmem:[%s3196_s7 + $0x660] sm:$0xff] }
 0x10d   :  { %1743 = vmatprep.subr.bf16.mxu0 %v1742_v47  ;;  %1877 = vmatpush1.bf16.msra.mxu1 %v1876_v49  ;;  %v1538_v47 = vld [vmem:[%s3196_s7 + $0x608] sm:$0xff]  ;;  %v1760_v49 = vpack.c.bf16 %v266_v40, %v264_v39  ;;  %v1762_v50 = vpack.c.bf16 %v271_v43, %v269_v42  ;;  %v1764_v60 = vpack.c.bf16 %v270_v52, %v268_v51  ;;  %v1417_v42 = vld [vmem:[%s3196_s7 + $0x240] sm:$0xff]  ;;  %v1419_v43 = vld [vmem:[%s3196_s7 + $0x250] sm:$0xff] }
 0x10e   :  { %v277_v0 = vld [vmem:[#allocation2 + $0xd] sm:$0xff]  ;;  %1879 = vmatprep.subr.bf16.mxu1 %v1878_v54  ;;  %v278_v15 = vld [vmem:[#allocation2 + $0x15] sm:$0x3]  ;;  %v1898_v56 = vpack.c.bf16 %v1540_v48, %v1538_v47  ;;  %v1424_v47 = vld [vmem:[%s3196_s7 + $0x278] sm:$0xff]  ;;  %v1780_v52 = vpack.c.bf16 %v1419_v43, %v1417_v42 }
 0x10f   :  { %383 = vmatmul.mubr.f32.gmra.mrb[8].mxu0 %v277_v0  ;;  %v273_v54 = vld [vmem:[%s3196_s7 + $0xe8] sm:$0xff]  ;;  %v1555_v51 = vld [vmem:[%s3196_s7 + $0x690] sm:$0xff]  ;;  %v1576_v42 = vld [vmem:[%s3196_s7 + $0x738] sm:$0xff] }
 0x110   :  { %1745 = vmatpush1.bf16.msra.mxu0 %v1744_v57  ;;  %388 = vmatprep.mubr.f32.mxu0 %v2054_v46  ;;  %v1539_v57 = vld [vmem:[%s3196_s7 + $0x610] sm:$0xff]  ;;  %v1554_v40 = vld [vmem:[%s3196_s7 + $0x688] sm:$0xff] }
 0x111   :  { %1747 = vmatprep.subr.bf16.mxu0 %v1746_v59  ;;  %1881 = vmatpush1.bf16.msra.mxu1 %v1880_v61  ;;  %v1544_v59 = vld [vmem:[%s3196_s7 + $0x638] sm:$0xff]  ;;  %v1766_v61 = vpack.c.bf16 %v275_v55, %v273_v54  ;;  %v1900_v0 = vpack.c.bf16 %v1539_v57, %v1537_v53  ;;  %v1422_v45 = vld [vmem:[%s3196_s7 + $0x268] sm:$0xff]  ;;  %v1421_v55 = vld [vmem:[%s3196_s7 + $0x260] sm:$0xff] }
 0x112   :  { %1883 = vmatprep.subr.bf16.mxu1 %v1882_v3  ;;  %v730_v18 = vld [vmem:[#allocation2 + $0x18] sm:$0x3]  ;;  %v1902_v4 = vpack.c.bf16 %v1544_v59, %v1542_v58  ;;  %v1782_v54 = vpack.c.bf16 %v1424_v47, %v1422_v45  ;;  %v243_v57 = vld [vmem:[#allocation2 + $0x14] sm:$0x3]  ;;  %v1426_v58 = vld [vmem:[%s3196_s7 + $0x288] sm:$0xff] }
 0x113   :  { %389 = vmatmul.mubr.f32.gmra.mrb[10].mxu0 %v278_v15  ;;  %841 = vmatmul.mubr.f32.gmra.mrb[4].mxu1 %v730_v18  ;;  %v1412_v3 = vld [vmem:[%s3196_s7 + $0x218] sm:$0xff]  ;;  %v1414_v15 = vld [vmem:[%s3196_s7 + $0x228] sm:$0xff]  ;;  %v1437_v45 = vld [vmem:[%s3196_s7 + $0x2e0] sm:$0xff] }
 0x114   :  { %1749 = vmatpush1.bf16.msra.mxu0 %v1748_v6  ;;  %459 = vmatprep.mubr.f32.mxu0 %v2054_v46  ;;  %v853_v6 = vld [vmem:[#allocation2 + $0x9] sm:$0xff]  ;;  %v1770_v11 = vpack.c.bf16 %v1412_v3, %v1410_v2  ;;  %v854_v18 = vld [vmem:[#allocation2 + $0x11] sm:$0xff]  ;;  %v1774_v24 = vpack.c.bf16 %v1416_v16, %v1414_v15  ;;  %v855_v39 = vld [vmem:[#allocation2 + $0x19] sm:$0x3] }
 0x115   :  { %1751 = vmatprep.subr.bf16.mxu0 %v1750_v10  ;;  %1885 = vmatpush1.bf16.msra.mxu1 %v1884_v12  ;;  %v1768_v10 = vpack.c.bf16 %v274_v63, %v272_v62  ;;  %v1409_v12 = vld [vmem:[%s3196_s7 + $0x200] sm:$0xff]  ;;  %v1560_v53 = vld [vmem:[%s3196_s7 + $0x6b8] sm:$0xff]  ;;  %v1559_v63 = vld [vmem:[%s3196_s7 + $0x6b0] sm:$0xff] }
 0x116   :  { %1887 = vmatprep.subr.bf16.mxu1 %v1886_v17  ;;  %953 = vmatprep.mubr.f32.mxu1 %v2054_v46  ;;  %v1906_v17 = vpack.c.bf16 %v1548_v8, %v1546_v7  ;;  %v1428_v59 = vld [vmem:[%s3196_s7 + $0x298] sm:$0xff]  ;;  %v1557_v62 = vld [vmem:[%s3196_s7 + $0x6a0] sm:$0xff]  ;;  %v1562_v1 = vld [vmem:[%s3196_s7 + $0x6c8] sm:$0xff] }
 0x117   :  { %v1564_v2 = vld [vmem:[%s3196_s7 + $0x6d8] sm:$0xff]  ;;  %v1786_v3 = vpack.c.bf16 %v1428_v59, %v1426_v58  ;;  %v1920_v8 = vpack.c.bf16 %v1559_v63, %v1557_v62  ;;  %v1434_v19 = vld [vmem:[%s3196_s7 + $0x2c8] sm:$0xff]  ;;  %v1439_v47 = vld [vmem:[%s3196_s7 + $0x2f0] sm:$0xff] }
 0x118   :  { %1753 = vmatpush1.bf16.msra.mxu0 %v1752_v21  ;;  %v1772_v21 = vpack.c.bf16 %v1411_v13, %v1409_v12  ;;  %v1432_v7 = vld [vmem:[%s3196_s7 + $0x2b8] sm:$0xff]  ;;  %v1563_v12 = vld [vmem:[%s3196_s7 + $0x6d0] sm:$0xff]  ;;  %v1441_v58 = vld [vmem:[%s3196_s7 + $0x300] sm:$0xff] }
 0x119   :  { %1755 = vmatprep.subr.bf16.mxu0 %v1754_v22  ;;  %1889 = vmatpush1.bf16.msra.mxu1 %v1888_v25  ;;  %v1550_v22 = vld [vmem:[%s3196_s7 + $0x668] sm:$0xff]  ;;  %v1413_v25 = vld [vmem:[%s3196_s7 + $0x220] sm:$0xff]  ;;  %v1568_v15 = vld [vmem:[%s3196_s7 + $0x6f8] sm:$0xff] }
 0x11a   :  { %1891 = vmatprep.subr.bf16.mxu1 %v1890_v30  ;;  %v1420_v30 = vld [vmem:[%s3196_s7 + $0x258] sm:$0xff]  ;;  %v1910_v32 = vpack.c.bf16 %v1552_v23, %v1550_v22  ;;  %v1565_v23 = vld [vmem:[%s3196_s7 + $0x6e0] sm:$0xff]  ;;  %v1443_v59 = vld [vmem:[%s3196_s7 + $0x310] sm:$0xff] }
 0x11b   :  { %v1778_v33 = vpack.c.bf16 %v1420_v30, %v1418_v29  ;;  %v1794_v29 = vpack.c.bf16 %v1436_v20, %v1434_v19  ;;  %v1433_v30 = vld [vmem:[%s3196_s7 + $0x2c0] sm:$0xff]  ;;  %v1586_v19 = vld [vmem:[%s3196_s7 + $0x788] sm:$0xff]  ;;  %v1588_v20 = vld [vmem:[%s3196_s7 + $0x798] sm:$0xff] }
 0x11c   :  { %1757 = vmatpush1.bf16.msra.mxu0 %v1756_v36  ;;  %v1551_v36 = vld [vmem:[%s3196_s7 + $0x670] sm:$0xff] }
 0x11d   :  { %1759 = vmatprep.subr.bf16.mxu0 %v1758_v38  ;;  %1893 = vmatpush1.bf16.msra.mxu1 %v1892_v41  ;;  %v1776_v38 = vpack.c.bf16 %v1415_v26, %v1413_v25  ;;  %v1556_v41 = vld [vmem:[%s3196_s7 + $0x698] sm:$0xff]  ;;  %v1912_v48 = vpack.c.bf16 %v1551_v36, %v1549_v35  ;;  %v1570_v26 = vld [vmem:[%s3196_s7 + $0x708] sm:$0xff] }
 0x11e   :  { %1895 = vmatprep.subr.bf16.mxu1 %v1894_v44  ;;  %v2745_v44 = vld [vmem:[#allocation2 + $0xc] sm:$0xff]  ;;  %v1440_v35 = vld [vmem:[%s3196_s7 + $0x2f8] sm:$0xff] }
 0x120   :  { %1761 = vmatpush1.bf16.msra.mxu0 %v1760_v49  ;;  %v1914_v49 = vpack.c.bf16 %v1556_v41, %v1554_v40  ;;  %v1571_v40 = vld [vmem:[%s3196_s7 + $0x710] sm:$0xff] }
 0x121   :  { %1763 = vmatprep.subr.bf16.mxu0 %v1762_v50  ;;  %1897 = vmatpush1.bf16.msra.mxu1 %v1896_v34  ;;  %v1553_v50 = vld [vmem:[%s3196_s7 + $0x680] sm:$0xff]  ;;  %v1558_v34 = vld [vmem:[%s3196_s7 + $0x6a8] sm:$0xff] }
 0x122   :  { %1899 = vmatprep.subr.bf16.mxu1 %v1898_v56  ;;  %v1423_v56 = vld [vmem:[%s3196_s7 + $0x270] sm:$0xff] }
 0x124   :  { %1765 = vmatpush1.bf16.msra.mxu0 %v1764_v60  ;;  %954 = vmatmul.mubr.f32.vlgmr.msra.gmra.mrb[0].mxu1 %v853_v6  ;;  %v1916_v60 = vpack.c.bf16 %v1555_v51, %v1553_v50  ;;  %v1430_v6 = vld [vmem:[%s3196_s7 + $0x2a8] sm:$0xff] }
 0x125   :  { %1767 = vmatprep.subr.bf16.mxu0 %v1766_v61  ;;  %1901 = vmatpush1.bf16.msra.mxu1 %v1900_v0  ;;  %v1918_v61 = vpack.c.bf16 %v1560_v53, %v1558_v34  ;;  %v1784_v0 = vpack.c.bf16 %v1423_v56, %v1421_v55  ;;  %v1790_v16 = vpack.c.bf16 %v1432_v7, %v1430_v6  ;;  %v1575_v34 = vld [vmem:[%s3196_s7 + $0x730] sm:$0xff]  ;;  %v1578_v55 = vld [vmem:[%s3196_s7 + $0x748] sm:$0xff]  ;;  %v1580_v56 = vld [vmem:[%s3196_s7 + $0x758] sm:$0xff] }
 0x126   :  { %959 = vmatprep.mubr.f32.mxu1 %v2054_v46  ;;  %1903 = vmatprep.subr.bf16.mxu1 %v1902_v4  ;;  %v1425_v4 = vld [vmem:[%s3196_s7 + $0x280] sm:$0xff]  ;;  %v1800_v53 = vpack.c.bf16 %v1439_v47, %v1437_v45  ;;  %v1938_v63 = vpack.c.bf16 %v1580_v56, %v1578_v55  ;;  %v1464_v55 = vld [vmem:[%s3196_s7 + $0x3b8] sm:$0xff] }
 0x127   :  { %v1788_v13 = vpack.c.bf16 %v1427_v5, %v1425_v4  ;;  %v1582_v4 = vld [vmem:[%s3196_s7 + $0x768] sm:$0xff]  ;;  %v1584_v5 = vld [vmem:[%s3196_s7 + $0x778] sm:$0xff]  ;;  %v1445_v7 = vld [vmem:[%s3196_s7 + $0x320] sm:$0xff] }
 0x128   :  { %1769 = vmatpush1.bf16.msra.mxu0 %v1768_v10  ;;  %960 = vmatmul.mubr.f32.gmra.mrb[2].mxu1 %v854_v18  ;;  %v1922_v10 = vpack.c.bf16 %v1564_v2, %v1562_v1  ;;  %v1431_v18 = vld [vmem:[%s3196_s7 + $0x2b0] sm:$0xff]  ;;  %v1804_v2 = vpack.c.bf16 %v1443_v59, %v1441_v58  ;;  %v1589_v47 = vld [vmem:[%s3196_s7 + $0x7a0] sm:$0xff] }
 0x129   :  { %1771 = vmatprep.subr.bf16.mxu0 %v1770_v11  ;;  %1905 = vmatpush1.bf16.msra.mxu1 %v1904_v14  ;;  %v1561_v11 = vld [vmem:[%s3196_s7 + $0x6c0] sm:$0xff]  ;;  %v1566_v14 = vld [vmem:[%s3196_s7 + $0x6e8] sm:$0xff]  ;;  %v1579_v1 = vld [vmem:[%s3196_s7 + $0x750] sm:$0xff] }
 0x12a   :  { %965 = vmatprep.mubr.f32.mxu1 %v2054_v46  ;;  %1907 = vmatprep.subr.bf16.mxu1 %v1906_v17  ;;  %v1429_v17 = vld [vmem:[%s3196_s7 + $0x2a0] sm:$0xff]  ;;  %v1926_v22 = vpack.c.bf16 %v1568_v15, %v1566_v14  ;;  %v980_v14 = vld [vmem:[#allocation2 + $0x1a] sm:$0x3]  ;;  %v1942_v15 = vpack.c.bf16 %v1584_v5, %v1582_v4  ;;  %v1595_v59 = vld [vmem:[%s3196_s7 + $0x7d0] sm:$0xff] }
 0x12b   :  { %460 = vmatmul.mubr.f32.vlgmr.msra.gmra.mrb[6].mxu0 %v241_v28  ;;  %v1792_v25 = vpack.c.bf16 %v1431_v18, %v1429_v17  ;;  %v1572_v28 = vld [vmem:[%s3196_s7 + $0x718] sm:$0xff]  ;;  %v1583_v17 = vld [vmem:[%s3196_s7 + $0x770] sm:$0xff]  ;;  %v1593_v58 = vld [vmem:[%s3196_s7 + $0x7c0] sm:$0xff] }
 0x12c   :  { %1773 = vmatpush1.bf16.msra.mxu0 %v1772_v21  ;;  %465 = vmatprep.mubr.f32.mxu0 %v2054_v46  ;;  %v1924_v21 = vpack.c.bf16 %v1563_v12, %v1561_v11  ;;  %v478_v11 = vld [vmem:[#allocation2 + $0x6] sm:$0xff]  ;;  %v1452_v12 = vld [vmem:[%s3196_s7 + $0x358] sm:$0xff]  ;;  %v1956_v4 = vpack.c.bf16 %v1595_v59, %v1593_v58  ;;  %v1619_v58 = vld [vmem:[%s3196_s7 + $0x890] sm:$0xff] }
 0x12d   :  { %1775 = vmatprep.subr.bf16.mxu0 %v1774_v24  ;;  %966 = vmatmul.mubr.f32.gmra.mrb[4].mxu1 %v855_v39  ;;  %v1567_v24 = vld [vmem:[%s3196_s7 + $0x6f0] sm:$0xff]  ;;  %v1569_v39 = vld [vmem:[%s3196_s7 + $0x700] sm:$0xff]  ;;  %v1622_v59 = vld [vmem:[%s3196_s7 + $0x8a8] sm:$0xff] }
 0x12e   :  { %1909 = vmatpush1.bf16.msra.mxu1 %v1908_v31  ;;  %1078 = vmatprep.mubr.f32.mxu1 %v2054_v46  ;;  %v1435_v31 = vld [vmem:[%s3196_s7 + $0x2d0] sm:$0xff]  ;;  %v1928_v36 = vpack.c.bf16 %v1567_v24, %v1565_v23  ;;  %v1932_v50 = vpack.c.bf16 %v1571_v40, %v1569_v39  ;;  %v1453_v39 = vld [vmem:[%s3196_s7 + $0x360] sm:$0xff] }
 0x12f   :  { %466 = vmatmul.mubr.f32.gmra.mrb[8].mxu0 %v2745_v44  ;;  %1911 = vmatprep.subr.bf16.mxu1 %v1910_v32  ;;  %v1438_v32 = vld [vmem:[%s3196_s7 + $0x2e8] sm:$0xff]  ;;  %v1796_v41 = vpack.c.bf16 %v1435_v31, %v1433_v30  ;;  %v1451_v23 = vld [vmem:[%s3196_s7 + $0x350] sm:$0xff]  ;;  %v1585_v30 = vld [vmem:[%s3196_s7 + $0x780] sm:$0xff] }
 0x130   :  { %1777 = vmatpush1.bf16.msra.mxu0 %v1776_v38  ;;  %471 = vmatprep.mubr.f32.mxu0 %v2054_v46  ;;  %v1930_v38 = vpack.c.bf16 %v1572_v28, %v1570_v26  ;;  %v1798_v43 = vpack.c.bf16 %v1440_v35, %v1438_v32  ;;  %v479_v24 = vld [vmem:[#allocation2 + $0xe] sm:$0xff]  ;;  %v1456_v26 = vld [vmem:[%s3196_s7 + $0x378] sm:$0xff] }
 0x131   :  { %1779 = vmatprep.subr.bf16.mxu0 %v1778_v33  ;;  %v1574_v33 = vld [vmem:[%s3196_s7 + $0x728] sm:$0xff]  ;;  %v1587_v31 = vld [vmem:[%s3196_s7 + $0x790] sm:$0xff] }
 0x132   :  { %1913 = vmatpush1.bf16.msra.mxu1 %v1912_v48  ;;  %v1442_v48 = vld [vmem:[%s3196_s7 + $0x308] sm:$0xff]  ;;  %v1934_v51 = vpack.c.bf16 %v1576_v42, %v1574_v33  ;;  %v1455_v40 = vld [vmem:[%s3196_s7 + $0x370] sm:$0xff]  ;;  %v1460_v42 = vld [vmem:[%s3196_s7 + $0x398] sm:$0xff] }
 0x133   :  { %472 = vmatmul.mubr.f32.gmra.mrb[10].mxu0 %v243_v57  ;;  %1915 = vmatprep.subr.bf16.mxu1 %v1914_v49  ;;  %v1444_v49 = vld [vmem:[%s3196_s7 + $0x318] sm:$0xff]  ;;  %v1590_v35 = vld [vmem:[%s3196_s7 + $0x7a8] sm:$0xff] }
 0x134   :  { %1781 = vmatpush1.bf16.msra.mxu0 %v1780_v52  ;;  %578 = vmatprep.mubr.f32.mxu0 %v2054_v46  ;;  %v1573_v52 = vld [vmem:[%s3196_s7 + $0x720] sm:$0xff]  ;;  %v1802_v57 = vpack.c.bf16 %v1444_v49, %v1442_v48  ;;  %v1458_v33 = vld [vmem:[%s3196_s7 + $0x388] sm:$0xff]  ;;  %v1591_v48 = vld [vmem:[%s3196_s7 + $0x7b0] sm:$0xff]  ;;  %v1816_v49 = vpack.c.bf16 %v1455_v40, %v1453_v39 }
 0x135   :  { %1783 = vmatprep.subr.bf16.mxu0 %v1782_v54  ;;  %v978_v54 = vld [vmem:[#allocation2 + $0xa] sm:$0xff]  ;;  %v1936_v62 = vpack.c.bf16 %v1575_v34, %v1573_v52  ;;  %v1818_v52 = vpack.c.bf16 %v1460_v42, %v1458_v33  ;;  %v1457_v34 = vld [vmem:[%s3196_s7 + $0x380] sm:$0xff]  ;;  %v1952_v56 = vpack.c.bf16 %v1591_v48, %v1589_v47  ;;  %v1104_v42 = vld [vmem:[#allocation2 + $0x13] sm:$0xff] }
 0x136   :  { %1917 = vmatpush1.bf16.msra.mxu1 %v1916_v60  ;;  %v1446_v60 = vld [vmem:[%s3196_s7 + $0x328] sm:$0xff]  ;;  %v1611_v33 = vld [vmem:[%s3196_s7 + $0x850] sm:$0xff]  ;;  %v2046_v48 = vld [vmem:[#allocation2] sm:$0xff] }
 0x137   :  { %1919 = vmatprep.subr.bf16.mxu1 %v1918_v61  ;;  %v1448_v61 = vld [vmem:[%s3196_s7 + $0x338] sm:$0xff] }
 0x138   :  { %1785 = vmatpush1.bf16.msra.mxu0 %v1784_v0  ;;  %v1577_v0 = vld [vmem:[%s3196_s7 + $0x740] sm:$0xff]  ;;  %v1806_v6 = vpack.c.bf16 %v1448_v61, %v1446_v60  ;;  %v1598_v61 = vld [vmem:[%s3196_s7 + $0x7e8] sm:$0xff] }
 0x139   :  { %1787 = vmatprep.subr.bf16.mxu0 %v1786_v3  ;;  %v979_v3 = vld [vmem:[#allocation2 + $0x12] sm:$0xff] }
 0x13a   :  { %1921 = vmatpush1.bf16.msra.mxu1 %v1920_v8  ;;  %v1447_v8 = vld [vmem:[%s3196_s7 + $0x330] sm:$0xff] }
 0x13b   :  { %1923 = vmatprep.subr.bf16.mxu1 %v1922_v10  ;;  %v1450_v10 = vld [vmem:[%s3196_s7 + $0x348] sm:$0xff]  ;;  %v1808_v18 = vpack.c.bf16 %v1447_v8, %v1445_v7  ;;  %v1599_v7 = vld [vmem:[%s3196_s7 + $0x7f0] sm:$0xff] }
 0x13c   :  { %1789 = vmatpush1.bf16.msra.mxu0 %v1788_v13  ;;  %v1940_v13 = vpack.c.bf16 %v1579_v1, %v1577_v0  ;;  %v1461_v0 = vld [vmem:[%s3196_s7 + $0x3a0] sm:$0xff]  ;;  %v1463_v1 = vld [vmem:[%s3196_s7 + $0x3b0] sm:$0xff] }
 0x13d   :  { %1791 = vmatprep.subr.bf16.mxu0 %v1790_v16  ;;  %v1581_v16 = vld [vmem:[%s3196_s7 + $0x760] sm:$0xff]  ;;  %v1824_v8 = vpack.c.bf16 %v1463_v1, %v1461_v0  ;;  %v1623_v1 = vld [vmem:[%s3196_s7 + $0x8b0] sm:$0xff] }
 0x13e   :  { %1925 = vmatpush1.bf16.msra.mxu1 %v1924_v21  ;;  %v1810_v21 = vpack.c.bf16 %v1452_v12, %v1450_v10  ;;  %v1944_v28 = vpack.c.bf16 %v1583_v17, %v1581_v16  ;;  %v1602_v10 = vld [vmem:[%s3196_s7 + $0x808] sm:$0xff]  ;;  %v1472_v16 = vld [vmem:[%s3196_s7 + $0x3f8] sm:$0xff]  ;;  %v1621_v0 = vld [vmem:[%s3196_s7 + $0x8a0] sm:$0xff] }
 0x13f   :  { %1927 = vmatprep.subr.bf16.mxu1 %v1926_v22  ;;  %v1449_v22 = vld [vmem:[%s3196_s7 + $0x340] sm:$0xff] }
 0x140   :  { %1793 = vmatpush1.bf16.msra.mxu0 %v1792_v25  ;;  %v1454_v25 = vld [vmem:[%s3196_s7 + $0x368] sm:$0xff]  ;;  %v1812_v32 = vpack.c.bf16 %v1451_v23, %v1449_v22  ;;  %v1608_v23 = vld [vmem:[%s3196_s7 + $0x838] sm:$0xff] }
 0x141   :  { %1795 = vmatprep.subr.bf16.mxu0 %v1794_v29  ;;  %v1946_v29 = vpack.c.bf16 %v1588_v20, %v1586_v19  ;;  %v1601_v19 = vld [vmem:[%s3196_s7 + $0x800] sm:$0xff]  ;;  %v1603_v20 = vld [vmem:[%s3196_s7 + $0x810] sm:$0xff]  ;;  %v1606_v22 = vld [vmem:[%s3196_s7 + $0x828] sm:$0xff] }
 0x142   :  { %1929 = vmatpush1.bf16.msra.mxu1 %v1928_v36  ;;  %v1592_v36 = vld [vmem:[%s3196_s7 + $0x7b8] sm:$0xff] }
 0x143   :  { %1931 = vmatprep.subr.bf16.mxu1 %v1930_v38  ;;  %v1814_v38 = vpack.c.bf16 %v1456_v26, %v1454_v25  ;;  %v1950_v45 = vpack.c.bf16 %v1592_v36, %v1590_v35  ;;  %v1469_v25 = vld [vmem:[%s3196_s7 + $0x3e0] sm:$0xff]  ;;  %v1471_v26 = vld [vmem:[%s3196_s7 + $0x3f0] sm:$0xff]  ;;  %v1610_v36 = vld [vmem:[%s3196_s7 + $0x848] sm:$0xff] }
 0x144   :  { %1797 = vmatpush1.bf16.msra.mxu0 %v1796_v41  ;;  %v480_v41 = vld [vmem:[#allocation2 + $0x16] sm:$0x3]  ;;  %v1103_v35 = vld [vmem:[#allocation2 + $0xb] sm:$0xff] }
 0x145   :  { %1799 = vmatprep.subr.bf16.mxu0 %v1798_v43  ;;  %1079 = vmatmul.mubr.f32.vlgmr.msra.gmra.mrb[0].mxu1 %v978_v54  ;;  %v1948_v43 = vpack.c.bf16 %v1587_v31, %v1585_v30  ;;  %v1462_v54 = vld [vmem:[%s3196_s7 + $0x3a8] sm:$0xff]  ;;  %v1605_v30 = vld [vmem:[%s3196_s7 + $0x820] sm:$0xff]  ;;  %v1607_v31 = vld [vmem:[%s3196_s7 + $0x830] sm:$0xff] }
 0x146   :  { %1933 = vmatpush1.bf16.msra.mxu1 %v1932_v50  ;;  %1084 = vmatprep.mubr.f32.mxu1 %v2054_v46  ;;  %v1594_v50 = vld [vmem:[%s3196_s7 + $0x7c8] sm:$0xff]  ;;  %v1968_v39 = vpack.c.bf16 %v1607_v31, %v1605_v30  ;;  %v2047_v31 = vld [vmem:[%s3192_s0] sm:$0xff] }
 0x147   :  { %1935 = vmatprep.subr.bf16.mxu1 %v1934_v51  ;;  %v1596_v51 = vld [vmem:[%s3196_s7 + $0x7d8] sm:$0xff] }
 0x148   :  { %1801 = vmatpush1.bf16.msra.mxu0 %v1800_v53  ;;  %v1459_v53 = vld [vmem:[%s3196_s7 + $0x390] sm:$0xff] }
 0x149   :  { %1803 = vmatprep.subr.bf16.mxu0 %v1802_v57  ;;  %1085 = vmatmul.mubr.f32.gmra.mrb[2].mxu1 %v979_v3  ;;  %v1954_v57 = vpack.c.bf16 %v1596_v51, %v1594_v50  ;;  %v1820_v60 = vpack.c.bf16 %v1459_v53, %v1457_v34  ;;  %v1468_v3 = vld [vmem:[%s3196_s7 + $0x3d8] sm:$0xff]  ;;  %v1613_v51 = vld [vmem:[%s3196_s7 + $0x860] sm:$0xff]  ;;  %v1618_v34 = vld [vmem:[%s3196_s7 + $0x888] sm:$0xff] }
 0x14a   :  { %1937 = vmatpush1.bf16.msra.mxu1 %v1936_v62  ;;  %1090 = vmatprep.mubr.f32.mxu1 %v2054_v46  ;;  %v1600_v62 = vld [vmem:[%s3196_s7 + $0x7f8] sm:$0xff] }
 0x14b   :  { %579 = vmatmul.mubr.f32.vlgmr.msra.gmra.mrb[6].mxu0 %v478_v11  ;;  %1939 = vmatprep.subr.bf16.mxu1 %v1938_v63  ;;  %v1822_v63 = vpack.c.bf16 %v1464_v55, %v1462_v54  ;;  %v1958_v5 = vpack.c.bf16 %v1600_v62, %v1598_v61  ;;  %v1604_v11 = vld [vmem:[%s3196_s7 + $0x818] sm:$0xff]  ;;  %v604_v54 = vld [vmem:[#allocation2 + $0xf] sm:$0xff] }
 0x14c   :  { %1805 = vmatpush1.bf16.msra.mxu0 %v1804_v2  ;;  %584 = vmatprep.mubr.f32.mxu0 %v2054_v46  ;;  %v1466_v2 = vld [vmem:[%s3196_s7 + $0x3c8] sm:$0xff]  ;;  %v1620_v53 = vld [vmem:[%s3196_s7 + $0x898] sm:$0xff] }
 0x14d   :  { %1807 = vmatprep.subr.bf16.mxu0 %v1806_v6  ;;  %1091 = vmatmul.mubr.f32.gmra.mrb[4].mxu1 %v980_v14  ;;  %v1597_v6 = vld [vmem:[%s3196_s7 + $0x7e0] sm:$0xff]  ;;  %v1826_v12 = vpack.c.bf16 %v1468_v3, %v1466_v2  ;;  %v1467_v14 = vld [vmem:[%s3196_s7 + $0x3d0] sm:$0xff]  ;;  %v1626_v2 = vld [vmem:[%s3196_s7 + $0x8c8] sm:$0xff] }
 0x14e   :  { %1941 = vmatpush1.bf16.msra.mxu1 %v1940_v13  ;;  %1203 = vmatprep.mubr.f32.mxu1 %v2054_v46  ;;  %v1465_v13 = vld [vmem:[%s3196_s7 + $0x3c0] sm:$0xff]  ;;  %v1960_v17 = vpack.c.bf16 %v1599_v7, %v1597_v6  ;;  %v605_v61 = vld [vmem:[#allocation2 + $0x17] sm:$0x3] }
 0x14f   :  { %585 = vmatmul.mubr.f32.gmra.mrb[8].mxu0 %v479_v24  ;;  %1943 = vmatprep.subr.bf16.mxu1 %v1942_v15  ;;  %v1470_v15 = vld [vmem:[%s3196_s7 + $0x3e8] sm:$0xff]  ;;  %v1628_v3 = vld [vmem:[%s3196_s7 + $0x8d8] sm:$0xff]  ;;  %v1625_v6 = vld [vmem:[%s3196_s7 + $0x8c0] sm:$0xff] }
 0x150   :  { %1809 = vmatpush1.bf16.msra.mxu0 %v1808_v18  ;;  %590 = vmatprep.mubr.f32.mxu0 %v2054_v46  ;;  %v1962_v18 = vpack.c.bf16 %v1604_v11, %v1602_v10  ;;  %v1830_v24 = vpack.c.bf16 %v1472_v16, %v1470_v15  ;;  %v1627_v7 = vld [vmem:[%s3196_s7 + $0x8d0] sm:$0xff]  ;;  %v1632_v10 = vld [vmem:[%s3196_s7 + $0x8f8] sm:$0xff] }
 0x151   :  { %1811 = vmatprep.subr.bf16.mxu0 %v1810_v21  ;;  %v1828_v21 = vpack.c.bf16 %v1467_v14, %v1465_v13  ;;  %v1988_v11 = vpack.c.bf16 %v1627_v7, %v1625_v6  ;;  %v1629_v13 = vld [vmem:[%s3196_s7 + $0x8e0] sm:$0xff]  ;;  %v1631_v14 = vld [vmem:[%s3196_s7 + $0x8f0] sm:$0xff] }
 0x152   :  { %1945 = vmatpush1.bf16.msra.mxu1 %v1944_v28  ;;  %v1964_v28 = vpack.c.bf16 %v1603_v20, %v1601_v19  ;;  %v1992_v15 = vpack.c.bf16 %v1631_v14, %v1629_v13  ;;  %v1229_v16 = vld [vmem:[#allocation2 + $0x14] sm:$0xff] }
 0x153   :  { %591 = vmatmul.mubr.f32.gmra.mrb[10].mxu0 %v480_v41  ;;  %1947 = vmatprep.subr.bf16.mxu1 %v1946_v29  ;;  %v1966_v29 = vpack.c.bf16 %v1608_v23, %v1606_v22  ;;  %v1609_v41 = vld [vmem:[%s3196_s7 + $0x840] sm:$0xff] }
 0x154   :  { %1813 = vmatpush1.bf16.msra.mxu0 %v1812_v32  ;;  %703 = vmatprep.mubr.f32.mxu0 %v2054_v46  ;;  %v1832_v32 = vpack.c.bf16 %v1471_v26, %v1469_v25  ;;  %v1972_v47 = vpack.c.bf16 %v1611_v33, %v1609_v41 }
 0x155   :  { %1815 = vmatprep.subr.bf16.mxu0 %v1814_v38  ;;  %v1612_v38 = vld [vmem:[%s3196_s7 + $0x858] sm:$0xff] }
 0x156   :  { %1949 = vmatpush1.bf16.msra.mxu1 %v1948_v43  ;;  %v1970_v40 = vpack.c.bf16 %v1612_v38, %v1610_v36  ;;  %v1614_v43 = vld [vmem:[%s3196_s7 + $0x868] sm:$0xff] }
 0x157   :  { %1951 = vmatprep.subr.bf16.mxu1 %v1950_v45  ;;  %v603_v45 = vld [vmem:[#allocation2 + $0x7] sm:$0xff] }
 0x158   :  { %1817 = vmatpush1.bf16.msra.mxu0 %v1816_v49  ;;  %v1105_v49 = vld [vmem:[#allocation2 + $0x1b] sm:$0x3]  ;;  %v2048_v38 = vld [vmem:[%s3192_s0 + $0x8] sm:$0xff] }
 0x159   :  { %1819 = vmatprep.subr.bf16.mxu0 %v1818_v52  ;;  %v1615_v52 = vld [vmem:[%s3196_s7 + $0x870] sm:$0xff] }
 0x15a   :  { %1953 = vmatpush1.bf16.msra.mxu1 %v1952_v56  ;;  %v1976_v55 = vpack.c.bf16 %v1615_v52, %v1613_v51  ;;  %v1978_v56 = vpack.c.bf16 %v1620_v53, %v1618_v34 }
 0x15b   :  { %1955 = vmatprep.subr.bf16.mxu1 %v1954_v57  ;;  %v1617_v57 = vld [vmem:[%s3196_s7 + $0x880] sm:$0xff] }
 0x15c   :  { %1821 = vmatpush1.bf16.msra.mxu0 %v1820_v60  ;;  %v1624_v60 = vld [vmem:[%s3196_s7 + $0x8b8] sm:$0xff]  ;;  %v1980_v62 = vpack.c.bf16 %v1619_v58, %v1617_v57 }
 0x15d   :  { %1823 = vmatprep.subr.bf16.mxu0 %v1822_v63  ;;  %v1982_v63 = vpack.c.bf16 %v1624_v60, %v1622_v59 }
 0x15e   :  { %1957 = vmatpush1.bf16.msra.mxu1 %v1956_v4  ;;  %v1984_v4 = vpack.c.bf16 %v1623_v1, %v1621_v0 }
 0x15f   :  { %1959 = vmatprep.subr.bf16.mxu1 %v1958_v5  ;;  %v1986_v5 = vpack.c.bf16 %v1628_v3, %v1626_v2 }
 0x160   :  { %1825 = vmatpush1.bf16.msra.mxu0 %v1824_v8  ;;  %v1630_v8 = vld [vmem:[%s3196_s7 + $0x8e8] sm:$0xff] }
 0x161   :  { %1827 = vmatprep.subr.bf16.mxu0 %v1826_v12  ;;  %v1990_v12 = vpack.c.bf16 %v1632_v10, %v1630_v8 }
 0x162   :  { %1961 = vmatpush1.bf16.msra.mxu1 %v1960_v17  ;;  %v1230_v17 = vld [vmem:[#allocation2 + $0x1c] sm:$0x3] }
 0x163   :  { %1963 = vmatprep.subr.bf16.mxu1 %v1962_v18 }
 0x164   :  { %1829 = vmatpush1.bf16.msra.mxu0 %v1828_v21 }
 0x165   :  { %1831 = vmatprep.subr.bf16.mxu0 %v1830_v24  ;;  %1204 = vmatmul.mubr.f32.vlgmr.msra.gmra.mrb[0].mxu1 %v1103_v35 }
 0x166   :  { %1965 = vmatpush1.bf16.msra.mxu1 %v1964_v28  ;;  %1209 = vmatprep.mubr.f32.mxu1 %v2054_v46  ;;  %v1616_v46 = vld [vmem:[%s3196_s7 + $0x878] sm:$0xff] }
 0x167   :  { %1967 = vmatprep.subr.bf16.mxu1 %v1966_v29  ;;  %v1974_v50 = vpack.c.bf16 %v1616_v46, %v1614_v43 }
 0x168   :  { %1833 = vmatpush1.bf16.msra.mxu0 %v1832_v32 }
 0x169   :  { %1210 = vmatmul.mubr.f32.gmra.mrb[2].mxu1 %v1104_v42 }
 0x16a   :  { %1969 = vmatpush1.bf16.msra.mxu1 %v1968_v39  ;;  %1215 = vmatprep.mubr.f32.mxu1 %v2046_v48 }
 0x16b   :  { %704 = vmatmul.mubr.f32.vlgmr.msra.gmra.mrb[6].mxu0 %v603_v45  ;;  %1971 = vmatprep.subr.bf16.mxu1 %v1970_v40 }
 0x16c   :  { %709 = vmatprep.mubr.f32.mxu0 %v2046_v48 }
 0x16d   :  { %1216 = vmatmul.mubr.f32.gmra.mrb[4].mxu1 %v1105_v49 }
 0x16e   :  { %1973 = vmatpush1.bf16.msra.mxu1 %v1972_v47  ;;  %1328 = vmatprep.mubr.f32.mxu1 %v2046_v48 }
 0x16f   :  { %710 = vmatmul.mubr.f32.gmra.mrb[8].mxu0 %v604_v54  ;;  %1975 = vmatprep.subr.bf16.mxu1 %v1974_v50 }
 0x170   :  { %715 = vmatprep.mubr.f32.mxu0 %v2046_v48 }
 0x172   :  { %1977 = vmatpush1.bf16.msra.mxu1 %v1976_v55 }
 0x173   :  { %716 = vmatmul.mubr.f32.gmra.mrb[10].mxu0 %v605_v61  ;;  %1979 = vmatprep.subr.bf16.mxu1 %v1978_v56 }
 0x176   :  { %1981 = vmatpush1.bf16.msra.mxu1 %v1980_v62 }
 0x177   :  { %1983 = vmatprep.subr.bf16.mxu1 %v1982_v63 }
 0x17a   :  { %1985 = vmatpush1.bf16.msra.mxu1 %v1984_v4 }
 0x17b   :  { %1987 = vmatprep.subr.bf16.mxu1 %v1986_v5 }
 0x17e   :  { %1989 = vmatpush1.bf16.msra.mxu1 %v1988_v11 }
 0x17f   :  { %1991 = vmatprep.subr.bf16.mxu1 %v1990_v12 }
 0x182   :  { %1993 = vmatpush1.bf16.msra.mxu1 %v1992_v15 }
 0x185   :  { %1329 = vmatmul.mubr.f32.vlgmr.msra.gmra.mrb[0].mxu1 %v2745_v44 }
 0x186   :  { %1334 = vmatprep.mubr.f32.mxu1 %v2046_v48 }
 0x189   :  { %1335 = vmatmul.mubr.f32.gmra.mrb[2].mxu1 %v1229_v16 }
 0x18a   :  { %1340 = vmatprep.mubr.f32.mxu1 %v2046_v48 }
 0x18d   :  { %1341 = vmatmul.mubr.f32.gmra.mrb[4].mxu1 %v1230_v17 }
 0x23e   :  { %v705_v18 = vpop.f32.mrb[6].mxu0 }
 0x23f   :  { %v707_v19 = vpop.f32.mrb[7].mxu0 }
 0x242   :  { %v711_v20 = vpop.f32.mrb[8].mxu0 }
 0x243   :  { %v713_v21 = vpop.f32.mrb[9].mxu0 }
 0x246   :  { %v717_v22 = vpop.f32.mrb[10].mxu0 }
 0x247   :  { %v719_v23 = vpop.f32.mrb[11].mxu0 }
 0x258   :  { %v1330_v24 = vpop.f32.mrb[0].mxu1 }
 0x259   :  { %v1994_v25 = vadd.f32 %v1330_v24, %v705_v18  ;;  %v1332_v26 = vpop.f32.mrb[1].mxu1 }
 0x25a   :  { %v1995_v28 = vadd.f32 %v1332_v26, %v707_v19 }
 0x25b   :  { %v1353_v29 = vmul.f32 %v1994_v25, %v2463_v9 }
 0x25c   :  { %v1354_v44 = vmul.f32 %v1995_v28, %v2463_v9  ;;  %v1336_v30 = vpop.f32.mrb[2].mxu1 }
 0x25d   :  { %v1359_v32 = vadd.f32 %v2047_v31, %v1353_v29  ;;  %v1996_v35 = vadd.f32 %v1336_v30, %v711_v20  ;;  %v1338_v36 = vpop.f32.mrb[3].mxu1 }
 0x25e   :  { %v1360_v39 = vadd.f32 %v2048_v38, %v1354_v44  ;;  %v1997_v40 = vadd.f32 %v1338_v36, %v713_v21 }
 0x25f   :  { %1365 = vst [vmem:[%s3199_s8] sm:$0xff] %v1359_v32  ;;  %v1355_v9 = vmul.f32 %v1996_v35, %v2484_v27 }
 0x260   :  { %1366 = vst [vmem:[%s3199_s8 + $0x8] sm:$0xff] %v1360_v39  ;;  %v1356_v41 = vmul.f32 %v1997_v40, %v2484_v27  ;;  %v1342_v33 = vpop.f32.mrb[4].mxu1 }
 0x261   :  { %v1998_v46 = vadd.f32 %v1342_v33, %v717_v22  ;;  %v1344_v45 = vpop.f32.mrb[5].mxu1 }
 0x262   :  { %v1999_v49 = vadd.f32 %v1344_v45, %v719_v23 }
 0x263   :  { %v1357_v27 = vmul.f32 %v1998_v46, %v2497_v37 }
 0x264   :  { %v1358_v50 = vmul.f32 %v1999_v49, %v2497_v37 }
 0x267   :  { %v2049_v42 = vld [vmem:[%s3192_s0 + $0x10] sm:$0xff]  ;;  %v2050_v47 = vld [vmem:[%s3192_s0 + $0x18] sm:$0xff] }
 0x268   :  { %v1361_v43 = vadd.f32 %v2049_v42, %v1355_v9  ;;  %v1362_v48 = vadd.f32 %v2050_v47, %v1356_v41 }
 0x26a   :  { %1367 = vst [vmem:[%s3199_s8 + $0x10] sm:$0xff] %v1361_v43  ;;  %1368 = vst [vmem:[%s3199_s8 + $0x18] sm:$0xff] %v1362_v48 }
 0x271   :  { %v2051_v51 = vld [vmem:[%s3192_s0 + $0x20] sm:$0x3]  ;;  %v2052_v34 = vld [vmem:[%s3192_s0 + $0x28] sm:$0x3] }
 0x272   :  { %v1363_v52 = vadd.f32 %v2051_v51, %v1357_v27  ;;  %v1364_v53 = vadd.f32 %v2052_v34, %v1358_v50 }
 0x274   :  { %1369 = vst [vmem:[%s3199_s8 + $0x20] sm:$0x3] %v1363_v52  ;;  %1370 = vst [vmem:[%s3199_s8 + $0x28] sm:$0x3] %v1364_v53 }

</bundles_post_ra>
